<compile_context>
chip_gen: v7x
topology: tpu7x:2x2x1
jax: 0.10.0
libtpu: 0.0.40
codegen_flags: <defaults>
</compile_context>

<pallas_src>
import functools

import numpy as np
import jax
import jax.numpy as jnp
from jax.experimental import pallas as pl
from jax.experimental.pallas import tpu as pltpu


# ----------------------------- config ---------------------------------------
class Config:
    conv3d_dense_layers = [64]
    conv3d_latent_dim = 64
    conv3d_tuple_layers = [(16, (3, 3, 3), (2, 2, 2)),
                           (8, (3, 3, 3), (2, 2, 2))]
    conv3d_use_upsample = True
    use_instance_norm = False
    use_layer_norm = False
    use_instance_affine = False
    use_layer_affine = False
    weight_sigma = 0.25
    # config.activation in the reference module; ReLU realized here.
    activation = staticmethod(jax.nn.relu)


# ------------------------ in-kernel building blocks --------------------------
def _up_pad(x, axis, factor, pad):
    """Nearest-neighbour upsample by `factor` along `axis` followed by zero
    padding of `pad` on both sides.  Built purely from static slices +
    concatenate (no strided stores, no lane-dim reshapes)."""
    zshape = list(x.shape)
    zshape[axis] = 1
    zero = jnp.zeros(zshape, x.dtype)
    pieces = [zero] * pad
    for i in range(x.shape[axis]):
        sl = [slice(None)] * x.ndim
        sl[axis] = slice(i, i + 1)
        piece = x[tuple(sl)]
        pieces.extend([piece] * factor)
    pieces.extend([zero] * pad)
    return jnp.concatenate(pieces, axis=axis)


def _upsample_conv_relu(x, w_r, b_row, K, stride):
    """NearestUpsample3D(stride) + Conv3d(K,'same') + bias + ReLU (channels-last).

    x:     (D, H, W, Cin)
    w_r:   (K*K*K*Cin, Cout)   rows ordered (kd, kh, kw, cin)
    b_row: (1, Cout)
    out:   (D*sd, H*sh, W*sw, Cout)
    """
    D, H, W, Cin = x.shape
    pad = K // 2
    xp = x
    for ax in range(3):
        xp = _up_pad(xp, ax, stride[ax], pad)       # upsampled + zero padded
    Do, Ho, Wo = D * stride[0], H * stride[1], W * stride[2]

    # im2col: one deep-contraction MXU matmul (depth K^3*Cin) instead of K^3
    # shallow (depth Cin) dots + f32 accumulate adds.
    cols = []
    for kd in range(K):
        for kh in range(K):
            for kw in range(K):
                tap = xp[kd:kd + Do, kh:kh + Ho, kw:kw + Wo, :]
                cols.append(tap.reshape(Do * Ho * Wo, Cin))
    slab = jnp.concatenate(cols, axis=-1)           # (N, K^3*Cin)  lane-dense K

    y = jnp.dot(slab, w_r, preferred_element_type=jnp.float32) + b_row
    y = jnp.maximum(y, 0.0)                         # ReLU
    return y.reshape(Do, Ho, Wo, w_r.shape[-1])


def _fused_decoder_kernel(codes_ref, *rest, n_dense, conv_cfgs, c0, low_res,
                          crop_lo, out_spatial, out_dim):
    """Entire decoder for one batch element, fully VMEM resident."""
    out_ref = rest[-1]
    prefs = rest[:-1]
    pi = 0

    # ---- dense MLP (activation after every dense layer) ----
    x = codes_ref[0]                                 # (1, Din)
    for _ in range(n_dense):
        w = prefs[pi][...]
        b = prefs[pi + 1][...]
        pi += 2
        x = jnp.maximum(
            jnp.dot(x, w, preferred_element_type=jnp.float32) + b, 0.0)

    # ---- (1, latent) -> (2, 2, 2, C0) channels-last volume ----
    # The last dense weight's columns were permuted in the wrapper to
    # (d, h, w, c) order, so this is a pure row re-arrangement (no transpose).
    n_vox = low_res ** 3
    rows = [x[:, s * c0:(s + 1) * c0] for s in range(n_vox)]
    v = jnp.concatenate(rows, axis=0).reshape(low_res, low_res, low_res, c0)

    # ---- [NearestUpsample3D + Conv3d('same') + ReLU] blocks ----
    for K, _cout, stride in conv_cfgs:
        w_r = prefs[pi][...]
        b_row = prefs[pi + 1][...]
        pi += 2
        v = _upsample_conv_relu(v, w_r, b_row, K, stride)

    # ---- crop first (commutes with a 1x1x1 conv), then 1x1x1 conv ----
    d0, h0, w0 = crop_lo
    od, oh, ow = out_spatial
    v = v[d0:d0 + od, h0:h0 + oh, w0:w0 + ow, :]
    flat = v.reshape(od * oh * ow, v.shape[-1])
    wl = prefs[pi][...]
    bl = prefs[pi + 1][...]
    y = jnp.dot(flat, wl, preferred_element_type=jnp.float32) + bl
    out_ref[...] = y.reshape(1, od, oh, ow, out_dim).astype(out_ref.dtype)


# ----------------------------- forward (Pallas) -------------------------------
def conv3d_forward_pallas(params, codes, spatial_shape, cfg):
    B, in_dim = codes.shape
    c0 = cfg.conv3d_latent_dim // 8
    low_res = 2

    # ---- one-time parameter packing (outside the kernel) ----
    flat_params = []
    n_dense = len(params["dense"])
    for i, (w, b) in enumerate(params["dense"]):
        if i == n_dense - 1:
            # torch .view(B, C0, 2, 2, 2) order (c,d,h,w) -> channels-last (d,h,w,c)
            perm = np.empty(cfg.conv3d_latent_dim, np.int32)
            for d in range(low_res):
                for h in range(low_res):
                    for wi in range(low_res):
                        for c in range(c0):
                            j = ((d * low_res + h) * low_res + wi) * c0 + c
                            perm[j] = ((c * low_res + d) * low_res + h) * low_res + wi
            w = w[:, perm]
            b = b[perm]
        flat_params += [w, b.reshape(1, -1)]

    conv_cfgs = []
    for (w, b, stride) in params["convs"]:
        K = int(w.shape[0])
        assert K % 2 == 1, "padding='same' realized here for odd kernels only"
        cin, cout = int(w.shape[3]), int(w.shape[4])
        flat_params += [w.reshape(K * K * K * cin, cout), b.reshape(1, -1)]
        conv_cfgs.append((K, cout, tuple(int(s) for s in stride)))

    wl, bl = params["last"]
    out_dim = int(wl.shape[1])
    flat_params += [wl, bl.reshape(1, -1)]

    # ---- static crop bounds (same formula as the torch module) ----
    full = [low_res, low_res, low_res]
    for _, _, stride in conv_cfgs:
        full = [f * s for f, s in zip(full, stride)]
    spatial_shape = tuple(int(s) for s in spatial_shape)
    crop_lo = tuple(full[a] // 2 - spatial_shape[a] // 2 for a in range(3))

    kern = functools.partial(
        _fused_decoder_kernel,
        n_dense=n_dense, conv_cfgs=tuple(conv_cfgs), c0=c0, low_res=low_res,
        crop_lo=crop_lo, out_spatial=spatial_shape, out_dim=out_dim)

    in_specs = [pl.BlockSpec((1, 1, in_dim), lambda bb: (bb, 0, 0))]
    for p in flat_params:
        in_specs.append(pl.BlockSpec(p.shape, lambda bb: (0, 0)))
    out_block = (1,) + spatial_shape + (out_dim,)

    return pl.pallas_call(
        kern,
        out_shape=jax.ShapeDtypeStruct((B,) + spatial_shape + (out_dim,),
                                       codes.dtype),
        grid=(B,),
        in_specs=in_specs,
        out_specs=pl.BlockSpec(out_block, lambda bb: (bb, 0, 0, 0, 0)),
        compiler_params=pltpu.CompilerParams(
            dimension_semantics=("parallel",)),   # v7x: shard batch over 2 TCs
    )(codes.reshape(B, 1, in_dim), *flat_params)


# ----------------------------- parameters ------------------------------------
def init_params(key, input_dim, output_dim, cfg):
    params = {"dense": [], "convs": [], "last": None}
    dims = [input_dim] + list(cfg.conv3d_dense_layers) + [cfg.conv3d_latent_dim]
    for i in range(len(dims) - 1):
        key, k = jax.random.split(key)
        w = cfg.weight_sigma * jax.random.normal(k, (dims[i], dims[i + 1]), jnp.float32)
        b = jnp.zeros((dims[i + 1],), jnp.float32)
        params["dense"].append((w, b))
    cur = cfg.conv3d_latent_dim // 8
    for layer_dim, ksz, stride in cfg.conv3d_tuple_layers:
        key, k = jax.random.split(key)
        K = ksz[0]
        w = cfg.weight_sigma * jax.random.normal(k, (K, K, K, cur, layer_dim), jnp.float32)
        b = jnp.zeros((layer_dim,), jnp.float32)
        params["convs"].append((w, b, stride))
        cur = layer_dim
    key, k = jax.random.split(key)
    wl = cfg.weight_sigma * jax.random.normal(k, (cur, output_dim), jnp.float32)
    bl = jnp.zeros((output_dim,), jnp.float32)
    params["last"] = (wl, bl)
    return params


# ----------------------------- pure-JAX reference -----------------------------
def nearest_upsample3d(x, stride):
    x = jnp.repeat(x, stride[0], axis=1)
    x = jnp.repeat(x, stride[1], axis=2)
    x = jnp.repeat(x, stride[2], axis=3)
    return x


def _crop(x, spatial_shape):
    B, D, H, W, C = x.shape
    lb = (D // 2 - spatial_shape[0] // 2,
          H // 2 - spatial_shape[1] // 2,
          W // 2 - spatial_shape[2] // 2)
    delta = (spatial_shape[0] % 2, spatial_shape[1] % 2, spatial_shape[2] % 2)
    hb = (D // 2 + spatial_shape[0] // 2 + delta[0],
          H // 2 + spatial_shape[1] // 2 + delta[1],
          W // 2 + spatial_shape[2] // 2 + delta[2])
    return x[:, lb[0]:hb[0], lb[1]:hb[1], lb[2]:hb[2], :]


def conv3d_forward_ref(params, codes, spatial_shape, cfg):
    B = codes.shape[0]
    x = codes
    for w, b in params["dense"]:
        x = jax.nn.relu(jnp.dot(x, w) + b)
    C0 = cfg.conv3d_latent_dim // 8
    x = x.reshape(B, C0, 2, 2, 2)
    x = jnp.transpose(x, (0, 2, 3, 4, 1))
    for w, b, stride in params["convs"]:
        x = nearest_upsample3d(x, stride)
        y = jax.lax.conv_general_dilated(
            x, w, window_strides=(1, 1, 1), padding="SAME",
            dimension_numbers=("NDHWC", "DHWIO", "NDHWC"))
        x = jax.nn.relu(y + b)
    wl, bl = params["last"]
    x = jnp.dot(x, wl) + bl
    return _crop(x, spatial_shape)


# ----------------------------- main -------------------------------------------
if __name__ == "__main__":
    cfg = Config()
    input_dim, output_dim = 32, 4
    batch = 2
    spatial_shape = (6, 6, 6)

    key = jax.random.PRNGKey(0)
    kp, kx = jax.random.split(key)
    params = init_params(kp, input_dim, output_dim, cfg)
    codes = jax.random.normal(kx, (batch, input_dim), jnp.float32)

    out = conv3d_forward_pallas(params, codes, spatial_shape, cfg)
    out = jax.block_until_ready(out)

    ref = jax.block_until_ready(conv3d_forward_ref(params, codes, spatial_shape, cfg))

    assert out.shape == (batch, 6, 6, 6, output_dim), out.shape
    max_err = float(jnp.max(jnp.abs(out - ref)))
    assert jnp.allclose(out, ref, rtol=5e-2, atol=5e-2), f"max_err={max_err}"
    print("KERNEL_OK")
</pallas_src>

<mosaic_0001>
module attributes {stable_mosaic.version = 11 : i64} {
  func.func @_fused_decoder_kernel(%arg0: i32, %arg1: memref<1x1x32xf32, #tpu.memory_space<vmem>>, %arg2: memref<32x64xf32, #tpu.memory_space<vmem>>, %arg3: memref<1x64xf32, #tpu.memory_space<vmem>>, %arg4: memref<64x64xf32, #tpu.memory_space<vmem>>, %arg5: memref<1x64xf32, #tpu.memory_space<vmem>>, %arg6: memref<216x16xf32, #tpu.memory_space<vmem>>, %arg7: memref<1x16xf32, #tpu.memory_space<vmem>>, %arg8: memref<432x8xf32, #tpu.memory_space<vmem>>, %arg9: memref<1x8xf32, #tpu.memory_space<vmem>>, %arg10: memref<8x4xf32, #tpu.memory_space<vmem>>, %arg11: memref<1x4xf32, #tpu.memory_space<vmem>>, %arg12: memref<1x6x6x6x4xf32, #tpu.memory_space<vmem>>) attributes {dimension_semantics = [#tpu.dimension_semantics<parallel>], iteration_bounds = array<i64: 2>, scalar_prefetch = 0 : i64, scratch_operands = 0 : i64, tpu.core_type = #tpu.core_type<tc>, window_params = [{transform_indices = @transform_0, window_bounds = array<i64: 1, 1, 32>}, {pipeline_mode = #tpu.pipeline_mode<synchronous>, transform_indices = @transform_1, window_bounds = array<i64: 32, 64>}, {pipeline_mode = #tpu.pipeline_mode<synchronous>, transform_indices = @transform_2, window_bounds = array<i64: 1, 64>}, {pipeline_mode = #tpu.pipeline_mode<synchronous>, transform_indices = @transform_3, window_bounds = array<i64: 64, 64>}, {pipeline_mode = #tpu.pipeline_mode<synchronous>, transform_indices = @transform_4, window_bounds = array<i64: 1, 64>}, {pipeline_mode = #tpu.pipeline_mode<synchronous>, transform_indices = @transform_5, window_bounds = array<i64: 216, 16>}, {pipeline_mode = #tpu.pipeline_mode<synchronous>, transform_indices = @transform_6, window_bounds = array<i64: 1, 16>}, {pipeline_mode = #tpu.pipeline_mode<synchronous>, transform_indices = @transform_7, window_bounds = array<i64: 432, 8>}, {pipeline_mode = #tpu.pipeline_mode<synchronous>, transform_indices = @transform_8, window_bounds = array<i64: 1, 8>}, {pipeline_mode = #tpu.pipeline_mode<synchronous>, transform_indices = @transform_9, window_bounds = array<i64: 8, 4>}, {pipeline_mode = #tpu.pipeline_mode<synchronous>, transform_indices = @transform_10, window_bounds = array<i64: 1, 4>}, {transform_indices = @transform_11, window_bounds = array<i64: 1, 6, 6, 6, 4>}]} {
    %c0 = arith.constant 0 : index
    %c0_0 = arith.constant 0 : index
    %c0_1 = arith.constant 0 : index
    %0 = vector.load %arg1[%c0, %c0_0, %c0_1] : memref<1x1x32xf32, #tpu.memory_space<vmem>>, vector<1x1x32xf32>
    %1 = vector.shape_cast %0 : vector<1x1x32xf32> to vector<1x32xf32>
    %c0_2 = arith.constant 0 : index
    %c0_3 = arith.constant 0 : index
    %2 = vector.load %arg2[%c0_2, %c0_3] : memref<32x64xf32, #tpu.memory_space<vmem>>, vector<32x64xf32>
    %c0_4 = arith.constant 0 : index
    %c0_5 = arith.constant 0 : index
    %3 = vector.load %arg3[%c0_4, %c0_5] : memref<1x64xf32, #tpu.memory_space<vmem>>, vector<1x64xf32>
    %cst = arith.constant dense<0.000000e+00> : vector<1x64xf32>
    %4 = tpu.matmul %1, %2, %cst {dimension_numbers = #tpu.dot_dimension_numbers<[1], [0], [0], [1], [0, 0, 1, 1], [], []>} : vector<1x32xf32>, vector<32x64xf32>, vector<1x64xf32> -> vector<1x64xf32>
    %5 = arith.addf %4, %3 : vector<1x64xf32>
    %cst_6 = arith.constant 0.000000e+00 : f32
    %6 = vector.broadcast %cst_6 : f32 to vector<1x64xf32>
    %7 = arith.maximumf %5, %6 : vector<1x64xf32>
    %c0_7 = arith.constant 0 : index
    %c0_8 = arith.constant 0 : index
    %8 = vector.load %arg4[%c0_7, %c0_8] : memref<64x64xf32, #tpu.memory_space<vmem>>, vector<64x64xf32>
    %c0_9 = arith.constant 0 : index
    %c0_10 = arith.constant 0 : index
    %9 = vector.load %arg5[%c0_9, %c0_10] : memref<1x64xf32, #tpu.memory_space<vmem>>, vector<1x64xf32>
    %cst_11 = arith.constant dense<0.000000e+00> : vector<1x64xf32>
    %10 = tpu.matmul %7, %8, %cst_11 {dimension_numbers = #tpu.dot_dimension_numbers<[1], [0], [0], [1], [0, 0, 1, 1], [], []>} : vector<1x64xf32>, vector<64x64xf32>, vector<1x64xf32> -> vector<1x64xf32>
    %11 = arith.addf %10, %9 : vector<1x64xf32>
    %cst_12 = arith.constant 0.000000e+00 : f32
    %12 = vector.broadcast %cst_12 : f32 to vector<1x64xf32>
    %13 = arith.maximumf %11, %12 : vector<1x64xf32>
    %14 = vector.extract_strided_slice %13 {offsets = [0, 0], sizes = [1, 8], strides = [1, 1]} : vector<1x64xf32> to vector<1x8xf32>
    %15 = vector.extract_strided_slice %13 {offsets = [0, 8], sizes = [1, 8], strides = [1, 1]} : vector<1x64xf32> to vector<1x8xf32>
    %16 = vector.extract_strided_slice %13 {offsets = [0, 16], sizes = [1, 8], strides = [1, 1]} : vector<1x64xf32> to vector<1x8xf32>
    %17 = vector.extract_strided_slice %13 {offsets = [0, 24], sizes = [1, 8], strides = [1, 1]} : vector<1x64xf32> to vector<1x8xf32>
    %18 = vector.extract_strided_slice %13 {offsets = [0, 32], sizes = [1, 8], strides = [1, 1]} : vector<1x64xf32> to vector<1x8xf32>
    %19 = vector.extract_strided_slice %13 {offsets = [0, 40], sizes = [1, 8], strides = [1, 1]} : vector<1x64xf32> to vector<1x8xf32>
    %20 = vector.extract_strided_slice %13 {offsets = [0, 48], sizes = [1, 8], strides = [1, 1]} : vector<1x64xf32> to vector<1x8xf32>
    %21 = vector.extract_strided_slice %13 {offsets = [0, 56], sizes = [1, 8], strides = [1, 1]} : vector<1x64xf32> to vector<1x8xf32>
    %22 = tpu.concatenate %14, %15, %16, %17, %18, %19, %20, %21 in 0 : vector<1x8xf32>, vector<1x8xf32>, vector<1x8xf32>, vector<1x8xf32>, vector<1x8xf32>, vector<1x8xf32>, vector<1x8xf32>, vector<1x8xf32> -> vector<8x8xf32>
    %23 = vector.shape_cast %22 : vector<8x8xf32> to vector<2x2x2x8xf32>
    %c0_13 = arith.constant 0 : index
    %c0_14 = arith.constant 0 : index
    %24 = vector.load %arg6[%c0_13, %c0_14] : memref<216x16xf32, #tpu.memory_space<vmem>>, vector<216x16xf32>
    %c0_15 = arith.constant 0 : index
    %c0_16 = arith.constant 0 : index
    %25 = vector.load %arg7[%c0_15, %c0_16] : memref<1x16xf32, #tpu.memory_space<vmem>>, vector<1x16xf32>
    %cst_17 = arith.constant 0.000000e+00 : f32
    %26 = vector.broadcast %cst_17 : f32 to vector<1x2x2x8xf32>
    %27 = vector.extract_strided_slice %23 {offsets = [0, 0, 0, 0], sizes = [1, 2, 2, 8], strides = [1, 1, 1, 1]} : vector<2x2x2x8xf32> to vector<1x2x2x8xf32>
    %28 = vector.extract_strided_slice %23 {offsets = [1, 0, 0, 0], sizes = [1, 2, 2, 8], strides = [1, 1, 1, 1]} : vector<2x2x2x8xf32> to vector<1x2x2x8xf32>
    %29 = tpu.concatenate %26, %27, %27, %28, %28, %26 in 0 : vector<1x2x2x8xf32>, vector<1x2x2x8xf32>, vector<1x2x2x8xf32>, vector<1x2x2x8xf32>, vector<1x2x2x8xf32>, vector<1x2x2x8xf32> -> vector<6x2x2x8xf32>
    %cst_18 = arith.constant 0.000000e+00 : f32
    %30 = vector.broadcast %cst_18 : f32 to vector<6x1x2x8xf32>
    %31 = vector.extract_strided_slice %29 {offsets = [0, 0, 0, 0], sizes = [6, 1, 2, 8], strides = [1, 1, 1, 1]} : vector<6x2x2x8xf32> to vector<6x1x2x8xf32>
    %32 = vector.extract_strided_slice %29 {offsets = [0, 1, 0, 0], sizes = [6, 1, 2, 8], strides = [1, 1, 1, 1]} : vector<6x2x2x8xf32> to vector<6x1x2x8xf32>
    %33 = tpu.concatenate %30, %31, %31, %32, %32, %30 in 1 : vector<6x1x2x8xf32>, vector<6x1x2x8xf32>, vector<6x1x2x8xf32>, vector<6x1x2x8xf32>, vector<6x1x2x8xf32>, vector<6x1x2x8xf32> -> vector<6x6x2x8xf32>
    %cst_19 = arith.constant 0.000000e+00 : f32
    %34 = vector.broadcast %cst_19 : f32 to vector<6x6x1x8xf32>
    %35 = vector.extract_strided_slice %33 {offsets = [0, 0, 0, 0], sizes = [6, 6, 1, 8], strides = [1, 1, 1, 1]} : vector<6x6x2x8xf32> to vector<6x6x1x8xf32>
    %36 = vector.extract_strided_slice %33 {offsets = [0, 0, 1, 0], sizes = [6, 6, 1, 8], strides = [1, 1, 1, 1]} : vector<6x6x2x8xf32> to vector<6x6x1x8xf32>
    %37 = tpu.concatenate %34, %35, %35, %36, %36, %34 in 2 : vector<6x6x1x8xf32>, vector<6x6x1x8xf32>, vector<6x6x1x8xf32>, vector<6x6x1x8xf32>, vector<6x6x1x8xf32>, vector<6x6x1x8xf32> -> vector<6x6x6x8xf32>
    %38 = vector.extract_strided_slice %37 {offsets = [0, 0, 0, 0], sizes = [4, 4, 4, 8], strides = [1, 1, 1, 1]} : vector<6x6x6x8xf32> to vector<4x4x4x8xf32>
    %39 = vector.shape_cast %38 : vector<4x4x4x8xf32> to vector<64x8xf32>
    %40 = vector.extract_strided_slice %37 {offsets = [0, 0, 1, 0], sizes = [4, 4, 4, 8], strides = [1, 1, 1, 1]} : vector<6x6x6x8xf32> to vector<4x4x4x8xf32>
    %41 = vector.shape_cast %40 : vector<4x4x4x8xf32> to vector<64x8xf32>
    %42 = vector.extract_strided_slice %37 {offsets = [0, 0, 2, 0], sizes = [4, 4, 4, 8], strides = [1, 1, 1, 1]} : vector<6x6x6x8xf32> to vector<4x4x4x8xf32>
    %43 = vector.shape_cast %42 : vector<4x4x4x8xf32> to vector<64x8xf32>
    %44 = vector.extract_strided_slice %37 {offsets = [0, 1, 0, 0], sizes = [4, 4, 4, 8], strides = [1, 1, 1, 1]} : vector<6x6x6x8xf32> to vector<4x4x4x8xf32>
    %45 = vector.shape_cast %44 : vector<4x4x4x8xf32> to vector<64x8xf32>
    %46 = vector.extract_strided_slice %37 {offsets = [0, 1, 1, 0], sizes = [4, 4, 4, 8], strides = [1, 1, 1, 1]} : vector<6x6x6x8xf32> to vector<4x4x4x8xf32>
    %47 = vector.shape_cast %46 : vector<4x4x4x8xf32> to vector<64x8xf32>
    %48 = vector.extract_strided_slice %37 {offsets = [0, 1, 2, 0], sizes = [4, 4, 4, 8], strides = [1, 1, 1, 1]} : vector<6x6x6x8xf32> to vector<4x4x4x8xf32>
    %49 = vector.shape_cast %48 : vector<4x4x4x8xf32> to vector<64x8xf32>
    %50 = vector.extract_strided_slice %37 {offsets = [0, 2, 0, 0], sizes = [4, 4, 4, 8], strides = [1, 1, 1, 1]} : vector<6x6x6x8xf32> to vector<4x4x4x8xf32>
    %51 = vector.shape_cast %50 : vector<4x4x4x8xf32> to vector<64x8xf32>
    %52 = vector.extract_strided_slice %37 {offsets = [0, 2, 1, 0], sizes = [4, 4, 4, 8], strides = [1, 1, 1, 1]} : vector<6x6x6x8xf32> to vector<4x4x4x8xf32>
    %53 = vector.shape_cast %52 : vector<4x4x4x8xf32> to vector<64x8xf32>
    %54 = vector.extract_strided_slice %37 {offsets = [0, 2, 2, 0], sizes = [4, 4, 4, 8], strides = [1, 1, 1, 1]} : vector<6x6x6x8xf32> to vector<4x4x4x8xf32>
    %55 = vector.shape_cast %54 : vector<4x4x4x8xf32> to vector<64x8xf32>
    %56 = vector.extract_strided_slice %37 {offsets = [1, 0, 0, 0], sizes = [4, 4, 4, 8], strides = [1, 1, 1, 1]} : vector<6x6x6x8xf32> to vector<4x4x4x8xf32>
    %57 = vector.shape_cast %56 : vector<4x4x4x8xf32> to vector<64x8xf32>
    %58 = vector.extract_strided_slice %37 {offsets = [1, 0, 1, 0], sizes = [4, 4, 4, 8], strides = [1, 1, 1, 1]} : vector<6x6x6x8xf32> to vector<4x4x4x8xf32>
    %59 = vector.shape_cast %58 : vector<4x4x4x8xf32> to vector<64x8xf32>
    %60 = vector.extract_strided_slice %37 {offsets = [1, 0, 2, 0], sizes = [4, 4, 4, 8], strides = [1, 1, 1, 1]} : vector<6x6x6x8xf32> to vector<4x4x4x8xf32>
    %61 = vector.shape_cast %60 : vector<4x4x4x8xf32> to vector<64x8xf32>
    %62 = vector.extract_strided_slice %37 {offsets = [1, 1, 0, 0], sizes = [4, 4, 4, 8], strides = [1, 1, 1, 1]} : vector<6x6x6x8xf32> to vector<4x4x4x8xf32>
    %63 = vector.shape_cast %62 : vector<4x4x4x8xf32> to vector<64x8xf32>
    %64 = vector.extract_strided_slice %37 {offsets = [1, 1, 1, 0], sizes = [4, 4, 4, 8], strides = [1, 1, 1, 1]} : vector<6x6x6x8xf32> to vector<4x4x4x8xf32>
    %65 = vector.shape_cast %64 : vector<4x4x4x8xf32> to vector<64x8xf32>
    %66 = vector.extract_strided_slice %37 {offsets = [1, 1, 2, 0], sizes = [4, 4, 4, 8], strides = [1, 1, 1, 1]} : vector<6x6x6x8xf32> to vector<4x4x4x8xf32>
    %67 = vector.shape_cast %66 : vector<4x4x4x8xf32> to vector<64x8xf32>
    %68 = vector.extract_strided_slice %37 {offsets = [1, 2, 0, 0], sizes = [4, 4, 4, 8], strides = [1, 1, 1, 1]} : vector<6x6x6x8xf32> to vector<4x4x4x8xf32>
    %69 = vector.shape_cast %68 : vector<4x4x4x8xf32> to vector<64x8xf32>
    %70 = vector.extract_strided_slice %37 {offsets = [1, 2, 1, 0], sizes = [4, 4, 4, 8], strides = [1, 1, 1, 1]} : vector<6x6x6x8xf32> to vector<4x4x4x8xf32>
    %71 = vector.shape_cast %70 : vector<4x4x4x8xf32> to vector<64x8xf32>
    %72 = vector.extract_strided_slice %37 {offsets = [1, 2, 2, 0], sizes = [4, 4, 4, 8], strides = [1, 1, 1, 1]} : vector<6x6x6x8xf32> to vector<4x4x4x8xf32>
    %73 = vector.shape_cast %72 : vector<4x4x4x8xf32> to vector<64x8xf32>
    %74 = vector.extract_strided_slice %37 {offsets = [2, 0, 0, 0], sizes = [4, 4, 4, 8], strides = [1, 1, 1, 1]} : vector<6x6x6x8xf32> to vector<4x4x4x8xf32>
    %75 = vector.shape_cast %74 : vector<4x4x4x8xf32> to vector<64x8xf32>
    %76 = vector.extract_strided_slice %37 {offsets = [2, 0, 1, 0], sizes = [4, 4, 4, 8], strides = [1, 1, 1, 1]} : vector<6x6x6x8xf32> to vector<4x4x4x8xf32>
    %77 = vector.shape_cast %76 : vector<4x4x4x8xf32> to vector<64x8xf32>
    %78 = vector.extract_strided_slice %37 {offsets = [2, 0, 2, 0], sizes = [4, 4, 4, 8], strides = [1, 1, 1, 1]} : vector<6x6x6x8xf32> to vector<4x4x4x8xf32>
    %79 = vector.shape_cast %78 : vector<4x4x4x8xf32> to vector<64x8xf32>
    %80 = vector.extract_strided_slice %37 {offsets = [2, 1, 0, 0], sizes = [4, 4, 4, 8], strides = [1, 1, 1, 1]} : vector<6x6x6x8xf32> to vector<4x4x4x8xf32>
    %81 = vector.shape_cast %80 : vector<4x4x4x8xf32> to vector<64x8xf32>
    %82 = vector.extract_strided_slice %37 {offsets = [2, 1, 1, 0], sizes = [4, 4, 4, 8], strides = [1, 1, 1, 1]} : vector<6x6x6x8xf32> to vector<4x4x4x8xf32>
    %83 = vector.shape_cast %82 : vector<4x4x4x8xf32> to vector<64x8xf32>
    %84 = vector.extract_strided_slice %37 {offsets = [2, 1, 2, 0], sizes = [4, 4, 4, 8], strides = [1, 1, 1, 1]} : vector<6x6x6x8xf32> to vector<4x4x4x8xf32>
    %85 = vector.shape_cast %84 : vector<4x4x4x8xf32> to vector<64x8xf32>
    %86 = vector.extract_strided_slice %37 {offsets = [2, 2, 0, 0], sizes = [4, 4, 4, 8], strides = [1, 1, 1, 1]} : vector<6x6x6x8xf32> to vector<4x4x4x8xf32>
    %87 = vector.shape_cast %86 : vector<4x4x4x8xf32> to vector<64x8xf32>
    %88 = vector.extract_strided_slice %37 {offsets = [2, 2, 1, 0], sizes = [4, 4, 4, 8], strides = [1, 1, 1, 1]} : vector<6x6x6x8xf32> to vector<4x4x4x8xf32>
    %89 = vector.shape_cast %88 : vector<4x4x4x8xf32> to vector<64x8xf32>
    %90 = vector.extract_strided_slice %37 {offsets = [2, 2, 2, 0], sizes = [4, 4, 4, 8], strides = [1, 1, 1, 1]} : vector<6x6x6x8xf32> to vector<4x4x4x8xf32>
    %91 = vector.shape_cast %90 : vector<4x4x4x8xf32> to vector<64x8xf32>
    %92 = tpu.concatenate %39, %41, %43, %45, %47, %49, %51, %53, %55, %57, %59, %61, %63, %65, %67, %69 in 1 : vector<64x8xf32>, vector<64x8xf32>, vector<64x8xf32>, vector<64x8xf32>, vector<64x8xf32>, vector<64x8xf32>, vector<64x8xf32>, vector<64x8xf32>, vector<64x8xf32>, vector<64x8xf32>, vector<64x8xf32>, vector<64x8xf32>, vector<64x8xf32>, vector<64x8xf32>, vector<64x8xf32>, vector<64x8xf32> -> vector<64x128xf32>
    %93 = tpu.concatenate %71, %73, %75, %77, %79, %81, %83, %85, %87, %89, %91 in 1 : vector<64x8xf32>, vector<64x8xf32>, vector<64x8xf32>, vector<64x8xf32>, vector<64x8xf32>, vector<64x8xf32>, vector<64x8xf32>, vector<64x8xf32>, vector<64x8xf32>, vector<64x8xf32>, vector<64x8xf32> -> vector<64x88xf32>
    %94 = tpu.concatenate %92, %93 in 1 : vector<64x128xf32>, vector<64x88xf32> -> vector<64x216xf32>
    %cst_20 = arith.constant dense<0.000000e+00> : vector<64x16xf32>
    %95 = tpu.matmul %94, %24, %cst_20 {dimension_numbers = #tpu.dot_dimension_numbers<[1], [0], [0], [1], [0, 0, 1, 1], [], []>} : vector<64x216xf32>, vector<216x16xf32>, vector<64x16xf32> -> vector<64x16xf32>
    %96 = vector.broadcast %25 : vector<1x16xf32> to vector<64x16xf32>
    %97 = arith.addf %95, %96 : vector<64x16xf32>
    %cst_21 = arith.constant 0.000000e+00 : f32
    %98 = vector.broadcast %cst_21 : f32 to vector<64x16xf32>
    %99 = arith.maximumf %97, %98 : vector<64x16xf32>
    %100 = vector.shape_cast %99 : vector<64x16xf32> to vector<4x4x4x16xf32>
    %c0_22 = arith.constant 0 : index
    %c0_23 = arith.constant 0 : index
    %101 = vector.load %arg8[%c0_22, %c0_23] : memref<432x8xf32, #tpu.memory_space<vmem>>, vector<432x8xf32>
    %c0_24 = arith.constant 0 : index
    %c0_25 = arith.constant 0 : index
    %102 = vector.load %arg9[%c0_24, %c0_25] : memref<1x8xf32, #tpu.memory_space<vmem>>, vector<1x8xf32>
    %cst_26 = arith.constant 0.000000e+00 : f32
    %103 = vector.broadcast %cst_26 : f32 to vector<1x4x4x16xf32>
    %104 = vector.extract_strided_slice %100 {offsets = [0, 0, 0, 0], sizes = [1, 4, 4, 16], strides = [1, 1, 1, 1]} : vector<4x4x4x16xf32> to vector<1x4x4x16xf32>
    %105 = vector.extract_strided_slice %100 {offsets = [1, 0, 0, 0], sizes = [1, 4, 4, 16], strides = [1, 1, 1, 1]} : vector<4x4x4x16xf32> to vector<1x4x4x16xf32>
    %106 = vector.extract_strided_slice %100 {offsets = [2, 0, 0, 0], sizes = [1, 4, 4, 16], strides = [1, 1, 1, 1]} : vector<4x4x4x16xf32> to vector<1x4x4x16xf32>
    %107 = vector.extract_strided_slice %100 {offsets = [3, 0, 0, 0], sizes = [1, 4, 4, 16], strides = [1, 1, 1, 1]} : vector<4x4x4x16xf32> to vector<1x4x4x16xf32>
    %108 = tpu.concatenate %103, %104, %104, %105, %105, %106, %106, %107, %107, %103 in 0 : vector<1x4x4x16xf32>, vector<1x4x4x16xf32>, vector<1x4x4x16xf32>, vector<1x4x4x16xf32>, vector<1x4x4x16xf32>, vector<1x4x4x16xf32>, vector<1x4x4x16xf32>, vector<1x4x4x16xf32>, vector<1x4x4x16xf32>, vector<1x4x4x16xf32> -> vector<10x4x4x16xf32>
    %cst_27 = arith.constant 0.000000e+00 : f32
    %109 = vector.broadcast %cst_27 : f32 to vector<10x1x4x16xf32>
    %110 = vector.extract_strided_slice %108 {offsets = [0, 0, 0, 0], sizes = [10, 1, 4, 16], strides = [1, 1, 1, 1]} : vector<10x4x4x16xf32> to vector<10x1x4x16xf32>
    %111 = vector.extract_strided_slice %108 {offsets = [0, 1, 0, 0], sizes = [10, 1, 4, 16], strides = [1, 1, 1, 1]} : vector<10x4x4x16xf32> to vector<10x1x4x16xf32>
    %112 = vector.extract_strided_slice %108 {offsets = [0, 2, 0, 0], sizes = [10, 1, 4, 16], strides = [1, 1, 1, 1]} : vector<10x4x4x16xf32> to vector<10x1x4x16xf32>
    %113 = vector.extract_strided_slice %108 {offsets = [0, 3, 0, 0], sizes = [10, 1, 4, 16], strides = [1, 1, 1, 1]} : vector<10x4x4x16xf32> to vector<10x1x4x16xf32>
    %114 = tpu.concatenate %109, %110, %110, %111, %111, %112, %112, %113, %113, %109 in 1 : vector<10x1x4x16xf32>, vector<10x1x4x16xf32>, vector<10x1x4x16xf32>, vector<10x1x4x16xf32>, vector<10x1x4x16xf32>, vector<10x1x4x16xf32>, vector<10x1x4x16xf32>, vector<10x1x4x16xf32>, vector<10x1x4x16xf32>, vector<10x1x4x16xf32> -> vector<10x10x4x16xf32>
    %cst_28 = arith.constant 0.000000e+00 : f32
    %115 = vector.broadcast %cst_28 : f32 to vector<10x10x1x16xf32>
    %116 = vector.extract_strided_slice %114 {offsets = [0, 0, 0, 0], sizes = [10, 10, 1, 16], strides = [1, 1, 1, 1]} : vector<10x10x4x16xf32> to vector<10x10x1x16xf32>
    %117 = vector.extract_strided_slice %114 {offsets = [0, 0, 1, 0], sizes = [10, 10, 1, 16], strides = [1, 1, 1, 1]} : vector<10x10x4x16xf32> to vector<10x10x1x16xf32>
    %118 = vector.extract_strided_slice %114 {offsets = [0, 0, 2, 0], sizes = [10, 10, 1, 16], strides = [1, 1, 1, 1]} : vector<10x10x4x16xf32> to vector<10x10x1x16xf32>
    %119 = vector.extract_strided_slice %114 {offsets = [0, 0, 3, 0], sizes = [10, 10, 1, 16], strides = [1, 1, 1, 1]} : vector<10x10x4x16xf32> to vector<10x10x1x16xf32>
    %120 = tpu.concatenate %115, %116, %116, %117, %117, %118, %118, %119, %119, %115 in 2 : vector<10x10x1x16xf32>, vector<10x10x1x16xf32>, vector<10x10x1x16xf32>, vector<10x10x1x16xf32>, vector<10x10x1x16xf32>, vector<10x10x1x16xf32>, vector<10x10x1x16xf32>, vector<10x10x1x16xf32>, vector<10x10x1x16xf32>, vector<10x10x1x16xf32> -> vector<10x10x10x16xf32>
    %121 = vector.extract_strided_slice %120 {offsets = [0, 0, 0, 0], sizes = [8, 8, 8, 16], strides = [1, 1, 1, 1]} : vector<10x10x10x16xf32> to vector<8x8x8x16xf32>
    %122 = vector.shape_cast %121 : vector<8x8x8x16xf32> to vector<512x16xf32>
    %123 = vector.extract_strided_slice %120 {offsets = [0, 0, 1, 0], sizes = [8, 8, 8, 16], strides = [1, 1, 1, 1]} : vector<10x10x10x16xf32> to vector<8x8x8x16xf32>
    %124 = vector.shape_cast %123 : vector<8x8x8x16xf32> to vector<512x16xf32>
    %125 = vector.extract_strided_slice %120 {offsets = [0, 0, 2, 0], sizes = [8, 8, 8, 16], strides = [1, 1, 1, 1]} : vector<10x10x10x16xf32> to vector<8x8x8x16xf32>
    %126 = vector.shape_cast %125 : vector<8x8x8x16xf32> to vector<512x16xf32>
    %127 = vector.extract_strided_slice %120 {offsets = [0, 1, 0, 0], sizes = [8, 8, 8, 16], strides = [1, 1, 1, 1]} : vector<10x10x10x16xf32> to vector<8x8x8x16xf32>
    %128 = vector.shape_cast %127 : vector<8x8x8x16xf32> to vector<512x16xf32>
    %129 = vector.extract_strided_slice %120 {offsets = [0, 1, 1, 0], sizes = [8, 8, 8, 16], strides = [1, 1, 1, 1]} : vector<10x10x10x16xf32> to vector<8x8x8x16xf32>
    %130 = vector.shape_cast %129 : vector<8x8x8x16xf32> to vector<512x16xf32>
    %131 = vector.extract_strided_slice %120 {offsets = [0, 1, 2, 0], sizes = [8, 8, 8, 16], strides = [1, 1, 1, 1]} : vector<10x10x10x16xf32> to vector<8x8x8x16xf32>
    %132 = vector.shape_cast %131 : vector<8x8x8x16xf32> to vector<512x16xf32>
    %133 = vector.extract_strided_slice %120 {offsets = [0, 2, 0, 0], sizes = [8, 8, 8, 16], strides = [1, 1, 1, 1]} : vector<10x10x10x16xf32> to vector<8x8x8x16xf32>
    %134 = vector.shape_cast %133 : vector<8x8x8x16xf32> to vector<512x16xf32>
    %135 = vector.extract_strided_slice %120 {offsets = [0, 2, 1, 0], sizes = [8, 8, 8, 16], strides = [1, 1, 1, 1]} : vector<10x10x10x16xf32> to vector<8x8x8x16xf32>
    %136 = vector.shape_cast %135 : vector<8x8x8x16xf32> to vector<512x16xf32>
    %137 = vector.extract_strided_slice %120 {offsets = [0, 2, 2, 0], sizes = [8, 8, 8, 16], strides = [1, 1, 1, 1]} : vector<10x10x10x16xf32> to vector<8x8x8x16xf32>
    %138 = vector.shape_cast %137 : vector<8x8x8x16xf32> to vector<512x16xf32>
    %139 = vector.extract_strided_slice %120 {offsets = [1, 0, 0, 0], sizes = [8, 8, 8, 16], strides = [1, 1, 1, 1]} : vector<10x10x10x16xf32> to vector<8x8x8x16xf32>
    %140 = vector.shape_cast %139 : vector<8x8x8x16xf32> to vector<512x16xf32>
    %141 = vector.extract_strided_slice %120 {offsets = [1, 0, 1, 0], sizes = [8, 8, 8, 16], strides = [1, 1, 1, 1]} : vector<10x10x10x16xf32> to vector<8x8x8x16xf32>
    %142 = vector.shape_cast %141 : vector<8x8x8x16xf32> to vector<512x16xf32>
    %143 = vector.extract_strided_slice %120 {offsets = [1, 0, 2, 0], sizes = [8, 8, 8, 16], strides = [1, 1, 1, 1]} : vector<10x10x10x16xf32> to vector<8x8x8x16xf32>
    %144 = vector.shape_cast %143 : vector<8x8x8x16xf32> to vector<512x16xf32>
    %145 = vector.extract_strided_slice %120 {offsets = [1, 1, 0, 0], sizes = [8, 8, 8, 16], strides = [1, 1, 1, 1]} : vector<10x10x10x16xf32> to vector<8x8x8x16xf32>
    %146 = vector.shape_cast %145 : vector<8x8x8x16xf32> to vector<512x16xf32>
    %147 = vector.extract_strided_slice %120 {offsets = [1, 1, 1, 0], sizes = [8, 8, 8, 16], strides = [1, 1, 1, 1]} : vector<10x10x10x16xf32> to vector<8x8x8x16xf32>
    %148 = vector.shape_cast %147 : vector<8x8x8x16xf32> to vector<512x16xf32>
    %149 = vector.extract_strided_slice %120 {offsets = [1, 1, 2, 0], sizes = [8, 8, 8, 16], strides = [1, 1, 1, 1]} : vector<10x10x10x16xf32> to vector<8x8x8x16xf32>
    %150 = vector.shape_cast %149 : vector<8x8x8x16xf32> to vector<512x16xf32>
    %151 = vector.extract_strided_slice %120 {offsets = [1, 2, 0, 0], sizes = [8, 8, 8, 16], strides = [1, 1, 1, 1]} : vector<10x10x10x16xf32> to vector<8x8x8x16xf32>
    %152 = vector.shape_cast %151 : vector<8x8x8x16xf32> to vector<512x16xf32>
    %153 = vector.extract_strided_slice %120 {offsets = [1, 2, 1, 0], sizes = [8, 8, 8, 16], strides = [1, 1, 1, 1]} : vector<10x10x10x16xf32> to vector<8x8x8x16xf32>
    %154 = vector.shape_cast %153 : vector<8x8x8x16xf32> to vector<512x16xf32>
    %155 = vector.extract_strided_slice %120 {offsets = [1, 2, 2, 0], sizes = [8, 8, 8, 16], strides = [1, 1, 1, 1]} : vector<10x10x10x16xf32> to vector<8x8x8x16xf32>
    %156 = vector.shape_cast %155 : vector<8x8x8x16xf32> to vector<512x16xf32>
    %157 = vector.extract_strided_slice %120 {offsets = [2, 0, 0, 0], sizes = [8, 8, 8, 16], strides = [1, 1, 1, 1]} : vector<10x10x10x16xf32> to vector<8x8x8x16xf32>
    %158 = vector.shape_cast %157 : vector<8x8x8x16xf32> to vector<512x16xf32>
    %159 = vector.extract_strided_slice %120 {offsets = [2, 0, 1, 0], sizes = [8, 8, 8, 16], strides = [1, 1, 1, 1]} : vector<10x10x10x16xf32> to vector<8x8x8x16xf32>
    %160 = vector.shape_cast %159 : vector<8x8x8x16xf32> to vector<512x16xf32>
    %161 = vector.extract_strided_slice %120 {offsets = [2, 0, 2, 0], sizes = [8, 8, 8, 16], strides = [1, 1, 1, 1]} : vector<10x10x10x16xf32> to vector<8x8x8x16xf32>
    %162 = vector.shape_cast %161 : vector<8x8x8x16xf32> to vector<512x16xf32>
    %163 = vector.extract_strided_slice %120 {offsets = [2, 1, 0, 0], sizes = [8, 8, 8, 16], strides = [1, 1, 1, 1]} : vector<10x10x10x16xf32> to vector<8x8x8x16xf32>
    %164 = vector.shape_cast %163 : vector<8x8x8x16xf32> to vector<512x16xf32>
    %165 = vector.extract_strided_slice %120 {offsets = [2, 1, 1, 0], sizes = [8, 8, 8, 16], strides = [1, 1, 1, 1]} : vector<10x10x10x16xf32> to vector<8x8x8x16xf32>
    %166 = vector.shape_cast %165 : vector<8x8x8x16xf32> to vector<512x16xf32>
    %167 = vector.extract_strided_slice %120 {offsets = [2, 1, 2, 0], sizes = [8, 8, 8, 16], strides = [1, 1, 1, 1]} : vector<10x10x10x16xf32> to vector<8x8x8x16xf32>
    %168 = vector.shape_cast %167 : vector<8x8x8x16xf32> to vector<512x16xf32>
    %169 = vector.extract_strided_slice %120 {offsets = [2, 2, 0, 0], sizes = [8, 8, 8, 16], strides = [1, 1, 1, 1]} : vector<10x10x10x16xf32> to vector<8x8x8x16xf32>
    %170 = vector.shape_cast %169 : vector<8x8x8x16xf32> to vector<512x16xf32>
    %171 = vector.extract_strided_slice %120 {offsets = [2, 2, 1, 0], sizes = [8, 8, 8, 16], strides = [1, 1, 1, 1]} : vector<10x10x10x16xf32> to vector<8x8x8x16xf32>
    %172 = vector.shape_cast %171 : vector<8x8x8x16xf32> to vector<512x16xf32>
    %173 = vector.extract_strided_slice %120 {offsets = [2, 2, 2, 0], sizes = [8, 8, 8, 16], strides = [1, 1, 1, 1]} : vector<10x10x10x16xf32> to vector<8x8x8x16xf32>
    %174 = vector.shape_cast %173 : vector<8x8x8x16xf32> to vector<512x16xf32>
    %175 = tpu.concatenate %122, %124, %126, %128, %130, %132, %134, %136, %138, %140, %142, %144, %146, %148, %150, %152 in 1 : vector<512x16xf32>, vector<512x16xf32>, vector<512x16xf32>, vector<512x16xf32>, vector<512x16xf32>, vector<512x16xf32>, vector<512x16xf32>, vector<512x16xf32>, vector<512x16xf32>, vector<512x16xf32>, vector<512x16xf32>, vector<512x16xf32>, vector<512x16xf32>, vector<512x16xf32>, vector<512x16xf32>, vector<512x16xf32> -> vector<512x256xf32>
    %176 = tpu.concatenate %154, %156, %158, %160, %162, %164, %166, %168, %170, %172, %174 in 1 : vector<512x16xf32>, vector<512x16xf32>, vector<512x16xf32>, vector<512x16xf32>, vector<512x16xf32>, vector<512x16xf32>, vector<512x16xf32>, vector<512x16xf32>, vector<512x16xf32>, vector<512x16xf32>, vector<512x16xf32> -> vector<512x176xf32>
    %177 = tpu.concatenate %175, %176 in 1 : vector<512x256xf32>, vector<512x176xf32> -> vector<512x432xf32>
    %cst_29 = arith.constant dense<0.000000e+00> : vector<512x8xf32>
    %178 = tpu.matmul %177, %101, %cst_29 {dimension_numbers = #tpu.dot_dimension_numbers<[1], [0], [0], [1], [0, 0, 1, 1], [], []>} : vector<512x432xf32>, vector<432x8xf32>, vector<512x8xf32> -> vector<512x8xf32>
    %179 = vector.broadcast %102 : vector<1x8xf32> to vector<512x8xf32>
    %180 = arith.addf %178, %179 : vector<512x8xf32>
    %cst_30 = arith.constant 0.000000e+00 : f32
    %181 = vector.broadcast %cst_30 : f32 to vector<512x8xf32>
    %182 = arith.maximumf %180, %181 : vector<512x8xf32>
    %183 = vector.shape_cast %182 : vector<512x8xf32> to vector<8x8x8x8xf32>
    %184 = vector.extract_strided_slice %183 {offsets = [1, 1, 1, 0], sizes = [6, 6, 6, 8], strides = [1, 1, 1, 1]} : vector<8x8x8x8xf32> to vector<6x6x6x8xf32>
    %185 = vector.shape_cast %184 : vector<6x6x6x8xf32> to vector<216x8xf32>
    %c0_31 = arith.constant 0 : index
    %c0_32 = arith.constant 0 : index
    %186 = vector.load %arg10[%c0_31, %c0_32] : memref<8x4xf32, #tpu.memory_space<vmem>>, vector<8x4xf32>
    %c0_33 = arith.constant 0 : index
    %c0_34 = arith.constant 0 : index
    %187 = vector.load %arg11[%c0_33, %c0_34] : memref<1x4xf32, #tpu.memory_space<vmem>>, vector<1x4xf32>
    %cst_35 = arith.constant dense<0.000000e+00> : vector<216x4xf32>
    %188 = tpu.matmul %185, %186, %cst_35 {dimension_numbers = #tpu.dot_dimension_numbers<[1], [0], [0], [1], [0, 0, 1, 1], [], []>} : vector<216x8xf32>, vector<8x4xf32>, vector<216x4xf32> -> vector<216x4xf32>
    %189 = vector.broadcast %187 : vector<1x4xf32> to vector<216x4xf32>
    %190 = arith.addf %188, %189 : vector<216x4xf32>
    %191 = vector.shape_cast %190 : vector<216x4xf32> to vector<1x6x6x6x4xf32>
    %c0_36 = arith.constant 0 : index
    %c0_37 = arith.constant 0 : index
    %c0_38 = arith.constant 0 : index
    %c0_39 = arith.constant 0 : index
    %c0_40 = arith.constant 0 : index
    %192 = vector.load %arg12[%c0_36, %c0_37, %c0_38, %c0_39, %c0_40] : memref<1x6x6x6x4xf32, #tpu.memory_space<vmem>>, vector<1x6x6x6x4xf32>
    tpu.vector_store %arg12[%c0_36, %c0_37, %c0_38, %c0_39, %c0_40], %191 {strides = array<i32>} : memref<1x6x6x6x4xf32, #tpu.memory_space<vmem>>, vector<1x6x6x6x4xf32>,
    return
  }
  func.func @transform_0(%arg0: i32) -> (i32, i32, i32) {
    %c0_i32 = arith.constant 0 : i32
    %c0_i32_0 = arith.constant 0 : i32
    %c0_i32_1 = arith.constant 0 : i32
    return %arg0, %c0_i32, %c0_i32_0 : i32, i32, i32
  }
  func.func @transform_1(%arg0: i32) -> (i32, i32) {
    %c0_i32 = arith.constant 0 : i32
    %c0_i32_0 = arith.constant 0 : i32
    %c0_i32_1 = arith.constant 0 : i32
    return %c0_i32, %c0_i32_0 : i32, i32
  }
  func.func @transform_2(%arg0: i32) -> (i32, i32) {
    %c0_i32 = arith.constant 0 : i32
    %c0_i32_0 = arith.constant 0 : i32
    %c0_i32_1 = arith.constant 0 : i32
    return %c0_i32, %c0_i32_0 : i32, i32
  }
  func.func @transform_3(%arg0: i32) -> (i32, i32) {
    %c0_i32 = arith.constant 0 : i32
    %c0_i32_0 = arith.constant 0 : i32
    %c0_i32_1 = arith.constant 0 : i32
    return %c0_i32, %c0_i32_0 : i32, i32
  }
  func.func @transform_4(%arg0: i32) -> (i32, i32) {
    %c0_i32 = arith.constant 0 : i32
    %c0_i32_0 = arith.constant 0 : i32
    %c0_i32_1 = arith.constant 0 : i32
    return %c0_i32, %c0_i32_0 : i32, i32
  }
  func.func @transform_5(%arg0: i32) -> (i32, i32) {
    %c0_i32 = arith.constant 0 : i32
    %c0_i32_0 = arith.constant 0 : i32
    %c0_i32_1 = arith.constant 0 : i32
    return %c0_i32, %c0_i32_0 : i32, i32
  }
  func.func @transform_6(%arg0: i32) -> (i32, i32) {
    %c0_i32 = arith.constant 0 : i32
    %c0_i32_0 = arith.constant 0 : i32
    %c0_i32_1 = arith.constant 0 : i32
    return %c0_i32, %c0_i32_0 : i32, i32
  }
  func.func @transform_7(%arg0: i32) -> (i32, i32) {
    %c0_i32 = arith.constant 0 : i32
    %c0_i32_0 = arith.constant 0 : i32
    %c0_i32_1 = arith.constant 0 : i32
    return %c0_i32, %c0_i32_0 : i32, i32
  }
  func.func @transform_8(%arg0: i32) -> (i32, i32) {
    %c0_i32 = arith.constant 0 : i32
    %c0_i32_0 = arith.constant 0 : i32
    %c0_i32_1 = arith.constant 0 : i32
    return %c0_i32, %c0_i32_0 : i32, i32
  }
  func.func @transform_9(%arg0: i32) -> (i32, i32) {
    %c0_i32 = arith.constant 0 : i32
    %c0_i32_0 = arith.constant 0 : i32
    %c0_i32_1 = arith.constant 0 : i32
    return %c0_i32, %c0_i32_0 : i32, i32
  }
  func.func @transform_10(%arg0: i32) -> (i32, i32) {
    %c0_i32 = arith.constant 0 : i32
    %c0_i32_0 = arith.constant 0 : i32
    %c0_i32_1 = arith.constant 0 : i32
    return %c0_i32, %c0_i32_0 : i32, i32
  }
  func.func @transform_11(%arg0: i32) -> (i32, i32, i32, i32, i32) {
    %c0_i32 = arith.constant 0 : i32
    %c0_i32_0 = arith.constant 0 : i32
    %c0_i32_1 = arith.constant 0 : i32
    %c0_i32_2 = arith.constant 0 : i32
    %c0_i32_3 = arith.constant 0 : i32
    return %arg0, %c0_i32, %c0_i32_0, %c0_i32_1, %c0_i32_2 : i32, i32, i32, i32, i32
  }
}

</mosaic_0001>

<bundles_post_ra>
// kernel: tpu_custom_call.1
= control target key start
LH: loop header
LB: loop body
LE: loop exit
PB: predicated region body
PF: predicated region fallthrough
CT: control target
= control target key end

     0   :  { %s9233_s17 = smov 0   ;;  %s15796_s0 = inlined_call_operand.vmem [shape: f32[2,1,32], index: 0, kind: input, shape index: {}]   ;;  %s15797_s1 = inlined_call_operand.vmem [shape: f32[32,64], index: 1, kind: input, shape index: {}]   ;;  %s15798_s2 = inlined_call_operand.vmem [shape: f32[1,64], index: 2, kind: input, shape index: {}]   ;;  %s15799_s3 = inlined_call_operand.vmem [shape: f32[64,64], index: 3, kind: input, shape index: {}]   ;;  %s15800_s4 = inlined_call_operand.vmem [shape: f32[1,64], index: 4, kind: input, shape index: {}]   ;;  %s15801_s5 = inlined_call_operand.vmem [shape: f32[216,16], index: 5, kind: input, shape index: {}]   ;;  %s15802_s6 = inlined_call_operand.vmem [shape: f32[1,16], index: 6, kind: input, shape index: {}]   ;;  %s15803_s7 = inlined_call_operand.vmem [shape: f32[432,8], index: 7, kind: input, shape index: {}]   ;;  %s15804_s8 = inlined_call_operand.vmem [shape: f32[1,8], index: 8, kind: input, shape index: {}]   ;;  %s15805_s9 = inlined_call_operand.vmem [shape: f32[8,4], index: 9, kind: input, shape index: {}]   ;;  %s15806_s10 = inlined_call_operand.vmem [shape: f32[1,4], index: 10, kind: input, shape index: {}]   ;;  %s15807_s11 = inlined_call_operand.vmem [shape: f32[2,6,6,6,4], index: 11, kind: output, shape index: {}]  }
   0x1 LB: > { %s7622_s18 = sadd.s32 4294967295, %s9152_s17   ;;  %p7626_p0 = scmp.ge.s32.totalorder %s9152_s17, 1  ;;  %s9152_s17 = sphi %s9233_s17, %s21_s17  }
   0x2   : > { %p335_p1 = scmp.lt.s32.totalorder %s9152_s17, 3 }
   0x4   : > { %p336_p2 = pnand %p7626_p0, %p335_p1 }
   0x6   : > { %339 = sbr.rel (%p336_p2) target bundleno = 2124 (0x84c), region = 64 }
   0xd   : > { %v382_v0 = vld [vmem:[%s15797_s1] sm:$0xff]  ;;  %v383_v1 = vld [vmem:[%s15797_s1 + $0x8] sm:$0xff]  ;;  %v384_v2 = vld [vmem:[%s15797_s1 + $0x10] sm:$0xff]  ;;  %v15831_v3 = vmov 0.0|0.0   ;;  %vm15815_vm0 = vmmov 0   ;;  %v15829_v6 = vmov 0.0   ;;  %v594_v50 = vlaneseq }
   0xe   : > { %7935 = vmatprep.subr.bf16.mxu0 %v15831_v3  ;;  %v7936_v4 = vpack.c.bf16 %v383_v1, %v382_v0  ;;  %v385_v5 = vld [vmem:[%s15797_s1 + $0x18] sm:$0xff]  ;;  %7830 = vmatprep.mubr.msk.f32.mxu0 %vm15815_vm0, %v15829_v6  ;;  %p373_p3 = scmp.lt.s32.totalorder %s7622_s18, 1  ;;  %v462_v7 = vld [vmem:[%s15799_s3] sm:$0xff]  ;;  %v463_v8 = vld [vmem:[%s15799_s3 + $0x8] sm:$0xff]  ;;  %vm387_vm1 = vcmask 261120   ;;  %vm471_vm2 = vcmask 523264  }
   0xf   : > { %7941 = vmatprep.subr.bf16.mxu1 %v15831_v3  ;;  %v7942_v9 = vpack.c.bf16 %v463_v8, %v462_v7  ;;  %v464_v10 = vld [vmem:[%s15799_s3 + $0x10] sm:$0xff]  ;;  %v465_v11 = vld [vmem:[%s15799_s3 + $0x18] sm:$0xff]  ;;  %7849 = vmatprep.mubr.msk.f32.mxu1 %vm15815_vm0, %v15829_v6  ;;  %v7939_v12 = vpack.c.bf16 %v385_v5, %v384_v2  ;;  %v466_v14 = vld [vmem:[%s15799_s3 + $0x20] sm:$0xff]  ;;  %s9157_s14 = smov 104   ;;  %s15812_s15 = smov 120   ;;  %v636_v35 = vrot.slane %v15829_v6, 7 }
  0x10   : > { %7937 = vmatpush3.bf16.msra.mxu0 %v7936_v4  ;;  %s17198_s18 = smov (!%p373_p3, %s7622_s18), 1  ;;  %v7945_v13 = vpack.c.bf16 %v465_v11, %v464_v10  ;;  %v467_v15 = vld [vmem:[%s15799_s3 + $0x28] sm:$0xff]  ;;  %v468_v18 = vld [vmem:[%s15799_s3 + $0x30] sm:$0xff]  ;;  %v469_v19 = vld [vmem:[%s15799_s3 + $0x38] sm:$0xff]  ;;  %s15808_s16 = smov 96   ;;  %vm575_vm3 = vcmask 1040384  }
  0x11   : > { %7938 = vmatprep.subr.bf16.mxu0 %v15831_v3  ;;  %7943 = vmatpush3.bf16.msra.mxu1 %v7942_v9  ;;  %s375_s20 = scalar_lea.vmem %s15796_s0, %s17198_s18  ;;  %v7948_v17 = vpack.c.bf16 %v467_v15, %v466_v14  ;;  %v7951_v20 = vpack.c.bf16 %v469_v19, %v468_v18  ;;  %v386_v21 = vld [vmem:[%s15798_s2] sm:$0x1]  ;;  %s15810_s19 = smov 112   ;;  %v646_v36 = vrot.slane %v15829_v6, 6  ;;  %vm15822_vm4 = vcmask 1041408   ;;  %v608_v14 = vld [vmem:[%s15801_s5 + $0x8] sm:$0xff] }
  0x12   : > { %7944 = vmatprep.subr.bf16.mxu1 %v15831_v3  ;;  %v381_v16 = vld [vmem:[%s375_s20] sm:$0x1]  ;;  %v666_v39 = vsel %vm575_vm3, 0.0, %v636_v35  ;;  %vm15820_vm5 = vcmask 1042432   ;;  %v656_v40 = vrot.slane %v15829_v6, 5  ;;  %s9161_s20 = smov 80  }
  0x13   : > { %v470_v26 = vld [vmem:[%s15800_s4] sm:$0x1]  ;;  %v671_v41 = vsel %vm15822_vm4, %v666_v39, %v646_v36  ;;  %s9162_s21 = smov 88   ;;  %vm15819_vm6 = vcmask 1043456   ;;  %vm15818_vm7 = vcmask 1044480   ;;  %s9163_s22 = smov 72  }
  0x14   : > { %7940 = vmatpush3.bf16.msra.mxu0 %v7939_v12  ;;  %v676_v42 = vsel %vm15820_vm5, %v671_v41, %v646_v36  ;;  %v9164_v48 = vmov 1983009808   ;;  %v595_v57 = vshrl.u32 %v594_v50, 7  ;;  %vm15817_vm8 = vcmask 1045504   ;;  %s9165_s27 = smov 16   ;;  %s9166_s28 = smov 24  }
  0x15   : > { %7946 = vmatpush3.bf16.msra.mxu1 %v7945_v13  ;;  %7953 = vmatprep.subr.bf16.mxu0 %v15831_v3  ;;  %v681_v43 = vsel %vm15819_vm6, %v676_v42, %v656_v40  ;;  %v592_v49 = vunpack.c.l.s4 %v9164_v48  ;;  %vm15821_vm9 = vcmask 1046528   ;;  %v607_v13 = vld [vmem:[%s15801_s5] sm:$0xff]  ;;  %vm723_vm10 = vcmask 1045508   ;;  %s15813_s29 = smov 40   ;;  %s9168_s30 = smov 48  }
  0x16   : > { %7947 = vmatprep.subr.bf16.mxu1 %v15831_v3  ;;  %v9317_v45 = vsel %vm15818_vm7, %v681_v43, %v656_v40  ;;  %v9344_v19 = vsel %vm15818_vm7, %v681_v43, 0.0  ;;  %vm9382_vm11 = vmor %vm15822_vm4, %vm723_vm10  ;;  %vm701_vm12 = vcmask 1046532   ;;  %s9169_s12 = smov 64   ;;  %s9170_s13 = smov 32   ;;  %vm987_vm14 = vcmask 64512  }
  0x17   : > { %7831 = vmatmul.mubr.msk.f32.vlgmr.msra.gmra.mrb[0].mxu0 %vm387_vm1, %v381_v16  ;;  %v593_v56 = vunpack.c.0.s8 %v592_v49  ;;  %v696_v35 = vcombine.high %v9344_v19, %v9344_v19  ;;  %v7635_v41 = vrot.slane %v9344_v19, 10  ;;  %v7630_v50 = vrot.slane %v9344_v19, 9  ;;  %vm9409_vm13 = vmor %vm15820_vm5, %vm701_vm12  ;;  %s9171_s25 = smov 8   ;;  %s8173_s23 = smul.u32 288, %s17198_s18 }
  0x18   : > { %vm993_vm15 = vcmask 130048   ;;  %vm999_vm10 = vcmask 195584   ;;  %vm1016_vm12 = vcmask 392192   ;;  %vm1033_vm0 = vcmask 588800  }
  0x19   : > { %7949 = vmatpush3.bf16.msra.mxu1 %v7948_v17  ;;  %v9325_v62 = vsub.s32 %v593_v56, %v595_v57  ;;  %v727_v42 = vrot.slane %v696_v35, 6  ;;  %v705_v49 = vrot.slane %v696_v35, 5 }
  0x1a   : > { %7950 = vmatprep.subr.bf16.mxu1 %v15831_v3 }
  0x1b   : > { %16059 = vst [vmem:[#allocation2_spill] sm:$0xff] %v9325_v62 }
  0x1d   : > { %7952 = vmatpush3.bf16.msra.mxu1 %v7951_v20 }
  0x1e   : > { %7992 = vmatprep.subr.bf16.mxu1 %v15831_v3 }
  0xea   : > { %v457_v22 = vpop.f32.mrb[0].mxu0 }
  0xeb   : > { %v458_v23 = vadd.f32 %v457_v22, %v386_v21  ;;  %v7832_v24 = vpop.f32.mrb[1].mxu0 }
  0xed   : > { %v461_v25 = vmax.f32 %v458_v23, 0.0  ;;  %v7954_v23 = vpack.c.bf16 %v608_v14, %v607_v13  ;;  %v611_v14 = vld [vmem:[%s15801_s5 + $0x20] sm:$0xff] }
  0xef   : > { %7850 = vmatmul.mubr.msk.f32.vlgmr.msra.gmra.mrb[0].mxu1 %vm471_vm2, %v461_v25  ;;  %7955 = vmatpush1.bf16.msra.mxu0 %v7954_v23 }
  0xf0   : > { %7956 = vmatprep.subr.bf16.mxu0 %v15831_v3 }
 0x1c2   : > { %v541_v27 = vpop.f32.mrb[0].mxu1 }
 0x1c3   : > { %v542_v28 = vadd.f32 %v541_v27, %v470_v26  ;;  %v7851_v29 = vpop.f32.mrb[1].mxu1 }
 0x1c4   : > { %v9355_v29 = vcombine.low %v9344_v19, %v9344_v19 }
 0x1c5   : > { %v545_v30 = vmax.f32 %v542_v28, 0.0 }
 0x1c7   : > { %v555_v31 = vrot.slane %v545_v30, 5  ;;  %v547_v32 = vrot.slane %v545_v30, 7  ;;  %v559_v33 = vrot.slane %v545_v30, 4  ;;  %v551_v34 = vrot.slane %v545_v30, 6 }
 0x1c8   : > { %v567_v37 = vrot.slane %v545_v30, 2  ;;  %v563_v38 = vrot.slane %v545_v30, 3  ;;  %v571_v44 = vrot.slane %v545_v30, 1 }
 0x1c9   : > { %556 = vrot.lane.b32.xlu1 %v555_v31, %s9157_s14  ;;  %548 = vrot.lane.b32.xlu0 %v547_v32, %s15812_s15 }
 0x1cd   : > { %560 = vrot.lane.b32.xlu1 %v559_v33, %s15808_s16  ;;  %552 = vrot.lane.b32.xlu0 %v551_v34, %s15810_s19  ;;  %s9172_s19 = smov 56  }
 0x1d1   : > { %568 = vrot.lane.b32.xlu1 %v567_v37, %s9161_s20  ;;  %564 = vrot.lane.b32.xlu0 %v563_v38, %s9162_s21 }
 0x1d5   : > { %572 = vrot.lane.b32.xlu0 %v571_v44, %s9163_s22 }
 0x23b   : > { %v557_v46 = vpop.permute.xlu1 %556  ;;  %v549_v47 = vpop.permute.xlu0 %548 }
 0x23c   : > { %v576_v51 = vsel %vm575_vm3, %v545_v30, %v549_v47 }
 0x23f   : > { %v561_v52 = vpop.permute.xlu1 %560  ;;  %v553_v53 = vpop.permute.xlu0 %552 }
 0x240   : > { %v578_v54 = vsel %vm15822_vm4, %v576_v51, %v553_v53  ;;  %v9391_v51 = vsel %vm9382_vm11, %v7635_v41, %v727_v42 }
 0x241   : > { %v580_v55 = vsel %vm15820_vm5, %v578_v54, %v557_v46 }
 0x242   : > { %v582_v58 = vsel %vm15819_vm6, %v580_v55, %v561_v52 }
 0x243   : > { %v565_v59 = vpop.permute.xlu0 %564  ;;  %v569_v60 = vpop.permute.xlu1 %568 }
 0x244   : > { %v584_v61 = vsel %vm15818_vm7, %v582_v58, %v565_v59  ;;  %v9416_v59 = vcombine.low %v9391_v51, %v9391_v51 }
 0x245   : > { %v586_v63 = vsel %vm15817_vm8, %v584_v61, %v569_v60 }
 0x247   : > { %v573_v0 = vpop.permute.xlu0 %572 }
 0x248   : > { %v588_v1 = vsel %vm15821_vm9, %v586_v63, %v573_v0  ;;  %v9428_v63 = vsel %vm9409_vm13, %v7630_v50, %v705_v49  ;;  %v621_v50 = vld [vmem:[%s15801_s5 + $0x70] sm:$0xff] }
 0x249   : > { %v590_v2 = vcombine.high %v588_v1, %v588_v1  ;;  %v597_v4 = vrot.slane %v588_v1, %v9325_v62  ;;  %v609_v1 = vld [vmem:[%s15801_s5 + $0x10] sm:$0xff] }
 0x24b   : > { %v9331_v5 = vrot.slane %v590_v2, %v9325_v62  ;;  %v605_v7 = vcombine.high %v597_v4, %v597_v4  ;;  %v637_v8 = vrot.slane %v597_v4, 7  ;;  %v647_v9 = vrot.slane %v597_v4, 6  ;;  %v610_v2 = vld [vmem:[%s15801_s5 + $0x18] sm:$0xff] }
 0x24c   : > { %v657_v17 = vrot.slane %v597_v4, 5 }
 0x24d   : > { %v638_v10 = vrot.slane %v605_v7, 7  ;;  %v639_v11 = vrot.slane %v9331_v5, 7  ;;  %v648_v12 = vrot.slane %v605_v7, 6  ;;  %v667_v15 = vsel %vm575_vm3, 0.0, %v637_v8 }
 0x24e   : > { %v649_v16 = vrot.slane %v9331_v5, 6  ;;  %v658_v20 = vrot.slane %v605_v7, 5  ;;  %v672_v21 = vsel %vm15822_vm4, %v667_v15, %v647_v9  ;;  %v659_v40 = vrot.slane %v9331_v5, 5  ;;  %v612_v15 = vld [vmem:[%s15801_s5 + $0x28] sm:$0xff] }
 0x24f   : > { %v668_v18 = vsel %vm575_vm3, 0.0, %v638_v10  ;;  %v669_v24 = vsel %vm575_vm3, 0.0, %v639_v11  ;;  %v677_v25 = vsel %vm15820_vm5, %v672_v21, %v647_v9  ;;  %v9452_v10 = vcombine.low %v9428_v63, %v9428_v63 }
 0x250   : > { %v673_v22 = vsel %vm15822_vm4, %v668_v18, %v648_v12  ;;  %v682_v28 = vsel %vm15819_vm6, %v677_v25, %v657_v17  ;;  %v674_v32 = vsel %vm15822_vm4, %v669_v24, %v649_v16  ;;  %v613_v18 = vld [vmem:[%s15801_s5 + $0x30] sm:$0xff]  ;;  %v7960_v21 = vpack.c.bf16 %v612_v15, %v611_v14  ;;  %v615_v25 = vld [vmem:[%s15801_s5 + $0x40] sm:$0xff] }
 0x251   : > { %v678_v26 = vsel %vm15820_vm5, %v673_v22, %v648_v12  ;;  %v687_v31 = vsel %vm15818_vm7, %v682_v28, 0.0  ;;  %v679_v39 = vsel %vm15820_vm5, %v674_v32, %v649_v16  ;;  %v7957_v12 = vpack.c.bf16 %v610_v2, %v609_v1  ;;  %v627_v15 = vld [vmem:[%s15801_s5 + $0xa0] sm:$0xff] }
 0x252   : > { %v683_v27 = vsel %vm15819_vm6, %v678_v26, %v658_v20  ;;  %v9364_v33 = vcombine.low %v9344_v19, %v687_v31  ;;  %v795_v34 = vcombine.low %v687_v31, %v687_v31  ;;  %v697_v36 = vcombine.high %v687_v31, %v687_v31  ;;  %v614_v20 = vld [vmem:[%s15801_s5 + $0x38] sm:$0xff]  ;;  %v616_v26 = vld [vmem:[%s15801_s5 + $0x48] sm:$0xff] }
 0x253   : > { %v9358_v30 = vsel %vm15818_vm7, %v683_v27, 0.0  ;;  %v684_v47 = vsel %vm15819_vm6, %v679_v39, %v659_v40  ;;  %v7636_v48 = vrot.slane %v687_v31, 10  ;;  %v7631_v58 = vrot.slane %v687_v31, 9  ;;  %7958 = vmatpush1.bf16.msra.mxu0 %v7957_v12 }
 0x254   : > { %1112 = vrot.lane.b32.xlu0 %v9364_v33, %s9165_s27  ;;  %v8201_v37 = vpack.i.bf16 %v795_v34, %v9355_v29  ;;  %v9372_v38 = vcombine.low %v687_v31, %v9358_v30  ;;  %v731_v43 = vrot.slane %v697_v36, 6  ;;  %v709_v53 = vrot.slane %v697_v36, 5  ;;  %7959 = vmatprep.subr.bf16.mxu0 %v15831_v3  ;;  %v617_v36 = vld [vmem:[%s15801_s5 + $0x50] sm:$0xff] }
 0x255   : > { %v9398_v54 = vsel %vm15818_vm7, %v684_v47, 0.0  ;;  %v9406_v56 = vcombine.low %v9358_v30, %v9358_v30  ;;  %v9443_v7 = vcombine.low %v9358_v30, %v9344_v19  ;;  %v698_v16 = vcombine.high %v9358_v30, %v9358_v30 }
 0x256   : > { %8202 = vrot.lane.b32.xlu1 %v8201_v37, %s9166_s28  ;;  %v8206_v44 = vpack.i.bf16 %v9372_v38, %v9355_v29  ;;  %v9395_v52 = vsel %vm9382_vm11, %v7636_v48, %v731_v43  ;;  %v8211_v55 = vpack.i.bf16 %v9372_v38, %v9364_v33  ;;  %v9424_v61 = vcombine.low %v9398_v54, %v9398_v54  ;;  %v618_v37 = vld [vmem:[%s15801_s5 + $0x58] sm:$0xff] }
 0x257   : > { %v9420_v60 = vcombine.low %v9391_v51, %v9395_v52  ;;  %v710_v0 = vsel %vm9409_vm13, %v7631_v58, %v709_v53  ;;  %v8216_v4 = vpack.i.bf16 %v9406_v56, %v795_v34  ;;  %v8221_v13 = vpack.i.bf16 %v9443_v7, %v9372_v38  ;;  %7961 = vmatpush1.bf16.msra.mxu0 %v7960_v21  ;;  %v623_v58 = vld [vmem:[%s15801_s5 + $0x80] sm:$0xff] }
 0x258   : > { %1157 = vrot.lane.b32.xlu0 %v795_v34, %s15813_s29  ;;  %v8276_v8 = vpack.i.bf16 %v9424_v61, %v9406_v56  ;;  %v9454_v11 = vcombine.low %v710_v0, %v710_v0  ;;  %v756_v22 = vcombine.low %v9428_v63, %v710_v0  ;;  %v713_v23 = vrot.slane %v698_v16, 5  ;;  %7962 = vmatprep.subr.bf16.mxu0 %v15831_v3 }
 0x259   : > { %v8231_v9 = vpack.i.bf16 %v9420_v60, %v9416_v59  ;;  %v7963_v24 = vpack.c.bf16 %v614_v20, %v613_v18  ;;  %v7632_v27 = vrot.slane %v9358_v30, 9  ;;  %v9493_v31 = vcombine.low %v9395_v52, %v9395_v52 }
 0x25a   : > { %8207 = vrot.lane.b32.xlu1 %v8206_v44, %s9168_s30  ;;  %v8236_v17 = vpack.i.bf16 %v9454_v11, %v9452_v10  ;;  %v8226_v28 = vpack.i.bf16 %v756_v22, %v9452_v10  ;;  %v735_v32 = vrot.slane %v698_v16, 6  ;;  %v7966_v35 = vpack.c.bf16 %v616_v26, %v615_v25  ;;  %v620_v44 = vld [vmem:[%s15801_s5 + $0x68] sm:$0xff]  ;;  %v631_v26 = vld [vmem:[%s15801_s5 + $0xc0] sm:$0xff] }
 0x25b   : > { %v9497_v34 = vsel %vm9409_vm13, %v7632_v27, %v713_v23  ;;  %7964 = vmatpush1.bf16.msra.mxu0 %v7963_v24  ;;  %v7637_v39 = vrot.slane %v9358_v30, 10  ;;  %v8241_v41 = vpack.i.bf16 %v9493_v31, %v9416_v59  ;;  %v7969_v43 = vpack.c.bf16 %v618_v37, %v617_v36  ;;  %v619_v30 = vld [vmem:[%s15801_s5 + $0x60] sm:$0xff]  ;;  %v628_v16 = vld [vmem:[%s15801_s5 + $0xa8] sm:$0xff] }
 0x25c   : > { %1202 = vrot.lane.b32.xlu0 %v9372_v38, %s9169_s12  ;;  %7965 = vmatprep.subr.bf16.mxu0 %v15831_v3  ;;  %v9509_v40 = vcombine.low %v710_v0, %v9497_v34  ;;  %v7972_v49 = vpack.c.bf16 %v620_v44, %v619_v30  ;;  %v624_v0 = vld [vmem:[%s15801_s5 + $0x88] sm:$0xff]  ;;  %v7984_v20 = vpack.c.bf16 %v628_v16, %v627_v15 }
 0x25d   : > { %v736_v42 = vsel %vm9382_vm11, %v7637_v39, %v735_v32  ;;  %v7978_v2 = vpack.c.bf16 %v624_v0, %v623_v58  ;;  %v632_v27 = vld [vmem:[%s15801_s5 + $0xc8] sm:$0xff]  ;;  %v9624_v37 = vcombine.low %v9497_v34, %v9428_v63  ;;  %v633_v39 = vld [vmem:[%s15801_s5 + $0xd0] sm:$0xff]  ;;  %v699_v30 = vcombine.high %v9398_v54, %v9398_v54 }
 0x25e   : > { %8212 = vrot.lane.b32.xlu1 %v8211_v55, %s9163_s22  ;;  %v9526_v47 = vcombine.low %v9395_v52, %v736_v42  ;;  %v8246_v48 = vpack.i.bf16 %v9509_v40, %v9452_v10  ;;  %v622_v52 = vld [vmem:[%s15801_s5 + $0x78] sm:$0xff]  ;;  %v8256_v1 = vpack.i.bf16 %v9509_v40, %v756_v22  ;;  %v9585_v18 = vcombine.low %v736_v42, %v736_v42 }
 0x25f   : > { %7967 = vmatpush1.bf16.msra.mxu0 %v7966_v35  ;;  %v7975_v55 = vpack.c.bf16 %v622_v52, %v621_v50  ;;  %v9589_v21 = vcombine.low %v736_v42, %v9391_v51  ;;  %v9637_v42 = vcombine.low %v9344_v19, %v9398_v54  ;;  %v717_v50 = vrot.slane %v699_v30, 5 }
 0x260   : > { %1159 = vrot.lane.b32.xlu0 %v9406_v56, %s15813_s29  ;;  %7968 = vmatprep.subr.bf16.mxu0 %v15831_v3  ;;  %v8251_v53 = vpack.i.bf16 %v9526_v47, %v9416_v59  ;;  %v8261_v12 = vpack.i.bf16 %v9526_v47, %v9420_v60  ;;  %v8271_v23 = vpack.i.bf16 %v9585_v18, %v9493_v31 }
 0x262   : > { %8217 = vrot.lane.b32.xlu1 %v8216_v4, %s15808_s16  ;;  %v625_v4 = vld [vmem:[%s15801_s5 + $0x90] sm:$0xff]  ;;  %s16064_s16 = smov 112  }
 0x263   : > { %7970 = vmatpush1.bf16.msra.mxu0 %v7969_v43 }
 0x264   : > { %8232 = vrot.lane.b32.xlu0 %v8231_v9, %s9165_s27  ;;  %7971 = vmatprep.subr.bf16.mxu0 %v15831_v3  ;;  %v626_v9 = vld [vmem:[%s15801_s5 + $0x98] sm:$0xff] }
 0x265   : > { %v7981_v14 = vpack.c.bf16 %v626_v9, %v625_v4 }
 0x266   : > { %8222 = vrot.lane.b32.xlu1 %v8221_v13, %s15812_s15  ;;  %v9569_v13 = vcombine.low %v9497_v34, %v9497_v34  ;;  %s16065_s15 = smov 40  }
 0x267   : > { %7973 = vmatpush1.bf16.msra.mxu0 %v7972_v49  ;;  %v7638_v49 = vrot.slane %v9398_v54, 10 }
 0x268   : > { %8237 = vrot.lane.b32.xlu0 %v8236_v17, %s9170_s13  ;;  %7974 = vmatprep.subr.bf16.mxu0 %v15831_v3  ;;  %v8266_v17 = vpack.i.bf16 %v9569_v13, %v9454_v11 }
 0x26a   : > { %1114 = vrot.lane.b32.xlu1 %v9372_v38, %s9165_s27 }
 0x26b   : > { %7976 = vmatpush1.bf16.msra.mxu0 %v7975_v55  ;;  %v7633_v55 = vrot.slane %v9398_v54, 9 }
 0x26c   : > { %1127 = vrot.lane.b32.xlu0 %v756_v22, %s9166_s28  ;;  %7977 = vmatprep.subr.bf16.mxu0 %v15831_v3  ;;  %v630_v22 = vld [vmem:[%s15801_s5 + $0xb8] sm:$0xff] }
 0x26e   : > { %8227 = vrot.lane.b32.xlu1 %v8226_v28, %s9171_s25 }
 0x26f   : > { %7979 = vmatpush1.bf16.msra.mxu0 %v7978_v2 }
 0x270   : > { %1142 = vrot.lane.b32.xlu0 %v9420_v60, %s9170_s13  ;;  %7980 = vmatprep.subr.bf16.mxu0 %v15831_v3  ;;  %v606_v60 = vcombine.high %v9331_v5, %v9331_v5  ;;  %v629_v5 = vld [vmem:[%s15801_s5 + $0xb0] sm:$0xff] }
 0x271   : > { %v7987_v24 = vpack.c.bf16 %v630_v22, %v629_v5 }
 0x272   : > { %8242 = vrot.lane.b32.xlu1 %v8241_v41, %s15813_s29  ;;  %v650_v25 = vrot.slane %v606_v60, 6  ;;  %v660_v36 = vrot.slane %v606_v60, 5  ;;  %s16066_s29 = smov 96  }
 0x273   : > { %7982 = vmatpush1.bf16.msra.mxu0 %v7981_v14 }
 0x274   : > { %1172 = vrot.lane.b32.xlu0 %v9454_v11, %s9168_s30  ;;  %7983 = vmatprep.subr.bf16.mxu0 %v15831_v3  ;;  %v640_v11 = vrot.slane %v606_v60, 7 }
 0x276   : > { %8247 = vrot.lane.b32.xlu1 %v8246_v48, %s9172_s19  ;;  %v670_v28 = vsel %vm575_vm3, 0.0, %v640_v11  ;;  %v739_v48 = vrot.slane %v699_v30, 6 }
 0x277   : > { %7985 = vmatpush1.bf16.msra.mxu0 %v7984_v20  ;;  %v675_v32 = vsel %vm15822_vm4, %v670_v28, %v650_v25  ;;  %vm15823_vm4 = vcmask 982016  }
 0x278   : > { %1187 = vrot.lane.b32.xlu0 %v9493_v31, %s9172_s19  ;;  %7986 = vmatprep.subr.bf16.mxu0 %v15831_v3  ;;  %v7990_v31 = vpack.c.bf16 %v632_v27, %v631_v26  ;;  %v680_v35 = vsel %vm15820_vm5, %v675_v32, %v650_v25  ;;  %vm15825_vm5 = vcmask 850944  }
 0x279   : > { %v685_v41 = vsel %vm15819_vm6, %v680_v35, %v660_v36  ;;  %vm15826_vm6 = vcmask 785408  }
 0x27a   : > { %8252 = vrot.lane.b32.xlu1 %v8251_v53, %s9169_s12  ;;  %v690_v34 = vsel %vm15818_vm7, %v685_v41, 0.0  ;;  %v740_v53 = vsel %vm9382_vm11, %v7638_v49, %v739_v48  ;;  %v1633_v49 = vrot.slane %v15829_v6, 4  ;;  %vm15827_vm7 = vcmask 719872  }
 0x27b   : > { %7988 = vmatpush1.bf16.msra.mxu0 %v7987_v24  ;;  %v9646_v43 = vcombine.low %v9398_v54, %v690_v34  ;;  %v9662_v52 = vcombine.low %v690_v34, %v690_v34  ;;  %v778_v58 = vcombine.low %v9391_v51, %v740_v53  ;;  %v700_v0 = vcombine.high %v690_v34, %v690_v34 }
 0x27c   : > { %1100 = vrot.lane.b32.xlu0 %v9526_v47, %s9171_s25  ;;  %7989 = vmatprep.subr.bf16.mxu0 %v15831_v3  ;;  %v835_v54 = vcombine.low %v740_v53, %v740_v53  ;;  %v7634_v14 = vrot.slane %v690_v34, 9  ;;  %v9703_v57 = vcombine.low %v690_v34, %v9344_v19 }
 0x27d   : > { %v8281_v44 = vpack.i.bf16 %v9646_v43, %v9443_v7  ;;  %v743_v2 = vrot.slane %v700_v0, 6  ;;  %v721_v4 = vrot.slane %v700_v0, 5  ;;  %v8321_v25 = vpack.i.bf16 %v9662_v52, %v9424_v61 }
 0x27e   : > { %8257 = vrot.lane.b32.xlu1 %v8256_v1, %s9161_s20  ;;  %v8291_v1 = vpack.i.bf16 %v778_v58, %v9526_v47  ;;  %v8316_v27 = vpack.i.bf16 %v9646_v43, %v9637_v42  ;;  %v8346_v30 = vpack.i.bf16 %v9703_v57, %v9646_v43 }
 0x27f   : > { %7991 = vmatpush1.bf16.msra.mxu0 %v7990_v31  ;;  %v722_v60 = vsel %vm9409_vm13, %v7634_v14, %v721_v4 }
 0x280   : > { %1217 = vrot.lane.b32.xlu0 %v9509_v40, %s9163_s22  ;;  %1405 = vmatprep.subr.mxu0 %v15829_v6  ;;  %v9721_v19 = vcombine.low %v722_v60, %v9428_v63 }
 0x282   : > { %8262 = vrot.lane.b32.xlu1 %v8261_v12, %s9162_s21  ;;  %v7639_v12 = vrot.slane %v690_v34, 10 }
 0x283   : > { %1406 = vmatpush1.msra.mxu0 %v633_v39 }
 0x284   : > { %1232 = vrot.lane.b32.xlu0 %v9526_v47, %s9161_s20  ;;  %8040 = vmatprep.subr.bf16.mxu0 %v15831_v3  ;;  %v744_v16 = vsel %vm9382_vm11, %v7639_v12, %v743_v2  ;;  %vm1010_vm11 = vcmask 326656  }
 0x286   : > { %8267 = vrot.lane.b32.xlu1 %v8266_v17, %s9157_s14  ;;  %v9690_v17 = vcombine.low %v740_v53, %v744_v16 }
 0x288   : > { %1102 = vrot.lane.b32.xlu0 %v9589_v21, %s9171_s25  ;;  %v8331_v32 = vpack.i.bf16 %v9690_v17, %v778_v58 }
 0x28a   : > { %8272 = vrot.lane.b32.xlu1 %v8271_v23, %s16064_s16 }
 0x28c   : > { %1129 = vrot.lane.b32.xlu0 %v9509_v40, %s9166_s28 }
 0x28e   : > { %1204 = vrot.lane.b32.xlu1 %v9443_v7, %s9169_s12  ;;  %v718_v7 = vsel %vm9409_vm13, %v7633_v55, %v717_v50  ;;  %v1667_v55 = vrot.slane %v15829_v6, 3  ;;  %vm1022_vm13 = vcmask 457728  }
 0x28f   : > { %v758_v56 = vcombine.low %v9428_v63, %v718_v7  ;;  %v9692_v20 = vcombine.low %v718_v7, %v722_v60  ;;  %v9738_v63 = vcombine.low %v744_v16, %v9391_v51 }
 0x290   : > { %1189 = vrot.lane.b32.xlu0 %v9585_v18, %s9172_s19  ;;  %v1816_v2 = vsel %vm575_vm3, %v1667_v55, 0.0 }
 0x291   : > { %v8286_v9 = vpack.i.bf16 %v758_v56, %v9509_v40  ;;  %v8306_v46 = vpack.i.bf16 %v9692_v20, %v9624_v37  ;;  %v8326_v51 = vpack.i.bf16 %v9692_v20, %v758_v56 }
 0x292   : > { %1144 = vrot.lane.b32.xlu1 %v9526_v47, %s9170_s13  ;;  %v8301_v47 = vpack.i.bf16 %v835_v54, %v9585_v18  ;;  %v9712_v18 = vcombine.low %v744_v16, %v744_v16 }
 0x294   : > { %1219 = vrot.lane.b32.xlu0 %v9624_v37, %s9163_s22  ;;  %v8341_v35 = vpack.i.bf16 %v9712_v18, %v835_v54 }
 0x296   : > { %1174 = vrot.lane.b32.xlu1 %v9569_v13, %s9168_s30 }
 0x298   : > { %1116 = vrot.lane.b32.xlu0 %v9637_v42, %s9165_s27 }
 0x29a   : > { %1234 = vrot.lane.b32.xlu1 %v9589_v21, %s9161_s20 }
 0x29c   : > { %1206 = vrot.lane.b32.xlu0 %v9646_v43, %s9169_s12 }
 0x29e   : > { %1161 = vrot.lane.b32.xlu1 %v9424_v61, %s16065_s15 }
 0x2a0   : > { %8282 = vrot.lane.b32.xlu0 %v8281_v44, %s9168_s30 }
 0x2a2   : > { %8277 = vrot.lane.b32.xlu1 %v8276_v8, %s9166_s28  ;;  %v816_v8 = vcombine.low %v718_v7, %v718_v7 }
 0x2a4   : > { %1163 = vrot.lane.b32.xlu0 %v9662_v52, %s16065_s15  ;;  %v8296_v15 = vpack.i.bf16 %v816_v8, %v9569_v13  ;;  %v8311_v13 = vpack.i.bf16 %v9690_v17, %v9589_v21  ;;  %v9727_v21 = vcombine.low %v722_v60, %v722_v60 }
 0x2a6   : > { %1118 = vrot.lane.b32.xlu1 %v9646_v43, %s9165_s27  ;;  %v8336_v39 = vpack.i.bf16 %v9727_v21, %v816_v8 }
 0x2a8   : > { %1146 = vrot.lane.b32.xlu0 %v778_v58, %s9170_s13 }
 0x2aa   : > { %1131 = vrot.lane.b32.xlu1 %v758_v56, %s9166_s28  ;;  %v1782_v56 = vsel %vm15817_vm8, %v9317_v45, %v1633_v49 }
 0x2ac   : > { %1176 = vrot.lane.b32.xlu0 %v816_v8, %s9168_s30 }
 0x2ae   : > { %1191 = vrot.lane.b32.xlu1 %v835_v54, %s9172_s19 }
 0x2b0   : > { %8292 = vrot.lane.b32.xlu0 %v8291_v1, %s9165_s27  ;;  %v9799_v1 = vsel %vm15821_vm9, %v1782_v56, %v1633_v49 }
 0x2b1   : > { %16068 = vst [vmem:[#allocation3_spill] sm:$0xff] %v9799_v1  ;;  %v1918_v14 = vrot.slane %v9799_v1, 2 }
 0x2b2   : > { %8287 = vrot.lane.b32.xlu1 %v8286_v9, %s9171_s25 }
 0x2b4   : > { %8297 = vrot.lane.b32.xlu0 %v8296_v15, %s9170_s13  ;;  %v1919_v15 = vrot.slane %v1816_v2, 2 }
 0x2b6   : > { %8302 = vrot.lane.b32.xlu1 %v8301_v47, %s16065_s15 }
 0x2b8   : > { %1236 = vrot.lane.b32.xlu0 %v9690_v17, %s9161_s20 }
 0x2ba   : > { %1221 = vrot.lane.b32.xlu1 %v9692_v20, %s9163_s22 }
 0x2bc   : > { %8307 = vrot.lane.b32.xlu0 %v8306_v46, %s9172_s19 }
 0x2be   : > { %1208 = vrot.lane.b32.xlu1 %v9703_v57, %s9169_s12 }
 0x2c0   : > { %8312 = vrot.lane.b32.xlu0 %v8311_v13, %s9169_s12 }
 0x2c2   : > { %1133 = vrot.lane.b32.xlu1 %v9692_v20, %s9166_s28 }
 0x2c4   : > { %1193 = vrot.lane.b32.xlu0 %v9712_v18, %s9172_s19 }
 0x2c6   : > { %v9716_v5 = vpop.permute.xlu0 %1112  ;;  %1148 = vrot.lane.b32.xlu1 %v9690_v17, %s9170_s13 }
 0x2c8   : > { %v9723_v22 = vpop.permute.xlu1 %8202  ;;  %1223 = vrot.lane.b32.xlu0 %v9721_v19, %s9163_s22 }
 0x2c9   : > { %v8204_v4 = vunpack.i.l.bf16 %v9723_v22 }
 0x2ca   : > { %v9729_v11 = vpop.permute.xlu0 %1157  ;;  %1178 = vrot.lane.b32.xlu1 %v9727_v21, %s9168_s30 }
 0x2cc   : > { %v9733_v23 = vpop.permute.xlu1 %8207  ;;  %1104 = vrot.lane.b32.xlu0 %v9690_v17, %s9171_s25 }
 0x2ce   : > { %v9740_v24 = vpop.permute.xlu0 %1202  ;;  %1238 = vrot.lane.b32.xlu1 %v9738_v63, %s9161_s20 }
 0x2d0   : > { %v9746_v26 = vpop.permute.xlu1 %8212  ;;  %8322 = vrot.lane.b32.xlu0 %v8321_v25, %s16066_s29  ;;  %v9821_v25 = vsel %vm15817_vm8, %v1918_v14, %v1919_v15  ;;  %vm15828_vm8 = vcmask 654336  }
 0x2d1   : > { %16069 = vst [vmem:[#allocation4_spill] sm:$0xff] %v9821_v25 }
 0x2d2   : > { %v9751_v28 = vpop.permute.xlu0 %1159  ;;  %8317 = vrot.lane.b32.xlu1 %v8316_v27, %s9163_s22 }
 0x2d4   : > { %v9755_v31 = vpop.permute.xlu1 %8217  ;;  %8327 = vrot.lane.b32.xlu0 %v8326_v51, %s9161_s20 }
 0x2d6   : > { %v9759_v61 = vpop.permute.xlu0 %8232  ;;  %8332 = vrot.lane.b32.xlu1 %v8331_v32, %s9162_s21  ;;  %s16067_s21 = smov 120  }
 0x2d7   : > { %v8234_v8 = vunpack.i.l.bf16 %v9759_v61 }
 0x2d8   : > { %v9763_v36 = vpop.permute.xlu1 %8222  ;;  %8342 = vrot.lane.b32.xlu0 %v8341_v35, %s16064_s16 }
 0x2da   : > { %v9767_v41 = vpop.permute.xlu0 %8237  ;;  %8337 = vrot.lane.b32.xlu1 %v8336_v39, %s9157_s14 }
 0x2db   : > { %v8239_v16 = vunpack.i.l.bf16 %v9767_v41 }
 0x2dc   : > { %v9770_v34 = vpop.permute.xlu1 %1114  ;;  %1106 = vrot.lane.b32.xlu0 %v9738_v63, %s9171_s25 }
 0x2de   : > { %v1128_v44 = vpop.permute.xlu0 %1127  ;;  %8347 = vrot.lane.b32.xlu1 %v8346_v30, %s16067_s21  ;;  %s15447_s21 = scalar_lea.vmem %s15807_s11, %s8173_s23 }
 0x2e0   : > { %v9777_v48 = vpop.permute.xlu1 %8227  ;;  %1135 = vrot.lane.b32.xlu0 %v9452_v10, %s9166_s28 }
 0x2e1   : > { %v8229_v50 = vunpack.i.l.bf16 %v9777_v48 }
 0x2e2   : > { %v1143_v53 = vpop.permute.xlu0 %1142  ;;  %1120 = vrot.lane.b32.xlu1 %v9355_v29, %s9165_s27 }
 0x2e3   : > { %v988_v7 = vsel %vm987_vm14, %v9355_v29, %v8229_v50 }
 0x2e4   : > { %v9788_v58 = vpop.permute.xlu1 %8242  ;;  %1165 = vrot.lane.b32.xlu0 %v9355_v29, %s16065_s15  ;;  %v994_v54 = vsel %vm993_vm15, %v988_v7, %v8234_v8 }
 0x2e5   : > { %v1000_v45 = vsel %vm999_vm10, %v994_v54, %v8204_v4  ;;  %v8244_v60 = vunpack.i.l.bf16 %v9788_v58  ;;  %v8214_v54 = vunpack.i.l.bf16 %v9746_v26 }
 0x2e6   : > { %v1173_v0 = vpop.permute.xlu0 %1172  ;;  %1150 = vrot.lane.b32.xlu1 %v9416_v59, %s9170_s13  ;;  %v1005_v46 = vsel %vm387_vm1, %v1000_v45, %v8239_v16 }
 0x2e7   : > { %v1011_v51 = vsel %vm1010_vm11, %v1005_v46, %v8244_v60 }
 0x2e8   : > { %v9803_v9 = vpop.permute.xlu1 %8247  ;;  %1195 = vrot.lane.b32.xlu0 %v9416_v59, %s9172_s19 }
 0x2e9   : > { %v8249_v32 = vunpack.i.l.bf16 %v9803_v9 }
 0x2ea   : > { %v1188_v12 = vpop.permute.xlu0 %1187  ;;  %1180 = vrot.lane.b32.xlu1 %v9452_v10, %s9168_s30 }
 0x2ec   : > { %v9813_v47 = vpop.permute.xlu1 %8252  ;;  %1225 = vrot.lane.b32.xlu0 %v9452_v10, %s9163_s22 }
 0x2ee   : > { %v1101_v13 = vpop.permute.xlu0 %1100  ;;  %1210 = vrot.lane.b32.xlu1 %v9355_v29, %s9169_s12  ;;  %v8209_v29 = vunpack.i.l.bf16 %v9733_v23 }
 0x2ef   : > { %v9825_v27 = vsel %vm987_vm14, %v9509_v40, %v1101_v13  ;;  %v8254_v40 = vunpack.i.l.bf16 %v9813_v47 }
 0x2f0   : > { %v1251_v10 = vsel %vm993_vm15, %v9825_v27, %v9716_v5  ;;  %v9832_v35 = vpop.permute.xlu1 %8257  ;;  %807 = vrot.lane.b32.xlu0 %v9662_v52, %s9166_s28  ;;  %v1017_v5 = vsel %vm1016_vm12, %v1011_v51, %v8209_v29  ;;  %v1867_v52 = vrot.slane %v9799_v1, 1  ;;  %v8224_v29 = vunpack.i.l.bf16 %v9763_v36 }
 0x2f1   : > { %v1259_v39 = vsel %vm999_vm10, %v1251_v10, %v1128_v44  ;;  %v1023_v55 = vsel %vm1022_vm13, %v1017_v5, %v8249_v32  ;;  %v8351_v44 = vpack.i.bf16 %v9821_v25, %v9703_v57 }
 0x2f2   : > { %v1267_v30 = vsel %vm387_vm1, %v1259_v39, %v1143_v53  ;;  %v1218_v49 = vpop.permute.xlu0 %1217  ;;  %1240 = vrot.lane.b32.xlu1 %v9416_v59, %s9161_s20  ;;  %v1868_v59 = vrot.slane %v1816_v2, 1  ;;  %v1028_v53 = vsel %vm471_vm2, %v1023_v55, %v8254_v40 }
 0x2f3   : > { %v1275_v50 = vsel %vm1010_vm11, %v1267_v30, %v9729_v11  ;;  %v8259_v11 = vunpack.i.l.bf16 %v9832_v35  ;;  %v1034_v2 = vsel %vm1033_vm0, %v1028_v53, %v8214_v54 }
 0x2f4   : > { %v1283_v7 = vsel %vm1016_vm12, %v1275_v50, %v1173_v0  ;;  %v9848_v56 = vpop.permute.xlu1 %8262  ;;  %768 = vrot.lane.b32.xlu0 %v9692_v20, %s9171_s25  ;;  %v9878_v16 = vsel %vm15821_vm9, %v1867_v52, %v1868_v59  ;;  %vm15824_vm9 = vcmask 916480   ;;  %v8260_v50 = vunpack.i.h.bf16 %v9832_v35 }
 0x2f5   : > { %v1291_v8 = vsel %vm1022_vm13, %v1283_v7, %v1188_v12  ;;  %v8264_v4 = vunpack.i.l.bf16 %v9848_v56  ;;  %v1043_v15 = vsel %vm15828_vm8, %v1034_v2, %v8259_v11  ;;  %16070 = vst [vmem:[#allocation5_spill] sm:$0xff] %v9878_v16  ;;  %v8361_v51 = vpack.i.bf16 %v9878_v16, %v9727_v21 }
 0x2f6   : > { %v1299_v0 = vsel %vm471_vm2, %v1291_v8, %v9740_v24  ;;  %v1233_v45 = vpop.permute.xlu0 %1232  ;;  %8352 = vrot.lane.b32.xlu1 %v8351_v44, %s9168_s30  ;;  %v8356_v24 = vpack.i.bf16 %v9799_v1, %v9690_v17  ;;  %v8219_v17 = vunpack.i.l.bf16 %v9755_v31  ;;  %v8215_v52 = vunpack.i.h.bf16 %v9746_v26 }
 0x2f7   : > { %v1307_v57 = vsel %vm1033_vm0, %v1299_v0, %v1218_v49  ;;  %v1052_v60 = vsel %vm15827_vm7, %v1043_v15, %v8264_v4  ;;  %v8265_v55 = vunpack.i.h.bf16 %v9848_v56 }
 0x2f8   : > { %v1315_v12 = vsel %vm15828_vm8, %v1307_v57, %v1233_v45  ;;  %v9867_v14 = vpop.permute.xlu1 %8267  ;;  %845 = vrot.lane.b32.xlu0 %v9712_v18, %s16065_s15  ;;  %v1061_v10 = vsel %vm15826_vm6, %v1052_v60, %v8219_v17 }
 0x2f9   : > { %7641 = vmatprep.mubr.msk.f32.mxu0 %vm15827_vm7, %v1315_v12  ;;  %v8269_v46 = vunpack.i.l.bf16 %v9867_v14  ;;  %v8270_v2 = vunpack.i.h.bf16 %v9867_v14  ;;  %v8220_v12 = vunpack.i.h.bf16 %v9755_v31 }
 0x2fa   : > { %v1103_v13 = vpop.permute.xlu0 %1102  ;;  %8357 = vrot.lane.b32.xlu1 %v8356_v24, %s9165_s27 }
 0x2fb   : > { %v1070_v39 = vsel %vm15825_vm5, %v1061_v10, %v8269_v46  ;;  %v9906_v30 = vsel %vm987_vm14, %v9624_v37, %v1103_v13  ;;  %v1035_v37 = vsel %vm1033_vm0, %v1028_v53, %v8215_v52 }
 0x2fc   : > { %v9886_v18 = vpop.permute.xlu1 %8272  ;;  %879 = vrot.lane.b32.xlu0 %v9721_v19, %s9172_s19  ;;  %v1252_v44 = vsel %vm993_vm15, %v9906_v30, %v9770_v34  ;;  %v1044_v0 = vsel %vm15828_vm8, %v1035_v37, %v8260_v50  ;;  %v8230_v37 = vunpack.i.h.bf16 %v9777_v48 }
 0x2fd   : > { %v8274_v32 = vunpack.i.l.bf16 %v9886_v18  ;;  %v1053_v57 = vsel %vm15827_vm7, %v1044_v0, %v8265_v55  ;;  %v8275_v53 = vunpack.i.h.bf16 %v9886_v18 }
 0x2fe   : > { %v1130_v40 = vpop.permute.xlu0 %1129  ;;  %8362 = vrot.lane.b32.xlu1 %v8361_v51, %s9170_s13  ;;  %v1062_v13 = vsel %vm15826_vm6, %v1053_v57, %v8220_v12  ;;  %v989_v0 = vsel %vm987_vm14, %v9364_v33, %v8230_v37  ;;  %v8245_v33 = vunpack.i.h.bf16 %v9788_v58  ;;  %v8255_v58 = vunpack.i.h.bf16 %v9813_v47 }
 0x2ff   : > { %v1079_v21 = vsel %vm15824_vm9, %v1070_v39, %v8274_v32  ;;  %v1260_v59 = vsel %vm999_vm10, %v1252_v44, %v1130_v40  ;;  %v1071_v40 = vsel %vm15825_vm5, %v1062_v13, %v8270_v2  ;;  %v8240_v13 = vunpack.i.h.bf16 %v9767_v41 }
 0x300   : > { %v1205_v49 = vpop.permute.xlu1 %1204  ;;  %v1088_v5 = vsel %vm15823_vm4, %v1079_v21, %v8224_v29  ;;  %v8225_v21 = vunpack.i.h.bf16 %v9763_v36 }
 0x301   : > { %1418 = vmatmul.mubr.f32.vlgmr.msra.gmra.mrb[2].mxu0 %v1088_v5 }
 0x302   : > { %v1190_v7 = vpop.permute.xlu0 %1189 }
 0x304   : > { %v1145_v8 = vpop.permute.xlu1 %1144 }
 0x305   : > { %v1268_v45 = vsel %vm387_vm1, %v1260_v59, %v1145_v8 }
 0x306   : > { %v1220_v34 = vpop.permute.xlu0 %1219  ;;  %v1276_v24 = vsel %vm1010_vm11, %v1268_v45, %v9751_v28  ;;  %v1080_v28 = vsel %vm15824_vm9, %v1071_v40, %v8275_v53  ;;  %v8235_v45 = vunpack.i.h.bf16 %v9759_v61 }
 0x308   : > { %v1175_v15 = vpop.permute.xlu1 %1174  ;;  %v995_v48 = vsel %vm993_vm15, %v989_v0, %v8235_v45 }
 0x309   : > { %v1284_v60 = vsel %vm1016_vm12, %v1276_v24, %v1175_v15  ;;  %v8205_v24 = vunpack.i.h.bf16 %v9723_v22 }
 0x30a   : > { %v1292_v51 = vsel %vm1022_vm13, %v1284_v60, %v1190_v7  ;;  %v9938_v10 = vpop.permute.xlu0 %1116 }
 0x30b   : > { %v1300_v39 = vsel %vm471_vm2, %v1292_v51, %v1205_v49  ;;  %v1089_v49 = vsel %vm15823_vm4, %v1080_v28, %v8225_v21  ;;  %v1001_v60 = vsel %vm999_vm10, %v995_v48, %v8205_v24 }
 0x30c   : > { %v1308_v5 = vsel %vm1033_vm0, %v1300_v39, %v1220_v34  ;;  %v1235_v44 = vpop.permute.xlu1 %1234  ;;  %v1006_v61 = vsel %vm387_vm1, %v1001_v60, %v8240_v13  ;;  %v1253_v39 = vsel %vm993_vm15, %v9825_v27, %v9938_v10 }
 0x30d   : > { %v1316_v7 = vsel %vm15828_vm8, %v1308_v5, %v1235_v44  ;;  %v1012_v22 = vsel %vm1010_vm11, %v1006_v61, %v8245_v33  ;;  %v8250_v5 = vunpack.i.h.bf16 %v9803_v9  ;;  %v8210_v44 = vunpack.i.h.bf16 %v9733_v23 }
 0x30e   : > { %7642 = vmatprep.mubr.msk.f32.mxu0 %vm15827_vm7, %v1316_v7  ;;  %v9952_v59 = vpop.permute.xlu0 %1206 }
 0x30f   : > { %1423 = vmatmul.mubr.f32.gmra.mrb[4].mxu0 %v1089_v49  ;;  %v1018_v7 = vsel %vm1016_vm12, %v1012_v22, %v8210_v44 }
 0x310   : > { %v9957_v8 = vpop.permute.xlu1 %1161  ;;  %v1024_v0 = vsel %vm1022_vm13, %v1018_v7, %v8250_v5 }
 0x311   : > { %v9998_v9 = vsel %vm471_vm2, %v1024_v0, %v8255_v58 }
 0x312   : > { %v9962_v57 = vpop.permute.xlu0 %8282  ;;  %v1036_v48 = vsel %vm1033_vm0, %v9998_v9, %v8214_v54 }
 0x313   : > { %v1045_v60 = vsel %vm15828_vm8, %v1036_v48, %v8259_v11 }
 0x314   : > { %v9965_v34 = vpop.permute.xlu1 %8277 }
 0x315   : > { %v8279_v22 = vunpack.i.l.bf16 %v9965_v34 }
 0x316   : > { %v9968_v15 = vpop.permute.xlu0 %1163 }
 0x318   : > { %v9972_v51 = vpop.permute.xlu1 %1118 }
 0x31a   : > { %v9976_v40 = vpop.permute.xlu0 %1146 }
 0x31c   : > { %v9981_v28 = vpop.permute.xlu1 %1131 }
 0x31d   : > { %v1261_v41 = vsel %vm999_vm10, %v1253_v39, %v9981_v28  ;;  %v1054_v39 = vsel %vm15827_vm7, %v1045_v60, %v8264_v4 }
 0x31e   : > { %v9989_v37 = vpop.permute.xlu0 %1176  ;;  %v1269_v27 = vsel %vm387_vm1, %v1261_v41, %v9976_v40  ;;  %v1063_v4 = vsel %vm15826_vm6, %v1054_v39, %v8219_v17 }
 0x31f   : > { %v1277_v23 = vsel %vm1010_vm11, %v1269_v27, %v9957_v8 }
 0x320   : > { %v9994_v49 = vpop.permute.xlu1 %1191  ;;  %v1285_v13 = vsel %vm1016_vm12, %v1277_v23, %v9989_v37 }
 0x321   : > { %v1293_v11 = vsel %vm1022_vm13, %v1285_v13, %v9994_v49 }
 0x322   : > { %v10000_v45 = vpop.permute.xlu0 %8292  ;;  %v1301_v0 = vsel %vm471_vm2, %v1293_v11, %v9952_v59 }
 0x323   : > { %v8294_v33 = vunpack.i.l.bf16 %v10000_v45 }
 0x324   : > { %v10004_v47 = vpop.permute.xlu1 %8287 }
 0x325   : > { %v8289_v24 = vunpack.i.l.bf16 %v10004_v47 }
 0x326   : > { %v10017_v61 = vpop.permute.xlu0 %8297 }
 0x327   : > { %v990_v54 = vsel %vm987_vm14, %v9372_v38, %v8289_v24  ;;  %v8299_v44 = vunpack.i.l.bf16 %v10017_v61  ;;  %v1072_v38 = vsel %vm15825_vm5, %v1063_v4, %v8269_v46 }
 0x328   : > { %v996_v5 = vsel %vm993_vm15, %v990_v54, %v8294_v33  ;;  %v10026_v41 = vpop.permute.xlu1 %8302  ;;  %v1081_v48 = vsel %vm15824_vm9, %v1072_v38, %v8274_v32  ;;  %v8284_v54 = vunpack.i.l.bf16 %v9962_v57 }
 0x329   : > { %v1002_v58 = vsel %vm999_vm10, %v996_v5, %v8279_v22  ;;  %v8304_v27 = vunpack.i.l.bf16 %v10026_v41  ;;  %v1090_v13 = vsel %vm15823_vm4, %v1081_v48, %v8224_v29 }
 0x32a   : > { %v10032_v7 = vpop.permute.xlu0 %1236  ;;  %v1007_v24 = vsel %vm387_vm1, %v1002_v58, %v8299_v44 }
 0x32b   : > { %v1013_v33 = vsel %vm1010_vm11, %v1007_v24, %v8304_v27  ;;  %v1254_v27 = vsel %vm993_vm15, %v9906_v30, %v9972_v51 }
 0x32c   : > { %v10043_v23 = vpop.permute.xlu1 %1221  ;;  %v1019_v5 = vsel %vm1016_vm12, %v1013_v33, %v8284_v54 }
 0x32d   : > { %v1309_v17 = vsel %vm1033_vm0, %v1301_v0, %v10043_v23 }
 0x32e   : > { %v10051_v60 = vpop.permute.xlu0 %8307  ;;  %v1317_v46 = vsel %vm15828_vm8, %v1309_v17, %v10032_v7 }
 0x32f   : > { %7643 = vmatprep.mubr.msk.f32.mxu0 %vm15827_vm7, %v1317_v46  ;;  %v8309_v32 = vunpack.i.l.bf16 %v10051_v60 }
 0x330   : > { %1428 = vmatmul.mubr.f32.gmra.mrb[6].mxu0 %v1090_v13  ;;  %v10061_v39 = vpop.permute.xlu1 %1208 }
 0x331   : > { %v1025_v44 = vsel %vm1022_vm13, %v1019_v5, %v8309_v32 }
 0x332   : > { %v10064_v22 = vpop.permute.xlu0 %8312 }
 0x333   : > { %v8314_v11 = vunpack.i.l.bf16 %v10064_v22 }
 0x334   : > { %v10069_v58 = vpop.permute.xlu1 %1133 }
 0x335   : > { %v1030_v29 = vsel %vm471_vm2, %v1025_v44, %v8314_v11  ;;  %v1262_v48 = vsel %vm999_vm10, %v1254_v27, %v10069_v58  ;;  %v8295_v44 = vunpack.i.h.bf16 %v10000_v45  ;;  %v8280_v45 = vunpack.i.h.bf16 %v9965_v34 }
 0x336   : > { %v1037_v4 = vsel %vm1033_vm0, %v1030_v29, %v8215_v52  ;;  %v10075_v38 = vpop.permute.xlu0 %1193 }
 0x337   : > { %v1046_v0 = vsel %vm15828_vm8, %v1037_v4, %v8260_v50 }
 0x338   : > { %v10085_v24 = vpop.permute.xlu1 %1148  ;;  %v1055_v26 = vsel %vm15827_vm7, %v1046_v0, %v8265_v55 }
 0x339   : > { %v1270_v52 = vsel %vm387_vm1, %v1262_v48, %v10085_v24  ;;  %v1064_v30 = vsel %vm15826_vm6, %v1055_v26, %v8220_v12 }
 0x33a   : > { %v10095_v17 = vpop.permute.xlu0 %1223  ;;  %v1278_v35 = vsel %vm1010_vm11, %v1270_v52, %v9968_v15  ;;  %v1073_v56 = vsel %vm15825_vm5, %v1064_v30, %v8270_v2  ;;  %v8290_v2 = vunpack.i.h.bf16 %v10004_v47 }
 0x33b   : > { %v1082_v14 = vsel %vm15824_vm9, %v1073_v56, %v8275_v53 }
 0x33c   : > { %v10099_v50 = vpop.permute.xlu1 %1178 }
 0x33d   : > { %v1286_v55 = vsel %vm1016_vm12, %v1278_v35, %v10099_v50 }
 0x33e   : > { %v1294_v46 = vsel %vm1022_vm13, %v1286_v55, %v10075_v38  ;;  %v1105_v31 = vpop.permute.xlu0 %1104 }
 0x33f   : > { %v10110_v12 = vsel %vm987_vm14, %v9692_v20, %v1105_v31  ;;  %v1302_v13 = vsel %vm471_vm2, %v1294_v46, %v10061_v39 }
 0x340   : > { %v1255_v33 = vsel %vm993_vm15, %v10110_v12, %v9938_v10  ;;  %v10121_v32 = vpop.permute.xlu1 %1238  ;;  %v1310_v54 = vsel %vm1033_vm0, %v1302_v13, %v10095_v17  ;;  %v1091_v10 = vsel %vm15823_vm4, %v1082_v14, %v8225_v21 }
 0x341   : > { %v1263_v20 = vsel %vm999_vm10, %v1255_v33, %v9981_v28  ;;  %v1318_v5 = vsel %vm15828_vm8, %v1310_v54, %v10121_v32  ;;  %v991_v28 = vsel %vm987_vm14, %v9637_v42, %v8290_v2  ;;  %v8285_v54 = vunpack.i.h.bf16 %v9962_v57 }
 0x342   : > { %v1271_v18 = vsel %vm387_vm1, %v1263_v20, %v9976_v40  ;;  %v10131_v53 = vpop.permute.xlu0 %8322  ;;  %7644 = vmatprep.mubr.msk.f32.mxu0 %vm15827_vm7, %v1318_v5  ;;  %v997_v27 = vsel %vm993_vm15, %v991_v28, %v8295_v44 }
 0x343   : > { %v1279_v47 = vsel %vm1010_vm11, %v1271_v18, %v9957_v8  ;;  %1433 = vmatmul.mubr.f32.gmra.mrb[8].mxu0 %v1091_v10  ;;  %v1003_v30 = vsel %vm999_vm10, %v997_v27, %v8280_v45  ;;  %v8324_v56 = vunpack.i.l.bf16 %v10131_v53  ;;  %v8325_v44 = vunpack.i.h.bf16 %v10131_v53 }
 0x344   : > { %v10141_v11 = vpop.permute.xlu1 %8317  ;;  %v1287_v40 = vsel %vm1016_vm12, %v1279_v47, %v9989_v37  ;;  %v8315_v27 = vunpack.i.h.bf16 %v10064_v22 }
 0x345   : > { %v8319_v4 = vunpack.i.l.bf16 %v10141_v11  ;;  %v1295_v36 = vsel %vm1022_vm13, %v1287_v40, %v9994_v49  ;;  %v8320_v42 = vunpack.i.h.bf16 %v10141_v11  ;;  %v8310_v40 = vunpack.i.h.bf16 %v10051_v60 }
 0x346   : > { %v10149_v21 = vpop.permute.xlu0 %8327  ;;  %v1303_v8 = vsel %vm471_vm2, %v1295_v36, %v9952_v59  ;;  %v8300_v59 = vunpack.i.h.bf16 %v10017_v61 }
 0x347   : > { %v1038_v37 = vsel %vm1033_vm0, %v9998_v9, %v8319_v4  ;;  %v8329_v0 = vunpack.i.l.bf16 %v10149_v21  ;;  %v1311_v49 = vsel %vm1033_vm0, %v1303_v8, %v10043_v23  ;;  %v8330_v9 = vunpack.i.h.bf16 %v10149_v21 }
 0x348   : > { %v10161_v48 = vpop.permute.xlu1 %8332  ;;  %v1319_v52 = vsel %vm15828_vm8, %v1311_v49, %v10032_v7  ;;  %v1039_v61 = vsel %vm1033_vm0, %v1030_v29, %v8320_v42  ;;  %v8305_v23 = vunpack.i.h.bf16 %v10026_v41  ;;  %v1008_v46 = vsel %vm387_vm1, %v1003_v30, %v8300_v59 }
 0x349   : > { %v8334_v26 = vunpack.i.l.bf16 %v10161_v48  ;;  %v1047_v34 = vsel %vm15828_vm8, %v1038_v37, %v8329_v0  ;;  %7645 = vmatprep.mubr.msk.f32.mxu0 %vm15827_vm7, %v1319_v52  ;;  %v8335_v31 = vunpack.i.h.bf16 %v10161_v48  ;;  %v1048_v29 = vsel %vm15828_vm8, %v1039_v61, %v8330_v9 }
 0x34a   : > { %v10175_v35 = vpop.permute.xlu0 %8342  ;;  %v1014_v20 = vsel %vm1010_vm11, %v1008_v46, %v8305_v23 }
 0x34b   : > { %v1056_v7 = vsel %vm15827_vm7, %v1047_v34, %v8334_v26  ;;  %v8344_v5 = vunpack.i.l.bf16 %v10175_v35  ;;  %v1057_v47 = vsel %vm15827_vm7, %v1048_v29, %v8335_v31 }
 0x34c   : > { %v10185_v55 = vpop.permute.xlu1 %8337  ;;  %v1065_v2 = vsel %vm15826_vm6, %v1056_v7, %v8324_v56 }
 0x34d   : > { %v8339_v13 = vunpack.i.l.bf16 %v10185_v55  ;;  %v16148_v53 = vunpack.i.h.bf16 %v10185_v55 }
 0x34e   : > { %v1107_v14 = vpop.permute.xlu0 %1106 }
 0x34f   : > { %v1250_v41 = vsel %vm987_vm14, %v9721_v19, %v1107_v14  ;;  %v1074_v33 = vsel %vm15825_vm5, %v1065_v2, %v8339_v13  ;;  %v15835_v19 = vunpack.i.h.bf16 %v10185_v55 }
 0x350   : > { %v1256_v18 = vsel %vm993_vm15, %v1250_v41, %v9972_v51  ;;  %v10206_v10 = vpop.permute.xlu1 %8347  ;;  %v1083_v8 = vsel %vm15824_vm9, %v1074_v33, %v8344_v5 }
 0x351   : > { %v1264_v28 = vsel %vm999_vm10, %v1256_v18, %v10069_v58  ;;  %v8349_v57 = vunpack.i.l.bf16 %v10206_v10  ;;  %v1020_v58 = vsel %vm1016_vm12, %v1014_v20, %v8285_v54  ;;  %v15833_v59 = vunpack.i.h.bf16 %v10206_v10 }
 0x352   : > { %v1272_v51 = vsel %vm387_vm1, %v1264_v28, %v10085_v24  ;;  %v1136_v36 = vpop.permute.xlu0 %1135  ;;  %v1066_v24 = vsel %vm15826_vm6, %v1057_v47, %v8325_v44  ;;  %v1026_v30 = vsel %vm1022_vm13, %v1020_v58, %v8310_v40 }
 0x353   : > { %v1280_v37 = vsel %vm1010_vm11, %v1272_v51, %v9968_v15  ;;  %v1092_v45 = vsel %vm15823_vm4, %v1083_v8, %v8349_v57  ;;  %v1075_v52 = vsel %vm15825_vm5, %v1066_v24, %v15835_v19  ;;  %v1031_v61 = vsel %vm471_vm2, %v1026_v30, %v8315_v27  ;;  %v1485_v30 = vld [vmem:[%s15803_s7 + $0x18] sm:$0xff] }
 0x354   : > { %v1121_v49 = vpop.permute.xlu1 %1120  ;;  %1438 = vmatmul.mubr.f32.gmra.mrb[10].mxu0 %v1092_v45  ;;  %v1288_v60 = vsel %vm1016_vm12, %v1280_v37, %v10099_v50  ;;  %v15834_v50 = vunpack.i.h.bf16 %v10175_v35 }
 0x355   : > { %v1257_v22 = vsel %vm993_vm15, %v10110_v12, %v1121_v49  ;;  %v1296_v15 = vsel %vm1022_vm13, %v1288_v60, %v10075_v38  ;;  %v1258_v7 = vsel %vm993_vm15, %v1250_v41, %v1121_v49  ;;  %v1040_v38 = vsel %vm1033_vm0, %v1031_v61, %v8319_v4 }
 0x356   : > { %v1304_v34 = vsel %vm471_vm2, %v1296_v15, %v10061_v39  ;;  %v1166_v23 = vpop.permute.xlu0 %1165  ;;  %v1265_v46 = vsel %vm999_vm10, %v1257_v22, %v1136_v36  ;;  %v1084_v39 = vsel %vm15824_vm9, %v1075_v52, %v15834_v50  ;;  %v1266_v4 = vsel %vm999_vm10, %v1258_v7, %v1136_v36  ;;  %v1483_v52 = vld [vmem:[%s15803_s7 + $0x8] sm:$0xff] }
 0x357   : > { %v1312_v12 = vsel %vm1033_vm0, %v1304_v34, %v10095_v17  ;;  %v1093_v17 = vsel %vm15823_vm4, %v1084_v39, %v15833_v59  ;;  %v1049_v41 = vsel %vm15828_vm8, %v1040_v38, %v8329_v0  ;;  %v1486_v34 = vld [vmem:[%s15803_s7 + $0x20] sm:$0xff]  ;;  %v1487_v7 = vld [vmem:[%s15803_s7 + $0x28] sm:$0xff]  ;;  %v1489_v38 = vld [vmem:[%s15803_s7 + $0x38] sm:$0xff] }
 0x358   : > { %v1151_v29 = vpop.permute.xlu1 %1150  ;;  %v1320_v14 = vsel %vm15828_vm8, %v1312_v12, %v10121_v32  ;;  %v1058_v47 = vsel %vm15827_vm7, %v1049_v41, %v8334_v26  ;;  %v1488_v12 = vld [vmem:[%s15803_s7 + $0x30] sm:$0xff]  ;;  %v1494_v41 = vld [vmem:[%s15803_s7 + $0x60] sm:$0xff] }
 0x359   : > { %v1273_v2 = vsel %vm387_vm1, %v1265_v46, %v1151_v29  ;;  %7646 = vmatprep.mubr.msk.f32.mxu0 %vm15827_vm7, %v1320_v14  ;;  %v1274_v32 = vsel %vm387_vm1, %v1266_v4, %v1151_v29  ;;  %v1067_v8 = vsel %vm15826_vm6, %v1058_v47, %v8324_v56  ;;  %v8002_v46 = vpack.c.bf16 %v1489_v38, %v1488_v12  ;;  %v1490_v29 = vld [vmem:[%s15803_s7 + $0x40] sm:$0xff]  ;;  %v1491_v14 = vld [vmem:[%s15803_s7 + $0x48] sm:$0xff] }
 0x35a   : > { %1443 = vmatmul.mubr.f32.gmra.mrb[12].mxu0 %v1093_v17  ;;  %v1281_v33 = vsel %vm1010_vm11, %v1273_v2, %v1166_v23  ;;  %v1196_v20 = vpop.permute.xlu0 %1195  ;;  %v1282_v28 = vsel %vm1010_vm11, %v1274_v32, %v1166_v23  ;;  %v1076_v37 = vsel %vm15825_vm5, %v1067_v8, %v8339_v13  ;;  %v1482_v13 = vld [vmem:[%s15803_s7] sm:$0xff]  ;;  %v7999_v23 = vpack.c.bf16 %v1487_v7, %v1486_v34  ;;  %v1492_v2 = vld [vmem:[%s15803_s7 + $0x50] sm:$0xff]  ;;  %v1493_v17 = vld [vmem:[%s15803_s7 + $0x58] sm:$0xff] }
 0x35b   : > { %v1085_v24 = vsel %vm15824_vm9, %v1076_v37, %v8344_v5  ;;  %v7993_v5 = vpack.c.bf16 %v1483_v52, %v1482_v13  ;;  %v8005_v39 = vpack.c.bf16 %v1491_v14, %v1490_v29  ;;  %v8008_v4 = vpack.c.bf16 %v1493_v17, %v1492_v2  ;;  %v1495_v32 = vld [vmem:[%s15803_s7 + $0x68] sm:$0xff] }
 0x35c   : > { %v1181_v54 = vpop.permute.xlu1 %1180  ;;  %v1094_v56 = vsel %vm15823_vm4, %v1085_v24, %v8349_v57  ;;  %v1484_v57 = vld [vmem:[%s15803_s7 + $0x10] sm:$0xff]  ;;  %vm16071_vm4 = vcmask 1041408   ;;  %vm16072_vm9 = vcmask 1042432   ;;  %vm16073_vm5 = vcmask 1043456   ;;  %v1503_v12 = vld [vmem:[%s15803_s7 + $0xa8] sm:$0xff] }
 0x35d   : > { %v1289_v18 = vsel %vm1016_vm12, %v1281_v33, %v1181_v54  ;;  %v1290_v40 = vsel %vm1016_vm12, %v1282_v28, %v1181_v54  ;;  %7994 = vmatpush1.bf16.msra.mxu1 %v7993_v5  ;;  %v7996_v61 = vpack.c.bf16 %v1485_v30, %v1484_v57  ;;  %v8011_v33 = vpack.c.bf16 %v1495_v32, %v1494_v41  ;;  %v10340_v54 = vld [vmem:[%s15802_s6] ss:$0 sm:$0xff]  ;;  %vm16074_vm6 = vmmov %vm16071_vm4 }
 0x35e   : > { %v1297_v51 = vsel %vm1022_vm13, %v1289_v18, %v1196_v20  ;;  %v1298_v27 = vsel %vm1022_vm13, %v1290_v40, %v1196_v20  ;;  %v1226_v26 = vpop.permute.xlu0 %1225  ;;  %7995 = vmatprep.subr.bf16.mxu1 %v15831_v3  ;;  %v1496_v20 = vld [vmem:[%s15803_s7 + $0x70] sm:$0xff]  ;;  %v1497_v18 = vld [vmem:[%s15803_s7 + $0x78] sm:$0xff] }
 0x360   : > { %v1211_v36 = vpop.permute.xlu1 %1210 }
 0x361   : > { %v1305_v0 = vsel %vm471_vm2, %v1297_v51, %v1211_v36  ;;  %v1306_v45 = vsel %vm471_vm2, %v1298_v27, %v1211_v36  ;;  %7997 = vmatpush1.bf16.msra.mxu1 %v7996_v61  ;;  %v8014_v51 = vpack.c.bf16 %v1497_v18, %v1496_v20  ;;  %v1498_v36 = vld [vmem:[%s15803_s7 + $0x80] sm:$0xff]  ;;  %v1504_v18 = vld [vmem:[%s15803_s7 + $0xb0] sm:$0xff] }
 0x362   : > { %v1313_v49 = vsel %vm1033_vm0, %v1305_v0, %v1226_v26  ;;  %v1314_v22 = vsel %vm1033_vm0, %v1306_v45, %v1226_v26  ;;  %7998 = vmatprep.subr.bf16.mxu1 %v15831_v3  ;;  %v1499_v0 = vld [vmem:[%s15803_s7 + $0x88] sm:$0xff] }
 0x363   : > { %v8017_v45 = vpack.c.bf16 %v1499_v0, %v1498_v36 }
 0x364   : > { %v1241_v58 = vpop.permute.xlu1 %1240 }
 0x365   : > { %v1321_v60 = vsel %vm15828_vm8, %v1313_v49, %v1241_v58  ;;  %v1322_v15 = vsel %vm15828_vm8, %v1314_v22, %v1241_v58  ;;  %8000 = vmatpush1.bf16.msra.mxu1 %v7999_v23  ;;  %v1500_v58 = vld [vmem:[%s15803_s7 + $0x90] sm:$0xff]  ;;  %v1501_v49 = vld [vmem:[%s15803_s7 + $0x98] sm:$0xff]  ;;  %v1502_v23 = vld [vmem:[%s15803_s7 + $0xa0] sm:$0xff] }
 0x366   : > { %7647 = vmatprep.mubr.msk.f32.mxu0 %vm15827_vm7, %v1321_v60  ;;  %8001 = vmatprep.subr.bf16.mxu1 %v15831_v3  ;;  %v8020_v57 = vpack.c.bf16 %v1501_v49, %v1500_v58  ;;  %vm16077_vm8 = vmmov %vm16073_vm5 }
 0x367   : > { %1448 = vmatmul.mubr.f32.gmra.mrb[14].mxu0 %v1094_v56 }
 0x368   : > { %7648 = vmatprep.mubr.msk.f32.mxu0 %vm15827_vm7, %v1322_v15  ;;  %vm16076_vm7 = vcmask 1045504  }
 0x369   : > { %8003 = vmatpush1.bf16.msra.mxu1 %v8002_v46 }
 0x36a   : > { %8004 = vmatprep.subr.bf16.mxu1 %v15831_v3 }
 0x36d   : > { %8006 = vmatpush1.bf16.msra.mxu1 %v8005_v39 }
 0x36e   : > { %8007 = vmatprep.subr.bf16.mxu1 %v15831_v3 }
 0x371   : > { %8009 = vmatpush1.bf16.msra.mxu1 %v8008_v4  ;;  %v8023_v4 = vpack.c.bf16 %v1503_v12, %v1502_v23  ;;  %v1508_v23 = vld [vmem:[%s15803_s7 + $0xd0] sm:$0xff]  ;;  %v1509_v12 = vld [vmem:[%s15803_s7 + $0xd8] sm:$0xff] }
 0x372   : > { %8010 = vmatprep.subr.bf16.mxu1 %v15831_v3 }
 0x375   : > { %8012 = vmatpush1.bf16.msra.mxu1 %v8011_v33 }
 0x376   : > { %8013 = vmatprep.subr.bf16.mxu1 %v15831_v3 }
 0x379   : > { %8015 = vmatpush1.bf16.msra.mxu1 %v8014_v51 }
 0x37a   : > { %8016 = vmatprep.subr.bf16.mxu1 %v15831_v3 }
 0x37d   : > { %8018 = vmatpush1.bf16.msra.mxu1 %v8017_v45 }
 0x37e   : > { %8019 = vmatprep.subr.bf16.mxu1 %v15831_v3 }
 0x381   : > { %8021 = vmatpush1.bf16.msra.mxu1 %v8020_v57 }
 0x382   : > { %8022 = vmatprep.subr.bf16.mxu1 %v15831_v3 }
 0x385   : > { %8024 = vmatpush1.bf16.msra.mxu1 %v8023_v4 }
 0x386   : > { %8025 = vmatprep.subr.bf16.mxu1 %v15831_v3 }
 0x3d4   : > { %v1419_v47 = vpop.f32.mrb[2].mxu0 }
 0x3d5   : > { %v1420_v28 = vadd.f32 %v10340_v54, %v1419_v47  ;;  %v1421_v40 = vpop.f32.mrb[3].mxu0  ;;  %v1505_v47 = vld [vmem:[%s15803_s7 + $0xb8] sm:$0xff] }
 0x3d7   : > { %v1458_v8 = vmax.f32 %v1420_v28, 0.0 }
 0x3d9   : > { %v10357_v27 = vcombine.high %v1458_v8, %v1458_v8  ;;  %v1537_v37 = vrot.slane %v1458_v8, 7  ;;  %v1569_v26 = vrot.slane %v1458_v8, 6  ;;  %v1601_v22 = vrot.slane %v1458_v8, 5 }
 0x3da   : > { %v1668_v13 = vrot.slane %v1458_v8, 3  ;;  %v1634_v34 = vrot.slane %v1458_v8, 4 }
 0x3db   : > { %v1538_v60 = vrot.slane %v10357_v27, 7  ;;  %v1570_v24 = vrot.slane %v10357_v27, 6  ;;  %v1701_v56 = vsel %vm575_vm3, 0.0, %v1537_v37  ;;  %v1602_v30 = vrot.slane %v10357_v27, 5 }
 0x3dc   : > { %v1717_v15 = vsel %vm16071_vm4, %v1701_v56, %v1569_v26  ;;  %vm16075_vm4 = vcmask 1044480   ;;  %v1817_v2 = vsel %vm575_vm3, %v1668_v13, 0.0 }
 0x3dd   : > { %v1702_v52 = vsel %vm575_vm3, 0.0, %v1538_v60  ;;  %v1733_v5 = vsel %vm16072_vm9, %v1717_v15, %v1569_v26  ;;  %v1922_v0 = vrot.slane %v1817_v2, 2  ;;  %v1871_v8 = vrot.slane %v1817_v2, 1  ;;  %v1506_v60 = vld [vmem:[%s15803_s7 + $0xc0] sm:$0xff] }
 0x3de   : > { %v1749_v61 = vsel %vm16073_vm5, %v1733_v5, %v1601_v22  ;;  %v1718_v7 = vsel %vm16074_vm6, %v1702_v52, %v1570_v24  ;;  %vm16078_vm5 = vcmask 1046528   ;;  %vm16079_vm6 = vmmov %vm16075_vm4  ;;  %v8026_v26 = vpack.c.bf16 %v1505_v47, %v1504_v18 }
 0x3df   : > { %v1766_v38 = vsel %vm16075_vm4, %v1749_v61, %v1601_v22  ;;  %v1734_v46 = vsel %vm16072_vm9, %v1718_v7, %v1570_v24  ;;  %vm16082_vm4 = vmmov %vm16076_vm7  ;;  %v1507_v24 = vld [vmem:[%s15803_s7 + $0xc8] sm:$0xff] }
 0x3e0   : > { %v1783_v29 = vsel %vm16076_vm7, %v1766_v38, %v1634_v34  ;;  %v1750_v14 = vsel %vm16077_vm8, %v1734_v46, %v1602_v30  ;;  %vm16080_vm8 = vmmov %vm16078_vm5  ;;  %8027 = vmatpush1.bf16.msra.mxu1 %v8026_v26  ;;  %v8029_v57 = vpack.c.bf16 %v1507_v24, %v1506_v60 }
 0x3e1   : > { %v10387_v39 = vsel %vm16078_vm5, %v1783_v29, %v1634_v34  ;;  %v1767_v17 = vsel %vm16079_vm6, %v1750_v14, %v1602_v30  ;;  %vm16083_vm9 = vmmov %vm16078_vm5  ;;  %vm16085_vm5 = vcmask 1041408   ;;  %8028 = vmatprep.subr.bf16.mxu1 %v15831_v3  ;;  %vm16086_vm6 = vcmask 1042432  }
 0x3e2   : > { %v1424_v41 = vpop.f32.mrb[4].mxu0  ;;  %v8371_v32 = vpack.i.bf16 %v10387_v39, %v9878_v16  ;;  %v8366_v33 = vpack.i.bf16 %v10387_v39, %v9738_v63  ;;  %v1784_v20 = vsel %vm16076_vm7, %v1767_v17, %v10357_v27  ;;  %v1921_v63 = vrot.slane %v10387_v39, 2 }
 0x3e3   : > { %v1425_v28 = vadd.f32 %v10340_v54, %v1424_v41  ;;  %v1426_v40 = vpop.f32.mrb[5].mxu0  ;;  %v10407_v51 = vsel %vm16080_vm8, %v1784_v20, %v10357_v27  ;;  %v1870_v36 = vrot.slane %v10387_v39, 1  ;;  %v8376_v45 = vpack.i.bf16 %v9878_v16, %v10387_v39  ;;  %v1511_v20 = vld [vmem:[%s15803_s7 + $0xe8] sm:$0xff] }
 0x3e4   : > { %16081 = vst [vmem:[#allocation6_spill] sm:$0xff] %v10407_v51  ;;  %8372 = vrot.lane.b32.xlu0 %v8371_v32, %s9165_s27  ;;  %8367 = vrot.lane.b32.xlu1 %v8366_v33, %s9169_s12  ;;  %v8381_v58 = vpack.i.bf16 %v10407_v51, %v9878_v16  ;;  %v10420_v49 = vsel %vm16082_vm4, %v1921_v63, %v1922_v0  ;;  %vm16087_vm7 = vcmask 1043456   ;;  %vm16088_vm8 = vcmask 1044480   ;;  %v1510_v33 = vld [vmem:[%s15803_s7 + $0xe0] sm:$0xff]  ;;  %vm16089_vm4 = vmmov %vm16085_vm5  ;;  %v1512_v63 = vld [vmem:[%s15803_s7 + $0xf0] sm:$0xff] }
 0x3e5   : > { %v10413_v37 = vmax.f32 %v1425_v28, 0.0  ;;  %v10436_v13 = vsel %vm16083_vm9, %v1870_v36, %v1871_v8  ;;  %v8391_v61 = vpack.i.bf16 %v10420_v49, %v9799_v1  ;;  %8030 = vmatpush1.bf16.msra.mxu1 %v8029_v57  ;;  %v8032_v17 = vpack.c.bf16 %v1509_v12, %v1508_v23  ;;  %v1513_v36 = vld [vmem:[%s15803_s7 + $0xf8] sm:$0xff] }
 0x3e6   : > { %16084 = vst [vmem:[#allocation7_spill] sm:$0xff] %v10436_v13  ;;  %v8386_v7 = vpack.i.bf16 %v10436_v13, %v9821_v25  ;;  %v8396_v41 = vpack.i.bf16 %v9821_v25, %v10436_v13  ;;  %v8401_v32 = vpack.i.bf16 %v9799_v1, %v10420_v49  ;;  %8031 = vmatprep.subr.bf16.mxu1 %v15831_v3  ;;  %vm16090_vm9 = vcmask 1045504  }
 0x3e7   : > { %v10431_v56 = vcombine.high %v10413_v37, %v10413_v37  ;;  %v1539_v22 = vrot.slane %v10413_v37, 7  ;;  %v1571_v15 = vrot.slane %v10413_v37, 6  ;;  %v1603_v30 = vrot.slane %v10413_v37, 5 }
 0x3e8   : > { %8377 = vrot.lane.b32.xlu0 %v8376_v45, %s16064_s16  ;;  %8382 = vrot.lane.b32.xlu1 %v8381_v58, %s9169_s12  ;;  %v1636_v4 = vrot.slane %v10413_v37, 4  ;;  %v8035_v28 = vpack.c.bf16 %v1511_v20, %v1510_v33  ;;  %v1669_v40 = vrot.slane %v10357_v27, 3  ;;  %v8038_v27 = vpack.c.bf16 %v1513_v36, %v1512_v63 }
 0x3e9   : > { %v1540_v52 = vrot.slane %v10431_v56, 7  ;;  %v1703_v5 = vsel %vm575_vm3, 0.0, %v1539_v22  ;;  %v1572_v46 = vrot.slane %v10431_v56, 6  ;;  %8033 = vmatpush1.bf16.msra.mxu1 %v8032_v17  ;;  %v1604_v26 = vrot.slane %v10431_v56, 5 }
 0x3ea   : > { %v1719_v34 = vsel %vm16085_vm5, %v1703_v5, %v1571_v15  ;;  %8034 = vmatprep.subr.bf16.mxu1 %v15831_v3  ;;  %vm16091_vm5 = vcmask 1046528   ;;  %v1818_v58 = vsel %vm575_vm3, %v1669_v40, 0.0  ;;  %v1873_v24 = vrot.slane %v10407_v51, 1 }
 0x3eb   : > { %v1735_v38 = vsel %vm16086_vm6, %v1719_v34, %v1571_v15  ;;  %v1704_v14 = vsel %vm575_vm3, 0.0, %v1540_v52  ;;  %v1874_v22 = vrot.slane %v1818_v58, 1  ;;  %v1670_v52 = vrot.slane %v10413_v37, 3 }
 0x3ec   : > { %v1751_v29 = vsel %vm16087_vm7, %v1735_v38, %v1603_v30  ;;  %8392 = vrot.lane.b32.xlu0 %v8391_v61, %s9168_s30  ;;  %8387 = vrot.lane.b32.xlu1 %v8386_v7, %s9170_s13  ;;  %v1720_v18 = vsel %vm16089_vm4, %v1704_v14, %v1572_v46  ;;  %vm16093_vm4 = vmmov %vm16091_vm5 }
 0x3ed   : > { %v1768_v2 = vsel %vm16088_vm8, %v1751_v29, %v1603_v30  ;;  %v1736_v8 = vsel %vm16086_vm6, %v1720_v18, %v1572_v46  ;;  %8036 = vmatpush1.bf16.msra.mxu1 %v8035_v28  ;;  %v10507_v5 = vsel %vm16093_vm4, %v1873_v24, %v1874_v22  ;;  %v1819_v30 = vsel %vm575_vm3, %v1670_v52, 0.0  ;;  %vm16097_vm6 = vmmov %vm16093_vm4 }
 0x3ee   : > { %v1785_v47 = vsel %vm16090_vm9, %v1768_v2, %v1636_v4  ;;  %v1752_v60 = vsel %vm16087_vm7, %v1736_v8, %v1604_v26  ;;  %8037 = vmatprep.subr.bf16.mxu1 %v15831_v3  ;;  %16094 = vst [vmem:[#allocation9_spill] sm:$0xff] %v10507_v5  ;;  %v8431_v34 = vpack.i.bf16 %v10507_v5, %v10436_v13  ;;  %v1877_v7 = vrot.slane %v1819_v30, 1  ;;  %vm16099_vm7 = vmmov %vm16090_vm9 }
 0x3ef   : > { %v10487_v0 = vsel %vm16091_vm5, %v1785_v47, %v1636_v4  ;;  %v1769_v15 = vsel %vm16088_vm8, %v1752_v60, %v1604_v26  ;;  %vm16095_vm5 = vmmov %vm16093_vm4  ;;  %v1924_v29 = vrot.slane %v10407_v51, 2  ;;  %v1928_v17 = vrot.slane %v1819_v30, 2 }
 0x3f0   : > { %8397 = vrot.lane.b32.xlu0 %v8396_v41, %s9161_s20  ;;  %8402 = vrot.lane.b32.xlu1 %v8401_v32, %s16066_s29  ;;  %16092 = vst [vmem:[#allocation8_spill] sm:$0xff] %v10487_v0  ;;  %v8411_v45 = vpack.i.bf16 %v10487_v0, %v10407_v51  ;;  %v1786_v57 = vsel %vm16090_vm9, %v1769_v15, %v10431_v56  ;;  %v1876_v61 = vrot.slane %v10487_v0, 1  ;;  %v1927_v12 = vrot.slane %v10487_v0, 2  ;;  %vm16101_vm8 = vmmov %vm16099_vm7 }
 0x3f1   : > { %8039 = vmatpush1.bf16.msra.mxu1 %v8038_v27  ;;  %v10518_v37 = vsel %vm16095_vm5, %v1786_v57, %v10431_v56  ;;  %v1925_v4 = vrot.slane %v1818_v58, 2  ;;  %vm16103_vm4 = vcmask 1041408   ;;  %vm16104_vm9 = vcmask 1042432  }
 0x3f2   : > { %8073 = vmatprep.subr.bf16.mxu1 %v15831_v3  ;;  %16096 = vst [vmem:[#allocation10_spill] sm:$0xff] %v10518_v37  ;;  %v8436_v23 = vpack.i.bf16 %v10518_v37, %v10487_v0  ;;  %v10527_v46 = vsel %vm16097_vm6, %v1876_v61, %v1877_v7  ;;  %v10539_v33 = vsel %vm16099_vm7, %v1927_v12, %v1928_v17  ;;  %vm16105_vm5 = vcmask 1043456  }
 0x3f3   : > { %16098 = vst [vmem:[#allocation11_spill] sm:$0xff] %v10527_v46  ;;  %v8451_v32 = vpack.i.bf16 %v10527_v46, %v10507_v5  ;;  %16100 = vst [vmem:[#allocation12_spill] sm:$0xff] %v10539_v33  ;;  %v10542_v20 = vsel %vm16101_vm8, %v1924_v29, %v1925_v4  ;;  %v8441_v63 = vpack.i.bf16 %v9799_v1, %v10518_v37  ;;  %v1671_v58 = vrot.slane %v10431_v56, 3 }
 0x3f4   : > { %2056 = vrot.lane.b32.xlu0 %v10420_v49, %s9170_s13  ;;  %2005 = vrot.lane.b32.xlu1 %v10436_v13, %s9165_s27  ;;  %16102 = vst [vmem:[#allocation13_spill] sm:$0xff] %v10542_v20  ;;  %v8461_v40 = vpack.i.bf16 %v10539_v33, %v10542_v20  ;;  %vm16106_vm6 = vcmask 1044480   ;;  %vm16107_vm8 = vcmask 1046528   ;;  %v1930_v30 = vrot.slane %v10518_v37, 2 }
 0x3f5   : > { %v1820_v52 = vsel %vm575_vm3, %v1671_v58, 0.0  ;;  %v1879_v29 = vrot.slane %v10518_v37, 1 }
 0x3f6   : > { %v1931_v61 = vrot.slane %v1820_v52, 2 }
 0x3f8   : > { %8412 = vrot.lane.b32.xlu0 %v8411_v45, %s9165_s27  ;;  %8407 = vrot.lane.b32.xlu1 %v8411_v45, %s16064_s16 }
 0x3fc   : > { %8417 = vrot.lane.b32.xlu0 %v8411_v45, %s16066_s29  ;;  %8422 = vrot.lane.b32.xlu1 %v8411_v45, %s9168_s30 }
 0x400   : > { %8432 = vrot.lane.b32.xlu1 %v8431_v34, %s16064_s16  ;;  %8427 = vrot.lane.b32.xlu0 %v8431_v34, %s9169_s12 }
 0x403   : > { %v1429_v38 = vpop.f32.mrb[6].mxu0 }
 0x404   : > { %v1430_v14 = vadd.f32 %v10340_v54, %v1429_v38  ;;  %v1431_v2 = vpop.f32.mrb[7].mxu0  ;;  %8437 = vrot.lane.b32.xlu1 %v8436_v23, %s9169_s12  ;;  %2007 = vrot.lane.b32.xlu0 %v10507_v5, %s9165_s27 }
 0x405   : > { %v1880_v2 = vrot.slane %v1820_v52, 1 }
 0x406   : > { %v10534_v41 = vmax.f32 %v1430_v14, 0.0 }
 0x408   : > { %v1541_v18 = vrot.slane %v10534_v41, 7  ;;  %v1573_v47 = vrot.slane %v10534_v41, 6  ;;  %8452 = vrot.lane.b32.xlu1 %v8451_v32, %s9161_s20  ;;  %2058 = vrot.lane.b32.xlu0 %v10542_v20, %s9170_s13  ;;  %v1605_v36 = vrot.slane %v10534_v41, 5  ;;  %v10561_v27 = vcombine.high %v10534_v41, %v10534_v41 }
 0x409   : > { %v1638_v60 = vrot.slane %v10534_v41, 4 }
 0x40a   : > { %v1705_v28 = vsel %vm575_vm3, 0.0, %v1541_v18  ;;  %v1542_v15 = vrot.slane %v10561_v27, 7  ;;  %v1574_v56 = vrot.slane %v10561_v27, 6  ;;  %v1606_v18 = vrot.slane %v10561_v27, 5 }
 0x40b   : > { %v1721_v8 = vsel %vm16103_vm4, %v1705_v28, %v1573_v47  ;;  %vm16109_vm4 = vmmov %vm16099_vm7 }
 0x40c   : > { %v1737_v26 = vsel %vm16104_vm9, %v1721_v8, %v1573_v47  ;;  %8462 = vrot.lane.b32.xlu1 %v8461_v40, %s16066_s29  ;;  %8442 = vrot.lane.b32.xlu0 %v8441_v63, %s16064_s16  ;;  %v1706_v34 = vsel %vm575_vm3, 0.0, %v1542_v15  ;;  %v10584_v38 = vsel %vm16109_vm4, %v1930_v30, %v1931_v61  ;;  %vm16111_vm9 = vcmask 1041408  }
 0x40d   : > { %v1753_v45 = vsel %vm16105_vm5, %v1737_v26, %v1605_v36  ;;  %16110 = vst [vmem:[#allocation15_spill] sm:$0xff] %v10584_v38  ;;  %v1722_v14 = vsel %vm16111_vm9, %v1706_v34, %v1574_v56  ;;  %v8501_v17 = vpack.i.bf16 %v10387_v39, %v10584_v38  ;;  %vm16112_vm5 = vmmov %vm16107_vm8  ;;  %v1672_v30 = vrot.slane %v10534_v41, 3 }
 0x40e   : > { %v1770_v24 = vsel %vm16106_vm6, %v1753_v45, %v1605_v36  ;;  %v10593_v4 = vsel %vm16112_vm5, %v1879_v29, %v1880_v2  ;;  %vm16114_vm6 = vcmask 1042432   ;;  %vm16117_vm9 = vmmov %vm16112_vm5 }
 0x40f   : > { %v1787_v22 = vsel %vm16099_vm7, %v1770_v24, %v1638_v60  ;;  %16113 = vst [vmem:[#allocation16_spill] sm:$0xff] %v10593_v4  ;;  %v8506_v47 = vpack.i.bf16 %v10593_v4, %v10527_v46  ;;  %vm16115_vm7 = vcmask 1043456   ;;  %v8491_v26 = vpack.i.bf16 %v10420_v49, %v10593_v4 }
 0x410   : > { %8472 = vrot.lane.b32.xlu1 %v8461_v40, %s9161_s20  ;;  %8447 = vrot.lane.b32.xlu0 %v8436_v23, %s9170_s13  ;;  %v10573_v57 = vsel %vm16107_vm8, %v1787_v22, %v1638_v60  ;;  %vm16116_vm8 = vcmask 1044480  }
 0x411   : > { %16108 = vst [vmem:[#allocation14_spill] sm:$0xff] %v10573_v57  ;;  %v8476_v23 = vpack.i.bf16 %v10573_v57, %v10518_v37  ;;  %v8481_v28 = vpack.i.bf16 %v10573_v57, %v10507_v5  ;;  %v8486_v36 = vpack.i.bf16 %v10527_v46, %v10573_v57  ;;  %v1882_v41 = vrot.slane %v10573_v57, 1 }
 0x414   : > { %2009 = vrot.lane.b32.xlu1 %v10527_v46, %s9165_s27  ;;  %8457 = vrot.lane.b32.xlu0 %v8451_v32, %s9170_s13  ;;  %v1738_v32 = vsel %vm16114_vm6, %v1722_v14, %v1574_v56  ;;  %vm16120_vm6 = vcmask 1041408  }
 0x416   : > { %v1434_v7 = vpop.f32.mrb[8].mxu0 }
 0x417   : > { %v1436_v12 = vpop.f32.mrb[9].mxu0  ;;  %v1435_v24 = vadd.f32 %v10340_v54, %v1434_v7  ;;  %v1821_v7 = vsel %vm575_vm3, %v1672_v30, 0.0 }
 0x418   : > { %8477 = vrot.lane.b32.xlu1 %v8476_v23, %s9165_s27  ;;  %8467 = vrot.lane.b32.xlu0 %v8461_v40, %s9168_s30  ;;  %v1754_v40 = vsel %vm16115_vm7, %v1738_v32, %v1606_v18  ;;  %v8516_v12 = vpack.i.bf16 %v9821_v25, %v10584_v38  ;;  %v1883_v14 = vrot.slane %v1821_v7, 1  ;;  %v1933_v32 = vrot.slane %v10573_v57, 2 }
 0x419   : > { %v1771_v63 = vsel %vm16116_vm8, %v1754_v40, %v1606_v18  ;;  %v10631_v15 = vmax.f32 %v1435_v24, 0.0  ;;  %vm16121_vm7 = vcmask 1042432   ;;  %vm16122_vm8 = vmmov %vm16109_vm4 }
 0x41a   : > { %v1788_v8 = vsel %vm16109_vm4, %v1771_v63, %v10561_v27  ;;  %vm16123_vm4 = vcmask 1043456  }
 0x41b   : > { %v10621_v58 = vsel %vm16117_vm9, %v1788_v8, %v10561_v27  ;;  %v1543_v61 = vrot.slane %v10631_v15, 7  ;;  %v1575_v29 = vrot.slane %v10631_v15, 6  ;;  %v1607_v24 = vrot.slane %v10631_v15, 5 }
 0x41c   : > { %8502 = vrot.lane.b32.xlu1 %v8501_v17, %s9168_s30  ;;  %2060 = vrot.lane.b32.xlu0 %v10539_v33, %s9170_s13  ;;  %16118 = vst [vmem:[#allocation17_spill] sm:$0xff] %v10621_v58  ;;  %v8526_v22 = vpack.i.bf16 %v10621_v58, %v10573_v57  ;;  %v8536_v34 = vpack.i.bf16 %v10621_v58, %v10527_v46  ;;  %vm16124_vm9 = vcmask 1044480  }
 0x41d   : > { %v8541_v23 = vpack.i.bf16 %v10593_v4, %v10621_v58  ;;  %v1707_v2 = vsel %vm575_vm3, 0.0, %v1543_v61 }
 0x41e   : > { %v1723_v18 = vsel %vm16120_vm6, %v1707_v2, %v1575_v29  ;;  %vm16126_vm6 = vcmask 1046528  }
 0x41f   : > { %v1739_v8 = vsel %vm16121_vm7, %v1723_v18, %v1575_v29  ;;  %vm16128_vm7 = vcmask 1041408  }
 0x420   : > { %8507 = vrot.lane.b32.xlu1 %v8506_v47, %s16064_s16  ;;  %8482 = vrot.lane.b32.xlu0 %v8481_v28, %s16066_s29  ;;  %v10658_v28 = vpop.permute.xlu1 %8352 }
 0x424   : > { %2011 = vrot.lane.b32.xlu1 %v10593_v4, %s9165_s27  ;;  %8487 = vrot.lane.b32.xlu0 %v8486_v36, %s9168_s30  ;;  %v8531_v36 = vpack.i.bf16 %v10420_v49, %v10621_v58  ;;  %v8358_v61 = vpop.permute.xlu1 %8357 }
 0x427   : > { %v10617_v45 = vpop.f32.mrb[10].mxu0 }
 0x428   : > { %v1441_v60 = vpop.f32.mrb[11].mxu0  ;;  %2062 = vrot.lane.b32.xlu1 %v10584_v38, %s9170_s13  ;;  %8492 = vrot.lane.b32.xlu0 %v8491_v26, %s9161_s20  ;;  %v8363_v18 = vpop.permute.xlu1 %8362 }
 0x42c   : > { %8527 = vrot.lane.b32.xlu1 %v8526_v22, %s16064_s16  ;;  %8497 = vrot.lane.b32.xlu0 %v8501_v17, %s16066_s29  ;;  %v10652_v17 = vsel %vm16112_vm5, %v1882_v41, %v1883_v14  ;;  %vm16125_vm5 = vmmov %vm16122_vm8 }
 0x42d   : > { %v10633_v52 = vpop.f32.mrb[12].mxu0  ;;  %16119 = vst [vmem:[#allocation18_spill] sm:$0xff] %v10652_v17  ;;  %v8551_v63 = vpack.i.bf16 %v10652_v17, %v10593_v4  ;;  %v8566_v41 = vpack.i.bf16 %v10652_v17, %v10584_v38 }
 0x42e   : > { %v1446_v56 = vpop.f32.mrb[13].mxu0 }
 0x42f   : > { %v808_v56 = vpop.permute.xlu0 %807 }
 0x430   : > { %8537 = vrot.lane.b32.xlu1 %v8536_v34, %s16066_s29  ;;  %8512 = vrot.lane.b32.xlu0 %v8506_v47, %s9169_s12  ;;  %v1934_v47 = vrot.slane %v1821_v7, 2  ;;  %v10678_v34 = vcombine.high %v10631_v15, %v10631_v15 }
 0x432   : > { %v10668_v60 = vsel %vm16122_vm8, %v1933_v32, %v1934_v47  ;;  %v1544_v29 = vrot.slane %v10678_v34, 7  ;;  %v8359_v32 = vunpack.i.l.bf16 %v8358_v61  ;;  %v1576_v47 = vrot.slane %v10678_v34, 6 }
 0x433   : > { %v8556_v30 = vpack.i.bf16 %v10668_v60, %v10518_v37  ;;  %v769_v2 = vpop.permute.xlu0 %768  ;;  %vm16129_vm8 = vcmask 1042432  }
 0x434   : > { %8542 = vrot.lane.b32.xlu1 %v8541_v23, %s9168_s30  ;;  %8517 = vrot.lane.b32.xlu0 %v8516_v12, %s9165_s27  ;;  %v1640_v23 = vrot.slane %v10631_v15, 4  ;;  %v8571_v12 = vpack.i.bf16 %v10668_v60, %v10407_v51 }
 0x438   : > { %8547 = vrot.lane.b32.xlu1 %v8526_v22, %s9170_s13  ;;  %8522 = vrot.lane.b32.xlu0 %v8526_v22, %s9169_s12  ;;  %v1755_v22 = vsel %vm16123_vm4, %v1739_v8, %v1607_v24 }
 0x439   : > { %v1772_v7 = vsel %vm16124_vm9, %v1755_v22, %v1607_v24  ;;  %v8364_v22 = vunpack.i.l.bf16 %v8363_v18 }
 0x43a   : > { %v10660_v40 = vpop.f32.mrb[14].mxu0  ;;  %v1789_v14 = vsel %vm16125_vm5, %v1772_v7, %v1640_v23 }
 0x43b   : > { %v1451_v26 = vpop.f32.mrb[15].mxu0  ;;  %v10697_v8 = vsel %vm16126_vm6, %v1789_v14, %v1640_v23  ;;  %v846_v23 = vpop.permute.xlu0 %845  ;;  %v1608_v14 = vrot.slane %v10678_v34, 5 }
 0x43c   : > { %8552 = vrot.lane.b32.xlu1 %v8551_v63, %s9170_s13  ;;  %8532 = vrot.lane.b32.xlu0 %v8531_v36, %s9165_s27  ;;  %v8576_v63 = vpack.i.bf16 %v10652_v17, %v10542_v20  ;;  %v1708_v36 = vsel %vm575_vm3, 0.0, %v1544_v29  ;;  %16127 = vst [vmem:[#allocation19_spill] sm:$0xff] %v10697_v8  ;;  %v992_v26 = vsel %vm987_vm14, %v9646_v43, %v769_v2  ;;  %v1939_v6 = vrot.slane %v10697_v8, 2 }
 0x43d   : > { %v998_v24 = vsel %vm993_vm15, %v992_v26, %v8359_v32  ;;  %v8591_v7 = vpack.i.bf16 %v9821_v25, %v10697_v8  ;;  %v8581_v2 = vpack.i.bf16 %v10539_v33, %v10652_v17 }
 0x440   : > { %8557 = vrot.lane.b32.xlu1 %v8556_v30, %s16066_s29  ;;  %8562 = vrot.lane.b32.xlu0 %v8556_v30, %s9168_s30  ;;  %v1724_v30 = vsel %vm16128_vm7, %v1708_v36, %v1576_v47  ;;  %v10724_v36 = vunpack.i.h.bf16 %v8363_v18  ;;  %v8586_v18 = vpack.i.bf16 %v10420_v49, %v10697_v8  ;;  %vm16142_vm7 = vcmask 654336  }
 0x441   : > { %v1740_v29 = vsel %vm16129_vm8, %v1724_v30, %v1576_v47  ;;  %v1936_v30 = vrot.slane %v10621_v58, 2  ;;  %vm16146_vm8 = vcmask 719872  }
 0x442   : > { %16131 = vst [vmem:[#allocation21_spill] sm:$0xff] %v10724_v36 }
 0x444   : > { %8572 = vrot.lane.b32.xlu1 %v8571_v12, %s9161_s20  ;;  %8567 = vrot.lane.b32.xlu0 %v8566_v41, %s9161_s20  ;;  %v1673_v12 = vrot.slane %v10561_v27, 3  ;;  %v1004_v41 = vsel %vm999_vm10, %v998_v24, %v808_v56  ;;  %v8601_v27 = vpack.i.bf16 %v10697_v8, %v10593_v4  ;;  %v10721_v56 = vunpack.i.h.bf16 %v8358_v61  ;;  %vm16132_vm10 = vmmov %vm16123_vm4 }
 0x445   : > { %v1009_v43 = vsel %vm387_vm1, %v1004_v41, %v8364_v22  ;;  %v1756_v47 = vsel %vm16132_vm10, %v1740_v29, %v1608_v14  ;;  %v1674_v24 = vrot.slane %v10631_v15, 3  ;;  %v8354_v61 = vunpack.i.l.bf16 %v10658_v28  ;;  %vm16133_vm4 = vmmov %vm16126_vm6 }
 0x446   : > { %v1822_v32 = vsel %vm575_vm3, %v1673_v12, 0.0  ;;  %16130 = vst [vmem:[#allocation20_spill] sm:$0xff] %v10721_v56  ;;  %v1015_v26 = vsel %vm1010_vm11, %v1009_v43, %v846_v23  ;;  %v8606_v12 = vpack.i.bf16 %v10652_v17, %v10697_v8  ;;  %v1773_v23 = vsel %vm16124_vm9, %v1756_v47, %v1608_v14  ;;  %vm16136_vm11 = vmmov %vm16125_vm5 }
 0x447   : > { %v1886_v22 = vrot.slane %v1822_v32, 1  ;;  %v1937_v29 = vrot.slane %v1822_v32, 2  ;;  %v2907_v15 = vsel %vm993_vm15, %v9821_v25, %v10721_v56  ;;  %v1021_v43 = vsel %vm1016_vm12, %v1015_v26, %v8354_v61  ;;  %vm16140_vm6 = vmmov %vm16133_vm4 }
 0x448   : > { %8577 = vrot.lane.b32.xlu1 %v8576_v63, %s9169_s12  ;;  %2064 = vrot.lane.b32.xlu0 %v10668_v60, %s9170_s13  ;;  %v1885_v63 = vrot.slane %v10621_v58, 1  ;;  %v10753_v32 = vunpack.i.h.bf16 %v10658_v28  ;;  %v1823_v14 = vsel %vm575_vm3, %v1674_v24, 0.0  ;;  %v8596_v26 = vpack.i.bf16 %v10542_v20, %v10697_v8 }
 0x449   : > { %vm16147_vm10 = vcmask 785408   ;;  %vm16151_vm9 = vcmask 916480  }
 0x44a   : > { %v10738_v41 = vsel %vm16133_vm4, %v1885_v63, %v1886_v22  ;;  %16135 = vst [vmem:[#allocation23_spill] sm:$0xff] %v10753_v32  ;;  %v10757_v63 = vsel %vm16136_vm11, %v1936_v30, %v1937_v29  ;;  %v1889_v29 = vrot.slane %v1823_v14, 1  ;;  %vm16154_vm11 = vcmask 982016  }
 0x44b   : > { %16134 = vst [vmem:[#allocation22_spill] sm:$0xff] %v10738_v41  ;;  %16137 = vst [vmem:[#allocation24_spill] sm:$0xff] %v10757_v63  ;;  %v8611_v61 = vpack.i.bf16 %v9799_v1, %v10738_v41 }
 0x44c   : > { %2013 = vrot.lane.b32.xlu1 %v10652_v17, %s9165_s27  ;;  %8592 = vrot.lane.b32.xlu0 %v8591_v7, %s9169_s12  ;;  %v880_v7 = vpop.permute.xlu0 %879 }
 0x44d   : > { %v1027_v28 = vsel %vm1022_vm13, %v1021_v43, %v880_v7  ;;  %v8616_v7 = vpack.i.bf16 %v9878_v16, %v10757_v63  ;;  %v1940_v43 = vrot.slane %v1823_v14, 2  ;;  %vm16138_vm13 = vmmov %vm16133_vm4  ;;  %vm16149_vm4 = vcmask 850944  }
 0x450   : > { %8582 = vrot.lane.b32.xlu1 %v8581_v2, %s16064_s16  ;;  %8602 = vrot.lane.b32.xlu0 %v8601_v27, %s16066_s29  ;;  %v2940_v2 = vsel %vm387_vm1, %v2907_v15, %v10724_v36  ;;  %v2912_v27 = vsel %vm993_vm15, %v10420_v49, %v10721_v56 }
 0x451   : > { %v2973_v24 = vsel %vm1016_vm12, %v2940_v2, %v10753_v32  ;;  %v2945_v30 = vsel %vm387_vm1, %v2912_v27, %v10724_v36  ;;  %v1440_v2 = vadd.f32 %v10340_v54, %v10617_v45  ;;  %v8626_v45 = vpack.i.bf16 %v10738_v41, %v10539_v33 }
 0x452   : > { %v10802_v11 = vsel %vm1016_vm12, %v2945_v30, %v10753_v32 }
 0x453   : > { %16143 = vst [vmem:[#allocation27_spill] sm:$0xff] %v10802_v11 }
 0x454   : > { %8587 = vrot.lane.b32.xlu1 %v8586_v18, %s16064_s16  ;;  %8607 = vrot.lane.b32.xlu0 %v8606_v12, %s9168_s30  ;;  %v1790_v18 = vsel %vm16125_vm5, %v1773_v23, %v10678_v34  ;;  %v1888_v12 = vrot.slane %v10697_v8, 1  ;;  %v8621_v23 = vpack.i.bf16 %v10757_v63, %v10487_v0 }
 0x455   : > { %v10783_v27 = vsel %vm16138_vm13, %v1790_v18, %v10678_v34  ;;  %v1514_v18 = vld [vmem:[%s15803_s7 + $0x100] sm:$0xff] }
 0x456   : > { %v8373_v47 = vpop.permute.xlu0 %8372  ;;  %v8368_v22 = vpop.permute.xlu1 %8367  ;;  %16139 = vst [vmem:[#allocation25_spill] sm:$0xff] %v10783_v27  ;;  %v10791_v14 = vsel %vm16140_vm6, %v1888_v12, %v1889_v29  ;;  %v1942_v16 = vrot.slane %v10783_v27, 2 }
 0x457   : > { %v8369_v15 = vunpack.i.l.bf16 %v8368_v22  ;;  %v8375_v59 = vunpack.i.h.bf16 %v8373_v47  ;;  %16141 = vst [vmem:[#allocation26_spill] sm:$0xff] %v10791_v14  ;;  %v8661_v48 = vpack.i.bf16 %v10791_v14, %v10738_v41  ;;  %v8691_v46 = vpack.i.bf16 %v10668_v60, %v10791_v14 }
 0x458   : > { %8597 = vrot.lane.b32.xlu1 %v8596_v26, %s9165_s27  ;;  %8612 = vrot.lane.b32.xlu0 %v8611_v61, %s9170_s13  ;;  %v8374_v26 = vunpack.i.l.bf16 %v8373_v47  ;;  %v8631_v47 = vpack.i.bf16 %v10584_v38, %v10738_v41 }
 0x459   : > { %v1032_v3 = vsel %vm471_vm2, %v1027_v28, %v8369_v15  ;;  %v2913_v15 = vsel %vm993_vm15, %v10542_v20, %v8375_v59 }
 0x45a   : > { %v1041_v61 = vsel %vm1033_vm0, %v1032_v3, %v8320_v42  ;;  %v10788_v50 = vpop.permute.xlu0 %8377  ;;  %v8383_v19 = vpop.permute.xlu1 %8382  ;;  %vm16144_vm0 = vmmov %vm16125_vm5  ;;  %v8370_v42 = vunpack.i.h.bf16 %v8368_v22  ;;  %v10820_v22 = vmax.f32 %v1440_v2, 0.0  ;;  %v2708_v28 = vsel %vm993_vm15, %v9799_v1, %v8374_v26  ;;  %v1528_v1 = vld [vmem:[%s15803_s7 + $0x170] sm:$0xff] }
 0x45b   : > { %v1050_v54 = vsel %vm16142_vm7, %v1041_v61, %v8330_v9  ;;  %v10805_v3 = vsel %vm16144_vm0, %v1939_v6, %v1940_v43  ;;  %v8641_v9 = vpack.i.bf16 %v10783_v27, %v10420_v49  ;;  %v1515_v6 = vld [vmem:[%s15803_s7 + $0x108] sm:$0xff]  ;;  %v2908_v49 = vsel %vm993_vm15, %v9821_v25, %v8375_v59  ;;  %vm16158_vm5 = vmmov %vm16142_vm7 }
 0x45c   : > { %16145 = vst [vmem:[#allocation28_spill] sm:$0xff] %v10805_v3  ;;  %8622 = vrot.lane.b32.xlu1 %v8621_v23, %s9161_s20  ;;  %8617 = vrot.lane.b32.xlu0 %v8616_v7, %s9168_s30  ;;  %v1059_v21 = vsel %vm16146_vm8, %v1050_v54, %v8335_v31  ;;  %v10827_v31 = vpack.c.bf16 %v1515_v6, %v1514_v18  ;;  %v8384_v61 = vunpack.i.l.bf16 %v8383_v19  ;;  %v16150_v59 = vunpack.i.h.bf16 %v10175_v35  ;;  %v1517_v18 = vld [vmem:[%s15803_s7 + $0x118] sm:$0xff]  ;;  %vm16159_vm13 = vmmov %vm16158_vm5 }
 0x45d   : > { %v1068_v12 = vsel %vm16147_vm10, %v1059_v21, %v8325_v44  ;;  %v3006_v55 = vsel %vm471_vm2, %v2973_v24, %v8370_v42  ;;  %v3014_v54 = vsel %vm471_vm2, %v10802_v11, %v8370_v42  ;;  %v1516_v21 = vld [vmem:[%s15803_s7 + $0x110] sm:$0xff]  ;;  %v16153_v24 = vunpack.i.h.bf16 %v10206_v10  ;;  %vm16160_vm6 = vmmov %vm16158_vm5 }
 0x45e   : > { %v8393_v30 = vpop.permute.xlu0 %8392  ;;  %v8388_v29 = vpop.permute.xlu1 %8387  ;;  %v1077_v44 = vsel %vm16149_vm4, %v1068_v12, %v16148_v53  ;;  %8042 = vmatpush1.bf16.msra.mxu0 %v10827_v31  ;;  %vm16161_vm7 = vmmov %vm16147_vm10  ;;  %v1609_v62 = vrot.slane %v10820_v22, 5  ;;  %v1642_v4 = vrot.slane %v10820_v22, 4 }
 0x45f   : > { %v8395_v23 = vunpack.i.h.bf16 %v8393_v30  ;;  %v8394_v7 = vunpack.i.l.bf16 %v8393_v30  ;;  %v8390_v43 = vunpack.i.h.bf16 %v8388_v29  ;;  %v8389_v2 = vunpack.i.l.bf16 %v8388_v29  ;;  %vm16162_vm0 = vmmov %vm16161_vm7 }
 0x460   : > { %2015 = vrot.lane.b32.xlu1 %v10738_v41, %s9165_s27  ;;  %8627 = vrot.lane.b32.xlu0 %v8626_v45, %s9169_s12  ;;  %v1086_v26 = vsel %vm16151_vm9, %v1077_v44, %v16150_v59  ;;  %v16155_v30 = vmov 0.0|0.0   ;;  %vm16163_vm8 = vmmov %vm16162_vm0 }
 0x461   : > { %v2941_v6 = vsel %vm387_vm1, %v2908_v49, %v8390_v43  ;;  %v10856_v45 = vsel %vm387_vm1, %v2708_v28, %v8389_v2  ;;  %v2946_v35 = vsel %vm387_vm1, %v2913_v15, %v8390_v43  ;;  %v1095_v12 = vsel %vm16154_vm11, %v1086_v26, %v16153_v24  ;;  %8043 = vmatprep.subr.bf16.mxu0 %v16155_v30  ;;  %vm16164_vm10 = vmmov %vm16151_vm9 }
 0x462   : > { %16152 = vst [vmem:[#allocation29_spill] sm:$0xff] %v10856_v45  ;;  %v10864_v29 = vsel %vm1016_vm12, %v2941_v6, %v8395_v23  ;;  %v2979_v53 = vsel %vm1016_vm12, %v2946_v35, %v8395_v23  ;;  %1453 = vmatmul.mubr.f32.gmra.mrb[16].mxu0 %v1095_v12  ;;  %v8398_v44 = vpop.permute.xlu0 %8397  ;;  %v2742_v49 = vsel %vm1016_vm12, %v10856_v45, %v8394_v7  ;;  %v8403_v28 = vpop.permute.xlu1 %8402  ;;  %v10875_v26 = vunpack.i.h.bf16 %v10788_v50  ;;  %vm16165_vm4 = vmmov %vm16151_vm9 }
 0x463   : > { %v10869_v2 = vpack.c.bf16 %v1517_v18, %v1516_v21  ;;  %v8400_v15 = vunpack.i.h.bf16 %v8398_v44  ;;  %v8399_v43 = vunpack.i.l.bf16 %v8398_v44  ;;  %v2775_v10 = vsel %vm471_vm2, %v2742_v49, %v8384_v61  ;;  %vm16166_vm9 = vmmov %vm16165_vm4 }
 0x464   : > { %v10872_v59 = vunpack.i.h.bf16 %v8403_v28  ;;  %16157 = vst [vmem:[#allocation31_spill] sm:$0xff] %v10875_v26  ;;  %v8379_v6 = vunpack.i.l.bf16 %v10788_v50  ;;  %v8404_v23 = vunpack.i.l.bf16 %v8403_v28  ;;  %8642 = vrot.lane.b32.xlu1 %v8641_v9, %s9169_s12  ;;  %8632 = vrot.lane.b32.xlu0 %v8631_v47, %s16064_s16  ;;  %v3015_v7 = vsel %vm471_vm2, %v2979_v53, %v8370_v42  ;;  %vm16167_vm11 = vmmov %vm16158_vm5 }
 0x465   : > { %v10881_v21 = vunpack.i.h.bf16 %v8383_v19  ;;  %v2808_v18 = vsel %vm16158_vm5, %v2775_v10, %v8400_v15  ;;  %v3066_v61 = vsel %vm16159_vm13, %v3006_v55, %v8399_v43  ;;  %v3074_v35 = vsel %vm16160_vm6, %v3014_v54, %v8399_v43  ;;  %8045 = vmatpush1.bf16.msra.mxu0 %v10869_v2  ;;  %v1518_v55 = vld [vmem:[%s15803_s7 + $0x120] sm:$0xff]  ;;  %v1519_v54 = vld [vmem:[%s15803_s7 + $0x128] sm:$0xff]  ;;  %vm16168_vm5 = vmmov %vm16162_vm0 }
 0x466   : > { %16156 = vst [vmem:[#allocation30_spill] sm:$0xff] %v10872_v59  ;;  %v2841_v50 = vsel %vm16161_vm7, %v2808_v18, %v10872_v59  ;;  %v2057_v24 = vpop.permute.xlu0 %2056  ;;  %v2006_v12 = vpop.permute.xlu1 %2005  ;;  %v3126_v9 = vsel %vm16162_vm0, %v3066_v61, %v8404_v23  ;;  %v3007_v47 = vsel %vm471_vm2, %v10864_v29, %v8370_v42  ;;  %v3134_v19 = vsel %vm16163_vm8, %v3074_v35, %v8404_v23  ;;  %v1520_v61 = vld [vmem:[%s15803_s7 + $0x130] sm:$0xff]  ;;  %vm16169_vm13 = vmmov %vm16160_vm6  ;;  %v1531_v59 = vld [vmem:[%s15803_s7 + $0x188] sm:$0xff] }
 0x467   : > { %8046 = vmatprep.subr.bf16.mxu0 %v16155_v30  ;;  %v2709_v44 = vsel %vm993_vm15, %v10387_v39, %v2006_v12  ;;  %v3186_v49 = vsel %vm16164_vm10, %v3126_v9, %v8379_v6  ;;  %v10905_v42 = vsel %vm16165_vm4, %v2841_v50, %v10875_v26  ;;  %v10908_v28 = vsel %vm16166_vm9, %v3134_v19, %v8379_v6  ;;  %v1521_v6 = vld [vmem:[%s15803_s7 + $0x138] sm:$0xff]  ;;  %vm16170_vm6 = vmmov %vm16162_vm0  ;;  %v1530_v26 = vld [vmem:[%s15803_s7 + $0x180] sm:$0xff] }
 0x468   : > { %4014 = vmatprep.mubr.f32.mxu1 %v3186_v49  ;;  %8662 = vrot.lane.b32.xlu1 %v8661_v48, %s9161_s20  ;;  %v10912_v15 = vsel %vm387_vm1, %v2709_v44, %v2057_v24  ;;  %v3075_v10 = vsel %vm16167_vm11, %v3015_v7, %v8399_v43  ;;  %v10917_v18 = vsel %vm471_vm2, %v2979_v53, %v10881_v21  ;;  %v1545_v35 = vrot.slane %v10820_v22, 7  ;;  %vm16171_vm7 = vmmov %vm16165_vm4 }
 0x469   : > { %2066 = vrot.lane.b32.xlu0 %v10757_v63, %s9170_s13  ;;  %4015 = vmatmul.mubr.f32.vlgmr.msra.gmra.mrb[2].mxu1 %v10905_v42  ;;  %v3135_v48 = vsel %vm16168_vm5, %v3075_v10, %v8404_v23  ;;  %v8047_v7 = vpack.c.bf16 %v1519_v54, %v1518_v55  ;;  %v8666_v24 = vpack.i.bf16 %v10805_v3, %v10757_v63  ;;  %vm16172_vm0 = vmmov %vm16165_vm4  ;;  %vm16174_vm8 = vcmask 1041408  }
 0x46a   : > { %7650 = vmatprep.mubr.msk.f32.mxu0 %vm1016_vm12, %v10912_v15  ;;  %v10932_v53 = vpop.permute.xlu0 %8412  ;;  %v10934_v50 = vpop.permute.xlu1 %8407  ;;  %v3067_v12 = vsel %vm16169_vm13, %v3007_v47, %v8399_v43  ;;  %8084 = vmatpush1.bf16.msra.mxu1 %v10827_v31  ;;  %v8636_v19 = vpack.i.bf16 %v10542_v20, %v10783_v27  ;;  %v8050_v55 = vpack.c.bf16 %v1521_v6, %v1520_v61  ;;  %v1522_v43 = vld [vmem:[%s15803_s7 + $0x140] sm:$0xff]  ;;  %v1523_v31 = vld [vmem:[%s15803_s7 + $0x148] sm:$0xff]  ;;  %v1577_v47 = vrot.slane %v10820_v22, 6  ;;  %vm16180_vm5 = vmmov %vm16169_vm13 }
 0x46b   : > { %v10941_v9 = vunpack.i.l.bf16 %v10934_v50  ;;  %8048 = vmatpush1.bf16.msra.mxu0 %v8047_v7  ;;  %8074 = vmatprep.subr.bf16.mxu1 %v16155_v30  ;;  %v3127_v54 = vsel %vm16170_vm6, %v3067_v12, %v8404_v23  ;;  %v1709_v44 = vsel %vm575_vm3, 0.0, %v1545_v35  ;;  %v8676_v6 = vpack.i.bf16 %v10436_v13, %v10805_v3  ;;  %v1524_v12 = vld [vmem:[%s15803_s7 + $0x150] sm:$0xff] }
 0x46c   : > { %8667 = vrot.lane.b32.xlu1 %v8666_v24, %s16066_s29  ;;  %8049 = vmatprep.subr.bf16.mxu0 %v16155_v30  ;;  %v8646_v23 = vpack.i.bf16 %v10539_v33, %v10783_v27  ;;  %v8053_v35 = vpack.c.bf16 %v1523_v31, %v1522_v43  ;;  %v8681_v31 = vpack.i.bf16 %v10805_v3, %v10518_v37  ;;  %vm16175_vm10 = vcmask 1042432  }
 0x46d   : > { %8637 = vrot.lane.b32.xlu0 %v8636_v19, %s16064_s16  ;;  %v3187_v61 = vsel %vm16171_vm7, %v3127_v54, %v10941_v9  ;;  %v10968_v24 = vsel %vm16172_vm0, %v3135_v48, %v10941_v9  ;;  %v1525_v48 = vld [vmem:[%s15803_s7 + $0x158] sm:$0xff]  ;;  %v8651_v54 = vpack.i.bf16 %v10783_v27, %v10652_v17  ;;  %vm16176_vm4 = vcmask 1043456   ;;  %vm16185_vm7 = vmmov %vm16180_vm5 }
 0x46e   : > { %v10958_v49 = vpop.permute.xlu0 %8417  ;;  %v10960_v10 = vpop.permute.xlu1 %8422  ;;  %16173 = vst [vmem:[#allocation32_spill] sm:$0xff] %v10968_v24  ;;  %8085 = vmatpush1.bf16.msra.mxu1 %v10869_v2  ;;  %4018 = vmatprep.mubr.f32.mxu1 %v3187_v61  ;;  %v1725_v2 = vsel %vm16174_vm8, %v1709_v44, %v1577_v47  ;;  %v8056_v61 = vpack.c.bf16 %v1525_v48, %v1524_v12  ;;  %v1529_v17 = vld [vmem:[%s15803_s7 + $0x178] sm:$0xff]  ;;  %vm16177_vm9 = vcmask 1044480   ;;  %vm16179_vm11 = vcmask 1045504   ;;  %vm16186_vm0 = vmmov %vm16174_vm8 }
 0x46f   : > { %8051 = vmatpush1.bf16.msra.mxu0 %v8050_v55  ;;  %4019 = vmatmul.mubr.f32.gmra.mrb[4].mxu1 %v10905_v42  ;;  %v1741_v44 = vsel %vm16175_vm10, %v1725_v2, %v1577_v47  ;;  %v11008_v47 = vcombine.high %v10820_v22, %v10820_v22  ;;  %v8686_v2 = vpack.i.bf16 %v10791_v14, %v10584_v38  ;;  %vm16181_vm13 = vmmov %vm16179_vm11  ;;  %vm16183_vm6 = vcmask 1046528  }
 0x470   : > { %8677 = vrot.lane.b32.xlu1 %v8676_v6, %s9168_s30  ;;  %8052 = vmatprep.subr.bf16.mxu0 %v16155_v30  ;;  %v1526_v6 = vld [vmem:[%s15803_s7 + $0x160] sm:$0xff]  ;;  %vm16187_vm8 = vcmask 785408   ;;  %v16200_v38 = vmov 0.0  }
 0x471   : > { %8647 = vrot.lane.b32.xlu0 %v8646_v23, %s9165_s27  ;;  %8075 = vmatprep.subr.bf16.mxu1 %v16155_v30  ;;  %v1527_v23 = vld [vmem:[%s15803_s7 + $0x168] sm:$0xff]  ;;  %v1578_v11 = vrot.slane %v11008_v47, 6  ;;  %vm16188_vm10 = vmmov %vm16187_vm8 }
 0x472   : > { %v10984_v19 = vpop.permute.xlu1 %8432  ;;  %v10986_v43 = vpop.permute.xlu0 %8427  ;;  %8086 = vmatpush1.bf16.msra.mxu1 %v8047_v7  ;;  %v1675_v7 = vrot.slane %v10678_v34, 3  ;;  %v11019_v34 = vpack.c.bf16 %v1527_v23, %v1526_v6 }
 0x473   : > { %8054 = vmatpush1.bf16.msra.mxu0 %v8053_v35  ;;  %8076 = vmatprep.subr.bf16.mxu1 %v16155_v30 }
 0x474   : > { %8682 = vrot.lane.b32.xlu1 %v8681_v31, %s9161_s20  ;;  %8055 = vmatprep.subr.bf16.mxu0 %v16155_v30  ;;  %v1757_v31 = vsel %vm16176_vm4, %v1741_v44, %v1609_v62  ;;  %v1824_v44 = vsel %vm575_vm3, %v1675_v7, 0.0  ;;  %v8671_v7 = vpack.i.bf16 %v10387_v39, %v10791_v14  ;;  %vm16190_vm4 = vcmask 916480  }
 0x475   : > { %8652 = vrot.lane.b32.xlu0 %v8651_v54, %s16066_s29  ;;  %v8656_v54 = vpack.i.bf16 %v10738_v41, %v10783_v27  ;;  %v1774_v6 = vsel %vm16177_vm9, %v1757_v31, %v1609_v62  ;;  %v11048_v62 = vpack.c.bf16 %v1529_v17, %v1528_v1  ;;  %v1943_v31 = vrot.slane %v1824_v44, 2  ;;  %vm16191_vm9 = vmmov %vm16190_vm4 }
 0x476   : > { %v11010_v12 = vpop.permute.xlu1 %8437  ;;  %v11012_v48 = vpop.permute.xlu0 %2007  ;;  %8087 = vmatpush1.bf16.msra.mxu1 %v8050_v55  ;;  %v1546_v55 = vrot.slane %v11008_v47, 7  ;;  %v1791_v20 = vsel %vm16179_vm11, %v1774_v6, %v1642_v4  ;;  %v3008_v6 = vsel %vm471_vm2, %v10864_v29, %v10881_v21  ;;  %v1532_v29 = vld [vmem:[%s15803_s7 + $0x190] sm:$0xff]  ;;  %vm16193_vm11 = vmmov %vm16183_vm6 }
 0x477   : > { %8057 = vmatpush1.bf16.msra.mxu0 %v8056_v61  ;;  %8077 = vmatprep.subr.bf16.mxu1 %v16155_v30  ;;  %v11071_v37 = vsel %vm16181_vm13, %v1942_v16, %v1943_v31  ;;  %vm16197_vm13 = vcmask 1043456  }
 0x478   : > { %8687 = vrot.lane.b32.xlu1 %v8686_v2, %s9169_s12  ;;  %8058 = vmatprep.subr.bf16.mxu0 %v16155_v30  ;;  %16182 = vst [vmem:[#allocation34_spill] sm:$0xff] %v11071_v37 }
 0x479   : > { %8657 = vrot.lane.b32.xlu0 %v8656_v54, %s9168_s30 }
 0x47a   : > { %v11034_v23 = vpop.permute.xlu1 %8452  ;;  %v11036_v2 = vpop.permute.xlu0 %2058  ;;  %8088 = vmatpush1.bf16.msra.mxu1 %v8053_v35 }
 0x47b   : > { %16178 = vst [vmem:[#allocation33_spill] sm:$0xff] %v11036_v2  ;;  %v11043_v54 = vunpack.i.l.bf16 %v11034_v23  ;;  %8060 = vmatpush1.bf16.msra.mxu0 %v11019_v34  ;;  %8078 = vmatprep.subr.bf16.mxu1 %v16155_v30 }
 0x47c   : > { %8692 = vrot.lane.b32.xlu1 %v8691_v46, %s16064_s16  ;;  %8061 = vmatprep.subr.bf16.mxu0 %v16155_v30  ;;  %v1710_v46 = vsel %vm575_vm3, 0.0, %v1546_v55  ;;  %v11084_v55 = vsel %vm16183_vm6, %v1791_v20, %v1642_v4  ;;  %v1892_v4 = vrot.slane %v1824_v44, 1  ;;  %vm16198_vm6 = vcmask 1044480  }
 0x47d   : > { %8672 = vrot.lane.b32.xlu0 %v8671_v7, %s9170_s13  ;;  %v3076_v1 = vsel %vm16180_vm5, %v10917_v18, %v11043_v54  ;;  %v1891_v18 = vrot.slane %v10783_v27, 1  ;;  %v11081_v7 = vpack.c.bf16 %v1531_v59, %v1530_v26  ;;  %16184 = vst [vmem:[#allocation35_spill] sm:$0xff] %v11084_v55  ;;  %v3068_v16 = vsel %vm16185_vm7, %v3008_v6, %v11043_v54  ;;  %v1533_v59 = vld [vmem:[%s15803_s7 + $0x198] sm:$0xff] }
 0x47e   : > { %v11066_v17 = vpop.permute.xlu1 %8462  ;;  %v11068_v35 = vpop.permute.xlu0 %8442  ;;  %8089 = vmatpush1.bf16.msra.mxu1 %v8056_v61  ;;  %v1726_v26 = vsel %vm16186_vm0, %v1710_v46, %v1578_v11  ;;  %v8711_v46 = vpack.i.bf16 %v11071_v37, %v10436_v13  ;;  %v8696_v44 = vpack.i.bf16 %v11084_v55, %v10757_v63  ;;  %vm16195_vm5 = vcmask 1042432  }
 0x47f   : > { %v11074_v0 = vunpack.i.l.bf16 %v11066_v17  ;;  %8063 = vmatpush1.bf16.msra.mxu0 %v11048_v62  ;;  %8079 = vmatprep.subr.bf16.mxu1 %v16155_v30  ;;  %vm16202_vm7 = vcmask 1045504   ;;  %vm16204_vm0 = vcmask 654336  }
 0x480   : > { %2068 = vrot.lane.b32.xlu1 %v10805_v3, %s9170_s13  ;;  %8064 = vmatprep.subr.bf16.mxu0 %v16155_v30 }
 0x481   : > { %2017 = vrot.lane.b32.xlu0 %v10791_v14, %s9165_s27  ;;  %v3128_v20 = vsel %vm16187_vm8, %v3068_v16, %v11074_v0  ;;  %v3136_v61 = vsel %vm16188_vm10, %v3076_v1, %v11074_v0  ;;  %v11120_v1 = vsel %vm16193_vm11, %v1891_v18, %v1892_v4  ;;  %v11123_v16 = vpack.c.bf16 %v1533_v59, %v1532_v29  ;;  %vm16205_vm10 = vmmov %vm16190_vm4 }
 0x482   : > { %v11105_v31 = vpop.permute.xlu1 %8472  ;;  %v11107_v6 = vpop.permute.xlu0 %8447  ;;  %v3188_v24 = vsel %vm16190_vm4, %v3128_v20, %v10941_v9  ;;  %v11115_v2 = vsel %vm16191_vm9, %v3136_v61, %v10941_v9  ;;  %16194 = vst [vmem:[#allocation38_spill] sm:$0xff] %v11120_v1  ;;  %v1742_v20 = vsel %vm16195_vm5, %v1726_v26, %v1578_v11  ;;  %v1534_v9 = vld [vmem:[%s15803_s7 + $0x1a0] sm:$0xff]  ;;  %v1610_v18 = vrot.slane %v11008_v47, 5  ;;  %8090 = vmatpush1.bf16.msra.mxu1 %v11019_v34  ;;  %vm16206_vm4 = vmmov %vm16204_vm0 }
 0x483   : > { %16189 = vst [vmem:[#allocation36_spill] sm:$0xff] %v11107_v6  ;;  %16192 = vst [vmem:[#allocation37_spill] sm:$0xff] %v11115_v2  ;;  %4022 = vmatprep.mubr.f32.mxu1 %v3188_v24  ;;  %8066 = vmatpush1.bf16.msra.mxu0 %v11081_v7  ;;  %v1535_v24 = vld [vmem:[%s15803_s7 + $0x1a8] sm:$0xff]  ;;  %v8716_v11 = vpack.i.bf16 %v10407_v51, %v11120_v1  ;;  %v8414_v26 = vunpack.i.l.bf16 %v10932_v53  ;;  %v8701_v4 = vpack.i.bf16 %v10805_v3, %v11084_v55  ;;  %vm16210_vm5 = vcmask 1046528  }
 0x484   : > { %8712 = vrot.lane.b32.xlu1 %v8711_v46, %s16066_s29  ;;  %4023 = vmatmul.mubr.f32.gmra.mrb[6].mxu1 %v10905_v42  ;;  %v1758_v61 = vsel %vm16197_vm13, %v1742_v20, %v1610_v18  ;;  %v11149_v46 = vpack.c.bf16 %v1535_v24, %v1534_v9  ;;  %v8736_v13 = vpack.i.bf16 %v10757_v63, %v11120_v1  ;;  %v11205_v63 = vunpack.i.l.bf16 %v11010_v12  ;;  %vm16208_vm9 = vmmov %vm16187_vm8 }
 0x485   : > { %8697 = vrot.lane.b32.xlu0 %v8696_v44, %s9169_s12  ;;  %8067 = vmatprep.subr.bf16.mxu0 %v16155_v30  ;;  %v11155_v44 = vld [vmem:[%s15802_s6] ss:$0 sm:$0xff]  ;;  %vm16209_vm11 = vmmov %vm16204_vm0 }
 0x486   : > { %v11137_v29 = vpop.permute.xlu1 %2009  ;;  %v11139_v59 = vpop.permute.xlu0 %8457  ;;  %8080 = vmatprep.subr.bf16.mxu1 %v16155_v30  ;;  %v1445_v34 = vadd.f32 %v11155_v44, %v10633_v52  ;;  %v1775_v52 = vsel %vm16198_vm6, %v1758_v61, %v1610_v18  ;;  %v16199_v18 = vunpack.i.h.bf16 %v10932_v53  ;;  %vm16212_vm13 = vmmov %vm16205_vm10 }
 0x487   : > { %16196 = vst [vmem:[#allocation39_spill] sm:$0xff] %v11137_v29  ;;  %8069 = vmatpush1.bf16.msra.mxu0 %v11123_v16  ;;  %v8459_v6 = vunpack.i.l.bf16 %v11139_v59  ;;  %v8731_v29 = vpack.i.bf16 %v11120_v1, %v10668_v60  ;;  %8091 = vmatpush1.bf16.msra.mxu1 %v11048_v62  ;;  %vm16213_vm6 = vmmov %vm16187_vm8 }
 0x488   : > { %8717 = vrot.lane.b32.xlu1 %v8716_v11, %s9170_s13  ;;  %8070 = vmatprep.subr.bf16.mxu0 %v16155_v30  ;;  %v2909_v11 = vsel %vm993_vm15, %v9821_v25, %v8414_v26  ;;  %v11181_v2 = vmax.f32 %v1445_v34, 0.0  ;;  %v2910_v62 = vsel %vm993_vm15, %v9821_v25, %v16199_v18  ;;  %v8721_v18 = vpack.i.bf16 %v10507_v5, %v11071_v37 }
 0x489   : > { %8702 = vrot.lane.b32.xlu0 %v8701_v4, %s16064_s16  ;;  %v8706_v4 = vpack.i.bf16 %v11120_v1, %v10387_v39  ;;  %8081 = vmatprep.subr.bf16.mxu1 %v16155_v30  ;;  %v2942_v61 = vsel %vm387_vm1, %v2909_v11, %v8459_v6  ;;  %v16201_v39 = vunpack.i.h.bf16 %v11139_v59  ;;  %v1792_v11 = vsel %vm16202_vm7, %v1775_v52, %v11008_v47  ;;  %vm16214_vm7 = vmmov %vm16204_vm0 }
 0x48a   : > { %v11165_v9 = vpop.permute.xlu1 %8477  ;;  %v11167_v24 = vpop.permute.xlu0 %8467  ;;  %v11222_v52 = vunpack.i.h.bf16 %v11034_v23  ;;  %v11225_v5 = vunpack.i.h.bf16 %v11066_v17 }
 0x48b   : > { %v8469_v20 = vunpack.i.l.bf16 %v11167_v24  ;;  %8072 = vmatpush1.bf16.msra.mxu0 %v11149_v46  ;;  %v2943_v51 = vsel %vm387_vm1, %v2910_v62, %v16201_v39  ;;  %8092 = vmatpush1.bf16.msra.mxu1 %v11081_v7 }
 0x48c   : > { %8732 = vrot.lane.b32.xlu1 %v8731_v29, %s9169_s12  ;;  %7852 = vmatprep.subr.mxu0 %v16200_v38  ;;  %v11202_v29 = vunpack.i.h.bf16 %v10934_v50  ;;  %v16203_v38 = vunpack.i.h.bf16 %v11167_v24  ;;  %v2914_v50 = vsel %vm993_vm15, %v10539_v33, %v8414_v26 }
 0x48d   : > { %v2975_v34 = vsel %vm1016_vm12, %v2942_v61, %v8469_v20  ;;  %8707 = vrot.lane.b32.xlu0 %v8706_v4, %s9161_s20  ;;  %8082 = vmatprep.subr.bf16.mxu1 %v16155_v30 }
 0x48e   : > { %v11210_v62 = vsel %vm1016_vm12, %v2943_v51, %v16203_v38  ;;  %v11212_v61 = vpop.permute.xlu1 %8502  ;;  %v11214_v4 = vpop.permute.xlu0 %2060  ;;  %v3009_v39 = vsel %vm471_vm2, %v2975_v34, %v10881_v21  ;;  %v2947_v38 = vsel %vm387_vm1, %v2914_v50, %v8459_v6  ;;  %v3010_v26 = vsel %vm471_vm2, %v2975_v34, %v11205_v63 }
 0x48f   : > { %v3069_v51 = vsel %vm16204_vm0, %v3009_v39, %v11043_v54  ;;  %v3011_v23 = vsel %vm471_vm2, %v11210_v62, %v11205_v63  ;;  %v11240_v17 = vsel %vm1016_vm12, %v2947_v38, %v8469_v20  ;;  %v1547_v38 = vrot.slane %v11181_v2, 7  ;;  %vm16217_vm0 = vmmov %vm16213_vm6  ;;  %8093 = vmatpush1.bf16.msra.mxu1 %v11123_v16 }
 0x490   : > { %8737 = vrot.lane.b32.xlu1 %v8736_v13, %s16064_s16  ;;  %v3129_v7 = vsel %vm16187_vm8, %v3069_v51, %v11074_v0  ;;  %v3070_v13 = vsel %vm16206_vm4, %v3010_v26, %v11222_v52  ;;  %v3071_v20 = vsel %vm16209_vm11, %v3011_v23, %v11222_v52  ;;  %v11260_v51 = vsel %vm16210_vm5, %v1792_v11, %v11008_v47  ;;  %vm16218_vm8 = vmmov %vm16205_vm10 }
 0x491   : > { %8722 = vrot.lane.b32.xlu0 %v8721_v18, %s9168_s30  ;;  %v3189_v6 = vsel %vm16205_vm10, %v3129_v7, %v11202_v29  ;;  %v3130_v34 = vsel %vm16208_vm9, %v3070_v13, %v11225_v5  ;;  %v8726_v18 = vpack.i.bf16 %v11071_v37, %v10573_v57  ;;  %16211 = vst [vmem:[#allocation41_spill] sm:$0xff] %v11260_v51  ;;  %vm16220_vm10 = vcmask 1041408   ;;  %vm16223_vm9 = vmmov %vm16214_vm7 }
 0x492   : > { %v11247_v39 = vpop.permute.xlu1 %8507  ;;  %v11249_v50 = vpop.permute.xlu0 %8482  ;;  %4026 = vmatprep.mubr.f32.mxu1 %v3189_v6  ;;  %v3190_v7 = vsel %vm16212_vm13, %v3130_v34, %v11202_v29  ;;  %v3131_v26 = vsel %vm16213_vm6, %v3071_v20, %v11225_v5  ;;  %v3017_v23 = vsel %vm471_vm2, %v11240_v17, %v10881_v21  ;;  %v11273_v6 = vunpack.i.l.bf16 %v11068_v35  ;;  %8083 = vmatprep.subr.bf16.mxu1 %v16155_v30  ;;  %vm16224_vm11 = vmmov %vm16210_vm5 }
 0x493   : > { %16207 = vst [vmem:[#allocation40_spill] sm:$0xff] %v11249_v50  ;;  %4027 = vmatmul.mubr.f32.gmra.mrb[8].mxu1 %v10905_v42  ;;  %v3077_v11 = vsel %vm16214_vm7, %v3017_v23, %v11043_v54  ;;  %v8746_v34 = vpack.i.bf16 %v11260_v51, %v11084_v55  ;;  %v1676_v21 = vrot.slane %v10820_v22, 3  ;;  %v8751_v16 = vpack.i.bf16 %v11071_v37, %v11260_v51  ;;  %vm16227_vm13 = vmmov %vm16217_vm0 }
 0x494   : > { %2070 = vrot.lane.b32.xlu1 %v11071_v37, %s9170_s13  ;;  %4030 = vmatprep.mubr.f32.mxu1 %v3190_v7  ;;  %v11286_v20 = vsel %vm16217_vm0, %v3077_v11, %v11074_v0  ;;  %v3191_v54 = vsel %vm16218_vm8, %v3131_v26, %v11273_v6  ;;  %v1711_v7 = vsel %vm575_vm3, 0.0, %v1547_v38  ;;  %v8741_v38 = vpack.i.bf16 %v11071_v37, %v10805_v3  ;;  %vm16229_vm6 = vmmov %vm16218_vm8 }
 0x495   : > { %8727 = vrot.lane.b32.xlu0 %v8726_v18, %s9161_s20  ;;  %v1579_v18 = vrot.slane %v11181_v2, 6  ;;  %8094 = vmatpush1.bf16.msra.mxu1 %v11149_v46  ;;  %v1825_v26 = vsel %vm575_vm3, %v1676_v21, 0.0  ;;  %v1894_v11 = vrot.slane %v11084_v55, 1  ;;  %v1611_v21 = vrot.slane %v11181_v2, 5 }
 0x496   : > { %v11278_v13 = vpop.permute.xlu1 %2011  ;;  %v11280_v57 = vpop.permute.xlu0 %8487  ;;  %v1895_v46 = vrot.slane %v1825_v26, 1  ;;  %vm16221_vm4 = vcmask 1042432   ;;  %vm16226_vm5 = vcmask 1043456   ;;  %vm16230_vm7 = vcmask 1045504  }
 0x497   : > { %16215 = vst [vmem:[#allocation42_spill] sm:$0xff] %v11278_v13  ;;  %16216 = vst [vmem:[#allocation43_spill] sm:$0xff] %v11280_v57  ;;  %4031 = vmatmul.mubr.f32.gmra.mrb[10].mxu1 %v10905_v42  ;;  %v1727_v30 = vsel %vm16220_vm10, %v1711_v7, %v1579_v18  ;;  %vm16232_vm0 = vcmask 1044480  }
 0x498   : > { %8747 = vrot.lane.b32.xlu1 %v8746_v34, %s9165_s27  ;;  %4034 = vmatprep.mubr.f32.mxu1 %v3191_v54  ;;  %v11317_v54 = vunpack.i.h.bf16 %v11010_v12  ;;  %v1743_v7 = vsel %vm16221_vm4, %v1727_v30, %v1579_v18  ;;  %v11341_v30 = vsel %vm16224_vm11, %v1894_v11, %v1895_v46  ;;  %vm16235_vm8 = vmmov %vm16230_vm7  ;;  %vm16241_vm4 = vcmask 1041408  }
 0x499   : > { %2019 = vrot.lane.b32.xlu0 %v11120_v1, %s9165_s27  ;;  %16225 = vst [vmem:[#allocation46_spill] sm:$0xff] %v11341_v30  ;;  %vm16236_vm10 = vmmov %vm16224_vm11 }
 0x49a   : > { %v11299_v0 = vpop.permute.xlu1 %2062  ;;  %v11301_v22 = vpop.permute.xlu0 %8492  ;;  %v3012_v12 = vsel %vm471_vm2, %v11210_v62, %v11317_v54  ;;  %vm16245_vm11 = vmmov %vm16230_vm7 }
 0x49b   : > { %16219 = vst [vmem:[#allocation44_spill] sm:$0xff] %v11299_v0  ;;  %4035 = vmatmul.mubr.f32.gmra.mrb[12].mxu1 %v10905_v42  ;;  %v11312_v23 = vunpack.i.l.bf16 %v11301_v22  ;;  %v1450_v0 = vadd.f32 %v11155_v44, %v10660_v40  ;;  %v11355_v44 = vcombine.high %v11181_v2, %v11181_v2 }
 0x49c   : > { %8752 = vrot.lane.b32.xlu1 %v8751_v16, %s16064_s16  ;;  %v8756_v16 = vpack.i.bf16 %v11260_v51, %v10805_v3  ;;  %v1759_v3 = vsel %vm16226_vm5, %v1743_v7, %v1611_v21  ;;  %vm16247_vm5 = vcmask 1042432  }
 0x49d   : > { %8742 = vrot.lane.b32.xlu0 %v8741_v38, %s9165_s27  ;;  %v1945_v38 = vrot.slane %v11084_v55, 2  ;;  %v3072_v18 = vsel %vm16223_vm9, %v3012_v12, %v11312_v23  ;;  %v1776_v46 = vsel %vm16232_vm0, %v1759_v3, %v1611_v21  ;;  %v11363_v7 = vmax.f32 %v1450_v0, 0.0  ;;  %vm16244_vm9 = vmmov %vm16241_vm4 }
 0x49e   : > { %v11322_v50 = vpop.permute.xlu1 %8527  ;;  %v11324_v57 = vpop.permute.xlu0 %8497  ;;  %v2920_v3 = vsel %vm993_vm15, %v10668_v60, %v10721_v56  ;;  %v1548_v0 = vrot.slane %v11355_v44, 7 }
 0x49f   : > { %16222 = vst [vmem:[#allocation45_spill] sm:$0xff] %v11322_v50  ;;  %v11327_v33 = vunpack.i.l.bf16 %v11324_v57  ;;  %v1946_v50 = vrot.slane %v1825_v26, 2  ;;  %v8771_v26 = vpack.i.bf16 %v11341_v30, %v10621_v58 }
 0x4a0   : > { %8762 = vrot.lane.b32.xlu1 %v8746_v34, %s9168_s30 }
 0x4a1   : > { %8757 = vrot.lane.b32.xlu0 %v8756_v16, %s9169_s12  ;;  %v3132_v62 = vsel %vm16227_vm13, %v3072_v18, %v11327_v33  ;;  %v11360_v11 = vsel %vm16230_vm7, %v1945_v38, %v1946_v50  ;;  %v1644_v16 = vrot.slane %v11181_v2, 4  ;;  %v8781_v38 = vpack.i.bf16 %v10697_v8, %v11341_v30  ;;  %vm16248_vm13 = vmmov %vm16247_vm5 }
 0x4a2   : > { %v11347_v55 = vpop.permute.xlu1 %8537  ;;  %v11349_v13 = vpop.permute.xlu0 %8512  ;;  %v3192_v40 = vsel %vm16229_vm6, %v3132_v62, %v11273_v6  ;;  %16231 = vst [vmem:[#allocation48_spill] sm:$0xff] %v11360_v11  ;;  %v8776_v50 = vpack.i.bf16 %v11360_v11, %v10738_v41  ;;  %v1549_v62 = vrot.slane %v11363_v7, 7  ;;  %v8786_v58 = vpack.i.bf16 %v10791_v14, %v11360_v11  ;;  %vm16249_vm6 = vmmov %vm16230_vm7 }
 0x4a3   : > { %16228 = vst [vmem:[#allocation47_spill] sm:$0xff] %v11347_v55  ;;  %4038 = vmatprep.mubr.f32.mxu1 %v3192_v40  ;;  %v1793_v21 = vsel %vm16235_vm8, %v1776_v46, %v1644_v16  ;;  %v2953_v40 = vsel %vm387_vm1, %v2920_v3, %v10724_v36  ;;  %v1677_v55 = vrot.slane %v11008_v47, 3  ;;  %v1581_v3 = vrot.slane %v11363_v7, 6 }
 0x4a4   : > { %8767 = vrot.lane.b32.xlu1 %v8746_v34, %s9170_s13  ;;  %4039 = vmatmul.mubr.f32.gmra.mrb[14].mxu1 %v10905_v42  ;;  %v1678_v34 = vrot.slane %v11181_v2, 3  ;;  %v11390_v41 = vsel %vm16236_vm10, %v1793_v21, %v1644_v16  ;;  %v8479_v16 = vunpack.i.l.bf16 %v11165_v9  ;;  %v11412_v47 = vsel %vm1016_vm12, %v2953_v40, %v10753_v32 }
 0x4a5   : > { %8772 = vrot.lane.b32.xlu0 %v8771_v26, %s9161_s20  ;;  %v1580_v26 = vrot.slane %v11355_v44, 6  ;;  %16237 = vst [vmem:[#allocation51_spill] sm:$0xff] %v11390_v41  ;;  %v1951_v21 = vrot.slane %v11390_v41, 2  ;;  %16240 = vst [vmem:[#allocation54_spill] sm:$0xff] %v11412_v47  ;;  %v8791_v40 = vpack.i.bf16 %v11390_v41, %v11071_v37  ;;  %v1948_v47 = vrot.slane %v11260_v51, 2 }
 0x4a6   : > { %v11369_v12 = vpop.permute.xlu1 %8542  ;;  %v11371_v18 = vpop.permute.xlu0 %8517  ;;  %v2911_v32 = vsel %vm993_vm15, %v9821_v25, %v8479_v16  ;;  %v8505_v16 = vunpack.i.h.bf16 %v11212_v61  ;;  %vm16251_vm7 = vcmask 1043456   ;;  %vm16255_vm8 = vcmask 654336  }
 0x4a7   : > { %16233 = vst [vmem:[#allocation49_spill] sm:$0xff] %v11369_v12  ;;  %16234 = vst [vmem:[#allocation50_spill] sm:$0xff] %v11371_v18  ;;  %v1713_v12 = vsel %vm575_vm3, 0.0, %v1549_v62 }
 0x4a8   : > { %8777 = vrot.lane.b32.xlu1 %v8776_v50, %s16066_s29  ;;  %v1712_v50 = vsel %vm575_vm3, 0.0, %v1548_v0  ;;  %v1729_v18 = vsel %vm16244_vm9, %v1713_v12, %v1581_v3  ;;  %v8796_v0 = vpack.i.bf16 %v11390_v41, %v10668_v60  ;;  %vm16253_vm0 = vmmov %vm16251_vm7  ;;  %vm16259_vm9 = vcmask 1044480  }
 0x4a9   : > { %8782 = vrot.lane.b32.xlu0 %v8781_v38, %s9170_s13  ;;  %v11401_v38 = vsel %vm575_vm3, %v1678_v34, 0.0  ;;  %v1728_v34 = vsel %vm16241_vm4, %v1712_v50, %v1580_v26  ;;  %v11430_v50 = vcombine.high %v11363_v7, %v11363_v7  ;;  %vm16258_vm4 = vcmask 785408  }
 0x4aa   : > { %v11392_v2 = vpop.permute.xlu1 %8547  ;;  %v11394_v46 = vpop.permute.xlu0 %8522 }
 0x4ab   : > { %16238 = vst [vmem:[#allocation52_spill] sm:$0xff] %v11392_v2  ;;  %16239 = vst [vmem:[#allocation53_spill] sm:$0xff] %v11394_v46  ;;  %v1952_v2 = vrot.slane %v11401_v38, 2 }
 0x4ac   : > { %8787 = vrot.lane.b32.xlu1 %v8786_v58, %s9168_s30  ;;  %v1826_v58 = vsel %vm575_vm3, %v1677_v55, 0.0  ;;  %v8504_v55 = vunpack.i.l.bf16 %v11212_v61  ;;  %v1550_v61 = vrot.slane %v11430_v50, 7 }
 0x4ad   : > { %2021 = vrot.lane.b32.xlu0 %v11341_v30, %s9165_s27  ;;  %v11438_v12 = vsel %vm16245_vm11, %v1951_v21, %v1952_v2  ;;  %v1744_v2 = vsel %vm16248_vm13, %v1728_v34, %v1580_v26  ;;  %v16252_v34 = vrot.slane %v11355_v44, 5  ;;  %vm16260_vm11 = vcmask 916480   ;;  %vm16263_vm13 = vmmov %vm16259_vm9 }
 0x4ae   : > { %v11417_v62 = vpop.permute.xlu1 %8552  ;;  %v11419_v36 = vpop.permute.xlu0 %8532  ;;  %16246 = vst [vmem:[#allocation57_spill] sm:$0xff] %v11438_v12 }
 0x4af   : > { %16242 = vst [vmem:[#allocation55_spill] sm:$0xff] %v11417_v62  ;;  %16243 = vst [vmem:[#allocation56_spill] sm:$0xff] %v11419_v36  ;;  %v8554_v56 = vunpack.i.l.bf16 %v11417_v62  ;;  %v1949_v36 = vrot.slane %v1826_v58, 2  ;;  %v1745_v62 = vsel %vm16247_vm5, %v1729_v18, %v1581_v3  ;;  %v1897_v18 = vrot.slane %v11260_v51, 1 }
 0x4b0   : > { %2072 = vrot.lane.b32.xlu1 %v11360_v11, %s9170_s13  ;;  %v1680_v3 = vrot.slane %v11363_v7, 3  ;;  %vm16261_vm5 = vmmov %vm16255_vm8 }
 0x4b1   : > { %v2944_v37 = vsel %vm387_vm1, %v2911_v32, %v8554_v56  ;;  %8792 = vrot.lane.b32.xlu0 %v8791_v40, %s9169_s12  ;;  %v1613_v56 = vrot.slane %v11363_v7, 5  ;;  %v8806_v32 = vpack.i.bf16 %v11341_v30, %v11390_v41  ;;  %v11456_v60 = vsel %vm16249_vm6, %v1948_v47, %v1949_v36  ;;  %vm16264_vm6 = vmmov %vm16258_vm4 }
 0x4b2   : > { %v2977_v25 = vsel %vm1016_vm12, %v2944_v37, %v8504_v55  ;;  %v11447_v46 = vpop.permute.xlu1 %8557  ;;  %v11449_v11 = vpop.permute.xlu0 %8562  ;;  %16250 = vst [vmem:[#allocation58_spill] sm:$0xff] %v11456_v60  ;;  %v8801_v36 = vpack.i.bf16 %v11390_v41, %v11260_v51  ;;  %v1898_v47 = vrot.slane %v1826_v58, 1  ;;  %v1760_v40 = vsel %vm16253_vm0, %v1744_v2, %v16252_v34 }
 0x4b3   : > { %v3013_v26 = vsel %vm471_vm2, %v2977_v25, %v11317_v54  ;;  %v1761_v21 = vsel %vm16251_vm7, %v1745_v62, %v1613_v56  ;;  %v2743_v55 = vsel %vm1016_vm12, %v10856_v45, %v8505_v16  ;;  %v8429_v58 = vunpack.i.l.bf16 %v10986_v43  ;;  %vm16265_vm7 = vmmov %vm16261_vm5 }
 0x4b4   : > { %8797 = vrot.lane.b32.xlu1 %v8796_v0, %s9165_s27  ;;  %v8495_v0 = vunpack.i.h.bf16 %v11301_v22  ;;  %v3073_v62 = vsel %vm16255_vm8, %v3013_v26, %v11312_v23  ;;  %v11485_v51 = vunpack.i.h.bf16 %v11068_v35  ;;  %v8500_v2 = vunpack.i.h.bf16 %v11324_v57 }
 0x4b5   : > { %8807 = vrot.lane.b32.xlu0 %v8806_v32, %s9168_s30  ;;  %v8816_v32 = vpack.i.bf16 %v11456_v60, %v10791_v14  ;;  %v11489_v34 = vsel %vm16236_vm10, %v1897_v18, %v1898_v47  ;;  %v2744_v26 = vsel %vm1016_vm12, %v10912_v15, %v8505_v16  ;;  %v3133_v14 = vsel %vm16258_vm4, %v3073_v62, %v11327_v33  ;;  %vm16270_vm10 = vmmov %vm16260_vm11 }
 0x4b6   : > { %v11475_v37 = vpop.permute.xlu1 %8572  ;;  %v11477_v25 = vpop.permute.xlu0 %8567  ;;  %16256 = vst [vmem:[#allocation60_spill] sm:$0xff] %v11485_v51  ;;  %16257 = vst [vmem:[#allocation61_spill] sm:$0xff] %v11489_v34  ;;  %v1778_v35 = vsel %vm16259_vm9, %v1761_v21, %v1613_v56  ;;  %v11500_v45 = vsel %vm575_vm3, %v1680_v3, 0.0  ;;  %v11504_v57 = vsel %vm16260_vm11, %v3133_v14, %v11485_v51  ;;  %v2776_v18 = vsel %vm471_vm2, %v2743_v55, %v8429_v58 }
 0x4b7   : > { %16254 = vst [vmem:[#allocation59_spill] sm:$0xff] %v11475_v37  ;;  %v8424_v16 = vunpack.i.l.bf16 %v10960_v10  ;;  %4042 = vmatprep.mubr.f32.mxu1 %v11504_v57  ;;  %v8811_v56 = vpack.i.bf16 %v11489_v34, %v10697_v8  ;;  %v2809_v3 = vsel %vm16261_vm5, %v2776_v18, %v8495_v0  ;;  %v16262_v14 = vrot.slane %v11355_v44, 5  ;;  %vm16279_vm11 = vmmov %vm16261_vm5 }
 0x4b8   : > { %8802 = vrot.lane.b32.xlu1 %v8801_v36, %s16066_s29  ;;  %v8430_v62 = vunpack.i.h.bf16 %v10986_v43  ;;  %4043 = vmatmul.mubr.f32.gmra.mrb[16].mxu1 %v10905_v42  ;;  %v8826_v55 = vpack.i.bf16 %v11120_v1, %v11456_v60  ;;  %v2777_v37 = vsel %vm471_vm2, %v2744_v26, %v8429_v58  ;;  %v1714_v22 = vsel %vm575_vm3, 0.0, %v1550_v61  ;;  %v16269_v26 = vld [vmem:[#allocation6_spill] sm:$0xff] }
 0x4b9   : > { %8817 = vrot.lane.b32.xlu0 %v8816_v32, %s16066_s29  ;;  %v1777_v21 = vsel %vm16263_vm13, %v1760_v40, %v16262_v14  ;;  %v2842_v32 = vsel %vm16264_vm6, %v2809_v3, %v8500_v2  ;;  %v8434_v8 = vunpack.i.l.bf16 %v10984_v19  ;;  %v8474_v18 = vunpack.i.l.bf16 %v11105_v31  ;;  %4046 = vmatprep.mubr.f32.mxu1 %v10908_v28  ;;  %vm16283_vm13 = vmmov %vm16270_vm10 }
 0x4ba   : > { %v11510_v47 = vpop.permute.xlu1 %8577  ;;  %v11512_v36 = vpop.permute.xlu0 %2064  ;;  %v2810_v43 = vsel %vm16265_vm7, %v2777_v37, %v8495_v0  ;;  %v16266_v42 = vrot.slane %v11363_v7, 4  ;;  %vm16267_vm0 = vcmask 1045504   ;;  %v8419_v2 = vunpack.i.l.bf16 %v10958_v49  ;;  %vm16290_vm7 = vmmov %vm16258_vm4 }
 0x4bb   : > { %v8821_v61 = vpack.i.bf16 %v10783_v27, %v11489_v34  ;;  %vm16268_vm8 = vmmov %vm16267_vm0  ;;  %v2745_v28 = vsel %vm1016_vm12, %v10912_v15, %v8424_v16  ;;  %v2710_v37 = vsel %vm993_vm15, %v16269_v26, %v11012_v48  ;;  %v11547_v0 = vsel %vm16270_vm10, %v2842_v32, %v8434_v8 }
 0x4bc   : > { %8812 = vrot.lane.b32.xlu1 %v8811_v56, %s9161_s20  ;;  %v1795_v40 = vsel %vm16267_vm0, %v1778_v35, %v16266_v42  ;;  %v1794_v58 = vsel %vm16268_vm8, %v1777_v21, %v11355_v44  ;;  %v8831_v3 = vpack.i.bf16 %v11489_v34, %v11341_v30  ;;  %v16271_v14 = vunpack.i.h.bf16 %v10932_v53  ;;  %v16272_v21 = vld [vmem:[#allocation15_spill] sm:$0xff]  ;;  %v16273_v42 = vld [vmem:[#allocation33_spill] sm:$0xff]  ;;  %4047 = vmatmul.mubr.f32.gmra.mrb[18].mxu1 %v11547_v0  ;;  %v16276_v53 = vld [vmem:[#allocation32_spill] sm:$0xff] }
 0x4bd   : > { %8827 = vrot.lane.b32.xlu0 %v8826_v55, %s9168_s30  ;;  %v2778_v15 = vsel %vm471_vm2, %v2745_v28, %v8430_v62  ;;  %v11562_v48 = vsel %vm387_vm1, %v2710_v37, %v16273_v42  ;;  %v2843_v8 = vsel %vm16258_vm4, %v2810_v43, %v8419_v2  ;;  %v8435_v32 = vunpack.i.h.bf16 %v10984_v19  ;;  %4050 = vmatprep.mubr.f32.mxu1 %v16276_v53  ;;  %vm16292_vm0 = vmmov %vm16279_vm11  ;;  %v16293_v19 = vld [vmem:[#allocation39_spill] sm:$0xff]  ;;  %v16294_v53 = vld [vmem:[#allocation8_spill] sm:$0xff] }
 0x4be   : > { %v11549_v35 = vpop.permute.xlu1 %2013  ;;  %v11551_v56 = vpop.permute.xlu0 %8592  ;;  %v2915_v55 = vsel %vm993_vm15, %v16272_v21, %v16271_v14  ;;  %16274 = vst [vmem:[#allocation6_spill] sm:$0xff] %v11562_v48  ;;  %v16275_v26 = vunpack.i.h.bf16 %v11139_v59  ;;  %vm16277_vm9 = vcmask 1046528   ;;  %v2811_v37 = vsel %vm16279_vm11, %v2778_v15, %v8474_v18  ;;  %vm16295_vm8 = vmmov %vm16270_vm10 }
 0x4bf   : > { %v11574_v28 = vsel %vm16277_vm9, %v1794_v58, %v11355_v44  ;;  %v16280_v14 = vrot.slane %v11430_v50, 6  ;;  %vm16281_vm5 = vcmask 1041408   ;;  %v16282_v59 = vunpack.i.h.bf16 %v11167_v24  ;;  %vm16287_vm6 = vmmov %vm16277_vm9 }
 0x4c0   : > { %v2948_v51 = vsel %vm387_vm1, %v2915_v55, %v16275_v26  ;;  %8822 = vrot.lane.b32.xlu1 %v8821_v61, %s9170_s13  ;;  %16278 = vst [vmem:[#allocation15_spill] sm:$0xff] %v11574_v28  ;;  %v8514_v61 = vunpack.i.l.bf16 %v11349_v13  ;;  %v8425_v58 = vunpack.i.h.bf16 %v10960_v10  ;;  %v2746_v15 = vsel %vm1016_vm12, %v11562_v48, %v8424_v16  ;;  %v16289_v10 = vld [vmem:[#allocation24_spill] sm:$0xff]  ;;  %vm16296_vm10 = vmmov %vm16292_vm0 }
 0x4c1   : > { %v11580_v43 = vsel %vm16281_vm5, %v1714_v22, %v16280_v14  ;;  %v11586_v55 = vsel %vm1016_vm12, %v2948_v51, %v16282_v59  ;;  %8832 = vrot.lane.b32.xlu0 %v8831_v3, %s16064_s16  ;;  %v11594_v42 = vsel %vm16283_vm13, %v2843_v8, %v8435_v32  ;;  %v3018_v24 = vsel %vm471_vm2, %v11240_v17, %v11205_v63  ;;  %v16291_v59 = vld [vmem:[#allocation37_spill] sm:$0xff]  ;;  %vm16298_vm4 = vmmov %vm16295_vm8 }
 0x4c2   : > { %v11596_v22 = vpop.permute.xlu1 %8582  ;;  %v11598_v26 = vpop.permute.xlu0 %8602  ;;  %v16286_v51 = vrot.slane %v11363_v7, 4  ;;  %4051 = vmatmul.mubr.f32.gmra.mrb[20].mxu1 %v11594_v42  ;;  %v8841_v16 = vpack.i.bf16 %v11574_v28, %v16289_v10  ;;  %v2844_v8 = vsel %vm16290_vm7, %v2811_v37, %v8419_v2  ;;  %v2747_v14 = vsel %vm1016_vm12, %v11562_v48, %v8425_v58  ;;  %vm16299_vm9 = vmmov %vm16292_vm0 }
 0x4c3   : > { %16284 = vst [vmem:[#allocation33_spill] sm:$0xff] %v11596_v22  ;;  %16285 = vst [vmem:[#allocation32_spill] sm:$0xff] %v11598_v26  ;;  %4055 = vmatprep.mubr.f32.mxu1 %v16291_v59  ;;  %v8851_v17 = vpack.i.bf16 %v11574_v28, %v11341_v30  ;;  %v3019_v7 = vsel %vm471_vm2, %v11586_v55, %v11205_v63  ;;  %v2779_v2 = vsel %vm471_vm2, %v2746_v15, %v8430_v62 }
 0x4c4   : > { %v11606_v3 = vsel %vm16287_vm6, %v1795_v40, %v16286_v51  ;;  %2023 = vrot.lane.b32.xlu1 %v11489_v34, %s9165_s27  ;;  %v1900_v40 = vrot.slane %v11390_v41, 1  ;;  %v8475_v37 = vunpack.i.h.bf16 %v11105_v31  ;;  %v2780_v51 = vsel %vm471_vm2, %v2747_v14, %v8514_v61  ;;  %vm16300_vm11 = vmmov %vm16290_vm7 }
 0x4c5   : > { %16288 = vst [vmem:[#allocation62_spill] sm:$0xff] %v11606_v3  ;;  %8842 = vrot.lane.b32.xlu0 %v8841_v16, %s9165_s27  ;;  %v3078_v59 = vsel %vm16292_vm0, %v3018_v24, %v11222_v52  ;;  %v2711_v48 = vsel %vm993_vm15, %v16294_v53, %v16293_v19  ;;  %v8509_v26 = vunpack.i.l.bf16 %v11247_v39  ;;  %v11636_v63 = vsel %vm16295_vm8, %v2844_v8, %v8435_v32  ;;  %vm16301_vm5 = vmmov %vm16292_vm0 }
 0x4c6   : > { %v11638_v22 = vpop.permute.xlu1 %8587  ;;  %v11640_v62 = vpop.permute.xlu0 %8607  ;;  %v2812_v31 = vsel %vm16296_vm10, %v2779_v2, %v8474_v18  ;;  %v8420_v15 = vunpack.i.h.bf16 %v10958_v49  ;;  %v11646_v24 = vsel %vm387_vm1, %v2711_v48, %v11214_v4  ;;  %4056 = vmatmul.mubr.f32.gmra.mrb[22].mxu1 %v11636_v63  ;;  %v3197_v19 = vsel %vm16298_vm4, %v11286_v20, %v11202_v29  ;;  %vm16303_vm13 = vmmov %vm16287_vm6 }
 0x4c7   : > { %16297 = vst [vmem:[#allocation37_spill] sm:$0xff] %v11646_v24  ;;  %v3079_v32 = vsel %vm16299_vm9, %v3019_v7, %v11222_v52  ;;  %v8564_v16 = vunpack.i.l.bf16 %v11449_v11  ;;  %4060 = vmatprep.mubr.f32.mxu1 %v3197_v19  ;;  %v3138_v49 = vsel %vm16300_vm11, %v3078_v59, %v11225_v5  ;;  %v2813_v4 = vsel %vm16301_vm5, %v2780_v51, %v8475_v37  ;;  %vm16305_vm6 = vmmov %vm16290_vm7 }
 0x4c8   : > { %2074 = vrot.lane.b32.xlu1 %v11456_v60, %s9170_s13  ;;  %v16302_v18 = vrot.slane %v11401_v38, 1  ;;  %v2845_v52 = vsel %vm16305_vm6, %v2812_v31, %v8420_v15  ;;  %v8836_v20 = vpack.i.bf16 %v11574_v28, %v11390_v41  ;;  %v1679_v53 = vrot.slane %v11355_v44, 3  ;;  %vm16306_vm7 = vmmov %vm16298_vm4  ;;  %v16403_v41 = vld [vmem:[#allocation5_spill] sm:$0xff] }
 0x4c9   : > { %8852 = vrot.lane.b32.xlu0 %v8851_v17, %s16066_s29  ;;  %v2748_v14 = vsel %vm1016_vm12, %v11646_v24, %v8425_v58  ;;  %v11675_v38 = vsel %vm16306_vm7, %v2845_v52, %v8509_v26  ;;  %v8856_v17 = vpack.i.bf16 %v11489_v34, %v11574_v28  ;;  %vm16307_vm0 = vmmov %vm16305_vm6  ;;  %v8559_v44 = vunpack.i.l.bf16 %v11447_v46  ;;  %v16311_v52 = vld [vmem:[#allocation10_spill] sm:$0xff] }
 0x4ca   : > { %v11663_v48 = vsel %vm16303_vm13, %v1900_v40, %v16302_v18  ;;  %v11677_v7 = vpop.permute.xlu1 %8597  ;;  %v11679_v40 = vpop.permute.xlu0 %8612  ;;  %v3139_v2 = vsel %vm16307_vm0, %v3079_v32, %v11225_v5  ;;  %v2781_v51 = vsel %vm471_vm2, %v2748_v14, %v8514_v61  ;;  %4061 = vmatmul.mubr.f32.gmra.mrb[24].mxu1 %v11675_v38  ;;  %vm16308_vm8 = vmmov %vm16298_vm4  ;;  %v15907_v31 = vunpack.i.h.bf16 %v11165_v9  ;;  %v16310_v32 = vld [vmem:[#allocation42_spill] sm:$0xff] }
 0x4cb   : > { %16304 = vst [vmem:[#allocation39_spill] sm:$0xff] %v11663_v48  ;;  %v3198_v58 = vsel %vm16308_vm8, %v3138_v49, %v11202_v29  ;;  %vm16309_vm10 = vmmov %vm16307_vm0  ;;  %v2749_v19 = vsel %vm1016_vm12, %v11646_v24, %v8564_v16  ;;  %v8569_v18 = vunpack.i.l.bf16 %v11477_v25  ;;  %v8846_v5 = vpack.i.bf16 %v11341_v30, %v11574_v28 }
 0x4cc   : > { %v2846_v59 = vsel %vm16309_vm10, %v2813_v4, %v8420_v15  ;;  %4065 = vmatprep.mubr.f32.mxu1 %v3198_v58  ;;  %8837 = vrot.lane.b32.xlu1 %v8836_v20, %s16064_s16  ;;  %v8510_v61 = vunpack.i.h.bf16 %v11247_v39  ;;  %v2712_v29 = vsel %vm993_vm15, %v16311_v52, %v16310_v32  ;;  %v8515_v15 = vunpack.i.h.bf16 %v11349_v13  ;;  %vm16312_vm9 = vmmov %vm16298_vm4 }
 0x4cd   : > { %8857 = vrot.lane.b32.xlu0 %v8856_v17, %s9168_s30  ;;  %v3020_v49 = vsel %vm471_vm2, %v11586_v55, %v11317_v54  ;;  %v11708_v4 = vsel %vm16298_vm4, %v2846_v59, %v8509_v26  ;;  %v3199_v20 = vsel %vm16312_vm9, %v3139_v2, %v11273_v6  ;;  %vm16314_vm11 = vmmov %vm16301_vm5  ;;  %v16315_v17 = vld [vmem:[#allocation44_spill] sm:$0xff]  ;;  %v16319_v2 = vld [vmem:[#allocation53_spill] sm:$0xff]  ;;  %v1958_v30 = vrot.slane %v11500_v45, 2 }
 0x4ce   : > { %v11712_v14 = vpop.permute.xlu1 %8622  ;;  %v11714_v39 = vpop.permute.xlu0 %8617  ;;  %v2814_v58 = vsel %vm16314_vm11, %v2781_v51, %v8475_v37  ;;  %v3080_v13 = vsel %vm16301_vm5, %v3020_v49, %v11312_v23  ;;  %v11721_v32 = vsel %vm387_vm1, %v2712_v29, %v16315_v17  ;;  %4066 = vmatmul.mubr.f32.gmra.mrb[26].mxu1 %v11708_v4  ;;  %vm16317_vm13 = vmmov %vm16307_vm0  ;;  %v2782_v26 = vsel %vm471_vm2, %v2749_v19, %v8515_v15  ;;  %v16320_v37 = vld [vmem:[#allocation55_spill] sm:$0xff] }
 0x4cf   : > { %16313 = vst [vmem:[#allocation8_spill] sm:$0xff] %v11712_v14  ;;  %16316 = vst [vmem:[#allocation42_spill] sm:$0xff] %v11721_v32  ;;  %v2847_v54 = vsel %vm16317_vm13, %v2814_v58, %v8559_v44  ;;  %v11729_v59 = vunpack.i.l.bf16 %v16319_v2  ;;  %v2750_v23 = vsel %vm1016_vm12, %v11721_v32, %v8564_v16  ;;  %4070 = vmatprep.mubr.f32.mxu1 %v3199_v20  ;;  %v11738_v49 = vunpack.i.h.bf16 %v11477_v25  ;;  %v16325_v25 = vld [vmem:[#allocation48_spill] sm:$0xff] }
 0x4d0   : > { %vm16318_vm6 = vmmov %vm16307_vm0  ;;  %8847 = vrot.lane.b32.xlu1 %v8846_v5, %s9169_s12  ;;  %v8861_v19 = vpack.i.bf16 %v11663_v48, %v10783_v27  ;;  %v8871_v16 = vpack.i.bf16 %v11663_v48, %v11489_v34  ;;  %v1828_v17 = vsel %vm575_vm3, %v1679_v53, 0.0  ;;  %v2783_v51 = vsel %vm471_vm2, %v2750_v23, %v8515_v15 }
 0x4d1   : > { %v3140_v55 = vsel %vm16318_vm6, %v3080_v13, %v11327_v33  ;;  %vm16321_vm7 = vmmov %vm16301_vm5  ;;  %v16322_v33 = vpack.i.bf16 %v11438_v12, %v11120_v1  ;;  %v8881_v13 = vpack.i.bf16 %v16325_v25, %v11663_v48  ;;  %v16329_v53 = vunpack.i.h.bf16 %v16320_v37 }
 0x4d2   : > { %v2815_v52 = vsel %vm16321_vm7, %v2782_v26, %v8569_v18  ;;  %vm16323_vm0 = vmmov %vm16298_vm4  ;;  %v11751_v20 = vpop.permute.xlu1 %2015  ;;  %v11753_v58 = vpop.permute.xlu0 %8627  ;;  %v1954_v26 = vrot.slane %v11574_v28, 2  ;;  %v11785_v23 = vunpack.i.h.bf16 %v11447_v46  ;;  %vm16340_vm13 = vcmask 1045504  }
 0x4d3   : > { %8867 = vrot.lane.b32.xlu0 %v16322_v33, %s16066_s29  ;;  %v11749_v5 = vsel %vm16323_vm0, %v2847_v54, %v8510_v61  ;;  %16324 = vst [vmem:[#allocation10_spill] sm:$0xff] %v11751_v20  ;;  %v16326_v33 = vld [vmem:[#allocation13_spill] sm:$0xff]  ;;  %vm16327_vm8 = vmmov %vm16323_vm0 }
 0x4d4   : > { %v2916_v8 = vsel %vm993_vm15, %v16326_v33, %v15907_v31  ;;  %4071 = vmatmul.mubr.f32.gmra.mrb[28].mxu1 %v11749_v5  ;;  %v3200_v54 = vsel %vm16327_vm8, %v3140_v55, %v11273_v6  ;;  %vm16328_vm10 = vmmov %vm16318_vm6  ;;  %8862 = vrot.lane.b32.xlu1 %v8861_v19, %s9161_s20  ;;  %v16331_v31 = vld [vmem:[#allocation27_spill] sm:$0xff]  ;;  %v16332_v6 = vunpack.i.h.bf16 %v11449_v11  ;;  %v1955_v55 = vrot.slane %v1828_v17, 2 }
 0x4d5   : > { %v2848_v29 = vsel %vm16328_vm10, %v2815_v52, %v8559_v44  ;;  %v2949_v1 = vsel %vm387_vm1, %v2916_v8, %v16329_v53  ;;  %4075 = vmatprep.mubr.f32.mxu1 %v3200_v54  ;;  %vm16330_vm4 = vmmov %vm16301_vm5  ;;  %v3021_v27 = vsel %vm471_vm2, %v16331_v31, %v11729_v59  ;;  %v1903_v8 = vrot.slane %v11574_v28, 1 }
 0x4d6   : > { %v2816_v33 = vsel %vm16330_vm4, %v2783_v51, %v8569_v18  ;;  %v2982_v44 = vsel %vm1016_vm12, %v2949_v1, %v16332_v6  ;;  %vm16333_vm9 = vmmov %vm16330_vm4  ;;  %v11790_v51 = vpop.permute.xlu1 %8642  ;;  %v11792_v31 = vpop.permute.xlu0 %8632  ;;  %v8886_v1 = vpack.i.bf16 %v11606_v3, %v11456_v60  ;;  %v11802_v46 = vsel %vm16340_vm13, %v1954_v26, %v1955_v55  ;;  %v16346_v55 = vld [vmem:[#allocation56_spill] sm:$0xff] }
 0x4d7   : > { %8872 = vrot.lane.b32.xlu0 %v8871_v16, %s9169_s12  ;;  %v3081_v15 = vsel %vm16333_vm9, %v3021_v27, %v11738_v49  ;;  %vm16334_vm11 = vmmov %vm16323_vm0  ;;  %16336 = vst [vmem:[#allocation53_spill] sm:$0xff] %v11790_v51  ;;  %v16338_v27 = vld [vmem:[#allocation30_spill] sm:$0xff]  ;;  %v3022_v53 = vsel %vm471_vm2, %v2982_v44, %v11729_v59  ;;  %v1906_v26 = vrot.slane %v11606_v3, 1  ;;  %vm16349_vm8 = vcmask 1046528  }
 0x4d8   : > { %v11788_v18 = vsel %vm16334_vm11, %v2848_v29, %v8510_v61  ;;  %16337 = vst [vmem:[#allocation55_spill] sm:$0xff] %v11792_v31  ;;  %vm16339_vm5 = vmmov %vm16318_vm6  ;;  %v1904_v61 = vrot.slane %v1828_v17, 1  ;;  %v16342_v29 = vrot.slane %v11430_v50, 6  ;;  %vm16343_vm6 = vcmask 1042432   ;;  %8882 = vrot.lane.b32.xlu1 %v8881_v13, %s16064_s16  ;;  %v16345_v17 = vld [vmem:[#allocation45_spill] sm:$0xff] }
 0x4d9   : > { %16335 = vst [vmem:[#allocation44_spill] sm:$0xff] %v11788_v18  ;;  %4076 = vmatmul.mubr.f32.gmra.mrb[30].mxu1 %v11788_v18  ;;  %v2849_v19 = vsel %vm16339_vm5, %v2816_v33, %v16338_v27  ;;  %16341 = vst [vmem:[#allocation13_spill] sm:$0xff] %v11802_v46  ;;  %v1957_v33 = vrot.slane %v11606_v3, 2  ;;  %v11834_v52 = vpack.i.bf16 %v11802_v46, %v11438_v12  ;;  %v16354_v27 = vld [vmem:[#allocation35_spill] sm:$0xff]  ;;  %vm16359_vm9 = vcmask 1043456  }
 0x4da   : > { %v1746_v16 = vsel %vm16343_vm6, %v11580_v43, %v16342_v29  ;;  %4080 = vmatprep.mubr.f32.mxu1 %v11504_v57  ;;  %vm16344_vm7 = vmmov %vm16339_vm5  ;;  %v16347_v57 = vpack.i.bf16 %v11438_v12, %v11456_v60  ;;  %v11825_v13 = vsel %vm16349_vm8, %v1903_v8, %v1904_v61  ;;  %v16351_v29 = vld [vmem:[#allocation31_spill] sm:$0xff]  ;;  %v8663_v6 = vpop.permute.xlu1 %8662  ;;  %v16355_v8 = vunpack.i.l.bf16 %v16345_v17 }
 0x4db   : > { %v3141_v54 = vsel %vm16344_vm7, %v3081_v15, %v11785_v23  ;;  %vm16348_vm0 = vmmov %vm16330_vm4  ;;  %16350 = vst [vmem:[#allocation27_spill] sm:$0xff] %v11825_v13  ;;  %v11849_v24 = vunpack.i.l.bf16 %v8663_v6  ;;  %v16365_v51 = vrot.slane %v11430_v50, 5 }
 0x4dc   : > { %8877 = vrot.lane.b32.xlu0 %v16347_v57, %s9161_s20  ;;  %v3082_v43 = vsel %vm16348_vm0, %v3022_v53, %v11738_v49  ;;  %vm16352_vm10 = vmmov %vm16334_vm11  ;;  %v8911_v57 = vpack.i.bf16 %v16354_v27, %v11802_v46  ;;  %v11843_v53 = vpop.permute.xlu0 %2066  ;;  %2076 = vrot.lane.b32.xlu1 %v11438_v12, %s9170_s13 }
 0x4dd   : > { %v11830_v28 = vsel %vm16352_vm10, %v2849_v19, %v16351_v29  ;;  %vm16356_vm4 = vmmov %vm16352_vm10  ;;  %16357 = vst [vmem:[#allocation56_spill] sm:$0xff] %v11843_v53  ;;  %v16358_v19 = vrot.slane %v11430_v50, 5  ;;  %v1681_v29 = vrot.slane %v11430_v50, 3  ;;  %v16364_v53 = vunpack.i.l.bf16 %v11679_v40 }
 0x4de   : > { %16353 = vst [vmem:[#allocation45_spill] sm:$0xff] %v11830_v28  ;;  %4081 = vmatmul.mubr.f32.gmra.mrb[32].mxu1 %v11830_v28  ;;  %v3201_v61 = vsel %vm16356_vm4, %v3141_v54, %v16355_v8  ;;  %16360 = vst [vmem:[#allocation63_spill] sm:$0xff] %v11849_v24  ;;  %v8921_v54 = vpack.i.bf16 %v11825_v13, %v16325_v25  ;;  %v11860_v28 = vunpack.i.h.bf16 %v16345_v17  ;;  %v8668_v18 = vpop.permute.xlu1 %8667 }
 0x4df   : > { %v1762_v15 = vsel %vm16359_vm9, %v1746_v16, %v16358_v19  ;;  %4084 = vmatprep.mubr.f32.mxu1 %v3201_v61  ;;  %vm16361_vm11 = vmmov %vm16339_vm5  ;;  %v11863_v16 = vunpack.i.h.bf16 %v16319_v2  ;;  %v16362_v61 = vunpack.i.l.bf16 %v16346_v55  ;;  %v16363_v19 = vld [vmem:[#allocation12_spill] sm:$0xff]  ;;  %vm16366_vm5 = vcmask 1044480  }
 0x4e0   : > { %v3142_v32 = vsel %vm16361_vm11, %v3082_v43, %v11785_v23  ;;  %2025 = vrot.lane.b32.xlu0 %v11663_v48, %s9165_s27  ;;  %v1779_v20 = vsel %vm16366_vm5, %v1762_v15, %v16365_v51  ;;  %vm16369_vm6 = vmmov %vm16356_vm4  ;;  %v11892_v43 = vpop.permute.xlu0 %8637  ;;  %8902 = vrot.lane.b32.xlu1 %v11834_v52, %s9168_s30  ;;  %v16372_v51 = vrot.slane %v11500_v45, 1 }
 0x4e1   : > { %v2917_v31 = vsel %vm993_vm15, %v16363_v19, %v16362_v61  ;;  %v11882_v61 = vsel %vm16340_vm13, %v1957_v33, %v1958_v30  ;;  %v16368_v19 = vunpack.i.l.bf16 %v11714_v39  ;;  %v3023_v2 = vsel %vm471_vm2, %v2982_v44, %v11863_v16  ;;  %vm16371_vm7 = vmmov %vm16348_vm0 }
 0x4e2   : > { %v2950_v8 = vsel %vm387_vm1, %v2917_v31, %v16364_v53  ;;  %16367 = vst [vmem:[#allocation12_spill] sm:$0xff] %v11882_v61  ;;  %4085 = vmatmul.mubr.f32.gmra.mrb[34].mxu1 %v11547_v0  ;;  %v3202_v31 = vsel %vm16369_vm6, %v3142_v32, %v11860_v28  ;;  %v11890_v53 = vunpack.i.l.bf16 %v8668_v18  ;;  %v3083_v30 = vsel %vm16371_vm7, %v3023_v2, %v11849_v24  ;;  %vm16373_vm0 = vmmov %vm16349_vm8 }
 0x4e3   : > { %v2983_v14 = vsel %vm1016_vm12, %v2950_v8, %v16368_v19  ;;  %4088 = vmatprep.mubr.f32.mxu1 %v3202_v31  ;;  %v11905_v32 = vsel %vm16373_vm0, %v1906_v26, %v16372_v51  ;;  %vm16375_vm8 = vmmov %vm16361_vm11  ;;  %v11914_v8 = vpop.permute.xlu1 %8677  ;;  %v11923_v26 = vsel %vm575_vm3, %v1681_v29, 0.0  ;;  %v11925_v19 = vunpack.i.h.bf16 %v8663_v6 }
 0x4e4   : > { %16370 = vst [vmem:[#allocation64_spill] sm:$0xff] %v11890_v53  ;;  %16374 = vst [vmem:[#allocation65_spill] sm:$0xff] %v11905_v32  ;;  %8887 = vrot.lane.b32.xlu0 %v8886_v1, %s9169_s12  ;;  %v3143_v44 = vsel %vm16375_vm8, %v3083_v30, %v11890_v53  ;;  %v3024_v45 = vsel %vm471_vm2, %v2983_v14, %v11863_v16  ;;  %v11938_v1 = vunpack.i.l.bf16 %v11551_v56  ;;  %v11940_v29 = vunpack.i.h.bf16 %v8668_v18 }
 0x4e5   : > { %vm16376_vm10 = vmmov %vm16340_vm13  ;;  %v3203_v2 = vsel %vm16356_vm4, %v3143_v44, %v11860_v28  ;;  %16377 = vst [vmem:[#allocation66_spill] sm:$0xff] %v11923_v26  ;;  %v16380_v44 = vld [vmem:[#allocation20_spill] sm:$0xff]  ;;  %8912 = vrot.lane.b32.xlu1 %v8911_v57, %s16066_s29  ;;  %v11951_v0 = vunpack.i.l.bf16 %v11638_v22  ;;  %v16386_v18 = vpack.i.bf16 %v11438_v12, %v11606_v3 }
 0x4e6   : > { %v1796_v33 = vsel %vm16376_vm10, %v1779_v20, %v11430_v50  ;;  %4089 = vmatmul.mubr.f32.gmra.mrb[36].mxu1 %v11594_v42  ;;  %v11928_v20 = vpop.permute.xlu0 %8647  ;;  %vm16378_vm9 = vmmov %vm16371_vm7  ;;  %v2928_v15 = vsel %vm993_vm15, %v16325_v25, %v16380_v44 }
 0x4e7   : > { %v3084_v31 = vsel %vm16378_vm9, %v3024_v45, %v11849_v24  ;;  %4093 = vmatprep.mubr.f32.mxu1 %v3203_v2  ;;  %vm16381_vm11 = vmmov %vm16375_vm8  ;;  %v16384_v45 = vld [vmem:[#allocation50_spill] sm:$0xff]  ;;  %v11961_v44 = vpop.permute.xlu1 %8682 }
 0x4e8   : > { %v3144_v42 = vsel %vm16381_vm11, %v3084_v31, %v11890_v53  ;;  %vm16382_vm5 = vmmov %vm16373_vm0  ;;  %v8519_v51 = vunpack.i.l.bf16 %v16384_v45  ;;  %16385 = vst [vmem:[#allocation50_spill] sm:$0xff] %v11951_v0  ;;  %8892 = vrot.lane.b32.xlu0 %v16386_v18, %s16064_s16  ;;  %v8520_v31 = vunpack.i.h.bf16 %v16384_v45  ;;  %v16388_v53 = vld [vmem:[#allocation21_spill] sm:$0xff] }
 0x4e9   : > { %v11947_v6 = vsel %vm16382_vm5, %v1796_v33, %v11430_v50  ;;  %16387 = vst [vmem:[#allocation68_spill] sm:$0xff] %v11961_v44  ;;  %v3025_v50 = vsel %vm471_vm2, %v2983_v14, %v11938_v1  ;;  %v2961_v24 = vsel %vm387_vm1, %v2928_v15, %v16388_v53  ;;  %vm16389_vm13 = vmmov %vm16356_vm4  ;;  %v16393_v33 = vld [vmem:[#allocation43_spill] sm:$0xff]  ;;  %8922 = vrot.lane.b32.xlu1 %v8921_v54, %s9169_s12  ;;  %v16396_v53 = vld [vmem:[#allocation16_spill] sm:$0xff]  ;;  %v16401_v15 = vunpack.i.h.bf16 %v11165_v9 }
 0x4ea   : > { %16383 = vst [vmem:[#allocation67_spill] sm:$0xff] %v11947_v6  ;;  %4094 = vmatmul.mubr.f32.gmra.mrb[38].mxu1 %v11636_v63  ;;  %v3204_v18 = vsel %vm16389_vm13, %v3144_v42, %v11951_v0  ;;  %v11971_v57 = vpop.permute.xlu0 %8652  ;;  %vm16391_vm6 = vmmov %vm16371_vm7  ;;  %v11977_v2 = vpack.i.bf16 %v11947_v6, %v11606_v3  ;;  %v8489_v26 = vunpack.i.l.bf16 %v16393_v33  ;;  %v16395_v42 = vld [vmem:[#allocation36_spill] sm:$0xff]  ;;  %v11990_v3 = vsel %vm993_vm15, %v16396_v53, %v8519_v51  ;;  %v16399_v54 = vld [vmem:[#allocation23_spill] sm:$0xff] }
 0x4eb   : > { %16390 = vst [vmem:[#allocation69_spill] sm:$0xff] %v11971_v57  ;;  %v3085_v45 = vsel %vm16391_vm6, %v3025_v50, %v11925_v19  ;;  %4098 = vmatprep.mubr.f32.mxu1 %v3204_v18  ;;  %vm16394_vm7 = vmmov %vm16375_vm8  ;;  %v8450_v50 = vunpack.i.h.bf16 %v16395_v42  ;;  %v16398_v14 = vpack.i.bf16 %v11825_v13, %v11663_v48  ;;  %v11999_v57 = vsel %vm1016_vm12, %v2961_v24, %v16399_v54  ;;  %v16402_v53 = vld [vmem:[#allocation40_spill] sm:$0xff]  ;;  %v16405_v54 = vld [vmem:[#allocation14_spill] sm:$0xff] }
 0x4ec   : > { %16392 = vst [vmem:[#allocation70_spill] sm:$0xff] %v11977_v2  ;;  %v3145_v63 = vsel %vm16394_vm7, %v3085_v45, %v11940_v29  ;;  %16397 = vst [vmem:[#allocation43_spill] sm:$0xff] %v11990_v3  ;;  %v8449_v45 = vunpack.i.l.bf16 %v16395_v42  ;;  %v2921_v44 = vsel %vm993_vm15, %v16289_v10, %v16401_v15  ;;  %v12009_v30 = vsel %vm993_vm15, %v16403_v41, %v8520_v31  ;;  %v16408_v51 = vld [vmem:[#allocation29_spill] sm:$0xff] }
 0x4ed   : > { %8897 = vrot.lane.b32.xlu0 %v16398_v14, %s9170_s13  ;;  %16400 = vst [vmem:[#allocation36_spill] sm:$0xff] %v11999_v57  ;;  %16404 = vst [vmem:[#allocation16_spill] sm:$0xff] %v12009_v30  ;;  %v12011_v14 = vpop.permute.xlu1 %8687  ;;  %v8490_v24 = vunpack.i.h.bf16 %v16393_v33  ;;  %v2713_v42 = vsel %vm993_vm15, %v16405_v54, %v11549_v35  ;;  %v2751_v31 = vsel %vm1016_vm12, %v16408_v51, %v8489_v26  ;;  %v16409_v41 = vld [vmem:[#allocation49_spill] sm:$0xff]  ;;  %v16418_v51 = vld [vmem:[#allocation47_spill] sm:$0xff] }
 0x4ee   : > { %4099 = vmatmul.mubr.f32.gmra.mrb[40].mxu1 %v11675_v38  ;;  %vm16406_vm0 = vmmov %vm16356_vm4  ;;  %v12021_v15 = vpop.permute.xlu0 %8657  ;;  %v8545_v10 = vunpack.i.h.bf16 %v16409_v41  ;;  %v3623_v18 = vsel %vm387_vm1, %v11990_v3, %v8449_v45  ;;  %v16410_v35 = vpack.i.bf16 %v11456_v60, %v11825_v13  ;;  %v16411_v38 = vld [vmem:[#allocation54_spill] sm:$0xff]  ;;  %v3624_v57 = vsel %vm387_vm1, %v12009_v30, %v8450_v50  ;;  %v16419_v30 = vld [vmem:[#allocation52_spill] sm:$0xff] }
 0x4ef   : > { %v3205_v9 = vsel %vm16406_vm0, %v3145_v63, %v11951_v0  ;;  %16407 = vst [vmem:[#allocation40_spill] sm:$0xff] %v12021_v15  ;;  %v3029_v33 = vsel %vm471_vm2, %v16411_v38, %v11729_v59  ;;  %v16412_v63 = vunpack.i.h.bf16 %v16320_v37  ;;  %v16413_v45 = vpack.i.bf16 %v16325_v25, %v11825_v13  ;;  %vm16414_vm8 = vmmov %vm16391_vm6  ;;  %v16423_v38 = vld [vmem:[#allocation7_spill] sm:$0xff] }
 0x4f0   : > { %4103 = vmatprep.mubr.f32.mxu1 %v3205_v9  ;;  %8927 = vrot.lane.b32.xlu1 %v16410_v35, %s16064_s16  ;;  %v3089_v9 = vsel %vm16414_vm8, %v3029_v33, %v11738_v49  ;;  %v8535_v35 = vunpack.i.h.bf16 %v16346_v55  ;;  %v16415_v3 = vunpack.i.h.bf16 %v11449_v11  ;;  %vm16420_vm10 = vmmov %vm16394_vm7  ;;  %v16425_v33 = vunpack.i.l.bf16 %v16346_v55 }
 0x4f1   : > { %v2954_v54 = vsel %vm387_vm1, %v2921_v44, %v16412_v63  ;;  %8907 = vrot.lane.b32.xlu0 %v16413_v45, %s9161_s20  ;;  %v8580_v44 = vunpack.i.h.bf16 %v11510_v47  ;;  %v12054_v63 = vsel %vm387_vm1, %v2713_v42, %v11512_v36  ;;  %v12056_v50 = vpop.permute.xlu1 %8692  ;;  %v12069_v36 = vsel %vm1016_vm12, %v3624_v57, %v8545_v10  ;;  %vm16424_vm4 = vmmov %vm16391_vm6 }
 0x4f2   : > { %v2987_v37 = vsel %vm1016_vm12, %v2954_v54, %v16415_v3  ;;  %16416 = vst [vmem:[#allocation14_spill] sm:$0xff] %v12054_v63  ;;  %16417 = vst [vmem:[#allocation49_spill] sm:$0xff] %v12056_v50  ;;  %4104 = vmatmul.mubr.f32.gmra.mrb[42].mxu1 %v11708_v4  ;;  %v12063_v11 = vpop.permute.xlu0 %8672  ;;  %v12066_v3 = vsel %vm1016_vm12, %v3623_v18, %v8490_v24  ;;  %v3149_v54 = vsel %vm16420_vm10, %v3089_v9, %v11785_v23 }
 0x4f3   : > { %v15939_v42 = vunpack.i.l.bf16 %v12063_v11  ;;  %v2752_v45 = vsel %vm1016_vm12, %v12054_v63, %v8489_v26  ;;  %v16421_v4 = vunpack.i.l.bf16 %v11677_v7  ;;  %v16422_v10 = vpack.i.bf16 %v11802_v46, %v16354_v27  ;;  %vm16430_vm9 = vmmov %vm16406_vm0 }
 0x4f4   : > { %2078 = vrot.lane.b32.xlu1 %v11802_v46, %s9170_s13  ;;  %v3030_v57 = vsel %vm471_vm2, %v2987_v37, %v11729_v59  ;;  %v3603_v9 = vsel %vm993_vm15, %v16423_v38, %v8535_v35  ;;  %v2784_v26 = vsel %vm471_vm2, %v2751_v31, %v8580_v44  ;;  %v16427_v59 = vld [vmem:[#allocation59_spill] sm:$0xff]  ;;  %v16428_v31 = vunpack.i.l.bf16 %v11914_v8  ;;  %vm16431_vm11 = vmmov %vm16424_vm4 }
 0x4f5   : > { %v2918_v18 = vsel %vm993_vm15, %v16272_v21, %v16421_v4  ;;  %8917 = vrot.lane.b32.xlu0 %v16422_v10, %s9161_s20  ;;  %v12095_v21 = vpop.permute.xlu1 %2068  ;;  %v3090_v4 = vsel %vm16424_vm4, %v3030_v57, %v11738_v49  ;;  %v16426_v10 = vld [vmem:[#allocation28_spill] sm:$0xff]  ;;  %v8575_v27 = vunpack.i.h.bf16 %v16427_v59  ;;  %v16429_v55 = vunpack.i.l.bf16 %v16345_v17  ;;  %vm16432_vm5 = vmmov %vm16424_vm4  ;;  %v16434_v17 = vld [vmem:[#allocation33_spill] sm:$0xff] }
 0x4f6   : > { %v2951_v25 = vsel %vm387_vm1, %v2918_v18, %v15939_v42  ;;  %v2922_v24 = vsel %vm993_vm15, %v16426_v10, %v16425_v33  ;;  %v12110_v18 = vpop.permute.xlu0 %2017  ;;  %v2785_v57 = vsel %vm471_vm2, %v2752_v45, %v8580_v44  ;;  %vm16433_vm13 = vmmov %vm16394_vm7  ;;  %v8584_v10 = vunpack.i.l.bf16 %v16434_v17 }
 0x4f7   : > { %v12108_v35 = vsel %vm1016_vm12, %v2951_v25, %v16428_v31  ;;  %v12121_v33 = vsel %vm16430_vm9, %v3149_v54, %v16429_v55  ;;  %v12125_v25 = vunpack.i.l.bf16 %v11892_v43  ;;  %v2817_v42 = vsel %vm16432_vm5, %v2784_v26, %v8575_v27  ;;  %vm16436_vm6 = vmmov %vm16394_vm7 }
 0x4f8   : > { %8937 = vrot.lane.b32.xlu1 %v11977_v2, %s9165_s27  ;;  %v3026_v49 = vsel %vm471_vm2, %v12108_v35, %v11938_v1  ;;  %v3150_v38 = vsel %vm16433_vm13, %v3090_v4, %v11785_v23  ;;  %v8600_v54 = vunpack.i.h.bf16 %v11677_v7  ;;  %v12137_v44 = vunpack.i.h.bf16 %v11679_v40  ;;  %vm16439_vm7 = vmmov %vm16406_vm0 }
 0x4f9   : > { %2027 = vrot.lane.b32.xlu0 %v11825_v13, %s9165_s27  ;;  %v3086_v31 = vsel %vm16431_vm11, %v3026_v49, %v11925_v19  ;;  %v12139_v45 = vpop.permute.xlu1 %8712  ;;  %v12144_v13 = vunpack.i.h.bf16 %v11714_v39  ;;  %vm16440_vm0 = vmmov %vm16424_vm4  ;;  %v12153_v4 = vsel %vm471_vm2, %v2987_v37, %v11863_v16  ;;  %v16441_v60 = vunpack.i.l.bf16 %v16409_v41 }
 0x4fa   : > { %16435 = vst [vmem:[#allocation47_spill] sm:$0xff] %v12137_v44  ;;  %v3146_v55 = vsel %vm16436_vm6, %v3086_v31, %v11940_v29  ;;  %v12146_v49 = vpop.permute.xlu0 %8697  ;;  %v2818_v26 = vsel %vm16440_vm0, %v2785_v57, %v8575_v27  ;;  %v12160_v31 = vunpack.i.h.bf16 %v11551_v56  ;;  %v8675_v0 = vunpack.i.h.bf16 %v12063_v11  ;;  %vm16445_vm8 = vmmov %vm16436_vm6 }
 0x4fb   : > { %16437 = vst [vmem:[#allocation7_spill] sm:$0xff] %v12144_v13  ;;  %16438 = vst [vmem:[#allocation59_spill] sm:$0xff] %v12146_v49  ;;  %v3206_v23 = vsel %vm16439_vm7, %v3146_v55, %v12125_v25  ;;  %v2753_v15 = vsel %vm1016_vm12, %v12054_v63, %v16441_v60  ;;  %v16443_v55 = vpack.i.bf16 %v11802_v46, %v11947_v6  ;;  %v16444_v27 = vunpack.i.h.bf16 %v16402_v53  ;;  %v16446_v49 = vld [vmem:[#allocation32_spill] sm:$0xff] }
 0x4fc   : > { %16442 = vst [vmem:[#allocation33_spill] sm:$0xff] %v12160_v31  ;;  %4108 = vmatprep.mubr.f32.mxu1 %v3206_v23  ;;  %vm16447_vm10 = vmmov %vm16439_vm7  ;;  %v16448_v23 = vld [vmem:[#allocation9_spill] sm:$0xff]  ;;  %v16450_v60 = vunpack.i.h.bf16 %v16418_v51  ;;  %v8629_v50 = vunpack.i.l.bf16 %v11753_v58 }
 0x4fd   : > { %8942 = vrot.lane.b32.xlu1 %v16443_v55, %s16064_s16  ;;  %v2850_v37 = vsel %vm16445_vm8, %v2817_v42, %v16444_v27  ;;  %8932 = vrot.lane.b32.xlu0 %v11834_v52, %s9165_s27  ;;  %v12178_v56 = vsel %vm16447_vm10, %v3150_v38, %v11860_v28  ;;  %v3604_v55 = vsel %vm993_vm15, %v16448_v23, %v8600_v54  ;;  %v8718_v46 = vpop.permute.xlu1 %8717  ;;  %vm16449_vm4 = vmmov %vm16439_vm7  ;;  %v16456_v38 = vunpack.i.l.bf16 %v16419_v30 }
 0x4fe   : > { %4109 = vmatmul.mubr.f32.gmra.mrb[44].mxu1 %v11749_v5  ;;  %v3620_v42 = vsel %vm387_vm1, %v3603_v9, %v12137_v44  ;;  %v12185_v27 = vsel %vm16449_vm4, %v2850_v37, %v8584_v10  ;;  %vm16451_vm9 = vmmov %vm16436_vm6  ;;  %v12195_v57 = vpop.permute.xlu0 %8702  ;;  %v16453_v10 = vunpack.i.l.bf16 %v11677_v7  ;;  %v16454_v37 = vld [vmem:[#allocation34_spill] sm:$0xff]  ;;  %v3621_v5 = vsel %vm387_vm1, %v3604_v55, %v8675_v0  ;;  %v16457_v9 = vld [vmem:[#allocation8_spill] sm:$0xff] }
 0x4ff   : > { %v12190_v52 = vsel %vm16451_vm9, %v2818_v26, %v16450_v60  ;;  %16452 = vst [vmem:[#allocation32_spill] sm:$0xff] %v12195_v57  ;;  %v3653_v54 = vsel %vm1016_vm12, %v3620_v42, %v12144_v13  ;;  %v16455_v26 = vunpack.i.l.bf16 %v11679_v40  ;;  %v3625_v42 = vsel %vm387_vm1, %v3604_v55, %v16456_v38  ;;  %vm16469_vm11 = vmmov %vm16440_vm0 }
 0x500   : > { %v12204_v23 = vsel %vm993_vm15, %v16454_v37, %v16453_v10  ;;  %v16458_v7 = vunpack.i.l.bf16 %v11714_v39  ;;  %v8680_v40 = vunpack.i.h.bf16 %v11914_v8  ;;  %v16459_v0 = vpack.i.bf16 %v11947_v6, %v11438_v12  ;;  %v16462_v37 = vld [vmem:[#allocation53_spill] sm:$0xff]  ;;  %vm16470_vm5 = vmmov %vm16440_vm0 }
 0x501   : > { %v2955_v60 = vsel %vm387_vm1, %v2922_v24, %v16455_v26  ;;  %8952 = vrot.lane.b32.xlu1 %v11977_v2, %s9168_s30  ;;  %v16460_v24 = vld [vmem:[#allocation10_spill] sm:$0xff]  ;;  %v16461_v26 = vld [vmem:[#allocation17_spill] sm:$0xff]  ;;  %v12230_v55 = vunpack.i.h.bf16 %v16462_v37  ;;  %v8650_v38 = vunpack.i.h.bf16 %v11928_v20  ;;  %v12233_v39 = vpop.permute.xlu1 %8732  ;;  %v8644_v12 = vunpack.i.l.bf16 %v16462_v37  ;;  %vm16472_vm13 = vmmov %vm16436_vm6 }
 0x502   : > { %v12219_v10 = vsel %vm1016_vm12, %v2955_v60, %v16458_v7  ;;  %8947 = vrot.lane.b32.xlu0 %v16459_v0, %s9169_s12  ;;  %v2714_v2 = vsel %vm993_vm15, %v16461_v26, %v16460_v24  ;;  %v12237_v60 = vsel %vm471_vm2, %v3653_v54, %v12160_v31  ;;  %v16464_v7 = vunpack.i.h.bf16 %v11753_v58  ;;  %v8708_v44 = vpop.permute.xlu0 %8707  ;;  %v16466_v37 = vld [vmem:[#allocation41_spill] sm:$0xff]  ;;  %vm16473_vm7 = vmmov %vm16440_vm0 }
 0x503   : > { %16463 = vst [vmem:[#allocation9_spill] sm:$0xff] %v12237_v60  ;;  %v12244_v0 = vsel %vm471_vm2, %v12066_v3, %v8629_v50  ;;  %v8649_v24 = vunpack.i.l.bf16 %v11928_v20  ;;  %v3654_v26 = vsel %vm1016_vm12, %v3621_v5, %v8680_v40  ;;  %v12249_v6 = vunpack.i.h.bf16 %v8708_v44  ;;  %v16468_v40 = vld [vmem:[#allocation11_spill] sm:$0xff]  ;;  %vm16475_vm0 = vmmov %vm16449_vm4 }
 0x504   : > { %v2786_v13 = vsel %vm471_vm2, %v2753_v15, %v16464_v7  ;;  %v8709_v30 = vunpack.i.l.bf16 %v8708_v44  ;;  %v16465_v54 = vpack.i.bf16 %v11882_v61, %v11489_v34  ;;  %v3027_v15 = vsel %vm471_vm2, %v12108_v35, %v12230_v55  ;;  %vm16477_vm8 = vmmov %vm16475_vm0 }
 0x505   : > { %v12259_v50 = vunpack.i.h.bf16 %v12139_v45  ;;  %v8714_v20 = vunpack.i.l.bf16 %v12139_v45  ;;  %v8720_v3 = vunpack.i.h.bf16 %v8718_v46  ;;  %v8719_v5 = vunpack.i.l.bf16 %v8718_v46  ;;  %v12272_v35 = vpop.permute.xlu1 %8737  ;;  %v16471_v46 = vld [vmem:[#allocation4_spill] sm:$0xff]  ;;  %vm16481_vm10 = vmmov %vm16470_vm5 }
 0x506   : > { %8962 = vrot.lane.b32.xlu1 %v16465_v54, %s16066_s29  ;;  %v16467_v44 = vpack.i.bf16 %v11905_v32, %v16466_v37  ;;  %v12268_v7 = vsel %vm993_vm15, %v16468_v40, %v8650_v38  ;;  %v3719_v54 = vsel %vm16469_vm11, %v12237_v60, %v8709_v30  ;;  %v3087_v34 = vsel %vm16470_vm5, %v3027_v15, %v12249_v6  ;;  %v8723_v63 = vpop.permute.xlu0 %8722  ;;  %vm16483_vm4 = vmmov %vm16436_vm6 }
 0x507   : > { %v3687_v45 = vsel %vm471_vm2, %v3654_v26, %v8644_v12  ;;  %v2919_v31 = vsel %vm993_vm15, %v16471_v46, %v8649_v24  ;;  %v3777_v38 = vsel %vm16436_vm6, %v3719_v54, %v8714_v20  ;;  %v8725_v37 = vunpack.i.h.bf16 %v8723_v63  ;;  %vm16489_vm9 = vmmov %vm16470_vm5 }
 0x508   : > { %8957 = vrot.lane.b32.xlu0 %v16467_v44, %s9161_s20  ;;  %v3147_v44 = vsel %vm16472_vm13, %v3087_v34, %v12259_v50  ;;  %v3720_v40 = vsel %vm16473_vm7, %v3687_v45, %v8709_v30  ;;  %v8724_v57 = vunpack.i.l.bf16 %v8723_v63  ;;  %v16474_v60 = vpack.i.bf16 %v11663_v48, %v11882_v61  ;;  %v16478_v63 = vld [vmem:[#allocation51_spill] sm:$0xff]  ;;  %v16484_v34 = vld [vmem:[#allocation56_spill] sm:$0xff]  ;;  %vm16491_vm11 = vmmov %vm16470_vm5 }
 0x509   : > { %v3207_v12 = vsel %vm16475_vm0, %v3147_v44, %v12125_v25  ;;  %v16476_v24 = vunpack.i.h.bf16 %v11638_v22  ;;  %v2952_v15 = vsel %vm387_vm1, %v2919_v31, %v8719_v5  ;;  %v3622_v30 = vsel %vm387_vm1, %v12268_v7, %v8720_v3  ;;  %v16482_v31 = vld [vmem:[#allocation44_spill] sm:$0xff]  ;;  %v12307_v3 = vpop.permute.xlu1 %2070  ;;  %vm16494_vm5 = vmmov %vm16475_vm0 }
 0x50a   : > { %8972 = vrot.lane.b32.xlu1 %v16474_v60, %s9168_s30  ;;  %v16479_v54 = vpack.i.bf16 %v16478_v63, %v11905_v32  ;;  %4113 = vmatprep.mubr.f32.mxu1 %v3207_v12  ;;  %v16480_v60 = vunpack.i.h.bf16 %v16457_v9  ;;  %v8624_v46 = vunpack.i.l.bf16 %v16457_v9  ;;  %v3778_v5 = vsel %vm16483_vm4, %v3720_v40, %v8714_v20  ;;  %v16490_v40 = vld [vmem:[#allocation55_spill] sm:$0xff]  ;;  %vm16495_vm13 = vmmov %vm16483_vm4 }
 0x50b   : > { %v3835_v26 = vsel %vm16477_vm8, %v3777_v38, %v16476_v24  ;;  %v2985_v38 = vsel %vm1016_vm12, %v2952_v15, %v8724_v57  ;;  %v3655_v24 = vsel %vm1016_vm12, %v3622_v30, %v8725_v37  ;;  %4114 = vmatmul.mubr.f32.gmra.mrb[46].mxu1 %v16482_v31  ;;  %v12312_v12 = vsel %vm387_vm1, %v2714_v2, %v16484_v34  ;;  %v12321_v57 = vpop.permute.xlu0 %8727  ;;  %vm16497_vm6 = vmmov %vm16483_vm4  ;;  %v16515_v63 = vld [vmem:[#allocation63_spill] sm:$0xff] }
 0x50c   : > { %8967 = vrot.lane.b32.xlu0 %v16479_v54, %s9170_s13  ;;  %v2819_v44 = vsel %vm16481_vm10, %v2786_v13, %v16480_v60  ;;  %4372 = vmatmul.mubr.f32.vlgmr.msra.gmra.mrb[18].mxu0 %v3835_v26  ;;  %16485 = vst [vmem:[#allocation8_spill] sm:$0xff] %v12312_v12  ;;  %v16486_v54 = vunpack.i.h.bf16 %v11640_v62  ;;  %v16487_v60 = vld [vmem:[#allocation6_spill] sm:$0xff]  ;;  %v3028_v37 = vsel %vm471_vm2, %v2985_v38, %v12230_v55  ;;  %v16488_v26 = vunpack.i.l.bf16 %v16427_v59  ;;  %vm16500_vm8 = vmmov %vm16483_vm4 }
 0x50d   : > { %7651 = vmatprep.mubr.msk.f32.mxu0 %vm1016_vm12, %v16487_v60  ;;  %v8634_v2 = vunpack.i.l.bf16 %v16490_v40  ;;  %v16492_v34 = vunpack.i.l.bf16 %v11510_v47  ;;  %v3032_v30 = vsel %vm471_vm2, %v12219_v10, %v11863_v16  ;;  %v16498_v16 = vld [vmem:[#allocation60_spill] sm:$0xff]  ;;  %vm16503_vm10 = vmmov %vm16473_vm7 }
 0x50e   : > { %v12317_v13 = vsel %vm1016_vm12, %v3625_v42, %v16486_v54  ;;  %v3721_v20 = vsel %vm16489_vm9, %v3687_v45, %v16488_v26  ;;  %2080 = vrot.lane.b32.xlu1 %v11882_v61, %s9170_s13  ;;  %v3088_v42 = vsel %vm16491_vm11, %v3028_v37, %v12249_v6  ;;  %v16493_v45 = vunpack.i.h.bf16 %v11638_v22  ;;  %v12351_v37 = vpop.permute.xlu1 %8747  ;;  %vm16505_vm4 = vmmov %vm16475_vm0 }
 0x50f   : > { %v3688_v15 = vsel %vm471_vm2, %v3655_v24, %v16492_v34  ;;  %v3148_v31 = vsel %vm16495_vm13, %v3088_v42, %v12259_v50  ;;  %v16496_v54 = vunpack.i.h.bf16 %v16418_v51  ;;  %v3724_v24 = vsel %vm16473_vm7, %v12244_v0, %v8624_v46  ;;  %vm16506_vm9 = vmmov %vm16475_vm0 }
 0x510   : > { %2029 = vrot.lane.b32.xlu0 %v11905_v32, %s9165_s27  ;;  %v3836_v38 = vsel %vm16494_vm5, %v3778_v5, %v16493_v45  ;;  %v12355_v26 = vsel %vm16475_vm0, %v3148_v31, %v16498_v16  ;;  %v16499_v22 = vunpack.i.l.bf16 %v16402_v53  ;;  %v16501_v42 = vunpack.i.l.bf16 %v16409_v41  ;;  %vm16508_vm11 = vmmov %vm16497_vm6  ;;  %v16509_v16 = vld [vmem:[#allocation68_spill] sm:$0xff] }
 0x511   : > { %v2852_v47 = vsel %vm16497_vm6, %v2819_v44, %v16496_v54  ;;  %4376 = vmatmul.mubr.f32.gmra.mrb[20].mxu0 %v3836_v38  ;;  %v3033_v44 = vsel %vm471_vm2, %v12219_v10, %v11938_v1  ;;  %v8640_v38 = vunpack.i.h.bf16 %v11892_v43  ;;  %v8689_v31 = vunpack.i.l.bf16 %v12011_v14  ;;  %v12372_v54 = vpop.permute.xlu0 %2019  ;;  %4118 = vmatprep.mubr.f32.mxu1 %v12355_v26  ;;  %v16504_v10 = vld [vmem:[#allocation45_spill] sm:$0xff]  ;;  %vm16511_vm5 = vmmov %vm16475_vm0 }
 0x512   : > { %v3779_v5 = vsel %vm16500_vm8, %v3721_v20, %v16499_v22  ;;  %v2754_v34 = vsel %vm1016_vm12, %v12312_v12, %v16501_v42  ;;  %7652 = vmatprep.mubr.msk.f32.mxu0 %vm1016_vm12, %v16487_v60  ;;  %v16502_v41 = vunpack.i.l.bf16 %v16427_v59  ;;  %4119 = vmatmul.mubr.f32.gmra.mrb[48].mxu1 %v16504_v10  ;;  %v12382_v43 = vsel %vm16505_vm4, %v12190_v52, %v8634_v2  ;;  %vm16514_vm13 = vmmov %vm16497_vm6 }
 0x513   : > { %v12385_v42 = vsel %vm16506_vm9, %v2852_v47, %v8634_v2  ;;  %v16507_v60 = vunpack.i.l.bf16 %v16418_v51  ;;  %v8684_v32 = vunpack.i.l.bf16 %v16509_v16  ;;  %v16510_v59 = vunpack.i.l.bf16 %v11640_v62  ;;  %4122 = vmatprep.mubr.f32.mxu1 %v12121_v33  ;;  %vm16516_vm6 = vmmov %vm16473_vm7 }
 0x514   : > { %v3722_v20 = vsel %vm16503_vm10, %v3688_v15, %v16502_v41  ;;  %v3837_v10 = vsel %vm16511_vm5, %v3779_v5, %v8640_v38  ;;  %v16512_v52 = vunpack.i.h.bf16 %v11753_v58  ;;  %v16513_v47 = vunpack.i.l.bf16 %v12063_v11  ;;  %vm16517_vm7 = vmmov %vm16516_vm6  ;;  %v16518_v5 = vld [vmem:[#allocation19_spill] sm:$0xff] }
 0x515   : > { %v3782_v45 = vsel %vm16508_vm11, %v3724_v24, %v16507_v60  ;;  %v2755_v41 = vsel %vm1016_vm12, %v12312_v12, %v16510_v59  ;;  %4380 = vmatmul.mubr.f32.gmra.mrb[22].mxu0 %v3837_v10  ;;  %v12404_v60 = vpop.permute.xlu1 %8752  ;;  %v3780_v59 = vsel %vm16514_vm13, %v3722_v20, %v16499_v22  ;;  %v3091_v33 = vsel %vm16516_vm6, %v12153_v4, %v16515_v63  ;;  %v12421_v53 = vpop.permute.xlu0 %8742  ;;  %vm16520_vm0 = vmmov %vm16516_vm6 }
 0x516   : > { %v2787_v2 = vsel %vm471_vm2, %v2754_v34, %v16512_v52  ;;  %v2956_v24 = vsel %vm387_vm1, %v12204_v23, %v16513_v47  ;;  %v3092_v58 = vsel %vm16517_vm7, %v3032_v30, %v16515_v63  ;;  %v3690_v11 = vsel %vm471_vm2, %v12069_v36, %v8689_v31  ;;  %v16519_v34 = vld [vmem:[#allocation37_spill] sm:$0xff]  ;;  %vm16521_vm8 = vmmov %vm16520_vm0  ;;  %4123 = vmatmul.mubr.f32.gmra.mrb[50].mxu1 %v12185_v27  ;;  %v16523_v36 = vld [vmem:[#allocation64_spill] sm:$0xff] }
 0x517   : > { %v2715_v23 = vsel %vm993_vm15, %v16518_v5, %v12110_v18  ;;  %7653 = vmatprep.mubr.msk.f32.mxu0 %vm1016_vm12, %v16519_v34  ;;  %v3723_v20 = vsel %vm16520_vm0, %v3688_v15, %v8624_v46  ;;  %v3093_v4 = vsel %vm16521_vm8, %v3033_v44, %v11925_v19  ;;  %v16522_v22 = vunpack.i.h.bf16 %v12011_v14  ;;  %vm16524_vm10 = vmmov %vm16508_vm11  ;;  %4126 = vmatprep.mubr.f32.mxu1 %v12178_v56 }
 0x518   : > { %v3151_v30 = vsel %vm16524_vm10, %v3091_v33, %v16523_v36  ;;  %vm16525_vm4 = vmmov %vm16524_vm10  ;;  %v16526_v31 = vunpack.i.h.bf16 %v16457_v9  ;;  %v8685_v46 = vunpack.i.h.bf16 %v16509_v16  ;;  %v16528_v15 = vunpack.i.l.bf16 %v11914_v8 }
 0x519   : > { %v2788_v63 = vsel %vm471_vm2, %v2755_v41, %v16522_v22  ;;  %v3152_v18 = vsel %vm16525_vm4, %v3092_v58, %v16523_v36  ;;  %vm16527_vm9 = vmmov %vm16520_vm0  ;;  %v12447_v47 = vsel %vm387_vm1, %v2715_v23, %v12095_v21  ;;  %v12449_v9 = vpop.permute.xlu1 %8762  ;;  %v16532_v16 = vunpack.i.l.bf16 %v16418_v51  ;;  %v16542_v58 = vld [vmem:[#allocation49_spill] sm:$0xff] }
 0x51a   : > { %v2820_v10 = vsel %vm16527_vm9, %v2787_v2, %v16526_v31  ;;  %v2989_v44 = vsel %vm1016_vm12, %v2956_v24, %v16528_v15  ;;  %vm16529_vm11 = vmmov %vm16511_vm5  ;;  %16531 = vst [vmem:[#allocation10_spill] sm:$0xff] %v12447_v47  ;;  %v16539_v51 = vunpack.i.h.bf16 %v16446_v49  ;;  %4127 = vmatmul.mubr.f32.gmra.mrb[52].mxu1 %v12382_v43  ;;  %v16545_v23 = vunpack.i.l.bf16 %v16446_v49 }
 0x51b   : > { %v3838_v41 = vsel %vm16529_vm11, %v3780_v59, %v8640_v38  ;;  %vm16530_vm5 = vmmov %vm16520_vm0  ;;  %v16537_v38 = vunpack.i.h.bf16 %v16434_v17  ;;  %v16551_v36 = vunpack.i.l.bf16 %v11640_v62  ;;  %v16553_v17 = vld [vmem:[#allocation59_spill] sm:$0xff] }
 0x51c   : > { %v3725_v52 = vsel %vm16530_vm5, %v12244_v0, %v8684_v32  ;;  %4384 = vmatmul.mubr.f32.gmra.mrb[24].mxu0 %v3838_v41  ;;  %vm16533_vm13 = vmmov %vm16525_vm4  ;;  %v12459_v0 = vpop.permute.xlu0 %8757  ;;  %v16550_v22 = vmov %v16545_v23  ;;  %v16555_v41 = vmov %v16539_v51 }
 0x51d   : > { %v3781_v8 = vsel %vm16533_vm13, %v3723_v20, %v16532_v16  ;;  %vm16534_vm6 = vmmov %vm16525_vm4  ;;  %7654 = vmatprep.mubr.msk.f32.mxu0 %vm1016_vm12, %v16519_v34  ;;  %v16547_v34 = vmov %v16537_v38  ;;  %v12498_v15 = vpop.permute.xlu1 %8767  ;;  %v16557_v16 = vld [vmem:[#allocation40_spill] sm:$0xff] }
 0x51e   : > { %v3153_v2 = vsel %vm16534_vm6, %v3093_v4, %v11940_v29  ;;  %vm16535_vm7 = vmmov %vm16520_vm0  ;;  %16554 = vst [vmem:[#allocation17_spill] sm:$0xff] %v12498_v15 }
 0x51f   : > { %v3726_v56 = vsel %vm16535_vm7, %v3690_v11, %v8684_v32  ;;  %vm16536_vm0 = vmmov %vm16529_vm11  ;;  %v8694_v32 = vunpack.i.l.bf16 %v16542_v58  ;;  %v16543_v11 = vld [vmem:[#allocation50_spill] sm:$0xff] }
 0x520   : > { %v3211_v21 = vsel %vm16536_vm0, %v3151_v30, %v11860_v28  ;;  %vm16538_vm8 = vmmov %vm16536_vm0  ;;  %v2756_v30 = vsel %vm1016_vm12, %v12447_v47, %v16551_v36 }
 0x521   : > { %v3840_v24 = vsel %vm16538_vm8, %v3782_v45, %v16537_v38  ;;  %vm16540_vm10 = vmmov %vm16525_vm4  ;;  %v3034_v45 = vsel %vm471_vm2, %v2989_v44, %v11938_v1  ;;  %4131 = vmatprep.mubr.f32.mxu1 %v3211_v21  ;;  %v12509_v21 = vpop.permute.xlu0 %8772  ;;  %v16559_v38 = vunpack.i.h.bf16 %v16490_v40  ;;  %v12539_v40 = vunpack.i.l.bf16 %v12321_v57 }
 0x522   : > { %v2853_v59 = vsel %vm16540_vm10, %v2820_v10, %v16539_v51  ;;  %vm16541_vm4 = vmmov %vm16530_vm5  ;;  %v12496_v10 = vunpack.i.h.bf16 %v16553_v17  ;;  %v12517_v49 = vunpack.i.h.bf16 %v12509_v21  ;;  %4132 = vmatmul.mubr.f32.gmra.mrb[54].mxu1 %v12385_v42 }
 0x523   : > { %v2821_v33 = vsel %vm16541_vm4, %v2788_v63, %v8685_v46  ;;  %vm16544_vm9 = vmmov %vm16536_vm0  ;;  %v3784_v63 = vsel %vm16534_vm6, %v3726_v56, %v16550_v22  ;;  %v16558_v56 = vld [vmem:[#allocation42_spill] sm:$0xff] }
 0x524   : > { %v3212_v5 = vsel %vm16544_vm9, %v3152_v18, %v16543_v11  ;;  %vm16546_vm11 = vmmov %vm16534_vm6  ;;  %v16552_v18 = vld [vmem:[#allocation69_spill] sm:$0xff] }
 0x525   : > { %v3783_v28 = vsel %vm16546_vm11, %v3725_v52, %v16545_v23  ;;  %vm16548_vm5 = vmmov %vm16536_vm0  ;;  %v15970_v31 = vunpack.i.h.bf16 %v16552_v18  ;;  %v12493_v1 = vunpack.i.l.bf16 %v16552_v18  ;;  %4136 = vmatprep.mubr.f32.mxu1 %v3212_v5  ;;  %v8735_v5 = vunpack.i.h.bf16 %v12233_v39 }
 0x526   : > { %v3839_v20 = vsel %vm16548_vm5, %v3781_v8, %v16547_v34  ;;  %vm16549_vm13 = vmmov %vm16536_vm0  ;;  %v8659_v8 = vunpack.i.l.bf16 %v16557_v16  ;;  %v3841_v51 = vsel %vm16536_vm0, %v3783_v28, %v16559_v38  ;;  %v16564_v34 = vunpack.i.h.bf16 %v12011_v14  ;;  %v12541_v14 = vpop.permute.xlu1 %8777 }
 0x527   : > { %v3213_v4 = vsel %vm16549_vm13, %v3153_v2, %v16543_v11  ;;  %4388 = vmatmul.mubr.f32.gmra.mrb[26].mxu0 %v3839_v20  ;;  %vm16556_vm7 = vmmov %vm16534_vm6  ;;  %v12505_v2 = vunpack.i.h.bf16 %v16542_v58  ;;  %v16562_v58 = vmov %v16559_v38  ;;  %v8749_v28 = vunpack.i.l.bf16 %v12351_v37  ;;  %v16573_v38 = vld [vmem:[#allocation58_spill] sm:$0xff] }
 0x528   : > { %v2854_v52 = vsel %vm16556_vm7, %v2821_v33, %v16555_v41  ;;  %7655 = vmatprep.mubr.msk.f32.mxu0 %vm1016_vm12, %v16558_v56  ;;  %vm16560_vm8 = vmmov %vm16541_vm4  ;;  %v2789_v20 = vsel %vm471_vm2, %v2756_v30, %v16564_v34  ;;  %v12565_v41 = vunpack.i.h.bf16 %v12541_v14 }
 0x529   : > { %v3094_v11 = vsel %vm16560_vm8, %v3034_v45, %v11925_v19  ;;  %vm16561_vm10 = vmmov %vm16536_vm0  ;;  %v16565_v19 = vld [vmem:[#allocation25_spill] sm:$0xff] }
 0x52a   : > { %v12521_v33 = vsel %vm16561_vm10, %v2853_v59, %v8694_v32  ;;  %vm16563_vm4 = vmmov %vm16536_vm0  ;;  %v2716_v45 = vsel %vm993_vm15, %v16565_v19, %v12372_v54  ;;  %v3035_v59 = vsel %vm471_vm2, %v2989_v44, %v12230_v55  ;;  %v16569_v54 = vld [vmem:[#allocation36_spill] sm:$0xff]  ;;  %v15971_v55 = vunpack.i.l.bf16 %v12233_v39  ;;  %v12554_v44 = vpop.permute.xlu0 %8782  ;;  %v12577_v34 = vpop.permute.xlu1 %8787 }
 0x52b   : > { %v3842_v23 = vsel %vm16563_vm4, %v3784_v63, %v16562_v58  ;;  %vm16566_vm9 = vmmov %vm16536_vm0  ;;  %4392 = vmatmul.mubr.f32.gmra.mrb[28].mxu0 %v3840_v24  ;;  %v12562_v30 = vsel %vm387_vm1, %v2716_v45, %v12307_v3  ;;  %4137 = vmatmul.mubr.f32.gmra.mrb[56].mxu1 %v12521_v33 }
 0x52c   : > { %v12534_v22 = vsel %vm16566_vm9, %v2854_v52, %v8694_v32  ;;  %vm16567_vm11 = vmmov %vm16534_vm6  ;;  %v3044_v32 = vsel %vm471_vm2, %v16569_v54, %v12496_v10  ;;  %7656 = vmatprep.mubr.msk.f32.mxu0 %vm1016_vm12, %v16558_v56  ;;  %16572 = vst [vmem:[#allocation53_spill] sm:$0xff] %v12562_v30  ;;  %v8784_v52 = vunpack.i.l.bf16 %v12554_v44  ;;  %v2757_v56 = vsel %vm1016_vm12, %v12447_v47, %v8659_v8 }
 0x52d   : > { %v3154_v63 = vsel %vm16567_vm11, %v3094_v11, %v11940_v29  ;;  %vm16568_vm5 = vmmov %vm16560_vm8  ;;  %v2929_v11 = vsel %vm993_vm15, %v16573_v38, %v8749_v28  ;;  %4141 = vmatprep.mubr.f32.mxu1 %v3213_v4  ;;  %v16577_v4 = vld [vmem:[#allocation32_spill] sm:$0xff]  ;;  %v16660_v38 = vld [vmem:[#allocation15_spill] sm:$0xff] }
 0x52e   : > { %v3095_v36 = vsel %vm16568_vm5, %v3035_v59, %v12249_v6  ;;  %vm16570_vm13 = vmmov %vm16568_vm5  ;;  %v15972_v6 = vunpack.i.l.bf16 %v12272_v35  ;;  %v2962_v58 = vsel %vm387_vm1, %v2929_v11, %v8784_v52  ;;  %v16585_v59 = vld [vmem:[#allocation24_spill] sm:$0xff] }
 0x52f   : > { %v2822_v24 = vsel %vm16570_vm13, %v2789_v20, %v8685_v46  ;;  %vm16571_vm6 = vmmov %vm16568_vm5  ;;  %v8730_v46 = vunpack.i.h.bf16 %v12321_v57  ;;  %v3155_v3 = vsel %vm16556_vm7, %v3095_v36, %v12259_v50  ;;  %4396 = vmatmul.mubr.f32.gmra.mrb[30].mxu0 %v3841_v51  ;;  %v3214_v20 = vsel %vm16536_vm0, %v3154_v63, %v12125_v25  ;;  %v16575_v57 = vld [vmem:[#allocation9_spill] sm:$0xff]  ;;  %4142 = vmatmul.mubr.f32.gmra.mrb[58].mxu1 %v12534_v22 }
 0x530   : > { %v3104_v29 = vsel %vm16571_vm6, %v3044_v32, %v12517_v49  ;;  %vm16574_vm8 = vmmov %vm16556_vm7  ;;  %v2790_v50 = vsel %vm471_vm2, %v2757_v56, %v8735_v5  ;;  %v2758_v51 = vsel %vm1016_vm12, %v12562_v30, %v8659_v8  ;;  %v16578_v36 = vld [vmem:[#allocation29_spill] sm:$0xff]  ;;  %v8789_v63 = vunpack.i.l.bf16 %v12577_v34  ;;  %v2022_v32 = vpop.permute.xlu0 %2021  ;;  %4146 = vmatprep.mubr.f32.mxu1 %v3214_v20 }
 0x531   : > { %v2855_v19 = vsel %vm16574_vm8, %v2822_v24, %v15970_v31  ;;  %vm16576_vm10 = vmmov %vm16568_vm5  ;;  %7657 = vmatprep.mubr.msk.f32.mxu0 %vm1016_vm12, %v16578_v36  ;;  %v3691_v24 = vsel %vm471_vm2, %v12317_v13, %v15971_v55 }
 0x532   : > { %v3727_v45 = vsel %vm16576_vm10, %v16575_v57, %v12539_v40  ;;  %vm16579_vm4 = vmmov %vm16536_vm0  ;;  %v2995_v57 = vsel %vm1016_vm12, %v2962_v58, %v8789_v63  ;;  %v3728_v55 = vsel %vm16571_vm6, %v3691_v24, %v12539_v40  ;;  %v2791_v58 = vsel %vm471_vm2, %v2758_v51, %v8735_v5 }
 0x533   : > { %v12602_v56 = vsel %vm16579_vm4, %v2855_v19, %v15972_v6  ;;  %vm16581_vm9 = vmmov %vm16536_vm0  ;;  %v2924_v19 = vsel %vm993_vm15, %v16585_v59, %v8749_v28  ;;  %v12617_v6 = vunpack.i.h.bf16 %v12459_v0  ;;  %4400 = vmatmul.mubr.f32.gmra.mrb[32].mxu0 %v3842_v23  ;;  %v16590_v28 = vunpack.i.l.bf16 %v16577_v4 }
 0x534   : > { %16580 = vst [vmem:[#allocation11_spill] sm:$0xff] %v12602_v56  ;;  %v3215_v8 = vsel %vm16581_vm9, %v3155_v3, %v12125_v25  ;;  %vm16582_vm11 = vmmov %vm16556_vm7  ;;  %v16587_v25 = vld [vmem:[#allocation35_spill] sm:$0xff]  ;;  %v2073_v3 = vpop.permute.xlu1 %2072  ;;  %v2957_v20 = vsel %vm387_vm1, %v2924_v19, %v8784_v52  ;;  %v12628_v54 = vpop.permute.xlu0 %8792  ;;  %v3045_v23 = vsel %vm471_vm2, %v2995_v57, %v12496_v10  ;;  %v12638_v5 = vunpack.i.l.bf16 %v12404_v60  ;;  %4147 = vmatmul.mubr.f32.gmra.mrb[60].mxu1 %v12602_v56 }
 0x535   : > { %v3164_v11 = vsel %vm16582_vm11, %v3104_v29, %v12565_v41  ;;  %vm16583_vm5 = vmmov %vm16556_vm7  ;;  %16586 = vst [vmem:[#allocation44_spill] sm:$0xff] %v12617_v6  ;;  %v2717_v29 = vsel %vm993_vm15, %v16587_v25, %v2022_v32  ;;  %v12641_v52 = vsel %vm1016_vm12, %v2957_v20, %v8789_v63  ;;  %v16594_v32 = vunpack.i.h.bf16 %v16552_v18  ;;  %4151 = vmatprep.mubr.f32.mxu1 %v3215_v8 }
 0x536   : > { %v3785_v31 = vsel %vm16583_vm5, %v3727_v45, %v12493_v1  ;;  %vm16584_vm13 = vmmov %vm16571_vm6  ;;  %v16588_v45 = vld [vmem:[#allocation14_spill] sm:$0xff]  ;;  %16593 = vst [vmem:[#allocation55_spill] sm:$0xff] %v12638_v5  ;;  %v12657_v63 = vsel %vm471_vm2, %v2995_v57, %v12617_v6  ;;  %v16602_v57 = vunpack.i.l.bf16 %v12272_v35 }
 0x537   : > { %v2823_v13 = vsel %vm16584_vm13, %v2790_v50, %v8730_v46  ;;  %7658 = vmatprep.mubr.msk.f32.mxu0 %vm1016_vm12, %v16588_v45  ;;  %v12626_v50 = vsel %vm387_vm1, %v2717_v29, %v2073_v3  ;;  %vm16591_vm7 = vmmov %vm16536_vm0  ;;  %v3843_v51 = vsel %vm16536_vm0, %v3785_v31, %v12505_v2  ;;  %v15974_v3 = vunpack.i.h.bf16 %v16557_v16 }
 0x538   : > { %16589 = vst [vmem:[#allocation56_spill] sm:$0xff] %v12626_v50  ;;  %v12633_v59 = vsel %vm16591_vm7, %v3164_v11, %v16590_v28  ;;  %vm16595_vm8 = vmmov %vm16583_vm5  ;;  %v12650_v11 = vunpack.i.l.bf16 %v12509_v21  ;;  %v12661_v31 = vunpack.i.l.bf16 %v12541_v14  ;;  %4404 = vmatmul.mubr.f32.gmra.mrb[34].mxu0 %v3843_v51  ;;  %v12663_v18 = vpop.permute.xlu1 %8797  ;;  %v12671_v8 = vpop.permute.xlu0 %8807  ;;  %v16605_v14 = vld [vmem:[#allocation54_spill] sm:$0xff]  ;;  %v16608_v28 = vld [vmem:[#allocation52_spill] sm:$0xff] }
 0x539   : > { %16592 = vst [vmem:[#allocation6_spill] sm:$0xff] %v12633_v59  ;;  %v2856_v19 = vsel %vm16595_vm8, %v2823_v13, %v16594_v32  ;;  %vm16597_vm10 = vmmov %vm16571_vm6  ;;  %7659 = vmatprep.mubr.msk.f32.mxu0 %vm1016_vm12, %v12312_v12  ;;  %v16609_v32 = vld [vmem:[#allocation30_spill] sm:$0xff] }
 0x53a   : > { %16596 = vst [vmem:[#allocation45_spill] sm:$0xff] %v12650_v11  ;;  %v2824_v25 = vsel %vm16597_vm10, %v2791_v58, %v8730_v46  ;;  %vm16598_vm4 = vmmov %vm16571_vm6  ;;  %v3036_v58 = vsel %vm471_vm2, %v16605_v14, %v12496_v10  ;;  %v16614_v14 = vld [vmem:[#allocation67_spill] sm:$0xff] }
 0x53b   : > { %v3105_v29 = vsel %vm16598_vm4, %v3045_v23, %v12517_v49  ;;  %vm16599_vm9 = vmmov %vm16583_vm5  ;;  %16601 = vst [vmem:[#allocation68_spill] sm:$0xff] %v12671_v8  ;;  %v15973_v23 = vunpack.i.h.bf16 %v16608_v28  ;;  %v1909_v51 = vrot.slane %v16614_v14, 1 }
 0x53c   : > { %v3786_v21 = vsel %vm16599_vm9, %v3728_v55, %v12493_v1  ;;  %vm16600_vm11 = vmmov %vm16583_vm5  ;;  %v3037_v55 = vsel %vm471_vm2, %v12641_v52, %v12496_v10 }
 0x53d   : > { %v3165_v46 = vsel %vm16600_vm11, %v3105_v29, %v12565_v41  ;;  %vm16603_vm5 = vmmov %vm16536_vm0  ;;  %v3844_v10 = vsel %vm16536_vm0, %v3786_v21, %v12505_v2 }
 0x53e   : > { %v12676_v13 = vsel %vm16603_vm5, %v2856_v19, %v16602_v57  ;;  %vm16606_vm13 = vmmov %vm16536_vm0  ;;  %4408 = vmatmul.mubr.f32.gmra.mrb[36].mxu0 %v3844_v10  ;;  %v8818_v10 = vpop.permute.xlu0 %8817 }
 0x53f   : > { %16604 = vst [vmem:[#allocation63_spill] sm:$0xff] %v12676_v13  ;;  %v12686_v20 = vsel %vm16606_vm13, %v3165_v46, %v12638_v5  ;;  %4152 = vmatmul.mubr.f32.gmra.mrb[62].mxu1 %v12676_v13  ;;  %vm16610_vm6 = vmmov %vm16595_vm8  ;;  %7660 = vmatprep.mubr.msk.f32.mxu0 %vm1016_vm12, %v12312_v12  ;;  %vm16626_vm13 = vcmask 1045504  }
 0x540   : > { %16607 = vst [vmem:[#allocation19_spill] sm:$0xff] %v12686_v20  ;;  %v2857_v19 = vsel %vm16610_vm6, %v2824_v25, %v16609_v32  ;;  %vm16611_vm7 = vmmov %vm16598_vm4  ;;  %4156 = vmatprep.mubr.f32.mxu1 %v12355_v26  ;;  %v3626_v25 = vsel %vm387_vm1, %v12268_v7, %v15973_v23  ;;  %v12708_v26 = vpop.permute.xlu1 %8802  ;;  %v12718_v32 = vunpack.i.h.bf16 %v12272_v35  ;;  %v16617_v23 = vld [vmem:[#allocation31_spill] sm:$0xff]  ;;  %v16625_v7 = vrot.slane %v16614_v14, 2 }
 0x541   : > { %v3096_v29 = vsel %vm16611_vm7, %v3036_v58, %v12517_v49  ;;  %vm16612_vm8 = vmmov %vm16610_vm6 }
 0x542   : > { %v3156_v46 = vsel %vm16612_vm8, %v3096_v29, %v12565_v41  ;;  %vm16613_vm10 = vmmov %vm16598_vm4  ;;  %vm16631_vm8 = vcmask 1046528  }
 0x543   : > { %v3729_v57 = vsel %vm16613_vm10, %v3691_v24, %v12650_v11  ;;  %vm16615_vm4 = vmmov %vm16610_vm6  ;;  %v3659_v24 = vsel %vm1016_vm12, %v3626_v25, %v15974_v3  ;;  %v16623_v25 = vld [vmem:[#allocation66_spill] sm:$0xff] }
 0x544   : > { %v3787_v21 = vsel %vm16615_vm4, %v3729_v57, %v12661_v31  ;;  %vm16616_vm9 = vmmov %vm16611_vm7  ;;  %v16620_v57 = vunpack.i.l.bf16 %v16553_v17  ;;  %v16624_v3 = vrot.slane %v16623_v25, 2  ;;  %v8813_v59 = vpop.permute.xlu1 %8812 }
 0x545   : > { %v3097_v29 = vsel %vm16616_vm9, %v3037_v55, %v12517_v49  ;;  %vm16618_vm11 = vmmov %vm16536_vm0  ;;  %v16621_v55 = vunpack.i.l.bf16 %v16577_v4 }
 0x546   : > { %v12725_v58 = vsel %vm16618_vm11, %v2857_v19, %v16617_v23  ;;  %v3692_v49 = vsel %vm471_vm2, %v3659_v24, %v16620_v57  ;;  %vm16622_vm5 = vmmov %vm16536_vm0  ;;  %v12739_v20 = vsel %vm16626_vm13, %v16625_v7, %v16624_v3  ;;  %v16630_v23 = vrot.slane %v16623_v25, 1 }
 0x547   : > { %16619 = vst [vmem:[#allocation37_spill] sm:$0xff] %v12725_v58  ;;  %4157 = vmatmul.mubr.f32.gmra.mrb[64].mxu1 %v12725_v58  ;;  %v3216_v35 = vsel %vm16622_vm5, %v3156_v46, %v16621_v55  ;;  %vm16627_vm6 = vmmov %vm16536_vm0  ;;  %v8744_v3 = vunpack.i.l.bf16 %v12421_v53  ;;  %v16633_v7 = vunpack.i.h.bf16 %v12554_v44  ;;  %v16636_v25 = vunpack.i.h.bf16 %v12577_v34  ;;  %v12770_v58 = vpop.permute.xlu0 %8827 }
 0x548   : > { %4160 = vmatprep.mubr.f32.mxu1 %v3216_v35  ;;  %v3845_v19 = vsel %vm16627_vm6, %v3787_v21, %v12718_v32  ;;  %vm16628_vm7 = vmmov %vm16615_vm4  ;;  %v12750_v46 = vsel %vm16631_vm8, %v1909_v51, %v16630_v23  ;;  %v16634_v35 = vld [vmem:[#allocation43_spill] sm:$0xff]  ;;  %v12766_v51 = vunpack.i.h.bf16 %v8813_v59  ;;  %v12768_v55 = vunpack.i.l.bf16 %v8813_v59 }
 0x549   : > { %v3157_v24 = vsel %vm16628_vm7, %v3097_v29, %v12565_v41  ;;  %vm16629_vm0 = vmmov %vm16616_vm9  ;;  %16632 = vst [vmem:[#allocation64_spill] sm:$0xff] %v12750_v46  ;;  %v3627_v21 = vsel %vm387_vm1, %v16634_v35, %v16633_v7  ;;  %4413 = vmatmul.mubr.f32.gmra.mrb[38].mxu0 %v3845_v19  ;;  %v12772_v19 = vunpack.i.h.bf16 %v8818_v10  ;;  %v12774_v7 = vunpack.i.l.bf16 %v8818_v10  ;;  %v12795_v29 = vpop.permute.xlu1 %8822 }
 0x54a   : > { %v3730_v57 = vsel %vm16629_vm0, %v3692_v49, %v12650_v11  ;;  %vm16635_vm10 = vmmov %vm16615_vm4  ;;  %v3660_v23 = vsel %vm1016_vm12, %v3627_v21, %v16636_v25  ;;  %7661 = vmatprep.mubr.msk.f32.mxu0 %vm1016_vm12, %v12447_v47  ;;  %16637 = vst [vmem:[#allocation49_spill] sm:$0xff] %v12766_v51  ;;  %v3038_v35 = vsel %vm471_vm2, %v12641_v52, %v12617_v6  ;;  %v12783_v21 = vunpack.i.h.bf16 %v16577_v4  ;;  %v16643_v25 = vld [vmem:[#allocation26_spill] sm:$0xff] }
 0x54b   : > { %v3788_v41 = vsel %vm16635_vm10, %v3730_v57, %v12661_v31  ;;  %4161 = vmatmul.mubr.f32.gmra.mrb[66].mxu1 %v12185_v27  ;;  %vm16638_vm4 = vmmov %vm16622_vm5 }
 0x54c   : > { %v3217_v57 = vsel %vm16638_vm4, %v3157_v24, %v12638_v5  ;;  %16639 = vst [vmem:[#allocation50_spill] sm:$0xff] %v12783_v21  ;;  %vm16640_vm9 = vmmov %vm16638_vm4  ;;  %v12793_v24 = vsel %vm993_vm15, %v16643_v25, %v8744_v3  ;;  %v12809_v3 = vpop.permute.xlu0 %8832 }
 0x54d   : > { %4164 = vmatprep.mubr.f32.mxu1 %v3217_v57  ;;  %v3846_v59 = vsel %vm16640_vm9, %v3788_v41, %v12718_v32  ;;  %vm16641_vm11 = vmmov %vm16629_vm0  ;;  %v16646_v41 = vunpack.i.l.bf16 %v12459_v0  ;;  %16647 = vst [vmem:[#allocation69_spill] sm:$0xff] %v12809_v3 }
 0x54e   : > { %v3098_v10 = vsel %vm16641_vm11, %v3038_v35, %v12766_v51  ;;  %vm16642_vm5 = vmmov %vm16629_vm0  ;;  %4418 = vmatmul.mubr.f32.gmra.mrb[40].mxu0 %v3846_v59  ;;  %vm16678_vm11 = vcmask 1041408  }
 0x54f   : > { %v3731_v27 = vsel %vm16642_vm5, %v3692_v49, %v12768_v55  ;;  %vm16644_vm13 = vmmov %vm16628_vm7  ;;  %v12804_v57 = vsel %vm471_vm2, %v3660_v23, %v16646_v41  ;;  %7662 = vmatprep.mubr.msk.f32.mxu0 %vm1016_vm12, %v12447_v47  ;;  %v16651_v23 = vunpack.i.h.bf16 %v12351_v37  ;;  %4165 = vmatmul.mubr.f32.gmra.mrb[68].mxu1 %v12382_v43  ;;  %v16653_v41 = vld [vmem:[#allocation20_spill] sm:$0xff]  ;;  %v16655_v47 = vld [vmem:[#allocation51_spill] sm:$0xff] }
 0x550   : > { %v3158_v4 = vsel %vm16644_vm13, %v3098_v10, %v12772_v19  ;;  %vm16645_vm6 = vmmov %vm16628_vm7  ;;  %v2936_v49 = vsel %vm993_vm15, %v11882_v61, %v16653_v41  ;;  %v9142_v41 = vld [vmem:[%s15802_s6] ss:$0 sm:$0xff]  ;;  %v12898_v61 = vunpack.i.h.bf16 %v12404_v60 }
 0x551   : > { %v3789_v52 = vsel %vm16645_vm6, %v3731_v27, %v12774_v7  ;;  %vm16648_vm7 = vmmov %vm16638_vm4  ;;  %v16652_v27 = vld [vmem:[#allocation28_spill] sm:$0xff] }
 0x552   : > { %v3218_v35 = vsel %vm16648_vm7, %v3158_v4, %v12638_v5  ;;  %vm16649_vm0 = vmmov %vm16638_vm4  ;;  %v2925_v25 = vsel %vm993_vm15, %v16652_v27, %v16651_v23  ;;  %v16654_v4 = vunpack.i.l.bf16 %v12795_v29  ;;  %v16656_v23 = vunpack.i.h.bf16 %v16608_v28  ;;  %v16659_v27 = vld [vmem:[#allocation27_spill] sm:$0xff] }
 0x553   : > { %v3847_v59 = vsel %vm16649_vm0, %v3789_v52, %v12783_v21  ;;  %vm16650_vm8 = vmmov %vm16642_vm5  ;;  %v1454_v52 = vpop.f32.mrb[16].mxu0  ;;  %4169 = vmatprep.mubr.f32.mxu1 %v3218_v35  ;;  %v8745_v5 = vunpack.i.h.bf16 %v12421_v53 }
 0x554   : > { %v3732_v10 = vsel %vm16650_vm8, %v12804_v57, %v12768_v55  ;;  %v2958_v13 = vsel %vm387_vm1, %v2925_v25, %v16654_v4  ;;  %v3631_v43 = vsel %vm387_vm1, %v12793_v24, %v16656_v23  ;;  %v1455_v25 = vadd.f32 %v9142_v41, %v1454_v52  ;;  %4423 = vmatmul.mubr.f32.gmra.mrb[42].mxu0 %v3847_v59  ;;  %v1456_v35 = vpop.f32.mrb[17].mxu0  ;;  %v12841_v4 = vpop.permute.xlu1 %2023  ;;  %vm16658_vm10 = vmmov %vm16645_vm6  ;;  %v16661_v59 = vld [vmem:[#allocation21_spill] sm:$0xff] }
 0x555   : > { %16657 = vst [vmem:[#allocation59_spill] sm:$0xff] %v12841_v4  ;;  %v3790_v56 = vsel %vm16658_vm10, %v3732_v10, %v12774_v7  ;;  %7663 = vmatprep.mubr.msk.f32.mxu0 %vm1016_vm12, %v12562_v30  ;;  %v12848_v23 = vpop.permute.xlu0 %8842  ;;  %v2969_v41 = vsel %vm387_vm1, %v2936_v49, %v16661_v59  ;;  %v16662_v35 = vunpack.i.l.bf16 %v12770_v58  ;;  %4170 = vmatmul.mubr.f32.gmra.mrb[70].mxu1 %v12385_v42  ;;  %v16663_v4 = vld [vmem:[#allocation65_spill] sm:$0xff]  ;;  %v8799_v52 = vunpack.i.l.bf16 %v12663_v18  ;;  %vm16664_vm4 = vmmov %vm16649_vm0 }
 0x556   : > { %v12861_v53 = vmax.f32 %v1455_v25, 0.0  ;;  %v3848_v49 = vsel %vm16664_vm4, %v3790_v56, %v12783_v21  ;;  %v16665_v59 = vunpack.i.h.bf16 %v16557_v16  ;;  %vm16666_vm9 = vmmov %vm16642_vm5  ;;  %v16669_v56 = vld [vmem:[#allocation23_spill] sm:$0xff]  ;;  %vm16679_vm5 = vcmask 1042432  }
 0x557   : > { %v12859_v10 = vsel %vm1016_vm12, %v2958_v13, %v16662_v35  ;;  %v12877_v25 = vsel %vm16666_vm9, %v12657_v63, %v12766_v51  ;;  %v12889_v16 = vsel %vm1016_vm12, %v2969_v41, %v16669_v56  ;;  %vm16680_vm13 = vmmov %vm16650_vm8  ;;  %vm16681_vm6 = vcmask 1043456  }
 0x558   : > { %v3664_v13 = vsel %vm1016_vm12, %v3631_v43, %v16665_v59  ;;  %16667 = vst [vmem:[#allocation40_spill] sm:$0xff] %v12877_v25  ;;  %v12881_v42 = vcombine.high %v12861_v53, %v12861_v53  ;;  %v1551_v35 = vrot.slane %v12861_v53, 7  ;;  %v1583_v12 = vrot.slane %v12861_v53, 6  ;;  %4428 = vmatmul.mubr.f32.gmra.mrb[44].mxu0 %v3848_v49  ;;  %v12885_v3 = vpop.permute.xlu1 %2074  ;;  %16670 = vst [vmem:[#allocation25_spill] sm:$0xff] %v12889_v16  ;;  %v16672_v59 = vld [vmem:[#allocation57_spill] sm:$0xff]  ;;  %v16673_v25 = vld [vmem:[#allocation38_spill] sm:$0xff] }
 0x559   : > { %16668 = vst [vmem:[#allocation42_spill] sm:$0xff] %v12885_v3  ;;  %v16671_v43 = vunpack.i.h.bf16 %v12351_v37  ;;  %v12902_v21 = vsel %vm993_vm15, %v16673_v25, %v8745_v5  ;;  %7664 = vmatprep.mubr.msk.f32.mxu0 %vm1016_vm12, %v12562_v30  ;;  %v12906_v49 = vpop.permute.xlu0 %8852  ;;  %v3039_v37 = vsel %vm471_vm2, %v12859_v10, %v12617_v6  ;;  %v16677_v25 = vld [vmem:[#allocation18_spill] sm:$0xff]  ;;  %v8825_v6 = vunpack.i.h.bf16 %v12795_v29  ;;  %vm16683_vm7 = vmmov %vm16650_vm8 }
 0x55a   : > { %16674 = vst [vmem:[#allocation9_spill] sm:$0xff] %v12902_v21  ;;  %16675 = vst [vmem:[#allocation32_spill] sm:$0xff] %v12906_v49  ;;  %v1552_v56 = vrot.slane %v12881_v42, 7  ;;  %v1715_v60 = vsel %vm575_vm3, 0.0, %v1551_v35  ;;  %v3608_v16 = vsel %vm993_vm15, %v16677_v25, %v8799_v52  ;;  %v1584_v30 = vrot.slane %v12881_v42, 6 }
 0x55b   : > { %v12895_v63 = vsel %vm993_vm15, %v16672_v59, %v16671_v43  ;;  %v4016_v43 = vpop.f32.mrb[2].mxu1  ;;  %v16676_v59 = vunpack.i.l.bf16 %v16553_v17  ;;  %v1615_v49 = vrot.slane %v12861_v53, 5  ;;  %v1731_v3 = vsel %vm16678_vm11, %v1715_v60, %v1583_v12  ;;  %vm16687_vm8 = vmmov %vm16658_vm10 }
 0x55c   : > { %v4017_v41 = vpop.f32.mrb[3].mxu1  ;;  %v1716_v35 = vsel %vm575_vm3, 0.0, %v1552_v56  ;;  %v1747_v43 = vsel %vm16679_vm5, %v1731_v3, %v1583_v12  ;;  %v12927_v17 = vpop.permute.xlu1 %8837  ;;  %v16684_v56 = vunpack.i.h.bf16 %v12554_v44  ;;  %vm16685_vm0 = vcmask 1044480   ;;  %vm16689_vm10 = vmmov %vm16678_vm11 }
 0x55d   : > { %v12917_v5 = vsel %vm471_vm2, %v3664_v13, %v16676_v59  ;;  %v3099_v13 = vsel %vm16680_vm13, %v3039_v37, %v12766_v51  ;;  %v1648_v59 = vrot.slane %v12861_v53, 4  ;;  %v1763_v25 = vsel %vm16681_vm6, %v1747_v43, %v1615_v49  ;;  %v12934_v45 = vpop.permute.xlu0 %8857  ;;  %v16688_v43 = vld [vmem:[#allocation47_spill] sm:$0xff]  ;;  %vm16691_vm9 = vmmov %vm16687_vm8 }
 0x55e   : > { %16682 = vst [vmem:[#allocation24_spill] sm:$0xff] %v12934_v45  ;;  %v3738_v41 = vsel %vm16683_vm7, %v12917_v5, %v12650_v11  ;;  %v3632_v12 = vsel %vm387_vm1, %v12902_v21, %v16684_v56  ;;  %v1780_v3 = vsel %vm16685_vm0, %v1763_v25, %v1615_v49  ;;  %v12945_v37 = vunpack.i.l.bf16 %v12927_v17  ;;  %v16692_v11 = vld [vmem:[#allocation16_spill] sm:$0xff] }
 0x55f   : > { %v3796_v60 = vsel %vm16687_vm8, %v3738_v41, %v12661_v31  ;;  %v3629_v52 = vsel %vm387_vm1, %v3608_v16, %v16688_v43  ;;  %v1732_v51 = vsel %vm16689_vm10, %v1716_v35, %v1584_v30  ;;  %vm16690_vm4 = vcmask 1045504   ;;  %v4020_v43 = vpop.f32.mrb[4].mxu1  ;;  %vm16715_vm10 = vmmov %vm16691_vm9 }
 0x560   : > { %16686 = vst [vmem:[#allocation35_spill] sm:$0xff] %v12945_v37  ;;  %v1797_v45 = vsel %vm16690_vm4, %v1780_v3, %v1648_v59  ;;  %v3159_v44 = vsel %vm16691_vm9, %v3099_v13, %v12772_v19  ;;  %v3628_v56 = vsel %vm387_vm1, %v16692_v11, %v8825_v6  ;;  %vm16693_vm11 = vcmask 1046528   ;;  %v12961_v21 = vpop.permute.xlu1 %8847  ;;  %v16702_v43 = vld [vmem:[#allocation13_spill] sm:$0xff] }
 0x561   : > { %v12958_v49 = vsel %vm16693_vm11, %v1797_v45, %v1648_v59  ;;  %v8844_v25 = vunpack.i.l.bf16 %v12848_v23  ;;  %16695 = vst [vmem:[#allocation52_spill] sm:$0xff] %v12961_v21  ;;  %vm16696_vm5 = vcmask 916480   ;;  %v16697_v41 = vunpack.i.h.bf16 %v12577_v34  ;;  %v8868_v6 = vpop.permute.xlu0 %8867  ;;  %v16698_v45 = vld [vmem:[#allocation48_spill] sm:$0xff] }
 0x562   : > { %16694 = vst [vmem:[#allocation54_spill] sm:$0xff] %v12958_v49  ;;  %v3219_v16 = vsel %vm16696_vm5, %v3159_v44, %v12945_v37  ;;  %v8830_v13 = vunpack.i.h.bf16 %v12770_v58  ;;  %v8981_v59 = vpack.i.bf16 %v12958_v49, %v16698_v45  ;;  %v16699_v11 = vunpack.i.l.bf16 %v12449_v9  ;;  %vm16705_vm6 = vmmov %vm16696_vm5 }
 0x563   : > { %v3665_v3 = vsel %vm1016_vm12, %v3632_v12, %v16697_v41  ;;  %4174 = vmatprep.mubr.f32.mxu1 %v3219_v16  ;;  %v16701_v44 = vunpack.i.h.bf16 %v12498_v15  ;;  %v4021_v12 = vpop.f32.mrb[5].mxu1  ;;  %v8976_v16 = vpack.i.bf16 %v12958_v49, %v16702_v43  ;;  %vm16703_vm13 = vcmask 1042432   ;;  %vm16718_vm11 = vmmov %vm16696_vm5 }
 0x564   : > { %v12976_v21 = vsel %vm1016_vm12, %v16578_v36, %v16699_v11  ;;  %4175 = vmatmul.mubr.f32.gmra.mrb[72].mxu1 %v12521_v33  ;;  %v1748_v41 = vsel %vm16703_vm13, %v1732_v51, %v1584_v30  ;;  %v3661_v45 = vsel %vm1016_vm12, %v3628_v56, %v8830_v13  ;;  %v1616_v35 = vrot.slane %v12881_v42, 5  ;;  %8982 = vrot.lane.b32.xlu1 %v8981_v59, %s9165_s27  ;;  %v16704_v11 = vld [vmem:[#allocation7_spill] sm:$0xff]  ;;  %v16706_v12 = vld [vmem:[#allocation22_spill] sm:$0xff]  ;;  %v8863_v51 = vpop.permute.xlu1 %8862  ;;  %vm16719_vm5 = vmmov %vm16715_vm10 }
 0x565   : > { %16700 = vst [vmem:[#allocation66_spill] sm:$0xff] %v12976_v21  ;;  %v12982_v34 = vsel %vm387_vm1, %v12793_v24, %v16701_v44  ;;  %v3662_v21 = vsel %vm1016_vm12, %v3629_v52, %v16704_v11  ;;  %v12995_v24 = vsel %vm16705_vm6, %v3796_v60, %v12718_v32  ;;  %v12998_v33 = vunpack.i.h.bf16 %v12628_v54  ;;  %8977 = vrot.lane.b32.xlu0 %v8976_v16, %s9169_s12  ;;  %v13015_v59 = vpop.permute.xlu0 %8872  ;;  %v16709_v16 = vld [vmem:[#allocation33_spill] sm:$0xff] }
 0x566   : > { %v8794_v44 = vunpack.i.l.bf16 %v12628_v54  ;;  %v13003_v30 = vsel %vm993_vm15, %v16706_v12, %v8844_v25  ;;  %v16707_v56 = vunpack.i.l.bf16 %v12459_v0  ;;  %v13011_v13 = vunpack.i.h.bf16 %v8863_v51 }
 0x567   : > { %v13013_v60 = vunpack.i.l.bf16 %v8863_v51  ;;  %v8986_v54 = vpack.i.bf16 %v12958_v49, %v16614_v14  ;;  %vm16708_vm7 = vcmask 1043456   ;;  %v13020_v12 = vunpack.i.h.bf16 %v8868_v6 }
 0x568   : > { %v13009_v52 = vsel %vm471_vm2, %v3665_v3, %v16707_v56  ;;  %v1764_v25 = vsel %vm16708_vm7, %v1748_v41, %v1616_v35  ;;  %v3040_v0 = vsel %vm471_vm2, %v12859_v10, %v12998_v33  ;;  %v3694_v3 = vsel %vm471_vm2, %v3661_v45, %v8794_v44  ;;  %vm16725_vm7 = vmmov %vm16719_vm5 }
 0x569   : > { %v13028_v56 = vsel %vm471_vm2, %v3662_v21, %v16709_v16  ;;  %v16711_v51 = vunpack.i.l.bf16 %v16608_v28  ;;  %v13034_v14 = vunpack.i.l.bf16 %v8868_v6  ;;  %8987 = vrot.lane.b32.xlu1 %v8986_v54, %s16066_s29  ;;  %vm16712_vm0 = vcmask 654336   ;;  %v13047_v21 = vpop.permute.xlu1 %8882  ;;  %v16744_v16 = vld [vmem:[#allocation14_spill] sm:$0xff] }
 0x56a   : > { %16710 = vst [vmem:[#allocation43_spill] sm:$0xff] %v13028_v56  ;;  %v3100_v41 = vsel %vm16712_vm0, %v3040_v0, %v13011_v13  ;;  %vm16713_vm8 = vmmov %vm16712_vm0  ;;  %v8800_v45 = vunpack.i.h.bf16 %v12663_v18  ;;  %v16714_v28 = vpack.i.bf16 %v12739_v20, %v11663_v48  ;;  %vm16717_vm9 = vcmask 1044480  }
 0x56b   : > { %v3630_v11 = vsel %vm387_vm1, %v13003_v30, %v16711_v51  ;;  %v3733_v10 = vsel %vm16713_vm8, %v12804_v57, %v13013_v60  ;;  %v3160_v6 = vsel %vm16715_vm10, %v3100_v41, %v13020_v12  ;;  %vm16716_vm4 = vmmov %vm16712_vm0  ;;  %v1781_v54 = vsel %vm16717_vm9, %v1764_v25, %v1616_v35  ;;  %v13055_v57 = vpop.permute.xlu0 %8877 }
 0x56c   : > { %8997 = vrot.lane.b32.xlu0 %v16714_v28, %s16066_s29  ;;  %v3734_v44 = vsel %vm16716_vm4, %v3694_v3, %v13013_v60  ;;  %v1682_v0 = vrot.slane %v12861_v53, 3  ;;  %v3220_v18 = vsel %vm16718_vm11, %v3160_v6, %v12945_v37  ;;  %v3791_v51 = vsel %vm16719_vm5, %v3733_v10, %v13034_v14  ;;  %vm16720_vm13 = vmmov %vm16712_vm0 }
 0x56d   : > { %v3735_v28 = vsel %vm16720_vm13, %v13028_v56, %v12539_v40  ;;  %v16721_v41 = vunpack.i.l.bf16 %v12449_v9  ;;  %v16722_v53 = vunpack.i.h.bf16 %v12449_v9  ;;  %4179 = vmatprep.mubr.f32.mxu1 %v3220_v18  ;;  %v3849_v25 = vsel %vm16705_vm6, %v3791_v51, %v12898_v61  ;;  %vm16727_vm8 = vmmov %vm16716_vm4  ;;  %v16728_v51 = vld [vmem:[#allocation34_spill] sm:$0xff]  ;;  %v16755_v56 = vld [vmem:[#allocation4_spill] sm:$0xff] }
 0x56e   : > { %v16723_v10 = vunpack.i.h.bf16 %v11640_v62  ;;  %4433 = vmatmul.mubr.f32.gmra.mrb[46].mxu0 %v3849_v25  ;;  %vm16726_vm0 = vcmask 1045504   ;;  %v3739_v62 = vsel %vm16727_vm8, %v12917_v5, %v12768_v55  ;;  %v16729_v25 = vpack.i.bf16 %v16659_v27, %v12739_v20  ;;  %4180 = vmatmul.mubr.f32.gmra.mrb[74].mxu1 %v12534_v22  ;;  %vm16730_vm10 = vmmov %vm16719_vm5 }
 0x56f   : > { %v13068_v3 = vsel %vm1016_vm12, %v12626_v50, %v16721_v41  ;;  %v13074_v35 = vsel %vm1016_vm12, %v12626_v50, %v16722_v53  ;;  %v16724_v41 = vpack.i.bf16 %v12750_v46, %v16655_v47  ;;  %v3792_v53 = vsel %vm16725_vm7, %v3734_v44, %v13034_v14  ;;  %v13104_v44 = vpop.permute.xlu1 %2076  ;;  %7665 = vmatprep.mubr.msk.f32.mxu0 %vm1016_vm12, %v16578_v36  ;;  %v13119_v22 = vpop.permute.xlu0 %2025  ;;  %vm16733_vm4 = vmmov %vm16705_vm6 }
 0x570   : > { %v3663_v6 = vsel %vm1016_vm12, %v3630_v11, %v16723_v10  ;;  %v1798_v18 = vsel %vm16726_vm0, %v1781_v54, %v12881_v42  ;;  %v13095_v11 = vsel %vm993_vm15, %v16728_v51, %v8800_v45  ;;  %9007 = vrot.lane.b32.xlu0 %v16729_v25, %s9168_s30  ;;  %v3793_v5 = vsel %vm16730_vm10, %v3735_v28, %v12493_v1  ;;  %vm16737_vm11 = vmmov %vm16719_vm5 }
 0x571   : > { %8992 = vrot.lane.b32.xlu1 %v16724_v41, %s9161_s20  ;;  %v13110_v54 = vsel %vm993_vm15, %v16702_v43, %v8800_v45  ;;  %v16731_v41 = vunpack.i.l.bf16 %v12795_v29  ;;  %v1831_v10 = vsel %vm575_vm3, %v1682_v0, 0.0  ;;  %v16732_v25 = vunpack.i.l.bf16 %v12233_v39  ;;  %vm16739_vm5 = vmmov %vm16733_vm4 }
 0x572   : > { %v13126_v45 = vsel %vm16733_vm4, %v3792_v53, %v12898_v61  ;;  %vm16735_vm9 = vcmask 1046528   ;;  %v3797_v0 = vsel %vm16737_vm11, %v3739_v62, %v12774_v7  ;;  %v16738_v39 = vpack.i.bf16 %v16660_v38, %v12750_v46  ;;  %vm16740_vm13 = vmmov %vm16727_vm8 }
 0x573   : > { %v2963_v51 = vsel %vm387_vm1, %v12895_v63, %v16731_v41  ;;  %v3696_v28 = vsel %vm471_vm2, %v3663_v6, %v16732_v25  ;;  %16734 = vst [vmem:[#allocation26_spill] sm:$0xff] %v13126_v45  ;;  %v13130_v29 = vsel %vm16735_vm9, %v1798_v18, %v12881_v42  ;;  %v1963_v63 = vrot.slane %v12958_v49, 2  ;;  %4438 = vmatmul.mubr.f32.gmra.mrb[48].mxu0 %v13126_v45  ;;  %vm16745_vm6 = vmmov %vm16727_vm8 }
 0x574   : > { %16736 = vst [vmem:[#allocation28_spill] sm:$0xff] %v13130_v29  ;;  %v3851_v6 = vsel %vm16739_vm5, %v3793_v5, %v12505_v2  ;;  %v3740_v53 = vsel %vm16740_vm13, %v13009_v52, %v12768_v55  ;;  %v16741_v18 = vunpack.i.l.bf16 %v12770_v58  ;;  %v1964_v25 = vrot.slane %v1831_v10, 2  ;;  %7666 = vmatprep.mubr.msk.f32.mxu0 %vm1016_vm12, %v16744_v16  ;;  %v13159_v5 = vpop.permute.xlu1 %8902  ;;  %v16746_v58 = vld [vmem:[#allocation69_spill] sm:$0xff]  ;;  %vm16750_vm7 = vmmov %vm16733_vm4  ;;  %v16751_v16 = vld [vmem:[#allocation58_spill] sm:$0xff] }
 0x575   : > { %9002 = vrot.lane.b32.xlu1 %v16738_v39, %s9170_s13  ;;  %v8845_v41 = vunpack.i.h.bf16 %v12848_v23  ;;  %v16743_v39 = vpack.i.bf16 %v12750_v46, %v16663_v4  ;;  %v3736_v55 = vsel %vm16745_vm6, %v3696_v28, %v12539_v40  ;;  %v13167_v23 = vpop.permute.xlu0 %8887  ;;  %v9016_v50 = vpack.i.bf16 %v13130_v29, %v12958_v49  ;;  %vm16752_vm8 = vmmov %vm16730_vm10 }
 0x576   : > { %v13150_v62 = vsel %vm1016_vm12, %v2963_v51, %v16741_v18  ;;  %v16747_v51 = vld [vmem:[#allocation59_spill] sm:$0xff]  ;;  %v16748_v18 = vld [vmem:[#allocation41_spill] sm:$0xff]  ;;  %v9021_v36 = vpack.i.bf16 %v13130_v29, %v16751_v16  ;;  %v13178_v40 = vsel %vm16726_vm0, %v1963_v63, %v1964_v25  ;;  %v1912_v43 = vrot.slane %v12958_v49, 1  ;;  %vm16753_vm10 = vmmov %vm16752_vm8 }
 0x577   : > { %16742 = vst [vmem:[#allocation20_spill] sm:$0xff] %v13150_v62  ;;  %9012 = vrot.lane.b32.xlu0 %v16743_v39, %s16064_s16  ;;  %v2718_v48 = vsel %vm993_vm15, %v16748_v18, %v16747_v51  ;;  %v16749_v39 = vld [vmem:[#allocation50_spill] sm:$0xff]  ;;  %v1683_v37 = vrot.slane %v12881_v42, 3  ;;  %4442 = vmatmul.mubr.f32.gmra.mrb[50].mxu0 %v3851_v6  ;;  %v3794_v18 = vsel %vm16752_vm8, %v3736_v55, %v12493_v1  ;;  %v16754_v16 = vld [vmem:[#allocation44_spill] sm:$0xff]  ;;  %v1913_v25 = vrot.slane %v1831_v10, 1  ;;  %v16758_v6 = vld [vmem:[#allocation45_spill] sm:$0xff] }
 0x578   : > { %v13173_v45 = vsel %vm16750_vm7, %v3797_v0, %v16749_v39  ;;  %v13188_v0 = vsel %vm16753_vm10, %v3740_v53, %v12774_v7  ;;  %v3047_v63 = vsel %vm471_vm2, %v13150_v62, %v16754_v16  ;;  %v2927_v42 = vsel %vm993_vm15, %v16755_v56, %v8845_v41  ;;  %v16757_v1 = vld [vmem:[#allocation8_spill] sm:$0xff]  ;;  %v13204_v7 = vpop.permute.xlu1 %8912  ;;  %vm16759_vm4 = vmmov %vm16745_vm6  ;;  %v16760_v10 = vld [vmem:[#allocation42_spill] sm:$0xff] }
 0x579   : > { %9017 = vrot.lane.b32.xlu1 %v9016_v50, %s16064_s16  ;;  %v16756_v51 = vunpack.i.l.bf16 %v12498_v15  ;;  %7667 = vmatprep.mubr.msk.f32.mxu0 %vm1016_vm12, %v16757_v1  ;;  %v3737_v53 = vsel %vm16759_vm4, %v3696_v28, %v16758_v6  ;;  %v13210_v55 = vsel %vm387_vm1, %v2718_v48, %v16760_v10  ;;  %v16762_v41 = vld [vmem:[#allocation32_spill] sm:$0xff]  ;;  %v13213_v56 = vpop.permute.xlu0 %8892  ;;  %vm16763_vm9 = vmmov %vm16739_vm5  ;;  %vm16764_vm11 = vcmask 1046528  }
 0x57a   : > { %16761 = vst [vmem:[#allocation51_spill] sm:$0xff] %v13210_v55  ;;  %v3852_v62 = vsel %vm16763_vm9, %v3794_v18, %v12505_v2  ;;  %v13222_v28 = vsel %vm16764_vm11, %v1912_v43, %v1913_v25  ;;  %v1832_v48 = vsel %vm575_vm3, %v1683_v37, 0.0  ;;  %v16766_v6 = vld [vmem:[#allocation40_spill] sm:$0xff]  ;;  %vm16767_vm5 = vmmov %vm16752_vm8  ;;  %v16770_v2 = vld [vmem:[#allocation55_spill] sm:$0xff]  ;;  %v13238_v37 = vunpack.i.h.bf16 %v12927_v17 }
 0x57b   : > { %v13199_v50 = vsel %vm387_vm1, %v13003_v30, %v16756_v51  ;;  %9022 = vrot.lane.b32.xlu0 %v9021_v36, %s9165_s27  ;;  %v4024_v30 = vpop.f32.mrb[6].mxu1  ;;  %v9026_v36 = vpack.i.bf16 %v16663_v4, %v13130_v29  ;;  %v9036_v51 = vpack.i.bf16 %v13178_v40, %v16659_v27  ;;  %16765 = vst [vmem:[#allocation21_spill] sm:$0xff] %v13222_v28  ;;  %vm16769_vm13 = vmmov %vm16767_vm5  ;;  %v1915_v27 = vrot.slane %v13130_v29, 1  ;;  %v16776_v17 = vld [vmem:[#allocation49_spill] sm:$0xff] }
 0x57c   : > { %v4025_v15 = vpop.f32.mrb[7].mxu1  ;;  %v3166_v10 = vsel %vm16767_vm5, %v16766_v6, %v12772_v19  ;;  %v16768_v30 = vld [vmem:[#allocation24_spill] sm:$0xff]  ;;  %4446 = vmatmul.mubr.f32.gmra.mrb[52].mxu0 %v3852_v62  ;;  %vm16771_vm6 = vmmov %vm16750_vm7  ;;  %16773 = vst [vmem:[#allocation38_spill] sm:$0xff] %v13238_v37  ;;  %v16774_v18 = vunpack.i.h.bf16 %v12449_v9  ;;  %v16775_v62 = vunpack.i.l.bf16 %v12671_v8  ;;  %v9031_v6 = vpack.i.bf16 %v13222_v28, %v16660_v38 }
 0x57d   : > { %v16013_v16 = vunpack.i.h.bf16 %v16768_v30  ;;  %9027 = vrot.lane.b32.xlu1 %v9026_v36, %s9169_s12  ;;  %v3795_v15 = vsel %vm16769_vm13, %v3737_v53, %v12661_v31  ;;  %v13235_v43 = vsel %vm16771_vm6, %v3166_v10, %v16770_v2  ;;  %7668 = vmatprep.mubr.msk.f32.mxu0 %vm1016_vm12, %v16757_v1  ;;  %v13255_v53 = vpop.permute.xlu1 %8922  ;;  %vm16777_vm7 = vmmov %vm16759_vm4  ;;  %v13259_v36 = vpop.permute.xlu0 %8897  ;;  %v1916_v10 = vrot.slane %v1832_v48, 1  ;;  %v16782_v1 = vld [vmem:[#allocation52_spill] sm:$0xff] }
 0x57e   : > { %16772 = vst [vmem:[#allocation23_spill] sm:$0xff] %v13235_v43  ;;  %v13244_v25 = vsel %vm1016_vm12, %v13210_v55, %v16774_v18  ;;  %v13250_v31 = vsel %vm1016_vm12, %v13210_v55, %v16775_v62  ;;  %v3107_v9 = vsel %vm16777_vm7, %v3047_v63, %v16776_v17  ;;  %v1966_v2 = vrot.slane %v13130_v29, 2  ;;  %vm16778_vm0 = vmmov %vm16767_vm5 }
 0x57f   : > { %9037 = vrot.lane.b32.xlu0 %v9036_v51, %s16066_s29  ;;  %v13266_v18 = vsel %vm16778_vm0, %v3107_v9, %v12772_v19  ;;  %v8900_v51 = vunpack.i.h.bf16 %v13259_v36  ;;  %v9041_v62 = vpack.i.bf16 %v13222_v28, %v12750_v46  ;;  %vm16779_vm8 = vmmov %vm16771_vm6  ;;  %v13278_v17 = vsel %vm1016_vm12, %v12982_v34, %v16013_v16  ;;  %v16784_v16 = vld [vmem:[#allocation10_spill] sm:$0xff] }
 0x580   : > { %v3853_v63 = vsel %vm16779_vm8, %v3795_v15, %v12718_v32  ;;  %v8905_v55 = vunpack.i.h.bf16 %v13159_v5  ;;  %vm16780_vm10 = vmmov %vm16764_vm11  ;;  %v8850_v43 = vunpack.i.h.bf16 %v16782_v1  ;;  %v16783_v32 = vunpack.i.l.bf16 %v13259_v36 }
 0x581   : > { %9032 = vrot.lane.b32.xlu1 %v9031_v6, %s9161_s20  ;;  %4451 = vmatmul.mubr.f32.gmra.mrb[54].mxu0 %v3853_v63  ;;  %v13284_v9 = vsel %vm16780_vm10, %v1915_v27, %v1916_v10  ;;  %v2960_v34 = vsel %vm387_vm1, %v2927_v42, %v8900_v51  ;;  %v13295_v19 = vpop.permute.xlu1 %8927  ;;  %v1967_v6 = vrot.slane %v1832_v48, 2  ;;  %v13298_v27 = vunpack.i.l.bf16 %v16782_v1  ;;  %v13305_v42 = vpop.permute.xlu0 %8907  ;;  %vm16789_vm9 = vmmov %vm16777_vm7 }
 0x582   : > { %16781 = vst [vmem:[#allocation18_spill] sm:$0xff] %v13284_v9  ;;  %v2959_v15 = vsel %vm387_vm1, %v13095_v11, %v16783_v32  ;;  %7669 = vmatprep.mubr.msk.f32.mxu0 %vm1016_vm12, %v16784_v16  ;;  %v16786_v63 = vunpack.i.l.bf16 %v13159_v5  ;;  %v2993_v11 = vsel %vm1016_vm12, %v2960_v34, %v8905_v55  ;;  %v13308_v51 = vunpack.i.l.bf16 %v13305_v42  ;;  %vm16790_vm11 = vmmov %vm16778_vm0 }
 0x583   : > { %9042 = vrot.lane.b32.xlu0 %v9041_v62, %s9169_s12  ;;  %16785 = vst [vmem:[#allocation48_spill] sm:$0xff] %v13298_v27  ;;  %v9046_v62 = vpack.i.bf16 %v13284_v9, %v13222_v28  ;;  %vm16787_vm4 = vcmask 1045504   ;;  %v13318_v32 = vunpack.i.l.bf16 %v13204_v7  ;;  %v3043_v34 = vsel %vm471_vm2, %v2993_v11, %v13298_v27  ;;  %vm16791_vm5 = vmmov %vm16777_vm7 }
 0x584   : > { %v2992_v38 = vsel %vm1016_vm12, %v2959_v15, %v16786_v63  ;;  %v13315_v1 = vsel %vm16787_vm4, %v1966_v2, %v1967_v6  ;;  %v8874_v2 = vunpack.i.l.bf16 %v13015_v59  ;;  %v2719_v6 = vsel %vm993_vm15, %v16655_v47, %v13119_v22  ;;  %vm16792_vm13 = vmmov %vm16771_vm6 }
 0x585   : > { %v3041_v48 = vsel %vm471_vm2, %v2992_v38, %v12998_v33  ;;  %16788 = vst [vmem:[#allocation22_spill] sm:$0xff] %v13318_v32  ;;  %2031 = vrot.lane.b32.xlu1 %v12750_v46, %s9165_s27  ;;  %4456 = vmatmul.mubr.f32.gmra.mrb[56].mxu0 %v12995_v24  ;;  %v3042_v15 = vsel %vm471_vm2, %v2992_v38, %v13298_v27  ;;  %v13336_v24 = vpop.permute.xlu1 %2078  ;;  %vm16793_vm6 = vmmov %vm16778_vm0 }
 0x586   : > { %v3101_v55 = vsel %vm16789_vm9, %v3041_v48, %v13011_v13  ;;  %7670 = vmatprep.mubr.msk.f32.mxu0 %vm1016_vm12, %v16784_v16  ;;  %v3102_v38 = vsel %vm16791_vm5, %v3042_v15, %v13308_v51  ;;  %v13343_v48 = vpop.permute.xlu0 %8917  ;;  %v9056_v22 = vpack.i.bf16 %v13315_v1, %v13178_v40  ;;  %vm16795_vm7 = vmmov %vm16779_vm8 }
 0x587   : > { %9047 = vrot.lane.b32.xlu0 %v9046_v62, %s9170_s13  ;;  %v3161_v63 = vsel %vm16790_vm11, %v3101_v55, %v13020_v12  ;;  %v3162_v16 = vsel %vm16793_vm6, %v3102_v38, %v13318_v32  ;;  %v16794_v62 = vld [vmem:[#allocation66_spill] sm:$0xff]  ;;  %v9051_v55 = vpack.i.bf16 %v13178_v40, %v12739_v20  ;;  %vm16796_vm0 = vmmov %vm16791_vm5  ;;  %v13365_v38 = vsel %vm387_vm1, %v2719_v6, %v13104_v44 }
 0x588   : > { %v3221_v47 = vsel %vm16792_vm13, %v3161_v63, %v13238_v37  ;;  %v2792_v10 = vsel %vm471_vm2, %v16794_v62, %v8850_v43  ;;  %v3222_v15 = vsel %vm16795_vm7, %v3162_v16, %v13238_v37  ;;  %v3103_v11 = vsel %vm16796_vm0, %v3043_v34, %v13308_v51  ;;  %v16798_v16 = vld [vmem:[#allocation11_spill] sm:$0xff]  ;;  %vm16799_vm8 = vmmov %vm16796_vm0 }
 0x589   : > { %4184 = vmatprep.mubr.f32.mxu1 %v3221_v47  ;;  %v13361_v63 = vsel %vm471_vm2, %v13068_v3, %v8850_v43  ;;  %v16016_v62 = vunpack.i.l.bf16 %v13167_v23  ;;  %v16797_v47 = vunpack.i.h.bf16 %v12671_v8  ;;  %9057 = vrot.lane.b32.xlu1 %v9056_v22, %s9168_s30  ;;  %v16017_v34 = vunpack.i.l.bf16 %v16768_v30  ;;  %v13383_v43 = vpop.permute.xlu1 %8937  ;;  %vm16802_vm10 = vmmov %vm16793_vm6 }
 0x58a   : > { %4185 = vmatmul.mubr.f32.gmra.mrb[76].mxu1 %v16798_v16  ;;  %v2794_v3 = vsel %vm471_vm2, %v13074_v35, %v8874_v2  ;;  %v2795_v44 = vsel %vm471_vm2, %v13244_v25, %v8874_v2  ;;  %4461 = vmatmul.mubr.f32.gmra.mrb[58].mxu0 %v13173_v45  ;;  %v3741_v6 = vsel %vm16799_vm8, %v13009_v52, %v13013_v60  ;;  %v16800_v22 = vunpack.i.h.bf16 %v13015_v59  ;;  %v16801_v25 = vld [vmem:[#allocation53_spill] sm:$0xff]  ;;  %v13395_v2 = vpop.permute.xlu0 %2027  ;;  %vm16804_vm4 = vmmov %vm16796_vm0 }
 0x58b   : > { %v13372_v27 = vsel %vm1016_vm12, %v13199_v50, %v16797_v47  ;;  %9052 = vrot.lane.b32.xlu0 %v9051_v55, %s9161_s20  ;;  %v4028_v50 = vpop.f32.mrb[8].mxu1  ;;  %v8910_v35 = vunpack.i.h.bf16 %v13305_v42  ;;  %4189 = vmatprep.mubr.f32.mxu1 %v3222_v15  ;;  %v3163_v55 = vsel %vm16802_vm10, %v3103_v11, %v13318_v32  ;;  %v16803_v16 = vunpack.i.l.bf16 %v13055_v57  ;;  %v16805_v42 = vld [vmem:[#allocation12_spill] sm:$0xff]  ;;  %vm16806_vm9 = vmmov %vm16795_vm7 }
 0x58c   : > { %v2796_v47 = vsel %vm471_vm2, %v13250_v31, %v16800_v22  ;;  %7671 = vmatprep.mubr.msk.f32.mxu0 %vm1016_vm12, %v16801_v25  ;;  %v4029_v45 = vpop.f32.mrb[9].mxu1  ;;  %v2765_v31 = vsel %vm1016_vm12, %v13365_v38, %v16017_v34  ;;  %v9061_v15 = vpack.i.bf16 %v16805_v42, %v13284_v9  ;;  %v3856_v50 = vsel %vm16806_vm9, %v13188_v0, %v16749_v39  ;;  %vm16808_vm11 = vmmov %vm16793_vm6  ;;  %v16810_v0 = vld [vmem:[#allocation63_spill] sm:$0xff] }
 0x58d   : > { %v2827_v52 = vsel %vm16804_vm4, %v2794_v3, %v16803_v16  ;;  %v13416_v11 = vsel %vm471_vm2, %v13278_v17, %v16016_v62  ;;  %2082 = vrot.lane.b32.xlu1 %v12739_v20, %s9170_s13  ;;  %v16807_v3 = vld [vmem:[#allocation62_spill] sm:$0xff]  ;;  %v9066_v45 = vpack.i.bf16 %v16663_v4, %v12958_v49  ;;  %v3799_v16 = vsel %vm16808_vm11, %v3741_v6, %v13034_v14  ;;  %v16811_v17 = vld [vmem:[#allocation60_spill] sm:$0xff]  ;;  %vm16812_vm5 = vmmov %vm16795_vm7  ;;  %v13435_v34 = vpop.permute.xlu1 %8942  ;;  %v4032_v60 = vpop.f32.mrb[10].mxu1 }
 0x58e   : > { %v9071_v22 = vpack.i.bf16 %v16807_v3, %v13315_v1  ;;  %v13427_v39 = vunpack.i.l.bf16 %v16762_v41  ;;  %4190 = vmatmul.mubr.f32.gmra.mrb[78].mxu1 %v16810_v0  ;;  %v13433_v62 = vsel %vm16812_vm5, %v3163_v55, %v16811_v17  ;;  %16813 = vst [vmem:[#allocation14_spill] sm:$0xff] %v13435_v34  ;;  %v9076_v32 = vpack.i.bf16 %v16805_v42, %v13222_v28  ;;  %vm16815_vm13 = vmmov %vm16793_vm6  ;;  %v13447_v55 = vpop.permute.xlu0 %8932  ;;  %v4033_v0 = vpop.f32.mrb[11].mxu1 }
 0x58f   : > { %9062 = vrot.lane.b32.xlu0 %v9061_v15, %s9161_s20  ;;  %v16814_v37 = vunpack.i.l.bf16 %v12708_v26  ;;  %v8915_v6 = vunpack.i.h.bf16 %v13204_v7  ;;  %v13444_v15 = vunpack.i.l.bf16 %v13343_v48  ;;  %4466 = vmatmul.mubr.f32.gmra.mrb[60].mxu0 %v3856_v50  ;;  %vm16817_vm6 = vmmov %vm16796_vm0  ;;  %v16821_v0 = vld [vmem:[#allocation67_spill] sm:$0xff]  ;;  %v16824_v34 = vunpack.i.h.bf16 %v13055_v57 }
 0x590   : > { %16809 = vst [vmem:[#allocation34_spill] sm:$0xff] %v13427_v39  ;;  %4194 = vmatprep.mubr.f32.mxu1 %v13433_v62  ;;  %v2825_v60 = vsel %vm16817_vm6, %v2792_v10, %v8910_v35  ;;  %7672 = vmatprep.mubr.msk.f32.mxu0 %vm1016_vm12, %v16801_v25  ;;  %vm16818_vm7 = vmmov %vm16812_vm5  ;;  %v16819_v10 = vunpack.i.h.bf16 %v16746_v58 }
 0x591   : > { %v2860_v14 = vsel %vm16815_vm13, %v2827_v52, %v16814_v37  ;;  %16816 = vst [vmem:[#allocation69_spill] sm:$0xff] %v13444_v15  ;;  %v3857_v7 = vsel %vm16818_vm7, %v3799_v16, %v12898_v61  ;;  %9072 = vrot.lane.b32.xlu1 %v9071_v22, %s16066_s29  ;;  %vm16820_vm0 = vmmov %vm16812_vm5  ;;  %v16822_v37 = vunpack.i.l.bf16 %v13055_v57  ;;  %v13475_v16 = vunpack.i.h.bf16 %v13047_v21  ;;  %v13483_v17 = vpop.permute.xlu1 %8952  ;;  %v4036_v52 = vpop.f32.mrb[12].mxu1 }
 0x592   : > { %v13464_v50 = vsel %vm16820_vm0, %v2860_v14, %v16819_v10  ;;  %vm16823_vm8 = vmmov %vm16804_vm4  ;;  %v16826_v22 = vunpack.i.l.bf16 %v13259_v36  ;;  %v16827_v10 = vld [vmem:[#allocation37_spill] sm:$0xff]  ;;  %16828 = vst [vmem:[#allocation59_spill] sm:$0xff] %v13483_v17  ;;  %v16832_v36 = vld [vmem:[#allocation6_spill] sm:$0xff] }
 0x593   : > { %v2828_v25 = vsel %vm16823_vm8, %v2795_v44, %v16822_v37  ;;  %vm16825_vm10 = vmmov %vm16804_vm4  ;;  %9067 = vrot.lane.b32.xlu0 %v9066_v45, %s9168_s30  ;;  %4195 = vmatmul.mubr.f32.gmra.mrb[80].mxu1 %v16827_v10  ;;  %v16830_v37 = vunpack.i.h.bf16 %v12708_v26  ;;  %v4037_v45 = vpop.f32.mrb[13].mxu1  ;;  %v16834_v52 = vld [vmem:[#allocation43_spill] sm:$0xff]  ;;  %v13509_v10 = vunpack.i.h.bf16 %v13167_v23 }
 0x594   : > { %v2829_v61 = vsel %vm16825_vm10, %v2796_v47, %v16824_v34  ;;  %v2964_v14 = vsel %vm387_vm1, %v13110_v54, %v16826_v22  ;;  %vm16829_vm4 = vmmov %vm16808_vm11  ;;  %4471 = vmatmul.mubr.f32.gmra.mrb[62].mxu0 %v3857_v7  ;;  %4198 = vmatprep.mubr.f32.mxu1 %v16832_v36  ;;  %v13493_v54 = vpop.permute.xlu0 %8947  ;;  %v5714_v7 = vld [vmem:[%s15805_s9] sm:$0xff]  ;;  %v16840_v45 = vld [vmem:[#allocation29_spill] sm:$0xff]  ;;  %v16843_v47 = vunpack.i.l.bf16 %v13159_v5 }
 0x595   : > { %v2858_v44 = vsel %vm16829_vm4, %v2825_v60, %v8915_v6  ;;  %vm16831_vm9 = vmmov %vm16829_vm4  ;;  %v16836_v60 = vld [vmem:[#allocation35_spill] sm:$0xff]  ;;  %7673 = vmatprep.mubr.msk.f32.mxu0 %vm1016_vm12, %v16840_v45  ;;  %7853 = vmatpush3.msra.mxu0 %v5714_v7  ;;  %v13543_v5 = vpop.permute.xlu1 %8962  ;;  %v16852_v45 = vld [vmem:[#allocation26_spill] sm:$0xff] }
 0x596   : > { %v13489_v34 = vsel %vm16831_vm9, %v2829_v61, %v16830_v37  ;;  %vm16833_vm11 = vmmov %vm16817_vm6  ;;  %v16838_v37 = vunpack.i.h.bf16 %v13255_v53  ;;  %v13526_v17 = vsel %vm1016_vm12, %v2964_v14, %v16843_v47  ;;  %9077 = vrot.lane.b32.xlu1 %v9076_v32, %s16064_s16  ;;  %v16847_v32 = vunpack.i.l.bf16 %v12708_v26  ;;  %v16851_v7 = vld [vmem:[#allocation15_spill] sm:$0xff] }
 0x597   : > { %v2826_v22 = vsel %vm16833_vm11, %v13361_v63, %v8910_v35  ;;  %vm16835_vm5 = vmmov %vm16817_vm6  ;;  %v16839_v35 = vunpack.i.l.bf16 %v13255_v53  ;;  %2033 = vrot.lane.b32.xlu0 %v13222_v28, %s9165_s27  ;;  %v16850_v47 = vunpack.i.h.bf16 %v13015_v59 }
 0x598   : > { %v3742_v6 = vsel %vm16835_vm5, %v16834_v52, %v13444_v15  ;;  %vm16837_vm13 = vmmov %vm16820_vm0  ;;  %v2798_v63 = vsel %vm471_vm2, %v2765_v31, %v16838_v37  ;;  %v16844_v37 = vunpack.i.l.bf16 %v16746_v58  ;;  %v2720_v31 = vsel %vm993_vm15, %v16851_v7, %v13395_v2  ;;  %4476 = vmatmul.mubr.f32.gmra.mrb[64].mxu0 %v16852_v45 }
 0x599   : > { %v13503_v61 = vsel %vm16837_vm13, %v13266_v18, %v16836_v60  ;;  %v3699_v36 = vsel %vm471_vm2, %v13372_v27, %v16839_v35  ;;  %v16841_v18 = vunpack.i.h.bf16 %v12708_v26  ;;  %vm16842_vm6 = vmmov %vm16829_vm4  ;;  %v16846_v35 = vunpack.i.l.bf16 %v12671_v8  ;;  %v16853_v26 = vld [vmem:[#allocation19_spill] sm:$0xff] }
 0x59a   : > { %vm16845_vm7 = vmmov %vm16820_vm0  ;;  %v16860_v45 = vunpack.i.h.bf16 %v16762_v41  ;;  %2084 = vrot.lane.b32.xlu1 %v13178_v40, %s9170_s13 }
 0x59b   : > { %v2861_v52 = vsel %vm16842_vm6, %v2828_v25, %v16841_v18  ;;  %v13533_v27 = vsel %vm16845_vm7, %v2858_v44, %v16844_v37  ;;  %v2764_v25 = vsel %vm1016_vm12, %v13365_v38, %v16846_v35  ;;  %vm16848_vm0 = vmmov %vm16829_vm4  ;;  %v13554_v37 = vunpack.i.h.bf16 %v13295_v19 }
 0x59c   : > { %4199 = vmatmul.mubr.f32.gmra.mrb[82].mxu1 %v13533_v27  ;;  %v2859_v14 = vsel %vm16848_vm0, %v2826_v22, %v16847_v32  ;;  %vm16849_vm8 = vmmov %vm16848_vm0  ;;  %v2797_v18 = vsel %vm471_vm2, %v2764_v25, %v16850_v47  ;;  %v8958_v22 = vpop.permute.xlu0 %8957  ;;  %v8939_v25 = vunpack.i.l.bf16 %v13383_v43  ;;  %v16856_v32 = vld [vmem:[#allocation56_spill] sm:$0xff]  ;;  %v16858_v35 = vunpack.i.l.bf16 %v13047_v21 }
 0x59d   : > { %v3800_v44 = vsel %vm16849_vm8, %v3742_v6, %v13427_v39  ;;  %4202 = vmatprep.mubr.f32.mxu1 %v16853_v26  ;;  %v16854_v6 = vunpack.i.h.bf16 %v13055_v57  ;;  %vm16855_vm10 = vmmov %vm16835_vm5  ;;  %7674 = vmatprep.mubr.msk.f32.mxu0 %vm1016_vm12, %v16856_v32  ;;  %v13580_v57 = vunpack.i.l.bf16 %v8958_v22  ;;  %v4040_v32 = vpop.f32.mrb[14].mxu1 }
 0x59e   : > { %vm16857_vm4 = vmmov %vm16835_vm5  ;;  %v3049_v32 = vsel %vm471_vm2, %v13526_v17, %v12998_v33 }
 0x59f   : > { %v2830_v59 = vsel %vm16855_vm10, %v2797_v18, %v16854_v6  ;;  %v3743_v47 = vsel %vm16857_vm4, %v3699_v36, %v13444_v15  ;;  %vm16859_vm9 = vmmov %vm16845_vm7  ;;  %v16862_v18 = vunpack.i.h.bf16 %v16746_v58  ;;  %v16868_v58 = vpack.i.bf16 %v13130_v29, %v16663_v4 }
 0x5a0   : > { %v13573_v2 = vsel %vm16859_vm9, %v2861_v52, %v16858_v35  ;;  %vm16861_vm11 = vmmov %vm16848_vm0  ;;  %v16865_v52 = vunpack.i.h.bf16 %v13343_v48  ;;  %v13617_v4 = vpop.permute.xlu0 %8967  ;;  %v3801_v15 = vsel %vm16848_vm0, %v3743_v47, %v13427_v39  ;;  %v2937_v47 = vsel %vm993_vm15, %v12739_v20, %v8939_v25  ;;  %v16877_v39 = vld [vmem:[#allocation70_spill] sm:$0xff] }
 0x5a1   : > { %v13578_v7 = vsel %vm16861_vm11, %v2830_v59, %v16860_v45  ;;  %vm16863_vm5 = vmmov %vm16845_vm7  ;;  %v13596_v59 = vsel %vm387_vm1, %v2720_v31, %v13336_v24  ;;  %v8934_v45 = vunpack.i.l.bf16 %v13447_v55  ;;  %9087 = vrot.lane.b32.xlu0 %v16868_v58, %s16066_s29  ;;  %v8935_v31 = vunpack.i.h.bf16 %v13447_v55  ;;  %9082 = vrot.lane.b32.xlu1 %v16877_v39, %s9170_s13 }
 0x5a2   : > { %v13587_v26 = vsel %vm16863_vm5, %v2859_v14, %v16862_v18  ;;  %vm16864_vm13 = vmmov %vm16863_vm5  ;;  %16867 = vst [vmem:[#allocation41_spill] sm:$0xff] %v13596_v59  ;;  %v13604_v14 = vpop.permute.xlu1 %8972  ;;  %v13628_v55 = vunpack.i.l.bf16 %v13543_v5 }
 0x5a3   : > { %v3858_v6 = vsel %vm16864_vm13, %v3800_v44, %v13475_v16  ;;  %vm16866_vm6 = vmmov %vm16857_vm4  ;;  %4203 = vmatmul.mubr.f32.gmra.mrb[84].mxu1 %v13587_v26  ;;  %v16869_v44 = vld [vmem:[#allocation20_spill] sm:$0xff] }
 0x5a4   : > { %v2831_v35 = vsel %vm16866_vm6, %v2798_v63, %v16865_v52  ;;  %v3048_v18 = vsel %vm471_vm2, %v16869_v44, %v12998_v33  ;;  %v16870_v63 = vunpack.i.h.bf16 %v16762_v41  ;;  %vm16871_vm7 = vmmov %vm16848_vm0  ;;  %4480 = vmatmul.mubr.f32.gmra.mrb[66].mxu0 %v3858_v6  ;;  %v16872_v52 = vld [vmem:[#allocation23_spill] sm:$0xff]  ;;  %v16874_v41 = vld [vmem:[#allocation58_spill] sm:$0xff] }
 0x5a5   : > { %4207 = vmatprep.mubr.f32.mxu1 %v16872_v52  ;;  %vm16873_vm8 = vmmov %vm16857_vm4  ;;  %v16875_v6 = vld [vmem:[#allocation51_spill] sm:$0xff]  ;;  %v4041_v52 = vpop.f32.mrb[15].mxu1 }
 0x5a6   : > { %v13612_v24 = vsel %vm16871_vm7, %v2831_v35, %v16870_v63  ;;  %v3108_v44 = vsel %vm16873_vm8, %v3048_v18, %v13011_v13  ;;  %v13625_v35 = vsel %vm993_vm15, %v16874_v41, %v8939_v25  ;;  %7675 = vmatprep.mubr.msk.f32.mxu0 %vm1016_vm12, %v16875_v6  ;;  %v16876_v18 = vunpack.i.l.bf16 %v16768_v30  ;;  %vm16878_vm10 = vmmov %vm16857_vm4  ;;  %v16879_v63 = vld [vmem:[#allocation39_spill] sm:$0xff] }
 0x5a7   : > { %v3744_v52 = vsel %vm16878_vm10, %v3699_v36, %v13580_v57  ;;  %v13651_v33 = vsel %vm993_vm15, %v16879_v63, %v8934_v45  ;;  %v16881_v25 = vunpack.i.l.bf16 %v13617_v4  ;;  %vm16883_vm4 = vmmov %vm16863_vm5  ;;  %v16885_v36 = vld [vmem:[#allocation27_spill] sm:$0xff]  ;;  %v16887_v45 = vunpack.i.l.bf16 %v13604_v14  ;;  %4208 = vmatmul.mubr.f32.gmra.mrb[86].mxu1 %v13464_v50 }
 0x5a8   : > { %v13642_v41 = vsel %vm1016_vm12, %v13596_v59, %v16876_v18  ;;  %16880 = vst [vmem:[#allocation50_spill] sm:$0xff] %v13651_v33  ;;  %v16882_v18 = vpack.i.bf16 %v12750_v46, %v13130_v29  ;;  %v3859_v58 = vsel %vm16883_vm4, %v3801_v15, %v13475_v16  ;;  %vm16884_vm9 = vmmov %vm16848_vm0  ;;  %v13666_v59 = vsel %vm993_vm15, %v16885_v36, %v8935_v31  ;;  %v16892_v36 = vld [vmem:[#allocation17_spill] sm:$0xff] }
 0x5a9   : > { %v2970_v8 = vsel %vm387_vm1, %v2937_v47, %v16881_v25  ;;  %v3168_v39 = vsel %vm16884_vm9, %v3108_v44, %v13020_v12  ;;  %16886 = vst [vmem:[#allocation44_spill] sm:$0xff] %v13666_v59  ;;  %v9116_v47 = vpack.i.bf16 %v13284_v9, %v16805_v42  ;;  %vm16888_vm11 = vmmov %vm16866_vm6  ;;  %v8975_v15 = vunpack.i.h.bf16 %v13604_v14  ;;  %4484 = vmatmul.mubr.f32.gmra.mrb[68].mxu0 %v3859_v58  ;;  %v16891_v44 = vld [vmem:[#allocation48_spill] sm:$0xff] }
 0x5aa   : > { %9092 = vrot.lane.b32.xlu0 %v16882_v18, %s9168_s30  ;;  %v3003_v63 = vsel %vm1016_vm12, %v2970_v8, %v16887_v45  ;;  %v3109_v25 = vsel %vm16888_vm11, %v3049_v32, %v13011_v13  ;;  %4212 = vmatprep.mubr.f32.mxu1 %v13503_v61  ;;  %vm16889_vm5 = vmmov %vm16848_vm0  ;;  %v3050_v18 = vsel %vm471_vm2, %v13526_v17, %v16891_v44  ;;  %v16893_v45 = vunpack.i.h.bf16 %v16892_v36 }
 0x5ab   : > { %v3802_v31 = vsel %vm16889_vm5, %v3744_v52, %v13628_v55  ;;  %vm16890_vm13 = vmmov %vm16866_vm6  ;;  %v13690_v32 = vunpack.i.h.bf16 %v8958_v22  ;;  %v16894_v61 = vunpack.i.h.bf16 %v13617_v4  ;;  %7676 = vmatprep.mubr.msk.f32.mxu0 %vm1016_vm12, %v16875_v6  ;;  %v16895_v52 = vpack.i.bf16 %v12739_v20, %v16805_v42  ;;  %4213 = vmatmul.mubr.f32.gmra.mrb[88].mxu1 %v13573_v2 }
 0x5ac   : > { %v3745_v8 = vsel %vm16890_vm13, %v13416_v11, %v13580_v57  ;;  %v3639_v13 = vsel %vm387_vm1, %v13651_v33, %v16893_v45  ;;  %vm16896_vm6 = vmmov %vm16883_vm4  ;;  %v13705_v44 = vunpack.i.h.bf16 %v13543_v5  ;;  %v16897_v22 = vpack.i.bf16 %v13130_v29, %v16821_v0 }
 0x5ad   : > { %v3640_v58 = vsel %vm387_vm1, %v13666_v59, %v16894_v61  ;;  %9107 = vrot.lane.b32.xlu1 %v16895_v52, %s9165_s27  ;;  %v3228_v17 = vsel %vm16896_vm6, %v3168_v39, %v16836_v60  ;;  %v9101_v45 = vpack.i.bf16 %v12958_v49, %v13130_v29  ;;  %v16898_v61 = vunpack.i.l.bf16 %v13047_v21  ;;  %vm16899_vm7 = vmmov %vm16883_vm4 }
 0x5ae   : > { %9097 = vrot.lane.b32.xlu0 %v16897_v22, %s9161_s20  ;;  %v9121_v60 = vpack.i.bf16 %v12739_v20, %v13284_v9  ;;  %vm16900_vm0 = vmmov %vm16883_vm4  ;;  %v3673_v22 = vsel %vm1016_vm12, %v3640_v58, %v8975_v15  ;;  %4217 = vmatprep.mubr.f32.mxu1 %v3228_v17  ;;  %v16908_v58 = vld [vmem:[#allocation38_spill] sm:$0xff] }
 0x5af   : > { %v13717_v42 = vsel %vm16899_vm7, %v13489_v34, %v16898_v61  ;;  %v3860_v5 = vsel %vm16900_vm0, %v3802_v31, %v13554_v37  ;;  %vm16901_vm8 = vmmov %vm16889_vm5  ;;  %v13731_v34 = vunpack.i.h.bf16 %v13493_v54  ;;  %v16904_v31 = vunpack.i.h.bf16 %v16768_v30 }
 0x5b0   : > { %v3803_v39 = vsel %vm16901_vm8, %v3745_v8, %v13628_v55  ;;  %vm16902_vm10 = vmmov %vm16889_vm5  ;;  %4489 = vmatmul.mubr.f32.gmra.mrb[70].mxu0 %v3860_v5  ;;  %v16905_v8 = vld [vmem:[#allocation25_spill] sm:$0xff]  ;;  %v16910_v5 = vld [vmem:[#allocation22_spill] sm:$0xff]  ;;  %4218 = vmatmul.mubr.f32.gmra.mrb[90].mxu1 %v13717_v42 }
 0x5b1   : > { %v3169_v52 = vsel %vm16902_vm10, %v3109_v25, %v13020_v12  ;;  %vm16903_vm4 = vmmov %vm16888_vm11  ;;  %v3672_v61 = vsel %vm1016_vm12, %v3639_v13, %v16904_v31  ;;  %v3059_v12 = vsel %vm471_vm2, %v16905_v8, %v13509_v10  ;;  %v16031_v25 = vunpack.i.l.bf16 %v13493_v54  ;;  %7677 = vmatprep.mubr.msk.f32.mxu0 %vm1016_vm12, %v13365_v38  ;;  %9117 = vrot.lane.b32.xlu1 %v9116_v47, %s9169_s12 }
 0x5b2   : > { %v3110_v21 = vsel %vm16903_vm4, %v3050_v18, %v13308_v51  ;;  %v9111_v51 = vpack.i.bf16 %v13315_v1, %v16807_v3  ;;  %v16906_v18 = vunpack.i.l.bf16 %v13167_v23  ;;  %vm16907_vm9 = vmmov %vm16903_vm4  ;;  %9102 = vrot.lane.b32.xlu0 %v9101_v45, %s9170_s13  ;;  %v3060_v23 = vsel %vm471_vm2, %v3003_v63, %v13509_v10 }
 0x5b3   : > { %v3119_v13 = vsel %vm16907_vm9, %v3059_v12, %v13690_v32  ;;  %vm16909_vm11 = vmmov %vm16900_vm0  ;;  %v3170_v31 = vsel %vm16889_vm5, %v3110_v21, %v16910_v5  ;;  %v16913_v8 = vunpack.i.l.bf16 %v13213_v56  ;;  %v13777_v21 = vsel %vm471_vm2, %v3673_v22, %v16031_v25 }
 0x5b4   : > { %v13751_v30 = vsel %vm471_vm2, %v3672_v61, %v16906_v18  ;;  %v3229_v17 = vsel %vm16909_vm11, %v3169_v52, %v16908_v58  ;;  %vm16911_vm13 = vmmov %vm16889_vm5  ;;  %v16917_v12 = vunpack.i.l.bf16 %v13617_v4  ;;  %v16919_v22 = vunpack.i.h.bf16 %v13255_v53 }
 0x5b5   : > { %v3179_v47 = vsel %vm16911_vm13, %v3119_v13, %v13705_v44  ;;  %vm16912_vm6 = vmmov %vm16900_vm0  ;;  %4222 = vmatprep.mubr.f32.mxu1 %v3229_v17  ;;  %v13789_v13 = vsel %vm471_vm2, %v3003_v63, %v13731_v34  ;;  %9122 = vrot.lane.b32.xlu1 %v9121_v60, %s16064_s16  ;;  %v16920_v17 = vunpack.i.l.bf16 %v13295_v19  ;;  %v16922_v63 = vunpack.i.l.bf16 %v13604_v14 }
 0x5b6   : > { %v3861_v61 = vsel %vm16912_vm6, %v3803_v39, %v13554_v37  ;;  %vm16914_vm7 = vmmov %vm16900_vm0  ;;  %v2965_v18 = vsel %vm387_vm1, %v13625_v35, %v16917_v12  ;;  %v2799_v35 = vsel %vm471_vm2, %v13642_v41, %v16919_v22  ;;  %9112 = vrot.lane.b32.xlu0 %v9111_v51, %s9161_s20  ;;  %v16924_v41 = vunpack.i.h.bf16 %v13343_v48 }
 0x5b7   : > { %v13770_v45 = vsel %vm16914_vm7, %v3179_v47, %v16913_v8  ;;  %vm16916_vm0 = vmmov %vm16903_vm4  ;;  %4494 = vmatmul.mubr.f32.gmra.mrb[72].mxu0 %v3861_v61  ;;  %v13808_v47 = vsel %vm1016_vm12, %v2965_v18, %v16922_v63  ;;  %v9126_v8 = vpack.i.bf16 %v13284_v9, %v12750_v46  ;;  %v4044_v18 = vpop.f32.mrb[16].mxu1  ;;  %v9131_v63 = vpack.i.bf16 %v13315_v1, %v12739_v20 }
 0x5b8   : > { %16915 = vst [vmem:[#allocation8_spill] sm:$0xff] %v13770_v45  ;;  %v3120_v52 = vsel %vm16916_vm0, %v3060_v23, %v13690_v32  ;;  %vm16918_vm8 = vmmov %vm16889_vm5  ;;  %7678 = vmatprep.mubr.msk.f32.mxu0 %vm1016_vm12, %v13365_v38  ;;  %v16926_v23 = vld [vmem:[#allocation36_spill] sm:$0xff]  ;;  %v9136_v20 = vpack.i.bf16 %v13178_v40, %v13315_v1  ;;  %v3053_v14 = vsel %vm471_vm2, %v13808_v47, %v13731_v34 }
 0x5b9   : > { %v13785_v39 = vsel %vm16918_vm8, %v3120_v52, %v13705_v44  ;;  %vm16921_vm10 = vmmov %vm16912_vm6  ;;  %2086 = vrot.lane.b32.xlu1 %v13315_v1, %s9170_s13  ;;  %v16930_v52 = vld [vmem:[#allocation30_spill] sm:$0xff]  ;;  %v16944_v18 = vld [vmem:[#allocation4_spill] sm:$0xff] }
 0x5ba   : > { %v13803_v5 = vsel %vm16921_vm10, %v13578_v7, %v16920_v17  ;;  %vm16923_vm4 = vmmov %vm16912_vm6  ;;  %v3051_v7 = vsel %vm471_vm2, %v16926_v23, %v13509_v10  ;;  %2035 = vrot.lane.b32.xlu0 %v13284_v9, %s9165_s27 }
 0x5bb   : > { %4223 = vmatmul.mubr.f32.gmra.mrb[92].mxu1 %v13803_v5  ;;  %v3230_v60 = vsel %vm16923_vm4, %v3170_v31, %v16908_v58  ;;  %vm16925_vm9 = vmmov %vm16916_vm0  ;;  %v16928_v58 = vmov %v16920_v17  ;;  %v3052_v31 = vsel %vm471_vm2, %v13808_v47, %v13509_v10  ;;  %v16934_v10 = vld [vmem:[#allocation31_spill] sm:$0xff]  ;;  %v16953_v47 = vld [vmem:[#allocation57_spill] sm:$0xff] }
 0x5bc   : > { %4227 = vmatprep.mubr.f32.mxu1 %v3230_v60  ;;  %v2832_v51 = vsel %vm16925_vm9, %v2799_v35, %v16924_v41  ;;  %vm16927_vm11 = vmmov %vm16916_vm0  ;;  %v4045_v35 = vpop.f32.mrb[17].mxu1  ;;  %v16940_v60 = vld [vmem:[#allocation14_spill] sm:$0xff] }
 0x5bd   : > { %v3111_v61 = vsel %vm16927_vm11, %v3051_v7, %v13690_v32  ;;  %vm16929_vm5 = vmmov %vm16923_vm4  ;;  %9127 = vrot.lane.b32.xlu1 %v9126_v8, %s16066_s29  ;;  %v13860_v41 = vunpack.i.l.bf16 %v16940_v60 }
 0x5be   : > { %v13829_v48 = vsel %vm16929_vm5, %v13612_v24, %v16928_v58  ;;  %vm16931_vm13 = vmmov %vm16918_vm8  ;;  %3478 = vrot.lane.b32.xlu0 %v12958_v49, %s9161_s20 }
 0x5bf   : > { %4228 = vmatmul.mubr.f32.gmra.mrb[94].mxu1 %v13829_v48  ;;  %v2865_v12 = vsel %vm16931_vm13, %v2832_v51, %v16930_v52  ;;  %vm16932_vm6 = vmmov %vm16918_vm8  ;;  %v4048_v51 = vpop.f32.mrb[18].mxu1  ;;  %v8895_v52 = vunpack.i.h.bf16 %v13213_v56 }
 0x5c0   : > { %4232 = vmatprep.mubr.f32.mxu1 %v13433_v62  ;;  %v3171_v19 = vsel %vm16932_vm6, %v3111_v61, %v13705_v44  ;;  %vm16933_vm7 = vmmov %vm16916_vm0  ;;  %v16937_v62 = vunpack.i.l.bf16 %v13213_v56  ;;  %v4049_v23 = vpop.f32.mrb[19].mxu1 }
 0x5c1   : > { %v3112_v24 = vsel %vm16933_vm7, %v3052_v31, %v13690_v32  ;;  %vm16935_vm0 = vmmov %vm16923_vm4  ;;  %9132 = vrot.lane.b32.xlu1 %v9131_v63, %s9169_s12 }
 0x5c2   : > { %v13849_v22 = vsel %vm16935_vm0, %v2865_v12, %v16934_v10  ;;  %vm16938_vm8 = vmmov %vm16935_vm0  ;;  %3380 = vrot.lane.b32.xlu0 %v13284_v9, %s9168_s30  ;;  %v8940_v9 = vunpack.i.h.bf16 %v13383_v43 }
 0x5c3   : > { %16936 = vst [vmem:[#allocation45_spill] sm:$0xff] %v13849_v22  ;;  %4233 = vmatmul.mubr.f32.gmra.mrb[96].mxu1 %v13849_v22  ;;  %v3231_v17 = vsel %vm16938_vm8, %v3171_v19, %v16937_v62  ;;  %vm16939_vm10 = vmmov %vm16932_vm6  ;;  %v16943_v19 = vld [vmem:[#allocation5_spill] sm:$0xff] }
 0x5c4   : > { %4236 = vmatprep.mubr.f32.mxu1 %v3231_v17  ;;  %v3172_v32 = vsel %vm16939_vm10, %v3112_v24, %v13705_v44  ;;  %vm16941_vm4 = vmmov %vm16935_vm0  ;;  %v13871_v44 = vpop.f32.mrb[20].mxu1 }
 0x5c5   : > { %v3232_v7 = vsel %vm16941_vm4, %v3172_v32, %v13860_v41  ;;  %9137 = vrot.lane.b32.xlu1 %v9136_v20, %s16064_s16  ;;  %v4054_v61 = vpop.f32.mrb[21].mxu1  ;;  %vm16949_vm9 = vmmov %vm16933_vm7 }
 0x5c6   : > { %3529 = vrot.lane.b32.xlu0 %v13222_v28, %s16066_s29  ;;  %v13902_v61 = vpop.permute.xlu0 %2029  ;;  %vm16950_vm11 = vmmov %vm16933_vm7 }
 0x5c7   : > { %4237 = vmatmul.mubr.f32.gmra.mrb[98].mxu1 %v13533_v27  ;;  %v13878_v27 = vpop.f32.mrb[22].mxu1  ;;  %vm16951_vm5 = vmmov %vm16933_vm7 }
 0x5c8   : > { %4240 = vmatprep.mubr.f32.mxu1 %v3232_v7  ;;  %v4059_v58 = vpop.f32.mrb[23].mxu1  ;;  %v13900_v7 = vpop.permute.xlu1 %2080  ;;  %vm16952_vm13 = vmmov %vm16951_vm5 }
 0x5c9   : > { %3378 = vrot.lane.b32.xlu1 %v13222_v28, %s9168_s30  ;;  %v13884_v31 = vpop.f32.mrb[24].mxu1  ;;  %vm16954_vm7 = vmmov %vm16932_vm6 }
 0x5ca   : > { %3429 = vrot.lane.b32.xlu0 %v13178_v40, %s9169_s12  ;;  %v4064_v8 = vpop.f32.mrb[25].mxu1  ;;  %vm16955_vm0 = vmmov %vm16932_vm6 }
 0x5cb   : > { %4241 = vmatmul.mubr.f32.gmra.mrb[100].mxu1 %v13587_v26  ;;  %v16942_v26 = vld [vmem:[#allocation3_spill] sm:$0xff]  ;;  %v13890_v12 = vpop.f32.mrb[26].mxu1  ;;  %vm16957_vm8 = vmmov %vm16941_vm4 }
 0x5cc   : > { %v4069_v24 = vpop.f32.mrb[27].mxu1  ;;  %vm16958_vm10 = vmmov %vm16941_vm4 }
 0x5cd   : > { %3276 = vrot.lane.b32.xlu1 %v13178_v40, %s9165_s27  ;;  %v13896_v35 = vpop.f32.mrb[28].mxu1 }
 0x5ce   : > { %3278 = vrot.lane.b32.xlu0 %v13315_v1, %s9165_s27  ;;  %v4074_v62 = vpop.f32.mrb[29].mxu1 }
 0x5cf   : > { %v13898_v17 = vpop.f32.mrb[30].mxu1  ;;  %v16945_v62 = vunpack.i.h.bf16 %v13617_v4 }
 0x5d0   : > { %v4079_v63 = vpop.f32.mrb[31].mxu1 }
 0x5d1   : > { %3482 = vrot.lane.b32.xlu1 %v16942_v26, %s9161_s20  ;;  %v4082_v32 = vpop.f32.mrb[32].mxu1  ;;  %v16946_v63 = vld [vmem:[#allocation9_spill] sm:$0xff] }
 0x5d2   : > { %3533 = vrot.lane.b32.xlu0 %v16943_v19, %s16066_s29  ;;  %v4083_v51 = vpop.f32.mrb[33].mxu1  ;;  %v3635_v32 = vsel %vm387_vm1, %v16946_v63, %v16945_v62 }
 0x5d3   : > { %v4086_v23 = vpop.f32.mrb[34].mxu1  ;;  %v3668_v25 = vsel %vm1016_vm12, %v3635_v32, %v8975_v15  ;;  %v16948_v15 = vunpack.i.l.bf16 %v13493_v54  ;;  %v2933_v54 = vsel %vm993_vm15, %v16953_v47, %v8940_v9 }
 0x5d4   : > { %v4087_v20 = vpop.f32.mrb[35].mxu1 }
 0x5d5   : > { %3584 = vrot.lane.b32.xlu1 %v16944_v18, %s16064_s16  ;;  %v13904_v58 = vpop.f32.mrb[36].mxu1  ;;  %v13935_v32 = vsel %vm471_vm2, %v3668_v25, %v16948_v15 }
 0x5d6   : > { %v4092_v8 = vpop.f32.mrb[37].mxu1  ;;  %v13906_v26 = vpop.permute.xlu1 %8982 }
 0x5d7   : > { %v13908_v19 = vpop.permute.xlu0 %8977  ;;  %v13910_v24 = vpop.f32.mrb[38].mxu1 }
 0x5d8   : > { %v4097_v51 = vpop.f32.mrb[39].mxu1 }
 0x5d9   : > { %v13921_v8 = vpop.f32.mrb[40].mxu1 }
 0x5da   : > { %v4102_v28 = vpop.f32.mrb[41].mxu1 }
 0x5db   : > { %v13916_v23 = vpop.permute.xlu1 %8987  ;;  %v13937_v28 = vpop.f32.mrb[42].mxu1 }
 0x5dc   : > { %16947 = vst [vmem:[#allocation42_spill] sm:$0xff] %v13916_v23  ;;  %v4107_v29 = vpop.f32.mrb[43].mxu1 }
 0x5dd   : > { %v8984_v29 = vunpack.i.l.bf16 %v13906_v26 }
 0x5de   : > { %v8998_v20 = vpop.permute.xlu0 %8997 }
 0x5df   : > { %v13927_v63 = vunpack.i.h.bf16 %v8998_v20  ;;  %v8999_v51 = vunpack.i.l.bf16 %v8998_v20 }
 0x5e2   : > { %v9008_v62 = vpop.permute.xlu0 %9007 }
 0x5e3   : > { %v8993_v10 = vpop.permute.xlu1 %8992  ;;  %v9009_v22 = vunpack.i.l.bf16 %v9008_v62 }
 0x5e4   : > { %v13925_v4 = vunpack.i.h.bf16 %v8993_v10  ;;  %v8994_v59 = vunpack.i.l.bf16 %v8993_v10 }
 0x5e6   : > { %v3113_v56 = vsel %vm16949_vm9, %v3053_v14, %v13925_v4  ;;  %v3746_v43 = vsel %vm16950_vm11, %v13416_v11, %v8994_v59  ;;  %v3747_v10 = vsel %vm16951_vm5, %v13935_v32, %v8994_v59  ;;  %v3754_v20 = vsel %vm16952_vm13, %v13751_v30, %v8994_v59  ;;  %vm16959_vm9 = vmmov %vm16955_vm0 }
 0x5e7   : > { %v9003_v25 = vpop.permute.xlu1 %9002  ;;  %v3173_v15 = vsel %vm16932_vm6, %v3113_v56, %v13927_v63  ;;  %v3804_v33 = vsel %vm16954_vm7, %v3746_v43, %v8999_v51  ;;  %v3805_v14 = vsel %vm16955_vm0, %v3747_v10, %v8999_v51  ;;  %v2938_v11 = vsel %vm993_vm15, %v13178_v40, %v8940_v9  ;;  %v16960_v9 = vld [vmem:[#allocation41_spill] sm:$0xff]  ;;  %vm16962_vm11 = vmmov %vm16941_vm4 }
 0x5e8   : > { %v9004_v46 = vunpack.i.l.bf16 %v9003_v25  ;;  %v3233_v45 = vsel %vm16957_vm8, %v3173_v15, %v13860_v41  ;;  %v3862_v47 = vsel %vm16958_vm10, %v3804_v33, %v8895_v52  ;;  %v3863_v56 = vsel %vm16941_vm4, %v3805_v14, %v8895_v52  ;;  %vm16965_vm13 = vmmov %vm16955_vm0 }
 0x5e9   : > { %v13955_v49 = vpop.permute.xlu0 %9012  ;;  %4245 = vmatprep.mubr.f32.mxu1 %v3233_v45  ;;  %4499 = vmatmul.mubr.f32.gmra.mrb[74].mxu0 %v3862_v47  ;;  %v3812_v43 = vsel %vm16959_vm9, %v3754_v20, %v8999_v51  ;;  %v9005_v15 = vunpack.i.h.bf16 %v9003_v25  ;;  %vm16966_vm6 = vmmov %vm16951_vm5 }
 0x5ea   : > { %16956 = vst [vmem:[#allocation32_spill] sm:$0xff] %v13955_v49  ;;  %v2966_v10 = vsel %vm387_vm1, %v2933_v54, %v9004_v46  ;;  %v2971_v40 = vsel %vm387_vm1, %v2938_v11, %v9004_v46  ;;  %4246 = vmatmul.mubr.f32.gmra.mrb[102].mxu1 %v13464_v50  ;;  %7679 = vmatprep.mubr.msk.f32.mxu0 %vm1016_vm12, %v16960_v9  ;;  %v16964_v54 = vld [vmem:[#allocation46_spill] sm:$0xff]  ;;  %vm16969_vm7 = vmmov %vm16941_vm4 }
 0x5eb   : > { %v2999_v33 = vsel %vm1016_vm12, %v2966_v10, %v9009_v22  ;;  %v13970_v49 = vsel %vm1016_vm12, %v2971_v40, %v9009_v22  ;;  %v13972_v45 = vpop.permute.xlu1 %9017  ;;  %v13975_v14 = vsel %vm16962_vm11, %v3812_v43, %v8895_v52  ;;  %v3612_v25 = vsel %vm993_vm15, %v16964_v54, %v8984_v29  ;;  %v16968_v29 = vld [vmem:[#allocation16_spill] sm:$0xff]  ;;  %vm16970_vm8 = vmmov %vm16941_vm4 }
 0x5ec   : > { %16961 = vst [vmem:[#allocation40_spill] sm:$0xff] %v13970_v49  ;;  %16963 = vst [vmem:[#allocation24_spill] sm:$0xff] %v13975_v14  ;;  %v13978_v20 = vunpack.i.l.bf16 %v13972_v45  ;;  %v3054_v50 = vsel %vm471_vm2, %v2999_v33, %v13731_v34  ;;  %v3755_v43 = vsel %vm16966_vm6, %v13777_v21, %v8994_v59  ;;  %v13998_v10 = vsel %vm471_vm2, %v13970_v49, %v13731_v34  ;;  %v14007_v14 = vpop.f32.mrb[44].mxu1  ;;  %v16972_v34 = vld [vmem:[#allocation47_spill] sm:$0xff] }
 0x5ed   : > { %v13980_v46 = vpop.permute.xlu0 %9022  ;;  %4504 = vmatmul.mubr.f32.gmra.mrb[76].mxu0 %v3863_v56  ;;  %v3114_v22 = vsel %vm16951_vm5, %v3054_v50, %v13925_v4  ;;  %16967 = vst [vmem:[#allocation55_spill] sm:$0xff] %v13998_v10  ;;  %v3636_v56 = vsel %vm387_vm1, %v16968_v29, %v9005_v15  ;;  %v3813_v54 = vsel %vm16955_vm0, %v3755_v43, %v8999_v51  ;;  %v4112_v49 = vpop.f32.mrb[45].mxu1  ;;  %v14016_v15 = vunpack.i.h.bf16 %v13908_v19  ;;  %v16973_v51 = vld [vmem:[#allocation61_spill] sm:$0xff]  ;;  %vm16978_vm10 = vmmov %vm16951_vm5 }
 0x5ee   : > { %v9024_v11 = vunpack.i.l.bf16 %v13980_v46  ;;  %7680 = vmatprep.mubr.msk.f32.mxu0 %vm1016_vm12, %v16960_v9  ;;  %v3174_v47 = vsel %vm16965_vm13, %v3114_v22, %v13927_v63  ;;  %v9010_v9 = vunpack.i.h.bf16 %v9008_v62  ;;  %v14010_v59 = vsel %vm16970_vm8, %v3813_v54, %v8895_v52  ;;  %vm16979_vm4 = vmmov %vm16951_vm5 }
 0x5ef   : > { %v14002_v40 = vpop.permute.xlu1 %9027  ;;  %v3234_v50 = vsel %vm16969_vm7, %v3174_v47, %v13978_v20  ;;  %16971 = vst [vmem:[#allocation49_spill] sm:$0xff] %v14010_v59  ;;  %v3637_v23 = vsel %vm387_vm1, %v3612_v25, %v16972_v34  ;;  %v3652_v52 = vsel %vm387_vm1, %v16968_v29, %v16972_v34  ;;  %v8945_v43 = vunpack.i.h.bf16 %v16940_v60  ;;  %v16976_v29 = vld [vmem:[#allocation7_spill] sm:$0xff]  ;;  %vm16980_vm9 = vmmov %vm16979_vm4 }
 0x5f0   : > { %4250 = vmatprep.mubr.f32.mxu1 %v3234_v50  ;;  %v3669_v47 = vsel %vm1016_vm12, %v3636_v56, %v9010_v9  ;;  %v14021_v62 = vsel %vm993_vm15, %v16973_v51, %v9024_v11  ;;  %v16975_v50 = vld [vmem:[#allocation59_spill] sm:$0xff]  ;;  %v2721_v49 = vsel %vm993_vm15, %v16807_v3, %v13902_v61  ;;  %v3055_v51 = vsel %vm471_vm2, %v2999_v33, %v14016_v15  ;;  %vm16981_vm11 = vmmov %vm16979_vm4 }
 0x5f1   : > { %v9038_v22 = vpop.permute.xlu0 %9037  ;;  %4251 = vmatmul.mubr.f32.gmra.mrb[104].mxu1 %v13573_v2  ;;  %16974 = vst [vmem:[#allocation52_spill] sm:$0xff] %v14021_v62  ;;  %v8954_v25 = vunpack.i.l.bf16 %v16975_v50  ;;  %v8979_v2 = vunpack.i.l.bf16 %v13908_v19  ;;  %v3670_v60 = vsel %vm1016_vm12, %v3637_v23, %v16976_v29  ;;  %v16977_v34 = vunpack.i.l.bf16 %v16892_v36  ;;  %vm16982_vm5 = vmmov %vm16955_vm0 }
 0x5f2   : > { %v14044_v3 = vunpack.i.h.bf16 %v9038_v22  ;;  %v9039_v61 = vunpack.i.l.bf16 %v9038_v22  ;;  %vm16983_vm13 = vmmov %vm16955_vm0 }
 0x5f3   : > { %v9033_v54 = vpop.permute.xlu1 %9032  ;;  %v3638_v59 = vsel %vm387_vm1, %v14021_v62, %v16977_v34  ;;  %v3702_v19 = vsel %vm471_vm2, %v3669_v47, %v8979_v2  ;;  %v16984_v62 = vld [vmem:[#allocation33_spill] sm:$0xff]  ;;  %vm16986_vm6 = vmmov %vm16979_vm4  ;;  %v14080_v2 = vsel %vm1016_vm12, %v3652_v52, %v16976_v29 }
 0x5f4   : > { %v14032_v9 = vunpack.i.h.bf16 %v9033_v54  ;;  %v9034_v56 = vunpack.i.l.bf16 %v9033_v54  ;;  %v14061_v47 = vsel %vm471_vm2, %v3670_v60, %v16984_v62  ;;  %vm16987_vm0 = vmmov %vm16969_vm7  ;;  %16992 = vst [vmem:[#allocation66_spill] sm:$0xff] %v14080_v2  ;;  %v17004_v60 = vld [vmem:[#allocation34_spill] sm:$0xff] }
 0x5f5   : > { %v14034_v11 = vpop.permute.xlu0 %9042  ;;  %16985 = vst [vmem:[#allocation10_spill] sm:$0xff] %v14061_v47  ;;  %vm16990_vm8 = vmmov %vm16982_vm5 }
 0x5f6   : > { %v3115_v54 = vsel %vm16978_vm10, %v3055_v51, %v14032_v9  ;;  %v3748_v10 = vsel %vm16979_vm4, %v13935_v32, %v9034_v56  ;;  %v3749_v33 = vsel %vm16980_vm9, %v3702_v19, %v9034_v56  ;;  %v3756_v23 = vsel %vm16981_vm11, %v13777_v21, %v9034_v56  ;;  %v16988_v19 = vld [vmem:[#allocation68_spill] sm:$0xff]  ;;  %vm16991_vm10 = vmmov %vm16982_vm5 }
 0x5f7   : > { %v14054_v36 = vpop.permute.xlu1 %2031  ;;  %v3175_v34 = vsel %vm16982_vm5, %v3115_v54, %v14044_v3  ;;  %v3806_v22 = vsel %vm16983_vm13, %v3748_v10, %v9039_v61  ;;  %v3753_v32 = vsel %vm16986_vm6, %v13751_v30, %v13580_v57  ;;  %v16989_v54 = vunpack.i.h.bf16 %v16988_v19  ;;  %vm16996_vm9 = vmmov %vm16987_vm0  ;;  %v14111_v19 = vld [vmem:[%s15804_s8] ss:$0 sm:$0xff] }
 0x5f8   : > { %v3235_v21 = vsel %vm16969_vm7, %v3175_v34, %v13978_v20  ;;  %v3864_v56 = vsel %vm16987_vm0, %v3806_v22, %v8945_v43  ;;  %v3807_v62 = vsel %vm16990_vm8, %v3749_v33, %v9039_v61  ;;  %v3814_v30 = vsel %vm16991_vm10, %v3756_v23, %v9039_v61  ;;  %vm16998_vm11 = vmmov %vm16982_vm5 }
 0x5f9   : > { %v14067_v51 = vpop.permute.xlu0 %9047  ;;  %v3671_v10 = vsel %vm1016_vm12, %v3638_v59, %v16989_v54  ;;  %4255 = vmatprep.mubr.f32.mxu1 %v3235_v21  ;;  %4509 = vmatmul.mubr.f32.gmra.mrb[78].mxu0 %v3864_v56  ;;  %v14085_v22 = vsel %vm387_vm1, %v2721_v49, %v13900_v7  ;;  %v16994_v59 = vld [vmem:[#allocation29_spill] sm:$0xff]  ;;  %v14094_v61 = vsel %vm16996_vm9, %v3814_v30, %v8945_v43  ;;  %v9025_v23 = vunpack.i.h.bf16 %v13980_v46  ;;  %vm17001_vm5 = vmmov %vm16987_vm0 }
 0x5fa   : > { %16993 = vst [vmem:[#allocation11_spill] sm:$0xff] %v14085_v22  ;;  %4256 = vmatmul.mubr.f32.gmra.mrb[106].mxu1 %v13717_v42  ;;  %7681 = vmatprep.mubr.msk.f32.mxu0 %vm1016_vm12, %v16994_v59  ;;  %v16995_v21 = vld [vmem:[#allocation69_spill] sm:$0xff]  ;;  %v14098_v52 = vsel %vm1016_vm12, %v16994_v59, %v8954_v25  ;;  %v16997_v42 = vunpack.i.l.bf16 %v13255_v53  ;;  %v3811_v56 = vsel %vm16998_vm11, %v3753_v32, %v13628_v55  ;;  %v16999_v54 = vunpack.i.h.bf16 %v13906_v26  ;;  %vm17005_vm13 = vmmov %vm16990_vm8 }
 0x5fb   : > { %v3750_v33 = vsel %vm16979_vm4, %v14061_v47, %v16995_v21  ;;  %v14101_v7 = vpop.permute.xlu1 %9057  ;;  %v17000_v30 = vld [vmem:[#allocation13_spill] sm:$0xff]  ;;  %v9050_v46 = vunpack.i.h.bf16 %v14067_v51  ;;  %v14126_v32 = vsel %vm1016_vm12, %v14085_v22, %v8954_v25  ;;  %vm17009_vm6 = vmmov %vm16979_vm4 }
 0x5fc   : > { %v3704_v49 = vsel %vm471_vm2, %v3671_v10, %v16997_v42  ;;  %v2934_v34 = vsel %vm993_vm15, %v17000_v30, %v16999_v54  ;;  %v14122_v10 = vsel %vm17001_vm5, %v3807_v62, %v8945_v43  ;;  %v17003_v42 = vunpack.i.l.bf16 %v14067_v51  ;;  %v4373_v54 = vpop.f32.mrb[18].mxu0  ;;  %v14132_v30 = vpop.f32.mrb[46].mxu1  ;;  %vm17010_vm7 = vmmov %vm16987_vm0 }
 0x5fd   : > { %v14119_v53 = vpop.permute.xlu0 %9052  ;;  %17002 = vst [vmem:[#allocation53_spill] sm:$0xff] %v14122_v10  ;;  %v9060_v29 = vunpack.i.h.bf16 %v14101_v7  ;;  %4514 = vmatmul.mubr.f32.gmra.mrb[80].mxu0 %v14122_v10  ;;  %v3808_v47 = vsel %vm17005_vm13, %v3750_v33, %v17004_v60  ;;  %v17006_v62 = vunpack.i.h.bf16 %v16975_v50  ;;  %v17007_v25 = vunpack.i.l.bf16 %v14101_v7  ;;  %v4117_v59 = vpop.f32.mrb[47].mxu1  ;;  %v17008_v54 = vld [vmem:[#allocation56_spill] sm:$0xff]  ;;  %vm17011_vm8 = vmmov %vm16987_vm0 }
 0x5fe   : > { %v2967_v2 = vsel %vm387_vm1, %v2934_v34, %v17003_v42  ;;  %v4374_v42 = vpop.f32.mrb[19].mxu0  ;;  %7682 = vmatprep.mubr.msk.f32.mxu0 %vm1016_vm12, %v17008_v54  ;;  %v3751_v10 = vsel %vm17009_vm6, %v3704_v49, %v16995_v21  ;;  %v14152_v33 = vsel %vm17010_vm7, %v3811_v56, %v13554_v37  ;;  %v14167_v21 = vsel %vm16987_vm0, %v13785_v39, %v13860_v41  ;;  %vm17012_vm10 = vmmov %vm16979_vm4 }
 0x5ff   : > { %v14141_v43 = vsel %vm1016_vm12, %v14085_v22, %v17006_v62  ;;  %v3000_v34 = vsel %vm1016_vm12, %v2967_v2, %v17007_v25  ;;  %v14156_v62 = vadd.f32 %v14111_v19, %v13871_v44  ;;  %v2935_v22 = vsel %vm993_vm15, %v16944_v18, %v9025_v23  ;;  %v14160_v2 = vpop.permute.xlu1 %2082  ;;  %v4377_v39 = vpop.f32.mrb[20].mxu0  ;;  %vm17013_vm4 = vmmov %vm16998_vm11 }
 0x600   : > { %v3056_v59 = vsel %vm471_vm2, %v3000_v34, %v14016_v15  ;;  %v14170_v56 = vunpack.i.h.bf16 %v13972_v45  ;;  %v2968_v25 = vsel %vm387_vm1, %v2935_v22, %v9050_v46  ;;  %v3866_v18 = vsel %vm17011_vm8, %v3808_v47, %v13475_v16  ;;  %vm17014_vm9 = vmmov %vm17013_vm4  ;;  %v4120_v39 = vpop.f32.mrb[48].mxu1 }
 0x601   : > { %v14173_v44 = vpop.permute.xlu0 %9062  ;;  %v3116_v23 = vsel %vm17012_vm10, %v3056_v59, %v14032_v9  ;;  %v3001_v42 = vsel %vm1016_vm12, %v2968_v25, %v9060_v29  ;;  %4518 = vmatmul.mubr.f32.gmra.mrb[82].mxu0 %v3866_v18  ;;  %v3809_v22 = vsel %vm17014_vm9, %v3751_v10, %v17004_v60  ;;  %v14189_v46 = vadd.f32 %v14111_v19, %v13878_v27  ;;  %v4378_v59 = vpop.f32.mrb[21].mxu0  ;;  %vm17015_vm11 = vmmov %vm16987_vm0 }
 0x602   : > { %v14181_v54 = vunpack.i.l.bf16 %v14173_v44  ;;  %v3176_v45 = vsel %vm17013_vm4, %v3116_v23, %v14044_v3  ;;  %v14192_v47 = vunpack.i.l.bf16 %v14002_v40  ;;  %7683 = vmatprep.mubr.msk.f32.mxu0 %vm1016_vm12, %v16875_v6  ;;  %vm17016_vm5 = vmmov %vm17009_vm6  ;;  %v14202_v60 = vadd.f32 %v14111_v19, %v13884_v31 }
 0x603   : > { %v3236_v29 = vsel %vm17015_vm11, %v3176_v45, %v14170_v56  ;;  %v3752_v25 = vsel %vm17016_vm5, %v3704_v49, %v13580_v57  ;;  %v14206_v27 = vadd.f32 %v14111_v19, %v13890_v12  ;;  %v14210_v10 = vadd.f32 %v14111_v19, %v13896_v35  ;;  %v14216_v23 = vpop.permute.xlu1 %9072  ;;  %v4121_v49 = vpop.f32.mrb[49].mxu1  ;;  %vm17017_vm13 = vmmov %vm16987_vm0 }
 0x604   : > { %v14214_v18 = vadd.f32 %v14111_v19, %v13898_v17  ;;  %4260 = vmatprep.mubr.f32.mxu1 %v3236_v29  ;;  %v14219_v57 = vunpack.i.l.bf16 %v14216_v23  ;;  %v3867_v12 = vsel %vm17017_vm13, %v3809_v22, %v13475_v16  ;;  %v3057_v35 = vsel %vm471_vm2, %v3000_v34, %v14192_v47  ;;  %v4381_v45 = vpop.f32.mrb[22].mxu0  ;;  %vm17018_vm6 = vmmov %vm17016_vm5  ;;  %v4124_v49 = vpop.f32.mrb[50].mxu1 }
 0x605   : > { %v14221_v31 = vpop.permute.xlu0 %9067  ;;  %4261 = vmatmul.mubr.f32.gmra.mrb[108].mxu1 %v13803_v5  ;;  %v3058_v17 = vsel %vm471_vm2, %v3001_v42, %v14192_v47  ;;  %4522 = vmatmul.mubr.f32.gmra.mrb[84].mxu0 %v3867_v12  ;;  %v3117_v59 = vsel %vm17018_vm6, %v3057_v35, %v14181_v54  ;;  %vm17019_vm7 = vmmov %vm17013_vm4  ;;  %v14241_v34 = vadd.f32 %v14111_v19, %v13904_v58  ;;  %v9030_v42 = vunpack.i.h.bf16 %v14002_v40  ;;  %v4382_v22 = vpop.f32.mrb[23].mxu0  ;;  %v17036_v49 = vld [vmem:[#allocation55_spill] sm:$0xff] }
 0x606   : > { %v3810_v29 = vsel %vm17019_vm7, %v3752_v25, %v13628_v55  ;;  %vm17020_vm0 = vmmov %vm17016_vm5  ;;  %7684 = vmatprep.mubr.msk.f32.mxu0 %vm1016_vm12, %v16875_v6  ;;  %v17023_v39 = vunpack.i.h.bf16 %v13906_v26  ;;  %v14256_v58 = vadd.f32 %v14111_v19, %v13910_v24  ;;  %v14260_v40 = vadd.f32 %v14111_v19, %v13921_v8 }
 0x607   : > { %v3118_v5 = vsel %vm17020_vm0, %v3058_v17, %v14181_v54  ;;  %vm17021_vm8 = vmmov %vm17020_vm0  ;;  %v14268_v26 = vadd.f32 %v14111_v19, %v13937_v28  ;;  %v4125_v17 = vpop.f32.mrb[51].mxu1  ;;  %v14277_v45 = vadd.f32 %v14111_v19, %v14007_v14  ;;  %v9075_v28 = vunpack.i.h.bf16 %v14216_v23 }
 0x608   : > { %v3121_v16 = vsel %vm17021_vm8, %v13789_v13, %v13925_v4  ;;  %vm17022_vm10 = vmmov %vm17013_vm4  ;;  %v3178_v25 = vsel %vm17013_vm4, %v3118_v5, %v14219_v57  ;;  %v2939_v13 = vsel %vm993_vm15, %v13315_v1, %v17023_v39  ;;  %17024 = vst [vmem:[#allocation12_spill] sm:$0xff] %v14260_v40  ;;  %v14262_v6 = vpop.permute.xlu1 %9077  ;;  %v9065_v1 = vunpack.i.h.bf16 %v14173_v44  ;;  %v4385_v5 = vpop.f32.mrb[24].mxu0  ;;  %v17030_v44 = vld [vmem:[#allocation60_spill] sm:$0xff] }
 0x609   : > { %v3177_v55 = vsel %vm17022_vm10, %v3117_v59, %v14219_v57  ;;  %vm17025_vm9 = vmmov %vm17015_vm11  ;;  %17026 = vst [vmem:[#allocation62_spill] sm:$0xff] %v14268_v26  ;;  %v2034_v35 = vpop.permute.xlu0 %2033  ;;  %v9044_v59 = vunpack.i.l.bf16 %v14034_v11  ;;  %v2722_v14 = vsel %vm993_vm15, %v16821_v0, %v14054_v36  ;;  %v9054_v23 = vunpack.i.l.bf16 %v14119_v53  ;;  %v14305_v0 = vpop.f32.mrb[52].mxu1  ;;  %v17037_v17 = vld [vmem:[#allocation40_spill] sm:$0xff] }
 0x60a   : > { %v3237_v12 = vsel %vm17025_vm9, %v3177_v55, %v14170_v56  ;;  %vm17027_vm11 = vmmov %vm17025_vm9  ;;  %17029 = vst [vmem:[#allocation63_spill] sm:$0xff] %v14277_v45 }
 0x60b   : > { %4265 = vmatprep.mubr.f32.mxu1 %v3237_v12  ;;  %v3868_v24 = vsel %vm17027_vm11, %v3810_v29, %v13554_v37  ;;  %vm17028_vm5 = vmmov %vm17013_vm4  ;;  %v2800_v37 = vsel %vm471_vm2, %v14098_v52, %v9030_v42  ;;  %v2801_v29 = vsel %vm471_vm2, %v14126_v32, %v9030_v42  ;;  %v14302_v52 = vsel %vm387_vm1, %v2722_v14, %v14160_v2 }
 0x60c   : > { %v3181_v8 = vsel %vm17028_vm5, %v3121_v16, %v13927_v63  ;;  %4266 = vmatmul.mubr.f32.gmra.mrb[110].mxu1 %v13829_v48  ;;  %4527 = vmatmul.mubr.f32.gmra.mrb[86].mxu0 %v3868_v24  ;;  %vm17031_vm13 = vmmov %vm17025_vm9  ;;  %v4386_v16 = vpop.f32.mrb[25].mxu0  ;;  %v17032_v48 = vunpack.i.l.bf16 %v14067_v51  ;;  %v9069_v32 = vunpack.i.l.bf16 %v14221_v31  ;;  %v2085_v42 = vpop.permute.xlu1 %2084  ;;  %v3122_v12 = vsel %vm17020_vm0, %v17036_v49, %v13925_v4  ;;  %v17042_v4 = vld [vmem:[#allocation32_spill] sm:$0xff] }
 0x60d   : > { %v14284_v22 = vsel %vm17031_vm13, %v3178_v25, %v17030_v44  ;;  %7685 = vmatprep.mubr.msk.f32.mxu0 %vm1016_vm12, %v13365_v38  ;;  %vm17033_vm6 = vmmov %vm17025_vm9  ;;  %v17034_v25 = vunpack.i.l.bf16 %v14101_v7  ;;  %v3063_v24 = vsel %vm471_vm2, %v17037_v17, %v14016_v15  ;;  %v2802_v7 = vsel %vm471_vm2, %v14141_v43, %v9044_v59  ;;  %v4389_v5 = vpop.f32.mrb[26].mxu0  ;;  %v17039_v44 = vld [vmem:[#allocation45_spill] sm:$0xff] }
 0x60e   : > { %4270 = vmatprep.mubr.f32.mxu1 %v14284_v22  ;;  %v2972_v55 = vsel %vm387_vm1, %v2939_v13, %v17032_v48  ;;  %v14309_v36 = vsel %vm17033_vm6, %v3181_v8, %v13860_v41  ;;  %v4130_v13 = vpop.f32.mrb[53].mxu1  ;;  %vm17035_vm7 = vmmov %vm17020_vm0  ;;  %v17038_v41 = vld [vmem:[#allocation42_spill] sm:$0xff]  ;;  %v9014_v16 = vunpack.i.l.bf16 %v17042_v4  ;;  %v4390_v48 = vpop.f32.mrb[27].mxu0 }
 0x60f   : > { %v14314_v39 = vsel %vm1016_vm12, %v2972_v55, %v17034_v25  ;;  %v2833_v2 = vsel %vm17035_vm7, %v2800_v37, %v9065_v1  ;;  %v8989_v8 = vunpack.i.l.bf16 %v17038_v41  ;;  %vm17040_vm8 = vmmov %vm17013_vm4  ;;  %v17043_v55 = vld [vmem:[#allocation8_spill] sm:$0xff]  ;;  %v2771_v13 = vsel %vm1016_vm12, %v14302_v52, %v9069_v32 }
 0x610   : > { %4271 = vmatmul.mubr.f32.gmra.mrb[112].mxu1 %v17039_v44  ;;  %4532 = vmatmul.mubr.f32.gmra.mrb[88].mxu0 %v14152_v33  ;;  %v2866_v37 = vsel %vm17040_vm8, %v2833_v2, %v9075_v28  ;;  %vm17041_vm10 = vmmov %vm17020_vm0  ;;  %v17046_v33 = vunpack.i.h.bf16 %v16975_v50  ;;  %v17047_v2 = vld [vmem:[#allocation54_spill] sm:$0xff]  ;;  %v3064_v50 = vsel %vm471_vm2, %v14314_v39, %v14016_v15  ;;  %v8990_v48 = vunpack.i.h.bf16 %v17038_v41 }
 0x611   : > { %v3123_v14 = vsel %vm17041_vm10, %v3063_v24, %v14032_v9  ;;  %4274 = vmatprep.mubr.f32.mxu1 %v17043_v55  ;;  %7686 = vmatprep.mubr.msk.f32.mxu0 %vm1016_vm12, %v13365_v38  ;;  %vm17044_vm4 = vmmov %vm17020_vm0  ;;  %v2723_v49 = vsel %vm993_vm15, %v17047_v2, %v2034_v35  ;;  %v14351_v38 = vpop.f32.mrb[54].mxu1  ;;  %v9015_v55 = vunpack.i.h.bf16 %v17042_v4 }
 0x612   : > { %v2834_v43 = vsel %vm17044_vm4, %v2801_v29, %v9065_v1  ;;  %vm17045_vm9 = vmmov %vm17020_vm0  ;;  %v2770_v28 = vsel %vm1016_vm12, %v14302_v52, %v17046_v33  ;;  %17048 = vst [vmem:[#allocation67_spill] sm:$0xff] %v14351_v38  ;;  %v9045_v29 = vunpack.i.h.bf16 %v14034_v11  ;;  %v14360_v24 = vsel %vm387_vm1, %v2723_v49, %v2085_v42  ;;  %v4135_v5 = vpop.f32.mrb[55].mxu1 }
 0x613   : > { %v14316_v51 = vpop.permute.xlu0 %9087  ;;  %v2835_v25 = vsel %vm17045_vm9, %v2802_v7, %v9054_v23  ;;  %v14349_v17 = vpop.permute.xlu1 %9082  ;;  %vm17049_vm11 = vmmov %vm17028_vm5  ;;  %v2803_v42 = vsel %vm471_vm2, %v2770_v28, %v9044_v59  ;;  %v14384_v59 = vadd.f32 %v14111_v19, %v14132_v30  ;;  %v9079_v28 = vunpack.i.l.bf16 %v14262_v6 }
 0x614   : > { %v3182_v1 = vsel %vm17049_vm11, %v3122_v12, %v13927_v63  ;;  %vm17050_vm5 = vmmov %vm17033_vm6  ;;  %v4393_v63 = vpop.f32.mrb[28].mxu0  ;;  %v17052_v12 = vld [vmem:[#allocation24_spill] sm:$0xff] }
 0x615   : > { %v2899_v35 = vsel %vm17050_vm5, %v2866_v37, %v9014_v16  ;;  %vm17051_vm13 = vmmov %vm17040_vm8  ;;  %4537 = vmatmul.mubr.f32.gmra.mrb[90].mxu0 %v17052_v12  ;;  %v4394_v33 = vpop.f32.mrb[29].mxu0  ;;  %v17055_v37 = vld [vmem:[#allocation41_spill] sm:$0xff]  ;;  %17058 = vst [vmem:[#allocation37_spill] sm:$0xff] %v14384_v59 }
 0x616   : > { %v3183_v44 = vsel %vm17051_vm13, %v3123_v14, %v14044_v3  ;;  %4275 = vmatmul.mubr.f32.gmra.mrb[114].mxu1 %v2899_v35  ;;  %vm17053_vm6 = vmmov %vm17040_vm8  ;;  %7687 = vmatprep.mubr.msk.f32.mxu0 %vm1016_vm12, %v17055_v37  ;;  %v2804_v14 = vsel %vm471_vm2, %v2771_v13, %v9045_v29  ;;  %v3065_v35 = vsel %vm471_vm2, %v14314_v39, %v14192_v47 }
 0x617   : > { %v2867_v15 = vsel %vm17053_vm6, %v2834_v43, %v8989_v8  ;;  %vm17054_vm7 = vmmov %vm17053_vm6  ;;  %4278 = vmatprep.mubr.f32.mxu1 %v14167_v21  ;;  %v14386_v43 = vpop.f32.mrb[56].mxu1 }
 0x618   : > { %v2868_v11 = vsel %vm17054_vm7, %v2835_v25, %v8989_v8  ;;  %vm17056_vm0 = vmmov %vm17050_vm5  ;;  %v9055_v8 = vunpack.i.h.bf16 %v14119_v53  ;;  %17059 = vst [vmem:[#allocation6_spill] sm:$0xff] %v14386_v43  ;;  %v2772_v25 = vsel %vm1016_vm12, %v14360_v24, %v9069_v32 }
 0x619   : > { %v3242_v41 = vsel %vm17056_vm0, %v3182_v1, %v13978_v20  ;;  %vm17057_vm8 = vmmov %vm17044_vm4  ;;  %v9084_v1 = vunpack.i.l.bf16 %v14349_v17  ;;  %v2805_v12 = vsel %vm471_vm2, %v2772_v25, %v9045_v29 }
 0x61a   : > { %v3124_v16 = vsel %vm17057_vm8, %v3064_v50, %v14032_v9  ;;  %vm17060_vm10 = vmmov %vm17056_vm0  ;;  %v4140_v9 = vpop.f32.mrb[57].mxu1  ;;  %v17064_v50 = vld [vmem:[#allocation49_spill] sm:$0xff] }
 0x61b   : > { %v14390_v21 = vsel %vm17060_vm10, %v3183_v44, %v13978_v20  ;;  %vm17061_vm4 = vmmov %vm17056_vm0  ;;  %v4397_v20 = vpop.f32.mrb[30].mxu0  ;;  %4542 = vmatmul.mubr.f32.gmra.mrb[92].mxu0 %v17064_v50  ;;  %v9070_v44 = vunpack.i.h.bf16 %v14221_v31  ;;  %v14421_v47 = vpop.f32.mrb[58].mxu1 }
 0x61c   : > { %v14362_v7 = vpop.permute.xlu0 %9092  ;;  %v2900_v2 = vsel %vm17061_vm4, %v2867_v15, %v9015_v55  ;;  %vm17062_vm9 = vmmov %vm17056_vm0  ;;  %7688 = vmatprep.mubr.msk.f32.mxu0 %vm1016_vm12, %v17055_v37  ;;  %v14416_v15 = vunpack.i.h.bf16 %v14262_v6  ;;  %17067 = vst [vmem:[#allocation43_spill] sm:$0xff] %v14421_v47  ;;  %v17075_v20 = vld [vmem:[#allocation65_spill] sm:$0xff] }
 0x61d   : > { %v2901_v30 = vsel %vm17062_vm9, %v2868_v11, %v9015_v55  ;;  %vm17063_vm11 = vmmov %vm17057_vm8  ;;  %4279 = vmatmul.mubr.f32.gmra.mrb[116].mxu1 %v2900_v2  ;;  %v4145_v55 = vpop.f32.mrb[59].mxu1  ;;  %v16055_v9 = vunpack.i.l.bf16 %v14362_v7  ;;  %v17074_v2 = vld [vmem:[#allocation64_spill] sm:$0xff] }
 0x61e   : > { %v2836_v49 = vsel %vm17063_vm11, %v2803_v42, %v9054_v23  ;;  %vm17065_vm5 = vmmov %vm17057_vm8  ;;  %v4398_v23 = vpop.f32.mrb[31].mxu0  ;;  %4282 = vmatprep.mubr.f32.mxu1 %v14309_v36  ;;  %vm5348_vm11 = vcmask 1042434  }
 0x61f   : > { %v9108_v4 = vpop.permute.xlu1 %9107  ;;  %v2837_v32 = vsel %vm17065_vm5, %v2804_v14, %v9055_v8  ;;  %vm17066_vm13 = vmmov %vm17053_vm6  ;;  %v2869_v39 = vsel %vm17053_vm6, %v2836_v49, %v8990_v48  ;;  %v16056_v14 = vunpack.i.h.bf16 %v14316_v51  ;;  %v4401_v25 = vpop.f32.mrb[32].mxu0  ;;  %4547 = vmatmul.mubr.f32.gmra.mrb[94].mxu0 %v14094_v61  ;;  %v14452_v61 = vadd.f32 %v14111_v19, %v14305_v0 }
 0x620   : > { %v14395_v13 = vpop.permute.xlu0 %9097  ;;  %v3184_v5 = vsel %vm17066_vm13, %v3124_v16, %v14044_v3  ;;  %v9110_v53 = vunpack.i.h.bf16 %v9108_v4  ;;  %v9109_v63 = vunpack.i.l.bf16 %v9108_v4  ;;  %v16054_v3 = vunpack.i.h.bf16 %v14349_v17  ;;  %vm17068_vm7 = vmmov %vm17065_vm5  ;;  %v17072_v16 = vld [vmem:[#allocation52_spill] sm:$0xff] }
 0x621   : > { %v3125_v42 = vsel %vm17068_vm7, %v3065_v35, %v14181_v54  ;;  %v2902_v33 = vsel %vm17056_vm0, %v2869_v39, %v9079_v28  ;;  %vm17069_vm8 = vmmov %vm17053_vm6  ;;  %v3641_v4 = vsel %vm387_vm1, %v17072_v16, %v9084_v1  ;;  %v16053_v54 = vunpack.i.h.bf16 %v14362_v7  ;;  %4283 = vmatmul.mubr.f32.gmra.mrb[118].mxu1 %v2901_v30  ;;  %17077 = vst [vmem:[#allocation35_spill] sm:$0xff] %v14452_v61 }
 0x622   : > { %v2870_v29 = vsel %vm17069_vm8, %v2837_v32, %v8990_v48  ;;  %vm17070_vm10 = vmmov %vm17056_vm0  ;;  %v3617_v49 = vsel %vm993_vm15, %v17074_v2, %v9110_v53  ;;  %v4402_v32 = vpop.f32.mrb[33].mxu0  ;;  %4286 = vmatprep.mubr.f32.mxu1 %v3242_v41  ;;  %v14460_v53 = vpop.f32.mrb[60].mxu1  ;;  %v14468_v23 = vunpack.i.l.bf16 %v14316_v51  ;;  %v3674_v0 = vsel %vm1016_vm12, %v3641_v4, %v9070_v44  ;;  %v17084_v4 = vld [vmem:[#allocation53_spill] sm:$0xff] }
 0x623   : > { %v14419_v11 = vpop.permute.xlu1 %9117  ;;  %v14432_v6 = vsel %vm17070_vm10, %v3184_v5, %v14170_v56  ;;  %vm17071_vm4 = vmmov %vm17053_vm6  ;;  %v17076_v5 = vld [vmem:[#allocation29_spill] sm:$0xff]  ;;  %17079 = vst [vmem:[#allocation15_spill] sm:$0xff] %v14460_v53  ;;  %v4150_v39 = vpop.f32.mrb[61].mxu1  ;;  %v3646_v55 = vsel %vm387_vm1, %v3617_v49, %v9084_v1  ;;  %v2773_v25 = vsel %vm1016_vm12, %v14360_v24, %v16055_v9  ;;  %v14497_v1 = vunpack.i.l.bf16 %v14395_v13 }
 0x624   : > { %v14426_v36 = vpop.permute.xlu0 %9102  ;;  %v3185_v37 = vsel %vm17071_vm4, %v3125_v42, %v14219_v57  ;;  %vm17073_vm9 = vmmov %vm17065_vm5  ;;  %v3616_v57 = vsel %vm993_vm15, %v17075_v20, %v9109_v63  ;;  %v9119_v50 = vunpack.i.l.bf16 %v14419_v11  ;;  %7689 = vmatprep.mubr.msk.f32.mxu0 %vm1016_vm12, %v17076_v5  ;;  %v9120_v19 = vunpack.i.h.bf16 %v14419_v11  ;;  %v17083_v42 = vld [vmem:[#allocation47_spill] sm:$0xff]  ;;  %v4405_v16 = vpop.f32.mrb[34].mxu0  ;;  %v17087_v39 = vld [vmem:[#allocation10_spill] sm:$0xff] }
 0x625   : > { %v2838_v48 = vsel %vm17073_vm9, %v2805_v12, %v9055_v8  ;;  %v17078_v8 = vld [vmem:[#allocation50_spill] sm:$0xff]  ;;  %vm17080_vm5 = vmmov %vm17056_vm0  ;;  %4287 = vmatmul.mubr.f32.gmra.mrb[120].mxu1 %v2902_v33  ;;  %4552 = vmatmul.mubr.f32.gmra.mrb[96].mxu0 %v17084_v4  ;;  %v4406_v20 = vpop.f32.mrb[35].mxu0  ;;  %v17085_v33 = vld [vmem:[#allocation11_spill] sm:$0xff]  ;;  %vm5350_vm7 = vcmask 1044484  }
 0x626   : > { %v3642_v30 = vsel %vm387_vm1, %v17078_v8, %v16054_v3  ;;  %v2903_v63 = vsel %vm17080_vm5, %v2870_v29, %v9079_v28  ;;  %vm17081_vm13 = vmmov %vm17056_vm0  ;;  %v3707_v2 = vsel %vm471_vm2, %v3674_v0, %v9119_v50  ;;  %4290 = vmatprep.mubr.f32.mxu1 %v14390_v21  ;;  %7690 = vmatprep.mubr.msk.f32.mxu0 %vm1016_vm12, %v17085_v33  ;;  %v17091_v3 = vld [vmem:[#allocation7_spill] sm:$0xff] }
 0x627   : > { %v14458_v35 = vpop.permute.xlu1 %9122  ;;  %v14465_v41 = vsel %vm17081_vm13, %v3185_v37, %v14170_v56  ;;  %vm17082_vm6 = vmmov %vm17071_vm4  ;;  %v3645_v56 = vsel %vm387_vm1, %v3616_v57, %v17083_v42  ;;  %v3649_v57 = vsel %vm387_vm1, %v3617_v49, %v17083_v42  ;;  %v2806_v21 = vsel %vm471_vm2, %v2773_v25, %v9120_v19 }
 0x628   : > { %v14474_v12 = vpop.permute.xlu0 %9112  ;;  %v2871_v28 = vsel %vm17082_vm6, %v2838_v48, %v16056_v14  ;;  %v14494_v48 = vsel %vm1016_vm12, %v3642_v30, %v16053_v54  ;;  %v9124_v32 = vunpack.i.l.bf16 %v14458_v35  ;;  %v14506_v30 = vpop.f32.mrb[62].mxu1  ;;  %vm17088_vm0 = vmmov %vm17073_vm9  ;;  %v3679_v49 = vsel %vm1016_vm12, %v3646_v55, %v9070_v44  ;;  %v17092_v14 = vld [vmem:[#allocation28_spill] sm:$0xff] }
 0x629   : > { %v14484_v37 = vunpack.i.l.bf16 %v14474_v12  ;;  %17086 = vst [vmem:[#allocation26_spill] sm:$0xff] %v14506_v30  ;;  %vm17089_vm8 = vmmov %vm17088_vm0  ;;  %v4155_v20 = vpop.f32.mrb[63].mxu1  ;;  %v3678_v9 = vsel %vm1016_vm12, %v3645_v56, %v17091_v3  ;;  %v4409_v30 = vpop.f32.mrb[36].mxu0  ;;  %4291 = vmatmul.mubr.f32.gmra.mrb[122].mxu1 %v2903_v63  ;;  %v17094_v44 = vunpack.i.h.bf16 %v14474_v12 }
 0x62a   : > { %vm17090_vm10 = vmmov %vm17071_vm4  ;;  %vm5352_vm4 = vcmask 1046534   ;;  %v4410_v56 = vadd.f32 %v4409_v30, %v14156_v62  ;;  %v4411_v20 = vpop.f32.mrb[37].mxu0  ;;  %4294 = vmatprep.mubr.f32.mxu1 %v14432_v6  ;;  %v3682_v6 = vsel %vm1016_vm12, %v3649_v57, %v17091_v3 }
 0x62b   : > { %v2087_v8 = vpop.permute.xlu1 %2086  ;;  %v3757_v16 = vsel %vm17088_vm0, %v17087_v39, %v14484_v37  ;;  %v3758_v0 = vsel %vm17089_vm8, %v3707_v2, %v14484_v37  ;;  %v9104_v39 = vunpack.i.l.bf16 %v14426_v36  ;;  %vm17093_vm9 = vmmov %vm17080_vm5  ;;  %v4414_v57 = vpop.f32.mrb[38].mxu0  ;;  %v17104_v20 = vld [vmem:[#allocation16_spill] sm:$0xff] }
 0x62c   : > { %v2036_v4 = vpop.permute.xlu0 %2035  ;;  %v3815_v54 = vsel %vm17090_vm10, %v3757_v16, %v14468_v23  ;;  %vm17095_vm5 = vmmov %vm17088_vm0  ;;  %v4664_v30 = vmax.f32 %v4410_v56, 0.0 }
 0x62d   : > { %v2724_v29 = vsel %vm993_vm15, %v17092_v14, %v2036_v4  ;;  %v3873_v31 = vsel %vm17093_vm9, %v3815_v54, %v14416_v15  ;;  %v2839_v55 = vsel %vm17095_vm5, %v2806_v21, %v17094_v44  ;;  %vm17096_vm13 = vmmov %vm17082_vm6  ;;  %v3712_v54 = vsel %vm471_vm2, %v3679_v49, %v9119_v50  ;;  %v4158_v21 = vpop.f32.mrb[64].mxu1 }
 0x62e   : > { %v14533_v16 = vsel %vm387_vm1, %v2724_v29, %v2087_v8  ;;  %4556 = vmatmul.mubr.f32.gmra.mrb[98].mxu0 %v3873_v31  ;;  %v3816_v14 = vsel %vm17096_vm13, %v3758_v0, %v14468_v23  ;;  %vm17097_vm6 = vmmov %vm17093_vm9  ;;  %v17098_v8 = vld [vmem:[#allocation33_spill] sm:$0xff]  ;;  %v4159_v50 = vpop.f32.mrb[65].mxu1  ;;  %v17099_v49 = vunpack.i.h.bf16 %v14316_v51  ;;  %v17102_v31 = vunpack.i.l.bf16 %v14362_v7 }
 0x62f   : > { %7691 = vmatprep.mubr.msk.f32.mxu0 %vm1016_vm12, %v14302_v52  ;;  %v14542_v63 = vpop.permute.xlu1 %9127  ;;  %v2904_v29 = vsel %vm17097_vm6, %v2871_v28, %v9124_v32  ;;  %v14547_v62 = vsel %vm471_vm2, %v3678_v9, %v17098_v8  ;;  %vm17100_vm0 = vmmov %vm17090_vm10  ;;  %v3644_v51 = vsel %vm387_vm1, %v17104_v20, %v9104_v39  ;;  %v14573_v21 = vunpack.i.h.bf16 %v14395_v13  ;;  %v4162_v13 = vpop.f32.mrb[66].mxu1 }
 0x630   : > { %v14552_v0 = vunpack.i.l.bf16 %v14542_v63  ;;  %v2872_v4 = vsel %vm17100_vm0, %v2839_v55, %v17099_v49  ;;  %vm17101_vm8 = vmmov %vm17095_vm5  ;;  %v2774_v9 = vsel %vm1016_vm12, %v14533_v16, %v17102_v31  ;;  %v14564_v44 = vpop.permute.xlu0 %3478  ;;  %4295 = vmatmul.mubr.f32.gmra.mrb[124].mxu1 %v2904_v29  ;;  %v4736_v50 = vcombine.high %v4664_v30, %v4664_v30  ;;  %v17106_v49 = vld [vmem:[#allocation2_spill] sm:$0xff]  ;;  %v4416_v29 = vpop.f32.mrb[39].mxu0 }
 0x631   : > { %v3765_v28 = vsel %vm17101_vm8, %v14547_v62, %v14484_v37  ;;  %vm17103_vm10 = vmmov %vm17097_vm6  ;;  %v4743_v25 = vrot.slane %v4664_v30, %v17106_v49  ;;  %4298 = vmatprep.mubr.f32.mxu1 %v14465_v41  ;;  %v2807_v29 = vsel %vm471_vm2, %v2774_v9, %v9120_v19  ;;  %v3766_v11 = vsel %vm17101_vm8, %v3712_v54, %v14484_v37 }
 0x632   : > { %v3874_v56 = vsel %vm17103_vm10, %v3816_v14, %v14416_v15  ;;  %vm17105_vm9 = vmmov %vm17095_vm5  ;;  %v4415_v14 = vadd.f32 %v4414_v57, %v14189_v46  ;;  %v4750_v46 = vrot.slane %v4736_v50, %v17106_v49  ;;  %v17116_v50 = vld [vmem:[#allocation44_spill] sm:$0xff] }
 0x633   : > { %v3759_v55 = vsel %vm17105_vm9, %v3707_v2, %v14497_v1  ;;  %vm14578_vm5 = vmor %vm575_vm3, %vm5348_vm11  ;;  %4560 = vmatmul.mubr.f32.gmra.mrb[100].mxu0 %v3874_v56  ;;  %v14585_v2 = vunpack.i.h.bf16 %v14458_v35  ;;  %v4751_v57 = vcombine.high %v4743_v25, %v4743_v25  ;;  %v14595_v41 = vpop.permute.xlu1 %9132  ;;  %v4163_v35 = vpop.f32.mrb[67].mxu1 }
 0x634   : > { %7692 = vmatprep.mubr.msk.f32.mxu0 %vm1016_vm12, %v14302_v52  ;;  %vm17109_vm13 = vmmov %vm17097_vm6  ;;  %v4665_v56 = vmax.f32 %v4415_v14, 0.0  ;;  %v4752_v9 = vcombine.high %v4750_v46, %v4750_v46  ;;  %v5359_v13 = vrot.slane %v4750_v46, 7  ;;  %v14628_v37 = vpop.f32.mrb[68].mxu1  ;;  %v16057_v53 = vunpack.i.l.bf16 %v14595_v41 }
 0x635   : > { %v2905_v39 = vsel %vm17109_vm13, %v2872_v4, %v9124_v32  ;;  %vm17110_vm3 = vmmov %vm17100_vm0  ;;  %v4419_v4 = vpop.f32.mrb[40].mxu0  ;;  %v5356_v31 = vrot.slane %v4751_v57, 7  ;;  %17118 = vst [vmem:[#allocation19_spill] sm:$0xff] %v14628_v37 }
 0x636   : > { %v3817_v30 = vsel %vm17110_vm3, %v3759_v55, %v14552_v0  ;;  %vm17111_vm11 = vmmov %vm17100_vm0  ;;  %4299 = vmatmul.mubr.f32.gmra.mrb[126].mxu1 %v2905_v39  ;;  %v17115_v55 = vunpack.i.h.bf16 %v14426_v36  ;;  %v4421_v35 = vpop.f32.mrb[41].mxu0  ;;  %v14622_v39 = vsel %vm471_vm2, %v3682_v6, %v17098_v8 }
 0x637   : > { %v3823_v20 = vsel %vm17111_vm11, %v3765_v28, %v14468_v23  ;;  %vm14603_vm6 = vmor %vm14578_vm5, %vm5350_vm7  ;;  %4302 = vmatprep.mubr.f32.mxu1 %v14284_v22  ;;  %v5358_v57 = vrot.slane %v5356_v31, 2  ;;  %v5361_v35 = vrot.slane %v5359_v13, 2  ;;  %v4424_v37 = vpop.f32.mrb[42].mxu0  ;;  %v9138_v43 = vpop.permute.xlu1 %9137 }
 0x638   : > { %vm17114_vm0 = vmmov %vm17103_vm10  ;;  %v14613_v14 = vsel %vm387_vm1, %v17116_v50, %v17115_v55  ;;  %v3381_v55 = vpop.permute.xlu0 %3380  ;;  %v4420_v50 = vadd.f32 %v4419_v4, %v14202_v60  ;;  %v7714_v60 = vrot.slane %v4743_v25, 9  ;;  %v4753_v4 = vcombine.high %v4665_v56, %v4665_v56 }
 0x639   : > { %v3875_v28 = vsel %vm17114_vm0, %v3817_v30, %v14585_v2  ;;  %vm17117_vm10 = vmmov %vm17101_vm8  ;;  %v4760_v30 = vrot.slane %v4665_v56, %v17106_v49  ;;  %v3677_v47 = vsel %vm1016_vm12, %v3644_v51, %v3381_v55  ;;  %v4426_v56 = vpop.f32.mrb[43].mxu0 }
 0x63a   : > { %v3767_v19 = vsel %vm17117_vm10, %v3712_v54, %v14497_v1  ;;  %4565 = vmatmul.mubr.f32.gmra.mrb[102].mxu0 %v3875_v28  ;;  %v17119_v54 = vunpack.i.h.bf16 %v14474_v12  ;;  %vm17120_vm7 = vmmov %vm17101_vm8  ;;  %v4168_v28 = vpop.f32.mrb[69].mxu1  ;;  %v4666_v25 = vmax.f32 %v4420_v50, 0.0  ;;  %v14666_v50 = vunpack.i.h.bf16 %v14542_v63  ;;  %v17128_v56 = vld [vmem:[#allocation31_spill] sm:$0xff] }
 0x63b   : > { %7693 = vmatprep.mubr.msk.f32.mxu0 %vm1016_vm12, %v14360_v24  ;;  %vm17121_vm9 = vmmov %vm17114_vm0  ;;  %v14657_v61 = vpop.f32.mrb[70].mxu1 }
 0x63c   : > { %v2840_v46 = vsel %vm17120_vm7, %v2807_v29, %v17119_v54  ;;  %v14635_v22 = vsel %vm17121_vm9, %v3823_v20, %v14416_v15  ;;  %vm14640_vm5 = vmor %vm14603_vm6, %vm5352_vm4  ;;  %v5362_v29 = vrot.slane %v4752_v9, 7  ;;  %v4768_v54 = vcombine.high %v4760_v30, %v4760_v30  ;;  %v17125_v9 = vld [vmem:[#allocation30_spill] sm:$0xff]  ;;  %17127 = vst [vmem:[#allocation20_spill] sm:$0xff] %v14657_v61  ;;  %v4173_v55 = vpop.f32.mrb[71].mxu1 }
 0x63d   : > { %vm17124_vm13 = vmmov %vm17110_vm3  ;;  %v9135_v20 = vunpack.i.h.bf16 %v14595_v41  ;;  %v5360_v32 = vsel %vm14640_vm5, %v5358_v57, %v5359_v13  ;;  %v5357_v28 = vsel %vm14640_vm5, %v7714_v60, %v5356_v31  ;;  %v14660_v13 = vrot.slane %v4753_v4, %v17106_v49  ;;  %v14674_v60 = vpop.permute.xlu0 %3529  ;;  %v4429_v4 = vpop.f32.mrb[44].mxu0 }
 0x63e   : > { %v3824_v12 = vsel %vm17124_vm13, %v3766_v11, %v14468_v23  ;;  %v7715_v23 = vrot.slane %v4760_v30, 9  ;;  %v14653_v11 = vrot.slane %v4768_v54, 7  ;;  %vm17126_vm4 = vmmov %vm17110_vm3  ;;  %v5722_v59 = vcombine.low %v5357_v28, %v5360_v32 }
 0x63f   : > { %v2873_v38 = vsel %vm17126_vm4, %v2840_v46, %v17125_v9  ;;  %v4770_v57 = vcombine.high %v4666_v25, %v4666_v25  ;;  %v14663_v51 = vrot.slane %v4666_v25, %v17106_v49  ;;  %v5363_v31 = vsel %vm14640_vm5, %v5361_v35, %v5362_v29  ;;  %v4431_v29 = vpop.f32.mrb[45].mxu0  ;;  %vm17129_vm3 = vmmov %vm17114_vm0 }
 0x640   : > { %v5367_v30 = vsel %vm14640_vm5, %v7715_v23, %v14653_v11  ;;  %v3710_v46 = vsel %vm471_vm2, %v3677_v47, %v9135_v20  ;;  %v3708_v32 = vsel %vm471_vm2, %v14494_v48, %v16057_v53  ;;  %v4425_v25 = vadd.f32 %v4424_v37, %v14206_v27  ;;  %vm17130_vm11 = vmmov %vm17114_vm0  ;;  %v14701_v37 = vpop.permute.xlu1 %3378 }
 0x641   : > { %v5723_v54 = vcombine.low %v5363_v31, %v5367_v30  ;;  %v14681_v63 = vrot.slane %v4770_v57, %v17106_v49  ;;  %v4785_v35 = vcombine.high %v14663_v51, %v14663_v51  ;;  %v2906_v47 = vsel %vm17129_vm3, %v2873_v38, %v17128_v56  ;;  %vm17131_vm6 = vmmov %vm17126_vm4  ;;  %v14722_v29 = vpop.permute.xlu0 %3429 }
 0x642   : > { %v14690_v20 = vsel %vm17130_vm11, %v3824_v12, %v14416_v15  ;;  %v14694_v28 = vsel %vm17131_vm6, %v3767_v19, %v14552_v0  ;;  %v5730_v48 = vrot.slane %v5722_v59, %v17106_v49  ;;  %v16058_v23 = vrot.slane %v14660_v13, 7  ;;  %vm17132_vm0 = vmmov %vm17120_vm7  ;;  %4303 = vmatmul.mubr.f32.gmra.mrb[128].mxu1 %v2906_v47 }
 0x643   : > { %v5737_v9 = vrot.slane %v5723_v54, %v17106_v49  ;;  %v3764_v27 = vsel %vm17132_vm0, %v3710_v46, %v14573_v21  ;;  %v4786_v38 = vcombine.high %v14681_v63, %v14681_v63  ;;  %v5379_v15 = vrot.slane %v14681_v63, 7  ;;  %vm17133_vm8 = vmmov %vm17132_vm0  ;;  %7697 = vmatprep.mubr.msk.f32.mxu1 %vm1016_vm12, %v17076_v5 }
 0x644   : > { %v4667_v12 = vmax.f32 %v4425_v25, 0.0  ;;  %v3760_v19 = vsel %vm17133_vm8, %v3708_v32, %v14497_v1  ;;  %v4769_v59 = vcombine.high %v14660_v13, %v14660_v13  ;;  %v5376_v55 = vrot.slane %v4785_v35, 7  ;;  %vm17134_vm10 = vmmov %vm17126_vm4 }
 0x645   : > { %v14712_v57 = vcombine.low %v5730_v48, %v5737_v9  ;;  %v14714_v31 = vunpack.i.h.bf16 %v9138_v43  ;;  %v3818_v54 = vsel %vm17134_vm10, %v3760_v19, %v14552_v0  ;;  %v3676_v63 = vsel %vm1016_vm12, %v14613_v14, %v14701_v37  ;;  %vm17135_vm7 = vmmov %vm17129_vm3 }
 0x646   : > { %v4787_v30 = vcombine.high %v4667_v12, %v4667_v12  ;;  %v4794_v46 = vrot.slane %v4667_v12, %v17106_v49  ;;  %v5368_v25 = vrot.slane %v14653_v11, 2  ;;  %v14727_v56 = vrot.slane %v16058_v23, 2  ;;  %v3277_v23 = vpop.permute.xlu1 %3276  ;;  %vm17136_vm9 = vmmov %vm17126_vm4 }
 0x647   : > { %v14729_v35 = vunpack.i.l.bf16 %v9138_v43  ;;  %v3876_v47 = vsel %vm17135_vm7, %v3818_v54, %v14585_v2  ;;  %v5381_v48 = vrot.slane %v5379_v15, 2  ;;  %v5382_v9 = vrot.slane %v4786_v38, 7  ;;  %vm17137_vm13 = vmmov %vm17129_vm3 }
 0x648   : > { %v4801_v12 = vrot.slane %v4787_v30, %v17106_v49  ;;  %v4802_v19 = vcombine.high %v4794_v46, %v4794_v46  ;;  %4570 = vmatmul.mubr.f32.gmra.mrb[104].mxu0 %v3876_v47  ;;  %v14734_v14 = vrot.slane %v4769_v59, 7  ;;  %v5378_v53 = vrot.slane %v5376_v55, 2  ;;  %v14743_v30 = vpop.f32.mrb[72].mxu1  ;;  %vm17138_vm4 = vmmov %vm17132_vm0 }
 0x649   : > { %v3709_v11 = vsel %vm471_vm2, %v3676_v63, %v14722_v29  ;;  %7694 = vmatprep.mubr.msk.f32.mxu0 %vm1016_vm12, %v14360_v24  ;;  %v4430_v43 = vadd.f32 %v4429_v4, %v14210_v10  ;;  %v7717_v54 = vrot.slane %v4794_v46, 9  ;;  %v3822_v38 = vsel %vm17136_vm9, %v3764_v27, %v14666_v50  ;;  %v4178_v40 = vpop.f32.mrb[73].mxu1  ;;  %v17139_v46 = vld [vmem:[#allocation21_spill] sm:$0xff]  ;;  %vm17140_vm3 = vmmov %vm17131_vm6 }
 0x64a   : > { %v4803_v61 = vcombine.high %v4801_v12, %v4801_v12  ;;  %v5386_v45 = vrot.slane %v4802_v19, 7  ;;  %v5389_v59 = vrot.slane %v4801_v12, 7  ;;  %v14747_v26 = vsel %vm17137_vm13, %v3822_v38, %v14729_v35  ;;  %vm17141_vm11 = vmmov %vm17132_vm0 }
 0x64b   : > { %v4668_v47 = vmax.f32 %v4430_v43, 0.0  ;;  %v3761_v63 = vsel %vm17138_vm4, %v3708_v32, %v14564_v44  ;;  %v7716_v10 = vrot.slane %v14663_v51, 9  ;;  %v5383_v4 = vsel %vm14640_vm5, %v5381_v48, %v5382_v9  ;;  %4590 = vmatmul.mubr.f32.vlgmr.msra.gmra.mrb[130].mxu1 %v14747_v26  ;;  %v3279_v51 = vpop.permute.xlu0 %3278  ;;  %vm17142_vm6 = vmmov %vm17135_vm7 }
 0x64c   : > { %v5387_v27 = vsel %vm14640_vm5, %v7717_v54, %v5386_v45  ;;  %v3618_v12 = vsel %vm993_vm15, %v17139_v46, %v3277_v23  ;;  %v3819_v40 = vsel %vm17140_vm3, %v3761_v63, %v14674_v60  ;;  %7698 = vmatprep.mubr.msk.f32.mxu1 %vm1016_vm12, %v17085_v33  ;;  %v5380_v32 = vsel %vm14640_vm5, %v5378_v53, %v5379_v15  ;;  %v17145_v15 = vld [vmem:[#allocation18_spill] sm:$0xff]  ;;  %vm17150_vm8 = vmmov %vm17142_vm6 }
 0x64d   : > { %v14759_v19 = vcombine.low %v5383_v4, %v5387_v27  ;;  %v4804_v43 = vcombine.high %v4668_v47, %v4668_v47  ;;  %v4811_v38 = vrot.slane %v4668_v47, %v17106_v49  ;;  %v5388_v48 = vrot.slane %v5386_v45, 2  ;;  %vm17154_vm7 = vmmov %vm17142_vm6 }
 0x64e   : > { %v3762_v9 = vsel %vm17141_vm11, %v3709_v11, %v14564_v44  ;;  %v3877_v23 = vsel %vm17142_vm6, %v3819_v40, %v14714_v31  ;;  %v5391_v54 = vrot.slane %v5389_v59, 2  ;;  %v5392_v4 = vrot.slane %v4803_v61, 7  ;;  %vm17156_vm13 = vmmov %vm17142_vm6 }
 0x64f   : > { %v4819_v47 = vcombine.high %v4811_v38, %v4811_v38  ;;  %4575 = vmatmul.mubr.f32.gmra.mrb[106].mxu0 %v3877_v23  ;;  %v17143_v63 = vunpack.i.h.bf16 %v14349_v17  ;;  %v17144_v33 = vrot.slane %v14660_v13, 7  ;;  %v14780_v45 = vrot.slane %v4804_v43, %v17106_v49  ;;  %4594 = vmatmul.mubr.f32.gmra.mrb[132].mxu1 %v14635_v22  ;;  %v4434_v23 = vpop.f32.mrb[46].mxu0 }
 0x650   : > { %v3619_v46 = vsel %vm993_vm15, %v17145_v15, %v3279_v51  ;;  %7695 = vmatprep.mubr.msk.f32.mxu0 %vm1016_vm12, %v14533_v16  ;;  %v5373_v17 = vsel %vm14640_vm5, %v14727_v56, %v14734_v14  ;;  %v5377_v61 = vsel %vm14640_vm5, %v7716_v10, %v5376_v55  ;;  %7699 = vmatprep.mubr.msk.f32.mxu1 %vm1016_vm12, %v14302_v52  ;;  %vm17146_vm15 = vmmov %vm17132_vm0  ;;  %v17147_v22 = vunpack.i.h.bf16 %v14362_v7 }
 0x651   : > { %v3647_v27 = vsel %vm387_vm1, %v3618_v12, %v17143_v63  ;;  %v5370_v53 = vsel %vm14640_vm5, %v5368_v25, %v17144_v33  ;;  %v5396_v13 = vrot.slane %v4819_v47, 7  ;;  %v3650_v25 = vsel %vm387_vm1, %v3618_v12, %v17083_v42  ;;  %vm17148_vm0 = vmmov %vm17140_vm3 }
 0x652   : > { %v5740_v43 = vcombine.low %v5377_v61, %v5380_v32  ;;  %v3763_v40 = vsel %vm17146_vm15, %v3709_v11, %v14573_v21  ;;  %v3680_v51 = vsel %vm1016_vm12, %v3647_v27, %v17147_v22  ;;  %v3820_v56 = vsel %vm17148_vm0, %v3762_v9, %v14674_v60  ;;  %vm17151_vm10 = vmmov %vm17148_vm0 }
 0x653   : > { %v5390_v55 = vsel %vm14640_vm5, %v5388_v48, %v5389_v59  ;;  %v5393_v14 = vsel %vm14640_vm5, %v5391_v54, %v5392_v4  ;;  %v7718_v10 = vrot.slane %v4811_v38, 9  ;;  %v17149_v12 = vunpack.i.h.bf16 %v14426_v36  ;;  %4598 = vmatmul.mubr.f32.gmra.mrb[100].mxu1 %v14690_v20  ;;  %v14821_v38 = vpop.f32.mrb[74].mxu1  ;;  %v4436_v36 = vpop.f32.mrb[47].mxu0  ;;  %vm17155_vm9 = vmmov %vm17148_vm0 }
 0x654   : > { %v4820_v7 = vcombine.high %v14780_v45, %v14780_v45  ;;  %v5399_v11 = vrot.slane %v14780_v45, 7  ;;  %v14816_v9 = vsel %vm1016_vm12, %v3650_v25, %v17091_v3  ;;  %v3878_v59 = vsel %vm17150_vm8, %v3820_v56, %v14714_v31  ;;  %7700 = vmatprep.mubr.msk.f32.mxu1 %vm1016_vm12, %v14302_v52  ;;  %v4183_v27 = vpop.f32.mrb[75].mxu1  ;;  %vm17158_vm3 = vmmov %vm17142_vm6 }
 0x655   : > { %v3648_v32 = vsel %vm387_vm1, %v3619_v46, %v17149_v12  ;;  %v5398_v48 = vrot.slane %v5396_v13, 2  ;;  %v3651_v54 = vsel %vm387_vm1, %v3619_v46, %v17083_v42  ;;  %4580 = vmatmul.mubr.f32.gmra.mrb[108].mxu0 %v3878_v59  ;;  %v3821_v4 = vsel %vm17151_vm10, %v3763_v40, %v14666_v50  ;;  %vm17153_vm1 = vmmov %vm17138_vm4  ;;  %v4439_v46 = vpop.f32.mrb[48].mxu0 }
 0x656   : > { %v17152_v47 = vunpack.i.l.bf16 %v14595_v41  ;;  %v3681_v20 = vsel %vm1016_vm12, %v3648_v32, %v14701_v37  ;;  %7696 = vmatprep.mubr.msk.f32.mxu0 %vm1016_vm12, %v14533_v16  ;;  %v5739_v33 = vcombine.low %v5370_v53, %v5373_v17  ;;  %v5754_v45 = vrot.slane %v5740_v43, %v17106_v49  ;;  %vm17157_vm4 = vmmov %vm17153_vm1 }
 0x657   : > { %v14841_v52 = vsel %vm14640_vm5, %v7718_v10, %v5396_v13  ;;  %v3883_v41 = vsel %vm17154_vm7, %v14694_v28, %v14585_v2  ;;  %v4435_v15 = vadd.f32 %v4434_v23, %v14214_v18  ;;  %v5757_v61 = vcombine.low %v5390_v55, %v5393_v14  ;;  %v4440_v13 = vpop.f32.mrb[49].mxu0  ;;  %vm17161_vm6 = vmmov %vm17153_vm1  ;;  %v14869_v55 = vpop.permute.xlu1 %3482 }
 0x658   : > { %v3713_v63 = vsel %vm471_vm2, %v3680_v51, %v17152_v47  ;;  %4603 = vmatmul.mubr.f32.gmra.mrb[102].mxu1 %v3883_v41  ;;  %v5747_v53 = vrot.slane %v5739_v33, %v17106_v49  ;;  %v5400_v28 = vsel %vm14640_vm5, %v5398_v48, %v5399_v11  ;;  %v3714_v25 = vsel %vm471_vm2, %v3681_v20, %v14722_v29  ;;  %vm17162_vm15 = vmmov %vm17148_vm0  ;;  %v4443_v10 = vpop.f32.mrb[50].mxu0 }
 0x659   : > { %v3768_v42 = vsel %vm17153_vm1, %v3713_v63, %v14497_v1  ;;  %v3879_v1 = vsel %vm17156_vm13, %v3821_v4, %v14729_v35  ;;  %v3769_v17 = vsel %vm17157_vm4, %v3713_v63, %v14564_v44  ;;  %7701 = vmatprep.mubr.msk.f32.mxu1 %vm1016_vm12, %v14360_v24  ;;  %v17159_v43 = vmov 0.0   ;;  %vm17163_vm0 = vmmov %vm17153_vm1 }
 0x65a   : > { %v3826_v37 = vsel %vm17155_vm9, %v3768_v42, %v14552_v0  ;;  %4585 = vmatmul.mubr.f32.gmra.mrb[110].mxu0 %v3879_v1  ;;  %v4669_v0 = vmax.f32 %v4435_v15, 0.0  ;;  %vm17160_vm11 = vmmov 0   ;;  %v5755_v40 = vcombine.low %v5747_v53, %v5754_v45  ;;  %vm17164_vm8 = vmmov %vm17155_vm9 }
 0x65b   : > { %v3884_v18 = vsel %vm17158_vm3, %v3826_v37, %v14585_v2  ;;  %7854 = vmatprep.mubr.msk.f32.mxu0 %vm17160_vm11, %v17159_v43  ;;  %v5764_v22 = vrot.slane %v14759_v19, %v17106_v49  ;;  %v5771_v51 = vrot.slane %v5757_v61, %v17106_v49  ;;  %v3770_v56 = vsel %vm17161_vm6, %v3714_v25, %v14564_v44  ;;  %v4444_v44 = vpop.f32.mrb[51].mxu0  ;;  %vm17165_vm10 = vmmov %vm17158_vm3 }
 0x65c   : > { %v4821_v14 = vcombine.high %v4669_v0, %v4669_v0  ;;  %v4828_v2 = vrot.slane %v4669_v0, %v17106_v49  ;;  %v3827_v29 = vsel %vm17162_vm15, %v3769_v17, %v14674_v60  ;;  %v3771_v12 = vsel %vm17163_vm0, %v3714_v25, %v14573_v21  ;;  %4608 = vmatmul.mubr.f32.gmra.mrb[104].mxu1 %v3884_v18  ;;  %vm17166_vm1 = vmmov %vm17164_vm8  ;;  %v4447_v63 = vpop.f32.mrb[52].mxu0  ;;  %v17177_v44 = vld [vmem:[#allocation12_spill] sm:$0xff] }
 0x65d   : > { %v5401_v32 = vrot.slane %v5399_v11, 2  ;;  %v5402_v23 = vrot.slane %v4820_v7, 7  ;;  %v3684_v19 = vsel %vm1016_vm12, %v3651_v54, %v17091_v3  ;;  %v5772_v59 = vcombine.low %v5764_v22, %v5771_v51  ;;  %7702 = vmatprep.mubr.msk.f32.mxu1 %vm1016_vm12, %v14360_v24  ;;  %v14886_v11 = vpop.permute.xlu0 %3533  ;;  %vm17167_vm7 = vmmov %vm17163_vm0  ;;  %v4449_v33 = vpop.f32.mrb[53].mxu0 }
 0x65e   : > { %7855 = vmatmul.mubr.msk.f32.vlgmr.msra.gmra.mrb[112].mxu0 %vm987_vm14, %v14712_v57  ;;  %v4835_v36 = vrot.slane %v4821_v14, %v17106_v49  ;;  %v4836_v48 = vcombine.high %v4828_v2, %v4828_v2  ;;  %v3828_v21 = vsel %vm17164_vm8, %v3770_v56, %v14674_v60  ;;  %v5773_v7 = vcombine.low %v14841_v52, %v5400_v28  ;;  %vm17168_vm9 = vmmov %vm17158_vm3 }
 0x65f   : > { %7857 = vmatprep.mubr.msk.f32.mxu0 %vm17160_vm11, %v17159_v43  ;;  %v3885_v3 = vsel %vm17165_vm10, %v3827_v29, %v14714_v31  ;;  %v3829_v57 = vsel %vm17166_vm1, %v3771_v12, %v14666_v50  ;;  %v3772_v24 = vsel %vm17167_vm7, %v14547_v62, %v14869_v55  ;;  %v7719_v4 = vrot.slane %v4828_v2, 9  ;;  %vm17169_vm13 = vmmov %vm17158_vm3 }
 0x660   : > { %v4837_v54 = vcombine.high %v4835_v36, %v4835_v36  ;;  %v5406_v60 = vrot.slane %v4836_v48, 7  ;;  %v5409_v47 = vrot.slane %v4835_v36, 7  ;;  %v5403_v27 = vsel %vm14640_vm5, %v5401_v32, %v5402_v23  ;;  %4613 = vmatmul.mubr.f32.gmra.mrb[106].mxu1 %v3885_v3  ;;  %vm17170_vm4 = vmmov %vm17166_vm1 }
 0x661   : > { %v3886_v20 = vsel %vm17168_vm9, %v3828_v21, %v14714_v31  ;;  %v4448_v42 = vadd.f32 %v4447_v63, %v14241_v34  ;;  %v3716_v50 = vsel %vm471_vm2, %v14816_v9, %v17098_v8  ;;  %7703 = vmatprep.mubr.msk.f32.mxu1 %vm1016_vm12, %v14533_v16  ;;  %v3887_v45 = vsel %vm17169_vm13, %v3829_v57, %v14729_v35  ;;  %v14914_v34 = vpop.permute.xlu1 %3584  ;;  %vm17171_vm3 = vmmov %vm17163_vm0  ;;  %v4452_v35 = vpop.f32.mrb[54].mxu0 }
 0x662   : > { %7858 = vmatmul.mubr.msk.f32.gmra.mrb[114].mxu0 %vm987_vm14, %v5755_v40  ;;  %v5407_v62 = vsel %vm14640_vm5, %v7719_v4, %v5406_v60  ;;  %v3830_v31 = vsel %vm17170_vm4, %v3772_v24, %v14886_v11  ;;  %v5781_v41 = vrot.slane %v5773_v7, %v17106_v49  ;;  %v3773_v37 = vsel %vm17171_vm3, %v14622_v39, %v14869_v55  ;;  %vm17172_vm6 = vmmov %vm17163_vm0  ;;  %v4454_v28 = vpop.f32.mrb[55].mxu0 }
 0x663   : > { %v5774_v52 = vcombine.low %v5403_v27, %v5407_v62  ;;  %7860 = vmatprep.mubr.msk.f32.mxu0 %vm17160_vm11, %v17159_v43  ;;  %v4670_v9 = vmax.f32 %v4448_v42, 0.0  ;;  %v5408_v15 = vrot.slane %v5406_v60, 2  ;;  %v5411_v46 = vrot.slane %v5409_v47, 2  ;;  %vm17173_vm15 = vmmov %vm17168_vm9  ;;  %v4457_v2 = vpop.f32.mrb[56].mxu0  ;;  %v14961_v60 = vpop.f32.mrb[76].mxu1 }
 0x664   : > { %v5412_v1 = vrot.slane %v4837_v54, 7  ;;  %v3774_v53 = vsel %vm17172_vm6, %v3716_v50, %v14869_v55  ;;  %4618 = vmatmul.mubr.f32.gmra.mrb[108].mxu1 %v3886_v20  ;;  %v4453_v13 = vadd.f32 %v4452_v35, %v14256_v58  ;;  %v3888_v39 = vsel %vm17173_vm15, %v3830_v31, %v14914_v34  ;;  %vm17174_vm0 = vmmov %vm17166_vm1  ;;  %v4188_v33 = vpop.f32.mrb[77].mxu1 }
 0x665   : > { %v4838_v17 = vcombine.high %v4670_v9, %v4670_v9  ;;  %v4845_v61 = vrot.slane %v4670_v9, %v17106_v49  ;;  %v5788_v18 = vrot.slane %v5774_v52, %v17106_v49  ;;  %7704 = vmatprep.mubr.msk.f32.mxu1 %vm1016_vm12, %v14533_v16  ;;  %v3831_v0 = vsel %vm17174_vm0, %v3773_v37, %v14886_v11  ;;  %vm17175_vm8 = vmmov %vm17168_vm9 }
 0x666   : > { %7861 = vmatmul.mubr.msk.f32.gmra.mrb[116].mxu0 %vm987_vm14, %v5772_v59  ;;  %v3717_v25 = vsel %vm471_vm2, %v3684_v19, %v17098_v8  ;;  %v4671_v22 = vmax.f32 %v4453_v13, 0.0  ;;  %v14941_v51 = vsel %vm17175_vm8, %v3831_v0, %v14914_v34  ;;  %v5410_v16 = vsel %vm14640_vm5, %v5408_v15, %v5409_v47  ;;  %vm17176_vm10 = vmmov %vm17174_vm0  ;;  %v4459_v19 = vpop.f32.mrb[57].mxu0 }
 0x667   : > { %v4852_v40 = vrot.slane %v4838_v17, %v17106_v49  ;;  %v4853_v58 = vcombine.high %v4845_v61, %v4845_v61  ;;  %7863 = vmatprep.mubr.msk.f32.mxu0 %vm17160_vm11, %v17159_v43  ;;  %v5413_v56 = vsel %vm14640_vm5, %v5411_v46, %v5412_v1  ;;  %v5789_v14 = vcombine.low %v5781_v41, %v5788_v18  ;;  %vm17178_vm1 = vmmov %vm17175_vm8  ;;  %v4462_v42 = vpop.f32.mrb[58].mxu0  ;;  %v17180_v46 = vld [vmem:[#allocation62_spill] sm:$0xff]  ;;  %v14981_v18 = vpop.f32.mrb[78].mxu1 }
 0x668   : > { %v3832_v29 = vsel %vm17176_vm10, %v3774_v53, %v14886_v11  ;;  %4623 = vmatmul.mubr.f32.gmra.mrb[110].mxu1 %v3887_v45  ;;  %v4855_v23 = vcombine.high %v4671_v22, %v4671_v22  ;;  %v4862_v59 = vrot.slane %v4671_v22, %v17106_v49  ;;  %v4458_v36 = vadd.f32 %v4457_v2, %v17177_v44  ;;  %vm17179_vm7 = vmmov %vm17171_vm3  ;;  %v4464_v9 = vpop.f32.mrb[59].mxu0  ;;  %v4193_v22 = vpop.f32.mrb[79].mxu1 }
 0x669   : > { %v4854_v10 = vcombine.high %v4852_v40, %v4852_v40  ;;  %v5416_v12 = vrot.slane %v4853_v58, 7  ;;  %v5419_v32 = vrot.slane %v4852_v40, 7  ;;  %7705 = vmatprep.mubr.msk.f32.mxu1 %vm1016_vm12, %v17076_v5  ;;  %v14956_v48 = vsel %vm17178_vm1, %v3832_v29, %v14914_v34  ;;  %vm17181_vm9 = vmmov %vm17174_vm0  ;;  %v17182_v29 = vld [vmem:[#allocation63_spill] sm:$0xff] }
 0x66a   : > { %7864 = vmatmul.mubr.msk.f32.gmra.mrb[118].mxu0 %vm987_vm14, %v5789_v14  ;;  %v7720_v21 = vrot.slane %v4845_v61, 9  ;;  %v4869_v24 = vrot.slane %v4855_v23, %v17106_v49  ;;  %v4870_v54 = vcombine.high %v4862_v59, %v4862_v59  ;;  %v4672_v4 = vmax.f32 %v4458_v36, 0.0  ;;  %vm17184_vm13 = vmmov %vm17178_vm1 }
 0x66b   : > { %v5418_v7 = vrot.slane %v5416_v12, 2  ;;  %v5421_v3 = vrot.slane %v5419_v32, 2  ;;  %v5422_v57 = vrot.slane %v4854_v10, 7  ;;  %7866 = vmatprep.mubr.msk.f32.mxu0 %vm17160_vm11, %v17159_v43  ;;  %v3775_v47 = vsel %vm17179_vm7, %v3717_v25, %v14869_v55  ;;  %vm17189_vm4 = vmmov %vm17174_vm0 }
 0x66c   : > { %v5417_v63 = vsel %vm14640_vm5, %v7720_v21, %v5416_v12  ;;  %4628 = vmatmul.mubr.f32.gmra.mrb[134].mxu1 %v14747_v26  ;;  %v7721_v20 = vrot.slane %v4862_v59, 9  ;;  %v5790_v50 = vcombine.low %v5410_v16, %v5413_v56  ;;  %v4871_v62 = vcombine.high %v4869_v24, %v4869_v24 }
 0x66d   : > { %v5420_v27 = vsel %vm14640_vm5, %v5418_v7, %v5419_v32  ;;  %7706 = vmatprep.mubr.msk.f32.mxu1 %vm1016_vm12, %v17076_v5  ;;  %v5423_v45 = vsel %vm14640_vm5, %v5421_v3, %v5422_v57  ;;  %v5426_v31 = vrot.slane %v4870_v54, 7  ;;  %v5429_v52 = vrot.slane %v4869_v24, 7  ;;  %v4196_v7 = vpop.f32.mrb[80].mxu1 }
 0x66e   : > { %v5791_v41 = vcombine.low %v5417_v63, %v5420_v27  ;;  %v4872_v37 = vcombine.high %v4672_v4, %v4672_v4  ;;  %v4879_v15 = vrot.slane %v4672_v4, %v17106_v49  ;;  %v4463_v26 = vadd.f32 %v4462_v42, %v17180_v46  ;;  %v4197_v63 = vpop.f32.mrb[81].mxu1  ;;  %v17183_v42 = vld [vmem:[#allocation37_spill] sm:$0xff] }
 0x66f   : > { %v5427_v1 = vsel %vm14640_vm5, %v7721_v20, %v5426_v31  ;;  %v5428_v35 = vrot.slane %v5426_v31, 2  ;;  %v5431_v53 = vrot.slane %v5429_v52, 2  ;;  %v5432_v17 = vrot.slane %v4871_v62, 7 }
 0x670   : > { %v14978_v61 = vcombine.low %v5423_v45, %v5427_v1  ;;  %4632 = vmatmul.mubr.f32.gmra.mrb[136].mxu1 %v3888_v39  ;;  %v4886_v13 = vrot.slane %v4872_v37, %v17106_v49  ;;  %v4887_v28 = vcombine.high %v4879_v15, %v4879_v15  ;;  %v14985_v0 = vsel %vm17181_vm9, %v3775_v47, %v14886_v11  ;;  %v4467_v39 = vpop.f32.mrb[60].mxu0 }
 0x671   : > { %v5430_v25 = vsel %vm14640_vm5, %v5428_v35, %v5429_v52  ;;  %v5433_v40 = vsel %vm14640_vm5, %v5431_v53, %v5432_v17  ;;  %7707 = vmatprep.mubr.msk.f32.mxu1 %vm1016_vm12, %v17076_v5  ;;  %v4673_v58 = vmax.f32 %v4463_v26, 0.0  ;;  %v5798_v16 = vrot.slane %v5790_v50, %v17106_v49  ;;  %v4469_v12 = vpop.f32.mrb[61].mxu0  ;;  %v4200_v26 = vpop.f32.mrb[82].mxu1 }
 0x672   : > { %v4888_v56 = vcombine.high %v4886_v13, %v4886_v13  ;;  %v5436_v14 = vrot.slane %v4887_v28, 7  ;;  %v5439_v2 = vrot.slane %v4886_v13, 7  ;;  %v4468_v10 = vadd.f32 %v4467_v39, %v17182_v29  ;;  %v4472_v47 = vpop.f32.mrb[62].mxu0  ;;  %v4201_v13 = vpop.f32.mrb[83].mxu1 }
 0x673   : > { %v7722_v32 = vrot.slane %v4879_v15, 9  ;;  %v4889_v23 = vcombine.high %v4673_v58, %v4673_v58  ;;  %v4896_v19 = vrot.slane %v4673_v58, %v17106_v49  ;;  %v5805_v59 = vrot.slane %v5791_v41, %v17106_v49  ;;  %v4474_v62 = vpop.f32.mrb[63].mxu0 }
 0x674   : > { %v5438_v44 = vrot.slane %v5436_v14, 2  ;;  %v5441_v36 = vrot.slane %v5439_v2, 2  ;;  %v5442_v21 = vrot.slane %v4888_v56, 7  ;;  %4636 = vmatmul.mubr.f32.gmra.mrb[138].mxu1 %v14941_v51  ;;  %v14998_v3 = vcombine.low %v5430_v25, %v5433_v40 }
 0x675   : > { %v15002_v57 = vsel %vm14640_vm5, %v7722_v32, %v5436_v14  ;;  %7708 = vmatprep.mubr.msk.f32.mxu1 %vm1016_vm12, %v17076_v5  ;;  %v4903_v24 = vrot.slane %v4889_v23, %v17106_v49  ;;  %v4904_v54 = vcombine.high %v4896_v19, %v4896_v19  ;;  %v4674_v4 = vmax.f32 %v4468_v10, 0.0 }
 0x676   : > { %v5440_v27 = vsel %vm14640_vm5, %v5438_v44, %v5439_v2  ;;  %v7723_v20 = vrot.slane %v4896_v19, 9  ;;  %v4473_v33 = vadd.f32 %v4472_v47, %v17183_v42  ;;  %v5806_v50 = vcombine.low %v5798_v16, %v5805_v59  ;;  %v15031_v32 = vpop.f32.mrb[84].mxu1 }
 0x677   : > { %v4905_v45 = vcombine.high %v4903_v24, %v4903_v24  ;;  %v5443_v31 = vsel %vm14640_vm5, %v5441_v36, %v5442_v21  ;;  %v5446_v52 = vrot.slane %v4904_v54, 7  ;;  %v5449_v9 = vrot.slane %v4903_v24, 7  ;;  %v4206_v36 = vpop.f32.mrb[85].mxu1 }
 0x678   : > { %v5824_v41 = vcombine.low %v15002_v57, %v5440_v27  ;;  %4640 = vmatmul.mubr.f32.gmra.mrb[140].mxu1 %v14941_v51  ;;  %v4906_v37 = vcombine.high %v4674_v4, %v4674_v4  ;;  %v4913_v15 = vrot.slane %v4674_v4, %v17106_v49  ;;  %v4675_v46 = vmax.f32 %v4473_v33, 0.0  ;;  %7867 = vmatmul.mubr.msk.f32.gmra.mrb[120].mxu0 %vm987_vm14, %v5806_v50  ;;  %v4477_v51 = vpop.f32.mrb[64].mxu0 }
 0x679   : > { %v5447_v1 = vsel %vm14640_vm5, %v7723_v20, %v5446_v52  ;;  %v5448_v35 = vrot.slane %v5446_v52, 2  ;;  %v5451_v53 = vrot.slane %v5449_v9, 2  ;;  %v5452_v17 = vrot.slane %v4905_v45, 7  ;;  %7709 = vmatprep.mubr.msk.f32.mxu1 %vm1016_vm12, %v17076_v5  ;;  %7869 = vmatprep.mubr.msk.f32.mxu0 %vm17160_vm11, %v17159_v43  ;;  %v4478_v39 = vpop.f32.mrb[65].mxu0 }
 0x67a   : > { %v5825_v28 = vcombine.low %v5443_v31, %v5447_v1  ;;  %v4920_v25 = vrot.slane %v4906_v37, %v17106_v49  ;;  %v4921_v40 = vcombine.high %v4913_v15, %v4913_v15  ;;  %v5815_v58 = vrot.slane %v14978_v61, %v17106_v49  ;;  %v4481_v44 = vpop.f32.mrb[66].mxu0  ;;  %v15052_v52 = vpop.f32.mrb[86].mxu1  ;;  %v17185_v1 = vld [vmem:[#allocation35_spill] sm:$0xff] }
 0x67b   : > { %v5450_v22 = vsel %vm14640_vm5, %v5448_v35, %v5449_v9  ;;  %v7724_v16 = vrot.slane %v4913_v15, 9  ;;  %v4923_v56 = vcombine.high %v4675_v46, %v4675_v46  ;;  %v4930_v14 = vrot.slane %v4675_v46, %v17106_v49  ;;  %v4482_v24 = vpop.f32.mrb[67].mxu0  ;;  %v4211_v46 = vpop.f32.mrb[87].mxu1 }
 0x67c   : > { %v4922_v2 = vcombine.high %v4920_v25, %v4920_v25  ;;  %v5456_v29 = vrot.slane %v4921_v40, 7  ;;  %v5459_v10 = vrot.slane %v4920_v25, 7  ;;  %4644 = vmatmul.mubr.f32.gmra.mrb[142].mxu1 %v14956_v48  ;;  %v5822_v12 = vrot.slane %v14998_v3, %v17106_v49  ;;  %v4485_v15 = vpop.f32.mrb[68].mxu0  ;;  %v15071_v25 = vld [vmem:[%s15804_s8] ss:$0 sm:$0xff]  ;;  %v17187_v40 = vld [vmem:[#allocation67_spill] sm:$0xff] }
 0x67d   : > { %v5453_v61 = vsel %vm14640_vm5, %v5451_v53, %v5452_v17  ;;  %7710 = vmatprep.mubr.msk.f32.mxu1 %vm1016_vm12, %v17076_v5  ;;  %v4937_v23 = vrot.slane %v4923_v56, %v17106_v49  ;;  %v4938_v19 = vcombine.high %v4930_v14, %v4930_v14  ;;  %v7725_v59 = vrot.slane %v4930_v14, 9  ;;  %v4487_v53 = vpop.f32.mrb[69].mxu0 }
 0x67e   : > { %v5457_v21 = vsel %vm14640_vm5, %v7724_v16, %v5456_v29  ;;  %v5458_v7 = vrot.slane %v5456_v29, 2  ;;  %v5461_v57 = vrot.slane %v5459_v10, 2  ;;  %v5462_v3 = vrot.slane %v4922_v2, 7 }
 0x67f   : > { %v4939_v54 = vcombine.high %v4937_v23, %v4937_v23  ;;  %v5466_v4 = vrot.slane %v4938_v19, 7  ;;  %v5469_v47 = vrot.slane %v4937_v23, 7  ;;  %v5823_v63 = vcombine.low %v5815_v58, %v5822_v12 }
 0x680   : > { %v5460_v27 = vsel %vm14640_vm5, %v5458_v7, %v5459_v10  ;;  %v5463_v20 = vsel %vm14640_vm5, %v5461_v57, %v5462_v3  ;;  %4648 = vmatmul.mubr.f32.gmra.mrb[144].mxu1 %v14956_v48  ;;  %v5832_v42 = vrot.slane %v5824_v41, %v17106_v49  ;;  %v5839_v33 = vrot.slane %v5825_v28, %v17106_v49  ;;  %v17190_v57 = vld [vmem:[#allocation6_spill] sm:$0xff] }
 0x681   : > { %v5842_v50 = vcombine.low %v5457_v21, %v5460_v27  ;;  %v5467_v62 = vsel %vm14640_vm5, %v7725_v59, %v5466_v4  ;;  %v5468_v45 = vrot.slane %v5466_v4, 2  ;;  %v5471_v31 = vrot.slane %v5469_v47, 2  ;;  %7711 = vmatprep.mubr.msk.f32.mxu1 %vm1016_vm12, %v17076_v5  ;;  %7870 = vmatmul.mubr.msk.f32.gmra.mrb[122].mxu0 %vm987_vm14, %v5823_v63 }
 0x682   : > { %v5472_v9 = vrot.slane %v4939_v54, 7  ;;  %v5858_v37 = vcombine.low %v5463_v20, %v5467_v62  ;;  %v3891_v48 = vsel %vm17184_vm13, %v14985_v0, %v14914_v34  ;;  %7872 = vmatprep.mubr.msk.f32.mxu0 %vm17160_vm11, %v17159_v43  ;;  %v5840_v41 = vcombine.low %v5832_v42, %v5839_v33  ;;  %v17186_v0 = vld [vmem:[#allocation66_spill] sm:$0xff] }
 0x683   : > { %v5470_v26 = vsel %vm14640_vm5, %v5468_v45, %v5469_v47  ;;  %v4486_v35 = vadd.f32 %v4485_v15, %v17185_v1  ;;  %v5841_v17 = vcombine.low %v5450_v22, %v5453_v61  ;;  %v5856_v51 = vrot.slane %v5842_v50, %v17106_v49  ;;  %v15078_v22 = vpop.f32.mrb[88].mxu1  ;;  %v4490_v14 = vpop.f32.mrb[70].mxu0 }
 0x684   : > { %v5473_v13 = vsel %vm14640_vm5, %v5471_v31, %v5472_v9  ;;  %4652 = vmatmul.mubr.f32.gmra.mrb[146].mxu1 %v3891_v48  ;;  %v3718_v28 = vsel %vm471_vm2, %v17186_v0, %v17098_v8  ;;  %v4134_v58 = vadd.f32 %v15071_v25, %v17187_v40  ;;  %vm17188_vm2 = vmmov %vm17171_vm3  ;;  %v4216_v2 = vpop.f32.mrb[89].mxu1  ;;  %v4492_v23 = vpop.f32.mrb[71].mxu0  ;;  %v5866_v19 = vrot.slane %v5858_v37, %v17106_v49 }
 0x685   : > { %7712 = vmatprep.mubr.msk.f32.mxu1 %vm1016_vm12, %v17076_v5  ;;  %7873 = vmatmul.mubr.msk.f32.gmra.mrb[124].mxu0 %vm987_vm14, %v5840_v41  ;;  %v4676_v39 = vmax.f32 %v4486_v35, 0.0  ;;  %v5849_v16 = vrot.slane %v5841_v17, %v17106_v49  ;;  %v5859_v56 = vcombine.low %v5470_v26, %v5473_v13  ;;  %v3776_v8 = vsel %vm17188_vm2, %v3718_v28, %v14869_v55  ;;  %v15094_v7 = vpop.f32.mrb[90].mxu1  ;;  %vm17191_vm3 = vmmov %vm17178_vm1 }
 0x686   : > { %7875 = vmatprep.mubr.msk.f32.mxu0 %vm17160_vm11, %v17159_v43  ;;  %v4491_v12 = vadd.f32 %v4490_v14, %v4134_v58  ;;  %v3834_v36 = vsel %vm17189_vm4, %v3776_v8, %v14886_v11  ;;  %v4139_v3 = vadd.f32 %v15071_v25, %v17190_v57  ;;  %v4221_v4 = vpop.f32.mrb[91].mxu1 }
 0x687   : > { %v4940_v29 = vcombine.high %v4676_v39, %v4676_v39  ;;  %v4947_v10 = vrot.slane %v4676_v39, %v17106_v49  ;;  %v5857_v61 = vcombine.low %v5849_v16, %v5856_v51  ;;  %v5873_v59 = vrot.slane %v5859_v56, %v17106_v49 }
 0x688   : > { %4656 = vmatmul.mubr.f32.gmra.mrb[148].mxu1 %v3891_v48  ;;  %v4677_v21 = vmax.f32 %v4491_v12, 0.0  ;;  %v3892_v24 = vsel %vm17191_vm3, %v3834_v36, %v14914_v34 }
 0x689   : > { %7713 = vmatprep.mubr.msk.f32.mxu1 %vm1016_vm12, %v17076_v5  ;;  %v4954_v55 = vrot.slane %v4940_v29, %v17106_v49  ;;  %v4955_v44 = vcombine.high %v4947_v10, %v4947_v10  ;;  %7876 = vmatmul.mubr.msk.f32.gmra.mrb[126].mxu0 %vm987_vm14, %v5857_v61  ;;  %v5874_v54 = vcombine.low %v5866_v19, %v5873_v59  ;;  %v7726_v50 = vrot.slane %v4947_v10, 9 }
 0x68a   : > { %7878 = vmatprep.mubr.msk.f32.mxu0 %vm17160_vm11, %v17159_v43  ;;  %v4495_v5 = vpop.f32.mrb[72].mxu0  ;;  %v4957_v27 = vcombine.high %v4677_v21, %v4677_v21  ;;  %v4964_v42 = vrot.slane %v4677_v21, %v17106_v49  ;;  %vm7533_vm12 = vcmask 29696  }
 0x68b   : > { %v4956_v47 = vcombine.high %v4954_v55, %v4954_v55  ;;  %v5476_v63 = vrot.slane %v4955_v44, 7  ;;  %v5479_v11 = vrot.slane %v4954_v55, 7  ;;  %v4497_v20 = vpop.f32.mrb[73].mxu0  ;;  %v4496_v33 = vadd.f32 %v4495_v5, %v4139_v3 }
 0x68c   : > { %4660 = vmatmul.mubr.f32.gmra.mrb[150].mxu1 %v3892_v24  ;;  %v4971_v9 = vrot.slane %v4957_v27, %v17106_v49  ;;  %v4972_v37 = vcombine.high %v4964_v42, %v4964_v42  ;;  %v7727_v1 = vrot.slane %v4964_v42, 9  ;;  %v17192_v27 = vld [vmem:[#allocation43_spill] sm:$0xff] }
 0x68d   : > { %v5478_v62 = vrot.slane %v5476_v63, 2  ;;  %v5481_v45 = vrot.slane %v5479_v11, 2  ;;  %v5482_v31 = vrot.slane %v4956_v47, 7  ;;  %7879 = vmatmul.mubr.msk.f32.gmra.mrb[128].mxu0 %vm987_vm14, %v5874_v54  ;;  %v4678_v48 = vmax.f32 %v4496_v33, 0.0 }
 0x68e   : > { %v15104_v34 = vpop.f32.mrb[92].mxu1  ;;  %7881 = vmatprep.mubr.msk.f32.mxu0 %vm17160_vm11, %v17159_v43  ;;  %v5477_v15 = vsel %vm14640_vm5, %v7726_v50, %v5476_v63  ;;  %v4973_v26 = vcombine.high %v4971_v9, %v4971_v9  ;;  %v5486_v35 = vrot.slane %v4972_v37, 7  ;;  %v5489_v53 = vrot.slane %v4971_v9, 7 }
 0x68f   : > { %v4226_v41 = vpop.f32.mrb[93].mxu1  ;;  %v5480_v46 = vsel %vm14640_vm5, %v5478_v62, %v5479_v11  ;;  %v5483_v51 = vsel %vm14640_vm5, %v5481_v45, %v5482_v31  ;;  %v4974_v13 = vcombine.high %v4678_v48, %v4678_v48  ;;  %v4981_v0 = vrot.slane %v4678_v48, %v17106_v49  ;;  %v17193_v45 = vld [vmem:[#allocation15_spill] sm:$0xff] }
 0x690   : > { %v5875_v17 = vcombine.low %v5477_v15, %v5480_v46  ;;  %v5487_v40 = vsel %vm14640_vm5, %v7727_v1, %v5486_v35  ;;  %v5488_v58 = vrot.slane %v5486_v35, 2  ;;  %v5491_v39 = vrot.slane %v5489_v53, 2 }
 0x691   : > { %v5492_v16 = vrot.slane %v4973_v26, 7  ;;  %v5876_v8 = vcombine.low %v5483_v51, %v5487_v40  ;;  %v4988_v14 = vrot.slane %v4974_v13, %v17106_v49  ;;  %v4989_v2 = vcombine.high %v4981_v0, %v4981_v0 }
 0x692   : > { %v15116_v28 = vpop.f32.mrb[94].mxu1  ;;  %v5490_v29 = vsel %vm14640_vm5, %v5488_v58, %v5489_v53  ;;  %v5883_v59 = vrot.slane %v5875_v17, %v17106_v49  ;;  %v7728_v55 = vrot.slane %v4981_v0, 9  ;;  %v4144_v20 = vadd.f32 %v15071_v25, %v17192_v27 }
 0x693   : > { %v4231_v56 = vpop.f32.mrb[95].mxu1  ;;  %v5493_v10 = vsel %vm14640_vm5, %v5491_v39, %v5492_v16  ;;  %v5496_v12 = vrot.slane %v4989_v2, 7  ;;  %v5890_v23 = vrot.slane %v5876_v8, %v17106_v49  ;;  %v5499_v36 = vrot.slane %v4988_v14, 7 }
 0x694   : > { %v5892_v57 = vcombine.low %v5490_v29, %v5493_v10  ;;  %v4990_v62 = vcombine.high %v4988_v14, %v4988_v14  ;;  %v4149_v31 = vadd.f32 %v15071_v25, %v17193_v45 }
 0x695   : > { %v5498_v44 = vrot.slane %v5496_v12, 2  ;;  %v5891_v21 = vcombine.low %v5883_v59, %v5890_v23  ;;  %v5497_v3 = vsel %vm14640_vm5, %v7728_v55, %v5496_v12  ;;  %v5501_v26 = vrot.slane %v5499_v36, 2  ;;  %v17194_v59 = vld [vmem:[#allocation26_spill] sm:$0xff] }
 0x696   : > { %v4234_v61 = vpop.f32.mrb[96].mxu1  ;;  %v5900_v47 = vrot.slane %v5892_v57, %v17106_v49  ;;  %v5502_v1 = vrot.slane %v4990_v62, 7  ;;  %v4154_v55 = vadd.f32 %v15071_v25, %v17194_v59 }
 0x697   : > { %v4235_v19 = vpop.f32.mrb[97].mxu1  ;;  %v5500_v24 = vsel %vm14640_vm5, %v5498_v44, %v5499_v36  ;;  %7882 = vmatmul.mubr.msk.f32.gmra.mrb[130].mxu0 %vm987_vm14, %v5891_v21 }
 0x698   : > { %v5893_v54 = vcombine.low %v5497_v3, %v5500_v24  ;;  %7884 = vmatprep.mubr.msk.f32.mxu0 %vm17160_vm11, %v17159_v43  ;;  %v5503_v58 = vsel %vm14640_vm5, %v5501_v26, %v5502_v1  ;;  %v17195_v1 = vld [vmem:[#allocation19_spill] sm:$0xff] }
 0x69a   : > { %v4238_v5 = vpop.f32.mrb[98].mxu1  ;;  %v5907_v63 = vrot.slane %v5893_v54, %v17106_v49 }
 0x69b   : > { %v4239_v4 = vpop.f32.mrb[99].mxu1 }
 0x69c   : > { %v5908_v11 = vcombine.low %v5900_v47, %v5907_v63 }
 0x69e   : > { %7885 = vmatmul.mubr.msk.f32.gmra.mrb[132].mxu0 %vm987_vm14, %v5908_v11 }
 0x69f   : > { %7887 = vmatprep.mubr.msk.f32.mxu0 %vm17160_vm11, %v17159_v43 }
 0x6bc   : > { %v4500_v42 = vpop.f32.mrb[74].mxu0 }
 0x6bd   : > { %v4501_v33 = vadd.f32 %v4500_v42, %v4144_v20  ;;  %v4502_v50 = vpop.f32.mrb[75].mxu0 }
 0x6bf   : > { %v4679_v9 = vmax.f32 %v4501_v33, 0.0 }
 0x6c0   : > { %v4505_v37 = vpop.f32.mrb[76].mxu0 }
 0x6c1   : > { %v4991_v48 = vcombine.high %v4679_v9, %v4679_v9  ;;  %v4998_v41 = vrot.slane %v4679_v9, %v17106_v49  ;;  %v4506_v15 = vadd.f32 %v4505_v37, %v4149_v31  ;;  %v4507_v46 = vpop.f32.mrb[77].mxu0 }
 0x6c3   : > { %v5005_v35 = vrot.slane %v4991_v48, %v17106_v49  ;;  %v5006_v53 = vcombine.high %v4998_v41, %v4998_v41  ;;  %v4680_v17 = vmax.f32 %v4506_v15, 0.0  ;;  %v7729_v13 = vrot.slane %v4998_v41, 9 }
 0x6c5   : > { %v5007_v51 = vcombine.high %v5005_v35, %v5005_v35  ;;  %v5506_v0 = vrot.slane %v5006_v53, 7  ;;  %v5509_v40 = vrot.slane %v5005_v35, 7  ;;  %v5008_v39 = vcombine.high %v4680_v17, %v4680_v17 }
 0x6c6   : > { %v5015_v16 = vrot.slane %v4680_v17, %v17106_v49  ;;  %v4167_v35 = vadd.f32 %v15071_v25, %v17195_v1 }
 0x6c7   : > { %v5507_v56 = vsel %vm14640_vm5, %v7729_v13, %v5506_v0  ;;  %v5508_v8 = vrot.slane %v5506_v0, 2  ;;  %v5511_v14 = vrot.slane %v5509_v40, 2  ;;  %v5512_v2 = vrot.slane %v5007_v51, 7 }
 0x6c8   : > { %v5909_v29 = vcombine.low %v5503_v58, %v5507_v56  ;;  %v5023_v10 = vcombine.high %v5015_v16, %v5015_v16  ;;  %v5022_v23 = vrot.slane %v5008_v39, %v17106_v49  ;;  %v7730_v33 = vrot.slane %v5015_v16, 9 }
 0x6c9   : > { %v5510_v12 = vsel %vm14640_vm5, %v5508_v8, %v5509_v40  ;;  %v5513_v61 = vsel %vm14640_vm5, %v5511_v14, %v5512_v2  ;;  %v17196_v8 = vld [vmem:[#allocation20_spill] sm:$0xff] }
 0x6ca   : > { %v5910_v19 = vcombine.low %v5510_v12, %v5513_v61  ;;  %v5516_v44 = vrot.slane %v5023_v10, 7  ;;  %v5917_v3 = vrot.slane %v5909_v29, %v17106_v49  ;;  %v5024_v5 = vcombine.high %v5022_v23, %v5022_v23 }
 0x6cb   : > { %v5519_v4 = vrot.slane %v5022_v23, 7  ;;  %v4172_v14 = vadd.f32 %v15071_v25, %v17196_v8 }
 0x6cc   : > { %v4510_v36 = vpop.f32.mrb[78].mxu0  ;;  %v5924_v24 = vrot.slane %v5910_v19, %v17106_v49  ;;  %v5518_v54 = vrot.slane %v5516_v44, 2  ;;  %v5522_v45 = vrot.slane %v5024_v5, 7  ;;  %v5517_v48 = vsel %vm14640_vm5, %v7730_v33, %v5516_v44 }
 0x6cd   : > { %v4511_v21 = vadd.f32 %v4510_v36, %v4154_v55  ;;  %v4512_v57 = vpop.f32.mrb[79].mxu0  ;;  %v5521_v62 = vrot.slane %v5519_v4, 2  ;;  %v4177_v36 = vadd.f32 %v15071_v25, %v14743_v30  ;;  %v4187_v5 = vadd.f32 %v15071_v25, %v14961_v60 }
 0x6ce   : > { %v5925_v63 = vcombine.low %v5917_v3, %v5924_v24  ;;  %v5520_v50 = vsel %vm14640_vm5, %v5518_v54, %v5519_v4  ;;  %v4182_v24 = vadd.f32 %v15071_v25, %v14821_v38  ;;  %v15195_v38 = vadd.f32 %v15071_v25, %v14981_v18 }
 0x6cf   : > { %v4681_v47 = vmax.f32 %v4511_v21, 0.0  ;;  %v5926_v26 = vcombine.low %v5517_v48, %v5520_v50  ;;  %v5523_v53 = vsel %vm14640_vm5, %v5521_v62, %v5522_v45  ;;  %v15199_v60 = vadd.f32 %v15071_v25, %v15031_v32 }
 0x6d0   : > { %v4515_v11 = vpop.f32.mrb[80].mxu0  ;;  %7888 = vmatmul.mubr.msk.f32.gmra.mrb[134].mxu0 %vm987_vm14, %v5925_v63 }
 0x6d1   : > { %v5025_v27 = vcombine.high %v4681_v47, %v4681_v47  ;;  %v5032_v20 = vrot.slane %v4681_v47, %v17106_v49  ;;  %v4516_v42 = vpop.f32.mrb[81].mxu0  ;;  %7890 = vmatprep.mubr.msk.f32.mxu0 %vm17160_vm11, %v17159_v43  ;;  %v5934_v16 = vrot.slane %v5926_v26, %v17106_v49 }
 0x6d3   : > { %v5040_v31 = vcombine.high %v5032_v20, %v5032_v20  ;;  %v5039_v9 = vrot.slane %v5025_v27, %v17106_v49  ;;  %v7731_v41 = vrot.slane %v5032_v20, 9 }
 0x6d4   : > { %v4519_v37 = vpop.f32.mrb[82].mxu0 }
 0x6d5   : > { %v5526_v15 = vrot.slane %v5040_v31, 7  ;;  %v4520_v46 = vpop.f32.mrb[83].mxu0  ;;  %v5041_v51 = vcombine.high %v5039_v9, %v5039_v9  ;;  %v5529_v13 = vrot.slane %v5039_v9, 7 }
 0x6d7   : > { %v5527_v17 = vsel %vm14640_vm5, %v7731_v41, %v5526_v15  ;;  %v5528_v29 = vrot.slane %v5526_v15, 2  ;;  %v5531_v10 = vrot.slane %v5529_v13, 2  ;;  %v5532_v12 = vrot.slane %v5041_v51, 7 }
 0x6d8   : > { %v5927_v0 = vcombine.low %v5523_v53, %v5527_v17  ;;  %v4523_v40 = vpop.f32.mrb[84].mxu0 }
 0x6d9   : > { %v4524_v58 = vadd.f32 %v4523_v40, %v4167_v35  ;;  %v4525_v39 = vpop.f32.mrb[85].mxu0  ;;  %v5530_v54 = vsel %vm14640_vm5, %v5528_v29, %v5529_v13  ;;  %v5533_v4 = vsel %vm14640_vm5, %v5531_v10, %v5532_v12 }
 0x6da   : > { %v5941_v56 = vrot.slane %v5927_v0, %v17106_v49  ;;  %v5943_v1 = vcombine.low %v5530_v54, %v5533_v4 }
 0x6db   : > { %v4682_v2 = vmax.f32 %v4524_v58, 0.0 }
 0x6dc   : > { %v5942_v23 = vcombine.low %v5934_v16, %v5941_v56 }
 0x6dd   : > { %v5042_v19 = vcombine.high %v4682_v2, %v4682_v2  ;;  %v5049_v59 = vrot.slane %v4682_v2, %v17106_v49 }
 0x6de   : > { %7891 = vmatmul.mubr.msk.f32.gmra.mrb[136].mxu0 %vm987_vm14, %v5942_v23 }
 0x6df   : > { %v4528_v61 = vpop.f32.mrb[86].mxu0  ;;  %v5056_v21 = vrot.slane %v5042_v19, %v17106_v49  ;;  %v5057_v57 = vcombine.high %v5049_v59, %v5049_v59  ;;  %7893 = vmatprep.mubr.msk.f32.mxu0 %vm17160_vm11, %v17159_v43  ;;  %v7732_v45 = vrot.slane %v5049_v59, 9 }
 0x6e0   : > { %v4529_v55 = vadd.f32 %v4528_v61, %v4172_v14  ;;  %v4530_v44 = vpop.f32.mrb[87].mxu0 }
 0x6e1   : > { %v5058_v63 = vcombine.high %v5056_v21, %v5056_v21  ;;  %v5536_v11 = vrot.slane %v5057_v57, 7  ;;  %v5539_v27 = vrot.slane %v5056_v21, 7 }
 0x6e2   : > { %v4683_v3 = vmax.f32 %v4529_v55, 0.0 }
 0x6e3   : > { %v4272_v30 = vpop.f32.mrb[112].mxu1  ;;  %v4533_v47 = vpop.f32.mrb[88].mxu0  ;;  %v5538_v31 = vrot.slane %v5536_v11, 2  ;;  %v5541_v9 = vrot.slane %v5539_v27, 2  ;;  %v5542_v37 = vrot.slane %v5058_v63, 7  ;;  %v5537_v18 = vsel %vm14640_vm5, %v7732_v45, %v5536_v11 }
 0x6e4   : > { %v5059_v20 = vcombine.high %v4683_v3, %v4683_v3  ;;  %v4273_v42 = vpop.f32.mrb[113].mxu1  ;;  %v4535_v33 = vpop.f32.mrb[89].mxu0  ;;  %v5066_v50 = vrot.slane %v4683_v3, %v17106_v49  ;;  %v4534_v62 = vadd.f32 %v4533_v47, %v4177_v36  ;;  %v5951_v36 = vrot.slane %v5943_v1, %v17106_v49 }
 0x6e5   : > { %v5540_v32 = vsel %vm14640_vm5, %v5538_v31, %v5539_v27  ;;  %v5543_v0 = vsel %vm14640_vm5, %v5541_v9, %v5542_v37 }
 0x6e6   : > { %v5073_v48 = vrot.slane %v5059_v20, %v17106_v49  ;;  %v5074_v41 = vcombine.high %v5066_v50, %v5066_v50  ;;  %v4684_v15 = vmax.f32 %v4534_v62, 0.0  ;;  %v7733_v35 = vrot.slane %v5066_v50, 9 }
 0x6e7   : > { %v5944_v39 = vcombine.low %v5537_v18, %v5540_v32 }
 0x6e8   : > { %v4538_v26 = vpop.f32.mrb[90].mxu0  ;;  %v5075_v13 = vcombine.high %v5073_v48, %v5073_v48  ;;  %v5546_v40 = vrot.slane %v5074_v41, 7  ;;  %v5549_v58 = vrot.slane %v5073_v48, 7  ;;  %v5076_v16 = vcombine.high %v4684_v15, %v4684_v15 }
 0x6e9   : > { %v4276_v46 = vpop.f32.mrb[114].mxu1  ;;  %v4539_v53 = vadd.f32 %v4538_v26, %v4182_v24  ;;  %v4540_v51 = vpop.f32.mrb[91].mxu0  ;;  %v5083_v56 = vrot.slane %v4684_v15, %v17106_v49  ;;  %v5958_v33 = vrot.slane %v5944_v39, %v17106_v49 }
 0x6ea   : > { %v4277_v17 = vpop.f32.mrb[115].mxu1  ;;  %v5547_v14 = vsel %vm14640_vm5, %v7733_v35, %v5546_v40  ;;  %v5548_v2 = vrot.slane %v5546_v40, 2  ;;  %v5551_v29 = vrot.slane %v5549_v58, 2  ;;  %v5552_v10 = vrot.slane %v5075_v13, 7 }
 0x6eb   : > { %v4685_v8 = vmax.f32 %v4539_v53, 0.0  ;;  %v15212_v23 = vcombine.low %v5543_v0, %v5547_v14  ;;  %v5090_v19 = vrot.slane %v5076_v16, %v17106_v49  ;;  %v5091_v59 = vcombine.high %v5083_v56, %v5083_v56 }
 0x6ec   : > { %v5550_v21 = vsel %vm14640_vm5, %v5548_v2, %v5549_v58  ;;  %v7734_v57 = vrot.slane %v5083_v56, 9  ;;  %v5553_v63 = vsel %vm14640_vm5, %v5551_v29, %v5552_v10  ;;  %v5959_v18 = vcombine.low %v5951_v36, %v5958_v33 }
 0x6ed   : > { %v5093_v3 = vcombine.high %v4685_v8, %v4685_v8  ;;  %v5100_v24 = vrot.slane %v4685_v8, %v17106_v49  ;;  %v5092_v54 = vcombine.high %v5090_v19, %v5090_v19  ;;  %v5556_v4 = vrot.slane %v5091_v59, 7 }
 0x6ee   : > { %v4543_v61 = vpop.f32.mrb[92].mxu0  ;;  %v5559_v30 = vrot.slane %v5090_v19, 7  ;;  %7894 = vmatmul.mubr.msk.f32.gmra.mrb[138].mxu0 %vm987_vm14, %v5959_v18  ;;  %v5961_v2 = vcombine.low %v5550_v21, %v5553_v63 }
 0x6ef   : > { %v4545_v44 = vpop.f32.mrb[93].mxu0  ;;  %v4544_v47 = vadd.f32 %v4543_v61, %v4187_v5  ;;  %v5107_v11 = vrot.slane %v5093_v3, %v17106_v49  ;;  %v5108_v27 = vcombine.high %v5100_v24, %v5100_v24  ;;  %v5558_v50 = vrot.slane %v5556_v4, 2  ;;  %7896 = vmatprep.mubr.msk.f32.mxu0 %vm17160_vm11, %v17159_v43 }
 0x6f0   : > { %v4280_v12 = vpop.f32.mrb[116].mxu1  ;;  %v5561_v62 = vrot.slane %v5559_v30, 2  ;;  %v5562_v45 = vrot.slane %v5092_v54, 7  ;;  %v7735_v31 = vrot.slane %v5100_v24, 9  ;;  %v5557_v46 = vsel %vm14640_vm5, %v7734_v57, %v5556_v4 }
 0x6f1   : > { %v4281_v55 = vpop.f32.mrb[117].mxu1  ;;  %v5109_v48 = vcombine.high %v5107_v11, %v5107_v11  ;;  %v5566_v41 = vrot.slane %v5108_v27, 7  ;;  %v5569_v15 = vrot.slane %v5107_v11, 7  ;;  %v4686_v5 = vmax.f32 %v4544_v47, 0.0 }
 0x6f2   : > { %v4548_v42 = vpop.f32.mrb[94].mxu0  ;;  %v5560_v26 = vsel %vm14640_vm5, %v5558_v50, %v5559_v30  ;;  %v5563_v32 = vsel %vm14640_vm5, %v5561_v62, %v5562_v45  ;;  %v5968_v61 = vrot.slane %v15212_v23, %v17106_v49  ;;  %v5975_v44 = vrot.slane %v5961_v2, %v17106_v49 }
 0x6f3   : > { %v4550_v37 = vpop.f32.mrb[95].mxu0  ;;  %v4549_v1 = vadd.f32 %v4548_v42, %v15195_v38  ;;  %v5567_v35 = vsel %vm14640_vm5, %v7735_v31, %v5566_v41  ;;  %v5568_v53 = vrot.slane %v5566_v41, 2  ;;  %v5571_v17 = vrot.slane %v5569_v15, 2 }
 0x6f4   : > { %v4284_v20 = vpop.f32.mrb[118].mxu1  ;;  %v5572_v0 = vrot.slane %v5109_v48, 7  ;;  %v5978_v40 = vcombine.low %v5563_v32, %v5567_v35  ;;  %v5110_v58 = vcombine.high %v4686_v5, %v4686_v5  ;;  %v5117_v39 = vrot.slane %v4686_v5, %v17106_v49 }
 0x6f5   : > { %v4285_v9 = vpop.f32.mrb[119].mxu1  ;;  %v5977_v56 = vcombine.low %v5557_v46, %v5560_v26  ;;  %v5570_v8 = vsel %vm14640_vm5, %v5568_v53, %v5569_v15  ;;  %v4687_v14 = vmax.f32 %v4549_v1, 0.0  ;;  %v5976_v63 = vcombine.low %v5968_v61, %v5975_v44 }
 0x6f6   : > { %v5573_v29 = vsel %vm14640_vm5, %v5571_v17, %v5572_v0  ;;  %v5124_v10 = vrot.slane %v5110_v58, %v17106_v49  ;;  %v5125_v12 = vcombine.high %v5117_v39, %v5117_v39  ;;  %v7736_v19 = vrot.slane %v5117_v39, 9 }
 0x6f7   : > { %v5127_v59 = vcombine.high %v4687_v14, %v4687_v14  ;;  %v5134_v55 = vrot.slane %v4687_v14, %v17106_v49  ;;  %v5992_v4 = vrot.slane %v5978_v40, %v17106_v49  ;;  %v5985_v23 = vrot.slane %v5977_v56, %v17106_v49  ;;  %7897 = vmatmul.mubr.msk.f32.gmra.mrb[140].mxu0 %vm987_vm14, %v5976_v63 }
 0x6f8   : > { %v4288_v51 = vpop.f32.mrb[120].mxu1  ;;  %v4553_v13 = vpop.f32.mrb[96].mxu0  ;;  %v5126_v57 = vcombine.high %v5124_v10, %v5124_v10  ;;  %v5576_v3 = vrot.slane %v5125_v12, 7  ;;  %v5579_v24 = vrot.slane %v5124_v10, 7  ;;  %7899 = vmatprep.mubr.msk.f32.mxu0 %vm17160_vm11, %v17159_v43  ;;  %v5994_v46 = vcombine.low %v5570_v8, %v5573_v29 }
 0x6f9   : > { %v4289_v16 = vpop.f32.mrb[121].mxu1  ;;  %v4554_v38 = vpop.f32.mrb[97].mxu0  ;;  %v5141_v30 = vrot.slane %v5127_v59, %v17106_v49  ;;  %v5142_v47 = vcombine.high %v5134_v55, %v5134_v55  ;;  %v7737_v33 = vrot.slane %v5134_v55, 9  ;;  %v5993_v31 = vcombine.low %v5985_v23, %v5992_v4 }
 0x6fa   : > { %v5578_v27 = vrot.slane %v5576_v3, 2  ;;  %v5581_v20 = vrot.slane %v5579_v24, 2  ;;  %v5582_v42 = vrot.slane %v5126_v57, 7  ;;  %v5577_v37 = vsel %vm14640_vm5, %v7736_v19, %v5576_v3 }
 0x6fb   : > { %v5143_v50 = vcombine.high %v5141_v30, %v5141_v30  ;;  %v5586_v62 = vrot.slane %v5142_v47, 7  ;;  %v5589_v45 = vrot.slane %v5141_v30, 7  ;;  %v4210_v13 = vadd.f32 %v15071_v25, %v15052_v52  ;;  %7900 = vmatmul.mubr.msk.f32.gmra.mrb[142].mxu0 %vm987_vm14, %v5993_v31 }
 0x6fc   : > { %v4292_v36 = vpop.f32.mrb[122].mxu1  ;;  %v5580_v48 = vsel %vm14640_vm5, %v5578_v27, %v5579_v24  ;;  %v5583_v41 = vsel %vm14640_vm5, %v5581_v20, %v5582_v42  ;;  %v6002_v58 = vrot.slane %v5994_v46, %v17106_v49  ;;  %7902 = vmatprep.mubr.msk.f32.mxu0 %vm17160_vm11, %v17159_v43 }
 0x6fd   : > { %v4293_v54 = vpop.f32.mrb[123].mxu1  ;;  %v5995_v26 = vcombine.low %v5577_v37, %v5580_v48  ;;  %v5587_v1 = vsel %vm14640_vm5, %v7737_v33, %v5586_v62  ;;  %v5588_v18 = vrot.slane %v5586_v62, 2  ;;  %v5591_v32 = vrot.slane %v5589_v45, 2 }
 0x6fe   : > { %v5592_v53 = vrot.slane %v5143_v50, 7  ;;  %v6011_v17 = vcombine.low %v5583_v41, %v5587_v1  ;;  %v4215_v37 = vadd.f32 %v15071_v25, %v15078_v22 }
 0x6ff   : > { %v5590_v0 = vsel %vm14640_vm5, %v5588_v18, %v5589_v45  ;;  %v6009_v39 = vrot.slane %v5995_v26, %v17106_v49 }
 0x700   : > { %v5593_v16 = vsel %vm14640_vm5, %v5591_v32, %v5592_v53  ;;  %v6019_v61 = vrot.slane %v6011_v17, %v17106_v49 }
 0x701   : > { %v4557_v21 = vpop.f32.mrb[98].mxu0  ;;  %v6010_v8 = vcombine.low %v6002_v58, %v6009_v39  ;;  %v6012_v2 = vcombine.low %v5590_v0, %v5593_v16 }
 0x702   : > { %v4558_v11 = vpop.f32.mrb[99].mxu0 }
 0x703   : > { %v4296_v9 = vpop.f32.mrb[124].mxu1  ;;  %7903 = vmatmul.mubr.msk.f32.gmra.mrb[144].mxu0 %vm987_vm14, %v6010_v8  ;;  %v6026_v19 = vrot.slane %v6012_v2, %v17106_v49 }
 0x704   : > { %v4297_v5 = vpop.f32.mrb[125].mxu1  ;;  %7905 = vmatprep.mubr.msk.f32.mxu0 %vm17160_vm11, %v17159_v43 }
 0x705   : > { %v6027_v36 = vcombine.low %v6019_v61, %v6026_v19 }
 0x706   : > { %v4561_v15 = vpop.f32.mrb[100].mxu0 }
 0x707   : > { %v4563_v35 = vpop.f32.mrb[101].mxu0  ;;  %v4562_v51 = vadd.f32 %v4561_v15, %v15199_v60  ;;  %7906 = vmatmul.mubr.msk.f32.gmra.mrb[146].mxu0 %vm987_vm14, %v6027_v36 }
 0x708   : > { %7908 = vmatprep.mubr.msk.f32.mxu0 %vm17160_vm11, %v17159_v43 }
 0x709   : > { %v4300_v40 = vpop.f32.mrb[126].mxu1  ;;  %v4688_v38 = vmax.f32 %v4562_v51, 0.0 }
 0x70a   : > { %v4301_v56 = vpop.f32.mrb[127].mxu1  ;;  %v4220_v40 = vadd.f32 %v15071_v25, %v15094_v7 }
 0x70b   : > { %v5144_v29 = vcombine.high %v4688_v38, %v4688_v38  ;;  %v5151_v10 = vrot.slane %v4688_v38, %v17106_v49 }
 0x70d   : > { %v4566_v60 = vpop.f32.mrb[102].mxu0  ;;  %v5158_v59 = vrot.slane %v5144_v29, %v17106_v49  ;;  %v5159_v55 = vcombine.high %v5151_v10, %v5151_v10  ;;  %v7738_v4 = vrot.slane %v5151_v10, 9 }
 0x70e   : > { %v4567_v52 = vadd.f32 %v4566_v60, %v4210_v13  ;;  %v4568_v14 = vpop.f32.mrb[103].mxu0 }
 0x70f   : > { %v5160_v57 = vcombine.high %v5158_v59, %v5158_v59  ;;  %v5596_v3 = vrot.slane %v5159_v55, 7  ;;  %v5599_v24 = vrot.slane %v5158_v59, 7 }
 0x710   : > { %v4689_v12 = vmax.f32 %v4567_v52, 0.0 }
 0x711   : > { %v5598_v30 = vrot.slane %v5596_v3, 2  ;;  %v5601_v47 = vrot.slane %v5599_v24, 2  ;;  %v5602_v63 = vrot.slane %v5160_v57, 7  ;;  %v5597_v27 = vsel %vm14640_vm5, %v7738_v4, %v5596_v3 }
 0x712   : > { %v5168_v44 = vrot.slane %v4689_v12, %v17106_v49  ;;  %v5161_v21 = vcombine.high %v4689_v12, %v4689_v12 }
 0x713   : > { %v5600_v20 = vsel %vm14640_vm5, %v5598_v30, %v5599_v24  ;;  %v5603_v62 = vsel %vm14640_vm5, %v5601_v47, %v5602_v63  ;;  %v4230_v24 = vadd.f32 %v15071_v25, %v15116_v28 }
 0x714   : > { %v5176_v54 = vcombine.high %v5168_v44, %v5168_v44  ;;  %v7739_v11 = vrot.slane %v5168_v44, 9  ;;  %v5175_v42 = vrot.slane %v5161_v21, %v17106_v49  ;;  %v6028_v50 = vcombine.low %v5597_v27, %v5600_v20 }
 0x715   : > { %v4304_v33 = vpop.f32.mrb[128].mxu1  ;;  %v4225_v44 = vadd.f32 %v15071_v25, %v15104_v34 }
 0x716   : > { %v5606_v23 = vrot.slane %v5176_v54, 7  ;;  %v4305_v31 = vpop.f32.mrb[129].mxu1  ;;  %v5177_v48 = vcombine.high %v5175_v42, %v5175_v42  ;;  %v5609_v41 = vrot.slane %v5175_v42, 7  ;;  %v6036_v15 = vrot.slane %v6028_v50, %v17106_v49 }
 0x718   : > { %v5607_v45 = vsel %vm14640_vm5, %v7739_v11, %v5606_v23  ;;  %v5608_v32 = vrot.slane %v5606_v23, 2  ;;  %v5611_v35 = vrot.slane %v5609_v41, 2  ;;  %v5612_v53 = vrot.slane %v5177_v48, 7 }
 0x719   : > { %v6029_v9 = vcombine.low %v5603_v62, %v5607_v45 }
 0x71a   : > { %v5610_v58 = vsel %vm14640_vm5, %v5608_v32, %v5609_v41  ;;  %v5613_v39 = vsel %vm14640_vm5, %v5611_v35, %v5612_v53 }
 0x71b   : > { %v6043_v5 = vrot.slane %v6029_v9, %v17106_v49  ;;  %v4571_v46 = vpop.f32.mrb[104].mxu0  ;;  %v15306_v61 = vcombine.low %v5610_v58, %v5613_v39 }
 0x71c   : > { %v4572_v26 = vadd.f32 %v4571_v46, %v4215_v37  ;;  %v4573_v1 = vpop.f32.mrb[105].mxu0 }
 0x71d   : > { %v6044_v18 = vcombine.low %v6036_v15, %v6043_v5  ;;  %v6053_v27 = vrot.slane %v15306_v61, %v17106_v49 }
 0x71e   : > { %v4690_v17 = vmax.f32 %v4572_v26, 0.0  ;;  %v4591_v51 = vpop.f32.mrb[130].mxu1 }
 0x71f   : > { %7909 = vmatmul.mubr.msk.f32.gmra.mrb[148].mxu0 %vm987_vm14, %v6044_v18  ;;  %v4592_v0 = vpop.f32.mrb[131].mxu1 }
 0x720   : > { %7911 = vmatprep.mubr.msk.f32.mxu0 %vm17160_vm11, %v17159_v43  ;;  %v5178_v22 = vcombine.high %v4690_v17, %v4690_v17  ;;  %v5185_v13 = vrot.slane %v4690_v17, %v17106_v49 }
 0x722   : > { %v5192_v16 = vrot.slane %v5178_v22, %v17106_v49  ;;  %v5193_v38 = vcombine.high %v5185_v13, %v5185_v13  ;;  %v4576_v60 = vpop.f32.mrb[106].mxu0  ;;  %v4595_v8 = vpop.f32.mrb[132].mxu1  ;;  %v7740_v7 = vrot.slane %v5185_v13, 9 }
 0x723   : > { %v4577_v56 = vadd.f32 %v4576_v60, %v4220_v40  ;;  %v4578_v52 = vpop.f32.mrb[107].mxu0  ;;  %v4596_v10 = vpop.f32.mrb[133].mxu1 }
 0x724   : > { %v5194_v14 = vcombine.high %v5192_v16, %v5192_v16  ;;  %v5616_v2 = vrot.slane %v5193_v38, 7  ;;  %v5619_v29 = vrot.slane %v5192_v16, 7 }
 0x725   : > { %v4691_v12 = vmax.f32 %v4577_v56, 0.0 }
 0x726   : > { %v5618_v19 = vrot.slane %v5616_v2, 2  ;;  %v5621_v59 = vrot.slane %v5619_v29, 2  ;;  %v5622_v55 = vrot.slane %v5194_v14, 7  ;;  %v4599_v3 = vpop.f32.mrb[100].mxu1  ;;  %v5617_v21 = vsel %vm14640_vm5, %v7740_v7, %v5616_v2 }
 0x727   : > { %v5195_v36 = vcombine.high %v4691_v12, %v4691_v12  ;;  %v5202_v57 = vrot.slane %v4691_v12, %v17106_v49  ;;  %v8155_v30 = vadd.f32 %v15071_v25, %v4599_v3  ;;  %v4601_v47 = vpop.f32.mrb[101].mxu1 }
 0x728   : > { %v5620_v54 = vsel %vm14640_vm5, %v5618_v19, %v5619_v29  ;;  %v4581_v4 = vpop.f32.mrb[108].mxu0  ;;  %v5623_v28 = vsel %vm14640_vm5, %v5621_v59, %v5622_v55 }
 0x729   : > { %v6046_v63 = vcombine.low %v5617_v21, %v5620_v54  ;;  %v5209_v34 = vrot.slane %v5195_v36, %v17106_v49  ;;  %v5210_v11 = vcombine.high %v5202_v57, %v5202_v57  ;;  %v4583_v23 = vpop.f32.mrb[109].mxu0  ;;  %v7741_v20 = vrot.slane %v5202_v57, 9 }
 0x72a   : > { %v4582_v42 = vadd.f32 %v4581_v4, %v4225_v44  ;;  %v4694_v33 = vmax.f32 %v8155_v30, 0.0 }
 0x72b   : > { %v5211_v50 = vcombine.high %v5209_v34, %v5209_v34  ;;  %v5626_v62 = vrot.slane %v5210_v11, 7  ;;  %v5629_v45 = vrot.slane %v5209_v34, 7  ;;  %v4604_v31 = vpop.f32.mrb[102].mxu1  ;;  %v15324_v9 = vrot.slane %v6046_v63, %v17106_v49 }
 0x72c   : > { %v4692_v37 = vmax.f32 %v4582_v42, 0.0  ;;  %v5246_v48 = vcombine.high %v4694_v33, %v4694_v33  ;;  %v5253_v41 = vrot.slane %v4694_v33, %v17106_v49  ;;  %v8156_v5 = vadd.f32 %v15071_v25, %v4604_v31  ;;  %v4606_v46 = vpop.f32.mrb[103].mxu1 }
 0x72d   : > { %v4586_v15 = vpop.f32.mrb[110].mxu0  ;;  %v5627_v26 = vsel %vm14640_vm5, %v7741_v20, %v5626_v62  ;;  %v5628_v1 = vrot.slane %v5626_v62, 2  ;;  %v15330_v18 = vrot.slane %v5629_v45, 2  ;;  %v15332_v32 = vrot.slane %v5211_v50, 7  ;;  %v15372_v62 = vld [vmem:[%s15806_s10] ss:$0 sm:$0xff] }
 0x72e   : > { %v4588_v35 = vpop.f32.mrb[111].mxu0  ;;  %v15334_v53 = vcombine.low %v5623_v28, %v5627_v26  ;;  %v5212_v17 = vcombine.high %v4692_v37, %v4692_v37  ;;  %v5219_v51 = vrot.slane %v4692_v37, %v17106_v49  ;;  %v5260_v22 = vrot.slane %v5246_v48, %v17106_v49 }
 0x72f   : > { %v15340_v25 = vsel %vm14640_vm5, %v5628_v1, %v5629_v45  ;;  %v5633_v13 = vsel %vm14640_vm5, %v15330_v18, %v15332_v32  ;;  %v5261_v0 = vcombine.high %v5253_v41, %v5253_v41  ;;  %v7744_v40 = vrot.slane %v5253_v41, 9  ;;  %v4609_v58 = vpop.f32.mrb[104].mxu1 }
 0x730   : > { %v5226_v39 = vrot.slane %v5212_v17, %v17106_v49  ;;  %v5227_v16 = vcombine.high %v5219_v51, %v5219_v51  ;;  %v7742_v38 = vrot.slane %v5219_v51, 9  ;;  %v5262_v60 = vcombine.high %v5260_v22, %v5260_v22  ;;  %v4611_v52 = vpop.f32.mrb[105].mxu1 }
 0x731   : > { %v6301_v56 = vpop.f32.mrb[112].mxu0  ;;  %v5656_v8 = vrot.slane %v5261_v0, 7  ;;  %v5659_v14 = vrot.slane %v5260_v22, 7  ;;  %v4587_v2 = vadd.f32 %v4586_v15, %v4230_v24  ;;  %v4695_v29 = vmax.f32 %v8156_v5, 0.0 }
 0x732   : > { %v7856_v10 = vpop.f32.mrb[113].mxu0  ;;  %v5228_v12 = vcombine.high %v5226_v39, %v5226_v39  ;;  %v5636_v7 = vrot.slane %v5227_v16, 7  ;;  %v5639_v19 = vrot.slane %v5226_v39, 7  ;;  %v5662_v59 = vrot.slane %v5262_v60, 7  ;;  %v15386_v60 = vld [vmem:[%s15804_s8] ss:$0 sm:$0xff] }
 0x733   : > { %v15349_v55 = vsel %vm14640_vm5, %v7744_v40, %v5656_v8  ;;  %v5658_v44 = vrot.slane %v5656_v8, 2  ;;  %v5661_v36 = vrot.slane %v5659_v14, 2  ;;  %v4693_v57 = vmax.f32 %v4587_v2, 0.0  ;;  %v4614_v3 = vpop.f32.mrb[106].mxu1 }
 0x734   : > { %v15353_v21 = vsel %vm14640_vm5, %v7742_v38, %v5636_v7  ;;  %v5638_v54 = vrot.slane %v5636_v7, 2  ;;  %v5641_v24 = vrot.slane %v5639_v19, 2  ;;  %v5642_v4 = vrot.slane %v5228_v12, 7  ;;  %v4616_v47 = vpop.f32.mrb[107].mxu1 }
 0x735   : > { %v6306_v30 = vpop.f32.mrb[114].mxu0  ;;  %v15357_v63 = vsel %vm14640_vm5, %v5658_v44, %v5659_v14  ;;  %v5229_v34 = vcombine.high %v4693_v57, %v4693_v57  ;;  %v5236_v11 = vrot.slane %v4693_v57, %v17106_v49  ;;  %v5263_v23 = vcombine.high %v4695_v29, %v4695_v29 }
 0x736   : > { %v7859_v28 = vpop.f32.mrb[115].mxu0  ;;  %v15362_v20 = vsel %vm14640_vm5, %v5638_v54, %v5639_v19  ;;  %v6097_v42 = vcombine.low %v15349_v55, %v15357_v63  ;;  %v5643_v33 = vsel %vm14640_vm5, %v5641_v24, %v5642_v4  ;;  %v5270_v50 = vrot.slane %v4695_v29, %v17106_v49 }
 0x737   : > { %v6079_v45 = vcombine.low %v15353_v21, %v15362_v20  ;;  %v5243_v31 = vrot.slane %v5229_v34, %v17106_v49  ;;  %v5244_v37 = vcombine.high %v5236_v11, %v5236_v11  ;;  %v7743_v48 = vrot.slane %v5236_v11, 9  ;;  %v15377_v41 = vpop.f32.mrb[108].mxu1 }
 0x738   : > { %v5277_v15 = vrot.slane %v5263_v23, %v17106_v49  ;;  %v5278_v5 = vcombine.high %v5270_v50, %v5270_v50  ;;  %v5663_v46 = vsel %vm14640_vm5, %v5661_v36, %v5662_v59  ;;  %v7745_v26 = vrot.slane %v5270_v50, 9  ;;  %v4621_v35 = vpop.f32.mrb[109].mxu1 }
 0x739   : > { %v6311_v1 = vpop.f32.mrb[116].mxu0  ;;  %v5245_v17 = vcombine.high %v5243_v31, %v5243_v31  ;;  %v5646_v51 = vrot.slane %v5244_v37, 7  ;;  %v5649_v22 = vrot.slane %v5243_v31, 7  ;;  %v6302_v0 = vadd.f32 %v15372_v62, %v6301_v56 }
 0x73a   : > { %v7862_v40 = vpop.f32.mrb[117].mxu0  ;;  %v5279_v39 = vcombine.high %v5277_v15, %v5277_v15  ;;  %v5666_v16 = vrot.slane %v5278_v5, 7  ;;  %v5669_v38 = vrot.slane %v5277_v15, 7  ;;  %v8157_v52 = vadd.f32 %v15386_v60, %v4609_v58 }
 0x73b   : > { %v5647_v8 = vsel %vm14640_vm5, %v7743_v48, %v5646_v51  ;;  %v5648_v14 = vrot.slane %v5646_v51, 2  ;;  %v15391_v2 = vrot.slane %v5649_v22, 2  ;;  %v15393_v29 = vrot.slane %v5245_v17, 7  ;;  %v15395_v56 = vpop.f32.mrb[110].mxu1 }
 0x73c   : > { %v15397_v10 = vcombine.low %v5643_v33, %v5647_v8  ;;  %v5667_v12 = vsel %vm14640_vm5, %v7745_v26, %v5666_v16  ;;  %v5668_v7 = vrot.slane %v5666_v16, 2  ;;  %v15401_v19 = vrot.slane %v5669_v38, 2  ;;  %v4626_v59 = vpop.f32.mrb[111].mxu1 }
 0x73d   : > { %v15403_v58 = vpop.f32.mrb[118].mxu0  ;;  %v15407_v44 = vsel %vm14640_vm5, %v5648_v14, %v5649_v22  ;;  %v5653_v36 = vsel %vm14640_vm5, %v15391_v2, %v15393_v29  ;;  %v15413_v57 = vrot.slane %v5279_v39, 7  ;;  %v15415_v54 = vcombine.low %v5663_v46, %v5667_v12 }
 0x73e   : > { %v7865_v24 = vpop.f32.mrb[119].mxu0  ;;  %v15419_v4 = vsel %vm14640_vm5, %v5668_v7, %v5669_v38  ;;  %v6462_v47 = vcombine.high %v6302_v0, %v6302_v0  ;;  %v6469_v34 = vrot.slane %v6302_v0, %v17106_v49  ;;  %v4696_v11 = vmax.f32 %v8157_v52, 0.0 }
 0x73f   : > { %v5673_v23 = vsel %vm14640_vm5, %v15401_v19, %v15413_v57  ;;  %v6307_v28 = vadd.f32 %v15372_v62, %v6306_v30  ;;  %v6061_v33 = vcombine.low %v6053_v27, %v15324_v9  ;;  %v8158_v50 = vadd.f32 %v15386_v60, %v4614_v3  ;;  %v4629_v31 = vpop.f32.mrb[134].mxu1 }
 0x740   : > { %v6476_v37 = vrot.slane %v6462_v47, %v17106_v49  ;;  %v6477_v48 = vcombine.high %v6469_v34, %v6469_v34  ;;  %v5280_v15 = vcombine.high %v4696_v11, %v4696_v11  ;;  %v5287_v5 = vrot.slane %v4696_v11, %v17106_v49  ;;  %v4630_v46 = vpop.f32.mrb[135].mxu1 }
 0x741   : > { %v6479_v26 = vcombine.high %v6307_v28, %v6307_v28  ;;  %v6486_v35 = vrot.slane %v6307_v28, %v17106_v49  ;;  %7912 = vmatmul.mubr.msk.f32.gmra.mrb[150].mxu0 %vm987_vm14, %v6061_v33  ;;  %v4697_v30 = vmax.f32 %v8158_v50, 0.0  ;;  %v6312_v61 = vadd.f32 %v15372_v62, %v6311_v1 }
 0x742   : > { %v6921_v27 = vcombine.low %v6469_v34, %v6477_v48  ;;  %v6935_v9 = vrot.slane %v6476_v37, %v17106_v49  ;;  %v5294_v3 = vrot.slane %v5280_v15, %v17106_v49  ;;  %v5295_v17 = vcombine.high %v5287_v5, %v5287_v5  ;;  %7914 = vmatprep.mubr.msk.f32.mxu0 %vm17160_vm11, %v17159_v43 }
 0x743   : > { %v7746_v51 = vrot.slane %v5287_v5, 9  ;;  %v6478_v22 = vcombine.high %v6476_v37, %v6476_v37  ;;  %v6493_v0 = vrot.slane %v6479_v26, %v17106_v49  ;;  %v6494_v40 = vcombine.high %v6486_v35, %v6486_v35  ;;  %v4633_v39 = vpop.f32.mrb[136].mxu1 }
 0x744   : > { %v6928_v16 = vrot.slane %v6921_v27, %v17106_v49  ;;  %v5296_v38 = vcombine.high %v5294_v3, %v5294_v3  ;;  %v5676_v52 = vrot.slane %v5295_v17, 7  ;;  %v5679_v1 = vrot.slane %v5294_v3, 7  ;;  %v4634_v8 = vpop.f32.mrb[137].mxu1 }
 0x745   : > { %v6495_v14 = vcombine.high %v6493_v0, %v6493_v0  ;;  %v6937_v12 = vcombine.low %v6478_v22, %v6486_v35  ;;  %v6951_v7 = vrot.slane %v6494_v40, %v17106_v49  ;;  %v5297_v59 = vcombine.high %v4697_v30, %v4697_v30 }
 0x746   : > { %v6936_v24 = vcombine.low %v6928_v16, %v6935_v9  ;;  %v15452_v47 = vsel %vm14640_vm5, %v7746_v51, %v5676_v52  ;;  %v5678_v34 = vrot.slane %v5676_v52, 2  ;;  %v5681_v11 = vrot.slane %v5679_v1, 2 }
 0x747   : > { %v5682_v28 = vrot.slane %v5296_v38, 7  ;;  %v6944_v33 = vrot.slane %v6937_v12, %v17106_v49  ;;  %v6953_v50 = vcombine.low %v6493_v0, %v6495_v14  ;;  %v5304_v31 = vrot.slane %v4697_v30, %v17106_v49  ;;  %v4637_v37 = vpop.f32.mrb[138].mxu1 }
 0x748   : > { %7534 = vst.msk [vmem:[%s15447_s21] sm:$0x3f] %vm7533_vm12, %v6936_v24  ;;  %v15460_v48 = vsel %vm14640_vm5, %v5678_v34, %v5679_v1  ;;  %v5311_v15 = vrot.slane %v5297_v59, %v17106_v49  ;;  %v6496_v5 = vcombine.high %v6312_v61, %v6312_v61  ;;  %v6503_v46 = vrot.slane %v6312_v61, %v17106_v49  ;;  %v4638_v26 = vpop.f32.mrb[139].mxu1 }
 0x749   : > { %v6130_v35 = vcombine.low %v15452_v47, %v15460_v48  ;;  %v6952_v27 = vcombine.low %v6944_v33, %v6951_v7  ;;  %v5312_v9 = vcombine.high %v5304_v31, %v5304_v31  ;;  %v5683_v30 = vsel %vm14640_vm5, %v5681_v11, %v5682_v28 }
 0x74a   : > { %v5313_v3 = vcombine.high %v5311_v15, %v5311_v15  ;;  %v7747_v17 = vrot.slane %v5304_v31, 9  ;;  %v5689_v51 = vrot.slane %v5311_v15, 7  ;;  %v6510_v22 = vrot.slane %v6496_v5, %v17106_v49 }
 0x74b   : > { %7535 = vst.msk [vmem:[%s15447_s21 + $0x8] sm:$0x3f] %vm7533_vm12, %v6952_v27  ;;  %v5686_v0 = vrot.slane %v5312_v9, 7  ;;  %v6511_v40 = vcombine.high %v6503_v46, %v6503_v46  ;;  %v6960_v61 = vrot.slane %v6953_v50, %v17106_v49  ;;  %v6967_v39 = vrot.slane %v6503_v46, %v17106_v49  ;;  %v4641_v16 = vpop.f32.mrb[140].mxu1  ;;  %v15473_v38 = vpop.f32.mrb[120].mxu0 }
 0x74c   : > { %v15475_v52 = vrot.slane %v5689_v51, 2  ;;  %v15477_v1 = vrot.slane %v5313_v3, 7  ;;  %v6512_v8 = vcombine.high %v6510_v22, %v6510_v22  ;;  %v6063_v14 = vcombine.low %v15340_v25, %v5633_v13  ;;  %v4642_v12 = vpop.f32.mrb[141].mxu1  ;;  %v7868_v7 = vpop.f32.mrb[121].mxu0 }
 0x74d   : > { %v5687_v59 = vsel %vm14640_vm5, %v7747_v17, %v5686_v0  ;;  %v5688_v24 = vrot.slane %v5686_v0, 2  ;;  %v6968_v34 = vcombine.low %v6960_v61, %v6967_v39  ;;  %v6969_v11 = vcombine.low %v6511_v40, %v6510_v22 }
 0x74e   : > { %v5693_v28 = vsel %vm14640_vm5, %v15475_v52, %v15477_v1  ;;  %v15491_v33 = vcombine.low %v5683_v30, %v5687_v59  ;;  %v6983_v50 = vrot.slane %v6512_v8, %v17106_v49  ;;  %v6070_v18 = vrot.slane %v15334_v53, %v17106_v49 }
 0x74f   : > { %v15498_v32 = vsel %vm14640_vm5, %v5688_v24, %v5689_v51  ;;  %v6976_v25 = vrot.slane %v6969_v11, %v17106_v49  ;;  %7536 = vst.msk [vmem:[%s15447_s21 + $0x10] sm:$0x3f] %vm7533_vm12, %v6968_v34  ;;  %v6077_v13 = vrot.slane %v6063_v14, %v17106_v49  ;;  %v8159_v31 = vadd.f32 %v15386_v60, %v15377_v41  ;;  %v4645_v37 = vpop.f32.mrb[142].mxu1 }
 0x750   : > { %v6087_v53 = vrot.slane %v6079_v45, %v17106_v49  ;;  %v6094_v15 = vrot.slane %v15397_v10, %v17106_v49  ;;  %v8160_v5 = vadd.f32 %v15386_v60, %v15395_v56  ;;  %v6096_v46 = vcombine.low %v15407_v44, %v5653_v36  ;;  %v4646_v41 = vpop.f32.mrb[143].mxu1 }
 0x751   : > { %v6984_v26 = vcombine.low %v6976_v25, %v6983_v50  ;;  %v6078_v27 = vcombine.low %v6070_v18, %v6077_v13  ;;  %v4698_v9 = vmax.f32 %v8159_v31, 0.0  ;;  %v6111_v21 = vrot.slane %v6097_v42, %v17106_v49 }
 0x752   : > { %v6095_v20 = vcombine.low %v6087_v53, %v6094_v15  ;;  %v4699_v45 = vmax.f32 %v8160_v5, 0.0  ;;  %v6104_v60 = vrot.slane %v6096_v46, %v17106_v49  ;;  %v6114_v2 = vcombine.low %v15419_v4, %v5673_v23 }
 0x753   : > { %7537 = vst.msk [vmem:[%s15447_s21 + $0x18] sm:$0x3f] %vm7533_vm12, %v6984_v26  ;;  %7915 = vmatmul.mubr.msk.f32.gmra.mrb[152].mxu0 %vm987_vm14, %v6078_v27  ;;  %v5314_v29 = vcombine.high %v4698_v9, %v4698_v9  ;;  %v5321_v56 = vrot.slane %v4698_v9, %v17106_v49  ;;  %v6121_v55 = vrot.slane %v15415_v54, %v17106_v49  ;;  %v4649_v42 = vpop.f32.mrb[144].mxu1 }
 0x754   : > { %v6317_v63 = vadd.f32 %v15372_v62, %v15403_v58  ;;  %7917 = vmatprep.mubr.msk.f32.mxu0 %vm17160_vm11, %v17159_v43  ;;  %v5331_v10 = vcombine.high %v4699_v45, %v4699_v45  ;;  %v5338_v19 = vrot.slane %v4699_v45, %v17106_v49  ;;  %v6112_v44 = vcombine.low %v6104_v60, %v6111_v21  ;;  %v4650_v57 = vpop.f32.mrb[145].mxu1  ;;  %v15543_v4 = vpop.f32.mrb[122].mxu0 }
 0x755   : > { %v6128_v36 = vrot.slane %v6114_v2, %v17106_v49  ;;  %v5328_v23 = vrot.slane %v5314_v29, %v17106_v49  ;;  %v5329_v30 = vcombine.high %v5321_v56, %v5321_v56  ;;  %v7748_v54 = vrot.slane %v5321_v56, 9  ;;  %v7871_v17 = vpop.f32.mrb[123].mxu0 }
 0x756   : > { %v6513_v3 = vcombine.high %v6317_v63, %v6317_v63  ;;  %v5345_v58 = vrot.slane %v5331_v10, %v17106_v49  ;;  %v5346_v51 = vcombine.high %v5338_v19, %v5338_v19  ;;  %v7749_v22 = vrot.slane %v5338_v19, 9 }
 0x757   : > { %v6129_v0 = vcombine.low %v6121_v55, %v6128_v36  ;;  %v5330_v40 = vcombine.high %v5328_v23, %v5328_v23  ;;  %v5696_v61 = vrot.slane %v5329_v30, 7  ;;  %v5699_v39 = vrot.slane %v5328_v23, 7  ;;  %7918 = vmatmul.mubr.msk.f32.gmra.mrb[154].mxu0 %vm987_vm14, %v6095_v20  ;;  %v4653_v8 = vpop.f32.mrb[146].mxu1 }
 0x758   : > { %v6520_v16 = vrot.slane %v6317_v63, %v17106_v49  ;;  %v5347_v14 = vcombine.high %v5345_v58, %v5345_v58  ;;  %v5706_v12 = vrot.slane %v5346_v51, 7  ;;  %v5709_v7 = vrot.slane %v5345_v58, 7  ;;  %7920 = vmatprep.mubr.msk.f32.mxu0 %vm17160_vm11, %v17159_v43  ;;  %v4654_v24 = vpop.f32.mrb[147].mxu1  ;;  %v6331_v34 = vpop.f32.mrb[124].mxu0 }
 0x759   : > { %v6527_v59 = vrot.slane %v6513_v3, %v17106_v49  ;;  %v5697_v11 = vsel %vm14640_vm5, %v7748_v54, %v5696_v61  ;;  %v5698_v50 = vrot.slane %v5696_v61, 2  ;;  %v5701_v18 = vrot.slane %v5699_v39, 2  ;;  %v7874_v13 = vpop.f32.mrb[125].mxu0 }
 0x75a   : > { %v5702_v25 = vrot.slane %v5330_v40, 7  ;;  %v5707_v31 = vsel %vm14640_vm5, %v7749_v22, %v5706_v12  ;;  %v5708_v37 = vrot.slane %v5706_v12, 2  ;;  %v5711_v53 = vrot.slane %v5709_v7, 2 }
 0x75b   : > { %v5712_v15 = vrot.slane %v5347_v14, 7  ;;  %v5700_v5 = vsel %vm14640_vm5, %v5698_v50, %v5699_v39  ;;  %7921 = vmatmul.mubr.msk.f32.gmra.mrb[156].mxu0 %vm987_vm14, %v6112_v44  ;;  %v6528_v41 = vcombine.high %v6520_v16, %v6520_v16  ;;  %v6999_v26 = vrot.slane %v6527_v59, %v17106_v49  ;;  %v4657_v27 = vpop.f32.mrb[148].mxu1 }
 0x75c   : > { %v5703_v46 = vsel %vm14640_vm5, %v5701_v18, %v5702_v25  ;;  %v6148_v9 = vcombine.low %v5697_v11, %v5700_v5  ;;  %v5710_v21 = vsel %vm14640_vm5, %v5708_v37, %v5709_v7  ;;  %7923 = vmatprep.mubr.msk.f32.mxu0 %vm17160_vm11, %v17159_v43  ;;  %v4658_v60 = vpop.f32.mrb[149].mxu1  ;;  %v6336_v2 = vpop.f32.mrb[126].mxu0  ;;  %v6138_v56 = vrot.slane %v6130_v35, %v17106_v49 }
 0x75d   : > { %v5713_v20 = vsel %vm14640_vm5, %v5711_v53, %v5712_v15  ;;  %v6164_v45 = vcombine.low %v5703_v46, %v5707_v31  ;;  %v6985_v29 = vcombine.low %v6520_v16, %v6528_v41  ;;  %v6145_v55 = vrot.slane %v15491_v33, %v17106_v49  ;;  %v7877_v42 = vpop.f32.mrb[127].mxu0 }
 0x75e   : > { %v6147_v63 = vcombine.low %v15498_v32, %v5693_v28  ;;  %v6162_v10 = vrot.slane %v6148_v9, %v17106_v49  ;;  %v6165_v19 = vcombine.low %v5710_v21, %v5713_v20  ;;  %v6322_v47 = vadd.f32 %v15372_v62, %v15473_v38 }
 0x75f   : > { %v6172_v44 = vrot.slane %v6164_v45, %v17106_v49  ;;  %7924 = vmatmul.mubr.msk.f32.gmra.mrb[158].mxu0 %vm987_vm14, %v6129_v0  ;;  %v6992_v48 = vrot.slane %v6985_v29, %v17106_v49  ;;  %v6146_v35 = vcombine.low %v6138_v56, %v6145_v55  ;;  %v6529_v33 = vcombine.high %v6527_v59, %v6527_v59  ;;  %v4661_v52 = vpop.f32.mrb[150].mxu1 }
 0x760   : > { %v6155_v6 = vrot.slane %v6147_v63, %v17106_v49  ;;  %7926 = vmatprep.mubr.msk.f32.mxu0 %vm17160_vm11, %v17159_v43  ;;  %v6179_v1 = vrot.slane %v6165_v19, %v17106_v49  ;;  %v6530_v28 = vcombine.high %v6322_v47, %v6322_v47  ;;  %v6537_v32 = vrot.slane %v6322_v47, %v17106_v49  ;;  %v4662_v36 = vpop.f32.mrb[151].mxu1  ;;  %v6341_v57 = vpop.f32.mrb[128].mxu0 }
 0x761   : > { %v6327_v38 = vadd.f32 %v15372_v62, %v15543_v4  ;;  %v7000_v23 = vcombine.low %v6992_v48, %v6999_v26  ;;  %v6332_v54 = vadd.f32 %v15372_v62, %v6331_v34  ;;  %v6337_v3 = vadd.f32 %v15372_v62, %v6336_v2  ;;  %v7880_v17 = vpop.f32.mrb[129].mxu0 }
 0x762   : > { %v6163_v30 = vcombine.low %v6155_v6, %v6162_v10  ;;  %v6180_v58 = vcombine.low %v6172_v44, %v6179_v1  ;;  %v6544_v51 = vrot.slane %v6530_v28, %v17106_v49  ;;  %v6545_v22 = vcombine.high %v6537_v32, %v6537_v32 }
 0x763   : > { %v7001_v0 = vcombine.low %v6529_v33, %v6537_v32  ;;  %7538 = vst.msk [vmem:[%s15447_s21 + $0x20] sm:$0x3f] %vm7533_vm12, %v7000_v23  ;;  %7927 = vmatmul.mubr.msk.f32.gmra.mrb[160].mxu0 %vm987_vm14, %v6146_v35  ;;  %v6547_v40 = vcombine.high %v6327_v38, %v6327_v38  ;;  %v6554_v4 = vrot.slane %v6327_v38, %v17106_v49 }
 0x764   : > { %v6564_v61 = vcombine.high %v6332_v54, %v6332_v54  ;;  %v6571_v39 = vrot.slane %v6332_v54, %v17106_v49  ;;  %7929 = vmatprep.mubr.msk.f32.mxu0 %vm17160_vm11, %v17159_v43  ;;  %v6546_v16 = vcombine.high %v6544_v51, %v6544_v51  ;;  %v7015_v14 = vrot.slane %v6545_v22, %v17106_v49 }
 0x765   : > { %v7008_v8 = vrot.slane %v7001_v0, %v17106_v49  ;;  %v6581_v12 = vcombine.high %v6337_v3, %v6337_v3  ;;  %v6561_v7 = vrot.slane %v6547_v40, %v17106_v49  ;;  %v6562_v59 = vcombine.high %v6554_v4, %v6554_v4 }
 0x766   : > { %v7031_v24 = vrot.slane %v6554_v4, %v17106_v49  ;;  %v6578_v34 = vrot.slane %v6564_v61, %v17106_v49  ;;  %v7017_v50 = vcombine.low %v6544_v51, %v6546_v16  ;;  %v6579_v18 = vcombine.high %v6571_v39, %v6571_v39 }
 0x767   : > { %v7016_v11 = vcombine.low %v7008_v8, %v7015_v14  ;;  %v6588_v25 = vrot.slane %v6337_v3, %v17106_v49  ;;  %7930 = vmatmul.mubr.msk.f32.gmra.mrb[162].mxu0 %vm987_vm14, %v6163_v30  ;;  %v6563_v13 = vcombine.high %v6561_v7, %v6561_v7  ;;  %v7033_v31 = vcombine.low %v6562_v59, %v6561_v7 }
 0x768   : > { %v7063_v37 = vrot.slane %v6578_v34, %v17106_v49  ;;  %v6580_v53 = vcombine.high %v6578_v34, %v6578_v34  ;;  %7932 = vmatprep.mubr.msk.f32.mxu0 %vm17160_vm11, %v17159_v43  ;;  %v7024_v15 = vrot.slane %v7017_v50, %v17106_v49  ;;  %v7049_v5 = vcombine.low %v6571_v39, %v6579_v18 }
 0x769   : > { %7539 = vst.msk [vmem:[%s15447_s21 + $0x28] sm:$0x3f] %vm7533_vm12, %v7016_v11  ;;  %v6595_v46 = vrot.slane %v6581_v12, %v17106_v49  ;;  %v6596_v41 = vcombine.high %v6588_v25, %v6588_v25  ;;  %v7040_v26 = vrot.slane %v7033_v31, %v17106_v49  ;;  %v7047_v27 = vrot.slane %v6563_v13, %v17106_v49 }
 0x76a   : > { %v7065_v9 = vcombine.low %v6580_v53, %v6588_v25  ;;  %v6342_v21 = vadd.f32 %v15372_v62, %v6341_v57  ;;  %v7032_v20 = vcombine.low %v7024_v15, %v7031_v24  ;;  %v7056_v43 = vrot.slane %v7049_v5, %v17106_v49  ;;  %v6346_v47 = vpop.f32.mrb[130].mxu0 }
 0x76b   : > { %v6597_v45 = vcombine.high %v6595_v46, %v6595_v46  ;;  %v7079_v60 = vrot.slane %v6596_v41, %v17106_v49  ;;  %7933 = vmatmul.mubr.msk.f32.gmra.mrb[164].mxu0 %vm987_vm14, %v6180_v58  ;;  %v7048_v2 = vcombine.low %v7040_v26, %v7047_v27  ;;  %v6347_v6 = vadd.f32 %v15372_v62, %v6346_v47  ;;  %v7883_v33 = vpop.f32.mrb[131].mxu0 }
 0x76c   : > { %v7072_v29 = vrot.slane %v7065_v9, %v17106_v49  ;;  %v6598_v56 = vcombine.high %v6342_v21, %v6342_v21  ;;  %v6605_v55 = vrot.slane %v6342_v21, %v17106_v49  ;;  %7540 = vst.msk [vmem:[%s15447_s21 + $0x30] sm:$0x3f] %vm7533_vm12, %v7032_v20  ;;  %v7064_v63 = vcombine.low %v7056_v43, %v7063_v37 }
 0x76d   : > { %v7081_v42 = vcombine.low %v6595_v46, %v6597_v45  ;;  %7541 = vst.msk [vmem:[%s15447_s21 + $0x38] sm:$0x3f] %vm7533_vm12, %v7048_v2  ;;  %v6615_v32 = vcombine.high %v6347_v6, %v6347_v6  ;;  %v6622_v38 = vrot.slane %v6347_v6, %v17106_v49 }
 0x76e   : > { %v7080_v10 = vcombine.low %v7072_v29, %v7079_v60  ;;  %v6612_v19 = vrot.slane %v6598_v56, %v17106_v49  ;;  %v6613_v44 = vcombine.high %v6605_v55, %v6605_v55  ;;  %7542 = vst.msk [vmem:[%s15447_s21 + $0x40] sm:$0x3f] %vm7533_vm12, %v7064_v63  ;;  %v7095_v35 = vrot.slane %v6605_v55, %v17106_v49 }
 0x76f   : > { %v7088_v48 = vrot.slane %v7081_v42, %v17106_v49  ;;  %v6629_v23 = vrot.slane %v6615_v32, %v17106_v49  ;;  %v6630_v30 = vcombine.high %v6622_v38, %v6622_v38 }
 0x770   : > { %7543 = vst.msk [vmem:[%s15447_s21 + $0x48] sm:$0x3f] %vm7533_vm12, %v7080_v10  ;;  %v6614_v52 = vcombine.high %v6612_v19, %v6612_v19  ;;  %v7097_v1 = vcombine.low %v6613_v44, %v6612_v19 }
 0x771   : > { %v7096_v28 = vcombine.low %v7088_v48, %v7095_v35  ;;  %v6351_v3 = vpop.f32.mrb[132].mxu0  ;;  %v7113_v17 = vcombine.low %v6622_v38, %v6630_v30  ;;  %v7127_v0 = vrot.slane %v6629_v23, %v17106_v49  ;;  %v6631_v40 = vcombine.high %v6629_v23, %v6629_v23 }
 0x772   : > { %v7104_v36 = vrot.slane %v7097_v1, %v17106_v49  ;;  %v7111_v57 = vrot.slane %v6614_v52, %v17106_v49  ;;  %v6352_v58 = vadd.f32 %v15372_v62, %v6351_v3  ;;  %v7886_v51 = vpop.f32.mrb[133].mxu0 }
 0x773   : > { %7544 = vst.msk [vmem:[%s15447_s21 + $0x50] sm:$0x3f] %vm7533_vm12, %v7096_v28  ;;  %v7120_v22 = vrot.slane %v7113_v17, %v17106_v49 }
 0x774   : > { %v7112_v54 = vcombine.low %v7104_v36, %v7111_v57  ;;  %v6639_v4 = vrot.slane %v6352_v58, %v17106_v49  ;;  %v6632_v7 = vcombine.high %v6352_v58, %v6352_v58 }
 0x775   : > { %v7128_v61 = vcombine.low %v7120_v22, %v7127_v0 }
 0x776   : > { %7545 = vst.msk [vmem:[%s15447_s21 + $0x58] sm:$0x3f] %vm7533_vm12, %v7112_v54  ;;  %v6647_v39 = vcombine.high %v6639_v4, %v6639_v4  ;;  %v7129_v16 = vcombine.low %v6631_v40, %v6639_v4  ;;  %v6646_v59 = vrot.slane %v6632_v7, %v17106_v49 }
 0x777   : > { %7546 = vst.msk [vmem:[%s15447_s21 + $0x60] sm:$0x3f] %vm7533_vm12, %v7128_v61 }
 0x778   : > { %v7136_v8 = vrot.slane %v7129_v16, %v17106_v49  ;;  %v7143_v14 = vrot.slane %v6647_v39, %v17106_v49  ;;  %v6648_v24 = vcombine.high %v6646_v59, %v6646_v59 }
 0x77a   : > { %v7144_v12 = vcombine.low %v7136_v8, %v7143_v14  ;;  %v7145_v11 = vcombine.low %v6646_v59, %v6648_v24 }
 0x77c   : > { %7547 = vst.msk [vmem:[%s15447_s21 + $0x68] sm:$0x3f] %vm7533_vm12, %v7144_v12  ;;  %v7152_v53 = vrot.slane %v7145_v11, %v17106_v49 }
 0x7a3   : > { %v6356_v34 = vpop.f32.mrb[134].mxu0 }
 0x7a4   : > { %v6357_v50 = vadd.f32 %v15372_v62, %v6356_v34  ;;  %v7889_v18 = vpop.f32.mrb[135].mxu0 }
 0x7a6   : > { %v6649_v25 = vcombine.high %v6357_v50, %v6357_v50  ;;  %v6656_v13 = vrot.slane %v6357_v50, %v17106_v49 }
 0x7a8   : > { %v6663_v31 = vrot.slane %v6649_v25, %v17106_v49  ;;  %v6664_v37 = vcombine.high %v6656_v13, %v6656_v13  ;;  %v7159_v15 = vrot.slane %v6656_v13, %v17106_v49 }
 0x7aa   : > { %v6665_v5 = vcombine.high %v6663_v31, %v6663_v31  ;;  %v7160_v46 = vcombine.low %v7152_v53, %v7159_v15  ;;  %v7161_v41 = vcombine.low %v6664_v37, %v6663_v31 }
 0x7ac   : > { %v7168_v26 = vrot.slane %v7161_v41, %v17106_v49  ;;  %v7175_v27 = vrot.slane %v6665_v5, %v17106_v49  ;;  %7548 = vst.msk [vmem:[%s15447_s21 + $0x70] sm:$0x3f] %vm7533_vm12, %v7160_v46 }
 0x7ae   : > { %v7176_v9 = vcombine.low %v7168_v26, %v7175_v27 }
 0x7b0   : > { %7549 = vst.msk [vmem:[%s15447_s21 + $0x78] sm:$0x3f] %vm7533_vm12, %v7176_v9 }
 0x7b1   : > { %v6361_v21 = vpop.f32.mrb[136].mxu0 }
 0x7b2   : > { %v6362_v20 = vadd.f32 %v15372_v62, %v6361_v21  ;;  %v7892_v43 = vpop.f32.mrb[137].mxu0 }
 0x7b4   : > { %v6666_v45 = vcombine.high %v6362_v20, %v6362_v20  ;;  %v6673_v60 = vrot.slane %v6362_v20, %v17106_v49 }
 0x7b6   : > { %v6680_v2 = vrot.slane %v6666_v45, %v17106_v49  ;;  %v6681_v29 = vcombine.high %v6673_v60, %v6673_v60 }
 0x7b8   : > { %v7177_v56 = vcombine.low %v6673_v60, %v6681_v29  ;;  %v7191_v63 = vrot.slane %v6680_v2, %v17106_v49  ;;  %v6682_v47 = vcombine.high %v6680_v2, %v6680_v2 }
 0x7ba   : > { %v7184_v55 = vrot.slane %v7177_v56, %v17106_v49 }
 0x7bc   : > { %v7192_v42 = vcombine.low %v7184_v55, %v7191_v63 }
 0x7be   : > { %7550 = vst.msk [vmem:[%s15447_s21 + $0x80] sm:$0x3f] %vm7533_vm12, %v7192_v42 }
 0x7c1   : > { %v6366_v10 = vpop.f32.mrb[138].mxu0 }
 0x7c2   : > { %v6367_v19 = vadd.f32 %v15372_v62, %v6366_v10  ;;  %v7895_v44 = vpop.f32.mrb[139].mxu0 }
 0x7c4   : > { %v6683_v48 = vcombine.high %v6367_v19, %v6367_v19  ;;  %v6690_v35 = vrot.slane %v6367_v19, %v17106_v49 }
 0x7c6   : > { %v6697_v6 = vrot.slane %v6683_v48, %v17106_v49  ;;  %v6698_v33 = vcombine.high %v6690_v35, %v6690_v35  ;;  %v7193_v52 = vcombine.low %v6682_v47, %v6690_v35 }
 0x7c8   : > { %v6699_v1 = vcombine.high %v6697_v6, %v6697_v6  ;;  %v7200_v28 = vrot.slane %v7193_v52, %v17106_v49  ;;  %v7207_v32 = vrot.slane %v6698_v33, %v17106_v49 }
 0x7ca   : > { %v6371_v38 = vpop.f32.mrb[140].mxu0  ;;  %v7208_v23 = vcombine.low %v7200_v28, %v7207_v32  ;;  %v7209_v30 = vcombine.low %v6697_v6, %v6699_v1 }
 0x7cb   : > { %v6372_v36 = vadd.f32 %v15372_v62, %v6371_v38  ;;  %v7898_v57 = vpop.f32.mrb[141].mxu0 }
 0x7cc   : > { %7551 = vst.msk [vmem:[%s15447_s21 + $0x88] sm:$0x3f] %vm7533_vm12, %v7208_v23  ;;  %v7216_v17 = vrot.slane %v7209_v30, %v17106_v49 }
 0x7cd   : > { %v6700_v54 = vcombine.high %v6372_v36, %v6372_v36  ;;  %v6707_v3 = vrot.slane %v6372_v36, %v17106_v49 }
 0x7ce   : > { %v6376_v58 = vpop.f32.mrb[142].mxu0 }
 0x7cf   : > { %v6714_v51 = vrot.slane %v6700_v54, %v17106_v49  ;;  %v6715_v22 = vcombine.high %v6707_v3, %v6707_v3  ;;  %v7223_v0 = vrot.slane %v6707_v3, %v17106_v49  ;;  %v6377_v40 = vadd.f32 %v15372_v62, %v6376_v58  ;;  %v7901_v4 = vpop.f32.mrb[143].mxu0 }
 0x7d1   : > { %v6716_v61 = vcombine.high %v6714_v51, %v6714_v51  ;;  %v7224_v39 = vcombine.low %v7216_v17, %v7223_v0  ;;  %v7225_v16 = vcombine.low %v6715_v22, %v6714_v51  ;;  %v6717_v8 = vcombine.high %v6377_v40, %v6377_v40 }
 0x7d2   : > { %v6724_v14 = vrot.slane %v6377_v40, %v17106_v49 }
 0x7d3   : > { %v7232_v7 = vrot.slane %v7225_v16, %v17106_v49  ;;  %v7239_v59 = vrot.slane %v6716_v61, %v17106_v49  ;;  %7552 = vst.msk [vmem:[%s15447_s21 + $0x90] sm:$0x3f] %vm7533_vm12, %v7224_v39  ;;  %v6731_v24 = vrot.slane %v6717_v8, %v17106_v49 }
 0x7d4   : > { %v6732_v50 = vcombine.high %v6724_v14, %v6724_v14 }
 0x7d5   : > { %v7240_v18 = vcombine.low %v7232_v7, %v7239_v59  ;;  %v6733_v31 = vcombine.high %v6731_v24, %v6731_v24  ;;  %v7255_v26 = vrot.slane %v6731_v24, %v17106_v49 }
 0x7d6   : > { %v6381_v12 = vpop.f32.mrb[144].mxu0  ;;  %v7241_v13 = vcombine.low %v6724_v14, %v6732_v50 }
 0x7d7   : > { %v6382_v34 = vadd.f32 %v15372_v62, %v6381_v12  ;;  %v7904_v11 = vpop.f32.mrb[145].mxu0  ;;  %7553 = vst.msk [vmem:[%s15447_s21 + $0x98] sm:$0x3f] %vm7533_vm12, %v7240_v18 }
 0x7d8   : > { %v7248_v41 = vrot.slane %v7241_v13, %v17106_v49 }
 0x7d9   : > { %v6734_v25 = vcombine.high %v6382_v34, %v6382_v34  ;;  %v6741_v37 = vrot.slane %v6382_v34, %v17106_v49 }
 0x7da   : > { %v6386_v53 = vpop.f32.mrb[146].mxu0  ;;  %v7256_v45 = vcombine.low %v7248_v41, %v7255_v26 }
 0x7db   : > { %v6748_v15 = vrot.slane %v6734_v25, %v17106_v49  ;;  %v6387_v5 = vadd.f32 %v15372_v62, %v6386_v53  ;;  %v7907_v46 = vpop.f32.mrb[147].mxu0  ;;  %v6749_v27 = vcombine.high %v6741_v37, %v6741_v37  ;;  %v7257_v9 = vcombine.low %v6733_v31, %v6741_v37 }
 0x7dc   : > { %7554 = vst.msk [vmem:[%s15447_s21 + $0xa0] sm:$0x3f] %vm7533_vm12, %v7256_v45 }
 0x7dd   : > { %v6750_v21 = vcombine.high %v6748_v15, %v6748_v15  ;;  %v6751_v20 = vcombine.high %v6387_v5, %v6387_v5  ;;  %v6758_v43 = vrot.slane %v6387_v5, %v17106_v49  ;;  %v7264_v60 = vrot.slane %v7257_v9, %v17106_v49 }
 0x7de   : > { %v7271_v2 = vrot.slane %v6749_v27, %v17106_v49 }
 0x7df   : > { %v7273_v29 = vcombine.low %v6748_v15, %v6750_v21  ;;  %v6765_v56 = vrot.slane %v6751_v20, %v17106_v49  ;;  %v6766_v55 = vcombine.high %v6758_v43, %v6758_v43  ;;  %v7287_v19 = vrot.slane %v6758_v43, %v17106_v49 }
 0x7e0   : > { %v7272_v63 = vcombine.low %v7264_v60, %v7271_v2 }
 0x7e1   : > { %v6767_v42 = vcombine.high %v6765_v56, %v6765_v56  ;;  %v7280_v10 = vrot.slane %v7273_v29, %v17106_v49  ;;  %v7289_v44 = vcombine.low %v6766_v55, %v6765_v56 }
 0x7e2   : > { %7555 = vst.msk [vmem:[%s15447_s21 + $0xa8] sm:$0x3f] %vm7533_vm12, %v7272_v63 }
 0x7e3   : > { %v7288_v47 = vcombine.low %v7280_v10, %v7287_v19  ;;  %v7296_v48 = vrot.slane %v7289_v44, %v17106_v49  ;;  %v7303_v35 = vrot.slane %v6767_v42, %v17106_v49 }
 0x7e5   : > { %v7304_v6 = vcombine.low %v7296_v48, %v7303_v35  ;;  %7556 = vst.msk [vmem:[%s15447_s21 + $0xb0] sm:$0x3f] %vm7533_vm12, %v7288_v47 }
 0x7e7   : > { %7557 = vst.msk [vmem:[%s15447_s21 + $0xb8] sm:$0x3f] %vm7533_vm12, %v7304_v6 }
 0x7f2   : > { %v6391_v33 = vpop.f32.mrb[148].mxu0 }
 0x7f3   : > { %v6392_v52 = vadd.f32 %v15372_v62, %v6391_v33  ;;  %v7910_v1 = vpop.f32.mrb[149].mxu0 }
 0x7f5   : > { %v6768_v28 = vcombine.high %v6392_v52, %v6392_v52  ;;  %v6775_v32 = vrot.slane %v6392_v52, %v17106_v49 }
 0x7f7   : > { %v6782_v38 = vrot.slane %v6768_v28, %v17106_v49  ;;  %v6783_v36 = vcombine.high %v6775_v32, %v6775_v32 }
 0x7f9   : > { %v7305_v57 = vcombine.low %v6775_v32, %v6783_v36  ;;  %v7319_v30 = vrot.slane %v6782_v38, %v17106_v49  ;;  %v6784_v51 = vcombine.high %v6782_v38, %v6782_v38 }
 0x7fb   : > { %v7312_v23 = vrot.slane %v7305_v57, %v17106_v49 }
 0x7fd   : > { %v7320_v54 = vcombine.low %v7312_v23, %v7319_v30 }
 0x7ff   : > { %7558 = vst.msk [vmem:[%s15447_s21 + $0xc0] sm:$0x3f] %vm7533_vm12, %v7320_v54 }
 0x814   : > { %v6396_v3 = vpop.f32.mrb[150].mxu0 }
 0x815   : > { %v6397_v17 = vadd.f32 %v15372_v62, %v6396_v3  ;;  %v7913_v58 = vpop.f32.mrb[151].mxu0 }
 0x817   : > { %v6792_v22 = vrot.slane %v6397_v17, %v17106_v49  ;;  %v6785_v0 = vcombine.high %v6397_v17, %v6397_v17 }
 0x819   : > { %v6800_v40 = vcombine.high %v6792_v22, %v6792_v22  ;;  %v7321_v4 = vcombine.low %v6784_v51, %v6792_v22  ;;  %v6799_v16 = vrot.slane %v6785_v0, %v17106_v49 }
 0x81b   : > { %v7328_v61 = vrot.slane %v7321_v4, %v17106_v49  ;;  %v7335_v39 = vrot.slane %v6800_v40, %v17106_v49  ;;  %v6801_v14 = vcombine.high %v6799_v16, %v6799_v16 }
 0x81d   : > { %v7336_v8 = vcombine.low %v7328_v61, %v7335_v39  ;;  %v7337_v12 = vcombine.low %v6799_v16, %v6801_v14 }
 0x81f   : > { %7559 = vst.msk [vmem:[%s15447_s21 + $0xc8] sm:$0x3f] %vm7533_vm12, %v7336_v8  ;;  %v7344_v50 = vrot.slane %v7337_v12, %v17106_v49 }
 0x826   : > { %v6401_v7 = vpop.f32.mrb[152].mxu0 }
 0x827   : > { %v6402_v59 = vadd.f32 %v15372_v62, %v6401_v7  ;;  %v7916_v24 = vpop.f32.mrb[153].mxu0 }
 0x829   : > { %v6802_v34 = vcombine.high %v6402_v59, %v6402_v59  ;;  %v6809_v11 = vrot.slane %v6402_v59, %v17106_v49 }
 0x82a   : > { %v6406_v18 = vpop.f32.mrb[154].mxu0 }
 0x82b   : > { %v6816_v25 = vrot.slane %v6802_v34, %v17106_v49  ;;  %v6817_v13 = vcombine.high %v6809_v11, %v6809_v11  ;;  %v7351_v31 = vrot.slane %v6809_v11, %v17106_v49  ;;  %v6407_v37 = vadd.f32 %v15372_v62, %v6406_v18  ;;  %v7919_v53 = vpop.f32.mrb[155].mxu0 }
 0x82d   : > { %v6818_v15 = vcombine.high %v6816_v25, %v6816_v25  ;;  %v7352_v5 = vcombine.low %v7344_v50, %v7351_v31  ;;  %v7353_v46 = vcombine.low %v6817_v13, %v6816_v25  ;;  %v6819_v41 = vcombine.high %v6407_v37, %v6407_v37 }
 0x82e   : > { %v6826_v26 = vrot.slane %v6407_v37, %v17106_v49  ;;  %v6411_v27 = vpop.f32.mrb[156].mxu0 }
 0x82f   : > { %v7360_v9 = vrot.slane %v7353_v46, %v17106_v49  ;;  %v7367_v21 = vrot.slane %v6818_v15, %v17106_v49  ;;  %7560 = vst.msk [vmem:[%s15447_s21 + $0xd0] sm:$0x3f] %vm7533_vm12, %v7352_v5  ;;  %v6833_v20 = vrot.slane %v6819_v41, %v17106_v49  ;;  %v6412_v43 = vadd.f32 %v15372_v62, %v6411_v27  ;;  %v7922_v45 = vpop.f32.mrb[157].mxu0 }
 0x830   : > { %v6834_v60 = vcombine.high %v6826_v26, %v6826_v26 }
 0x831   : > { %v7368_v2 = vcombine.low %v7360_v9, %v7367_v21  ;;  %v6835_v29 = vcombine.high %v6833_v20, %v6833_v20  ;;  %v6836_v56 = vcombine.high %v6412_v43, %v6412_v43  ;;  %v6843_v63 = vrot.slane %v6412_v43, %v17106_v49 }
 0x832   : > { %v7369_v55 = vcombine.low %v6826_v26, %v6834_v60  ;;  %v6416_v42 = vpop.f32.mrb[158].mxu0  ;;  %v7383_v48 = vrot.slane %v6833_v20, %v17106_v49 }
 0x833   : > { %7561 = vst.msk [vmem:[%s15447_s21 + $0xd8] sm:$0x3f] %vm7533_vm12, %v7368_v2  ;;  %v6850_v10 = vrot.slane %v6836_v56, %v17106_v49  ;;  %v6417_v19 = vadd.f32 %v15372_v62, %v6416_v42  ;;  %v7925_v44 = vpop.f32.mrb[159].mxu0  ;;  %v6851_v35 = vcombine.high %v6843_v63, %v6843_v63  ;;  %v7385_v6 = vcombine.low %v6835_v29, %v6843_v63 }
 0x834   : > { %v7376_v47 = vrot.slane %v7369_v55, %v17106_v49 }
 0x835   : > { %v6852_v33 = vcombine.high %v6850_v10, %v6850_v10  ;;  %v6853_v52 = vcombine.high %v6417_v19, %v6417_v19  ;;  %v6860_v1 = vrot.slane %v6417_v19, %v17106_v49  ;;  %v7392_v32 = vrot.slane %v7385_v6, %v17106_v49 }
 0x836   : > { %v7384_v28 = vcombine.low %v7376_v47, %v7383_v48  ;;  %v7399_v38 = vrot.slane %v6851_v35, %v17106_v49  ;;  %v6421_v36 = vpop.f32.mrb[160].mxu0 }
 0x837   : > { %v7401_v57 = vcombine.low %v6850_v10, %v6852_v33  ;;  %v6867_v23 = vrot.slane %v6853_v52, %v17106_v49  ;;  %v6868_v30 = vcombine.high %v6860_v1, %v6860_v1  ;;  %v7928_v54 = vpop.f32.mrb[161].mxu0  ;;  %v6422_v17 = vadd.f32 %v15372_v62, %v6421_v36  ;;  %v9145_v62 = vld [vmem:[%s15806_s10] ss:$0 sm:$0xff] }
 0x838   : > { %7562 = vst.msk [vmem:[%s15447_s21 + $0xe0] sm:$0x3f] %vm7533_vm12, %v7384_v28  ;;  %v7400_v3 = vcombine.low %v7392_v32, %v7399_v38  ;;  %v7415_v22 = vrot.slane %v6860_v1, %v17106_v49 }
 0x839   : > { %v6869_v58 = vcombine.high %v6867_v23, %v6867_v23  ;;  %v7408_v51 = vrot.slane %v7401_v57, %v17106_v49  ;;  %v7417_v0 = vcombine.low %v6868_v30, %v6867_v23  ;;  %v6870_v40 = vcombine.high %v6422_v17, %v6422_v17 }
 0x83a   : > { %7563 = vst.msk [vmem:[%s15447_s21 + $0xe8] sm:$0x3f] %vm7533_vm12, %v7400_v3  ;;  %v6877_v4 = vrot.slane %v6422_v17, %v17106_v49  ;;  %v6426_v61 = vpop.f32.mrb[162].mxu0 }
 0x83b   : > { %v7416_v39 = vcombine.low %v7408_v51, %v7415_v22  ;;  %v7424_v16 = vrot.slane %v7417_v0, %v17106_v49  ;;  %v7431_v8 = vrot.slane %v6869_v58, %v17106_v49  ;;  %v6427_v14 = vadd.f32 %v9145_v62, %v6426_v61  ;;  %v7931_v12 = vpop.f32.mrb[163].mxu0 }
 0x83c   : > { %v6884_v7 = vrot.slane %v6870_v40, %v17106_v49  ;;  %v6885_v59 = vcombine.high %v6877_v4, %v6877_v4 }
 0x83d   : > { %v7432_v24 = vcombine.low %v7424_v16, %v7431_v8  ;;  %7564 = vst.msk [vmem:[%s15447_s21 + $0xf0] sm:$0x3f] %vm7533_vm12, %v7416_v39  ;;  %v6887_v34 = vcombine.high %v6427_v14, %v6427_v14  ;;  %v6894_v11 = vrot.slane %v6427_v14, %v17106_v49 }
 0x83e   : > { %v7433_v50 = vcombine.low %v6877_v4, %v6885_v59  ;;  %v6886_v18 = vcombine.high %v6884_v7, %v6884_v7  ;;  %v6431_v25 = vpop.f32.mrb[164].mxu0  ;;  %v7447_v5 = vrot.slane %v6884_v7, %v17106_v49 }
 0x83f   : > { %7565 = vst.msk [vmem:[%s15447_s21 + $0xf8] sm:$0x3f] %vm7533_vm12, %v7432_v24  ;;  %v6901_v13 = vrot.slane %v6887_v34, %v17106_v49  ;;  %v6902_v31 = vcombine.high %v6894_v11, %v6894_v11  ;;  %v6432_v37 = vadd.f32 %v9145_v62, %v6431_v25  ;;  %v7934_v53 = vpop.f32.mrb[165].mxu0 }
 0x840   : > { %v7440_v15 = vrot.slane %v7433_v50, %v17106_v49  ;;  %v7449_v46 = vcombine.low %v6886_v18, %v6894_v11 }
 0x841   : > { %v6903_v41 = vcombine.high %v6901_v13, %v6901_v13  ;;  %v7463_v26 = vrot.slane %v6902_v31, %v17106_v49  ;;  %v6904_v27 = vcombine.high %v6432_v37, %v6432_v37  ;;  %v6911_v9 = vrot.slane %v6432_v37, %v17106_v49 }
 0x842   : > { %v7448_v21 = vcombine.low %v7440_v15, %v7447_v5  ;;  %v7456_v20 = vrot.slane %v7449_v46, %v17106_v49 }
 0x843   : > { %v7465_v43 = vcombine.low %v6901_v13, %v6903_v41  ;;  %v6918_v45 = vrot.slane %v6904_v27, %v17106_v49  ;;  %v6919_v60 = vcombine.high %v6911_v9, %v6911_v9  ;;  %v7479_v55 = vrot.slane %v6911_v9, %v17106_v49 }
 0x844   : > { %7566 = vst.msk [vmem:[%s15447_s21 + $0x100] sm:$0x3f] %vm7533_vm12, %v7448_v21  ;;  %v7464_v2 = vcombine.low %v7456_v20, %v7463_v26 }
 0x845   : > { %v6920_v29 = vcombine.high %v6918_v45, %v6918_v45  ;;  %v7472_v56 = vrot.slane %v7465_v43, %v17106_v49  ;;  %v7481_v63 = vcombine.low %v6919_v60, %v6918_v45 }
 0x846   : > { %7567 = vst.msk [vmem:[%s15447_s21 + $0x108] sm:$0x3f] %vm7533_vm12, %v7464_v2 }
 0x847   : > { %v7480_v42 = vcombine.low %v7472_v56, %v7479_v55  ;;  %v7488_v10 = vrot.slane %v7481_v63, %v17106_v49  ;;  %v7495_v19 = vrot.slane %v6920_v29, %v17106_v49 }
 0x849   : > { %v7496_v44 = vcombine.low %v7488_v10, %v7495_v19  ;;  %7568 = vst.msk [vmem:[%s15447_s21 + $0x110] sm:$0x3f] %vm7533_vm12, %v7480_v42 }
 0x84b   : > { %7569 = vst.msk [vmem:[%s15447_s21 + $0x118] sm:$0x3f] %vm7533_vm12, %v7496_v44 }
 0x84c PF: > { %s21_s17 = sadd.s32 1, %s9152_s17  }
 0x84d   : > { %p18_p4 = scmp.ge.s32.totalorder %s21_s17, 4  }
 0x84f   :  { %20 = sbr.rel (!%p18_p4) target bundleno = 1 (0x1), region = 94 }

</bundles_post_ra>
